<compile_context>
chip_gen: v7x
topology: tpu7x:2x2x1
jax: 0.10.0
libtpu: 0.0.40
codegen_flags: <defaults>
</compile_context>

<pallas_src>
import functools
import math

import jax
import jax.numpy as jnp
from jax import lax
from jax.experimental import pallas as pl
from jax.experimental.pallas import tpu as pltpu

ROLL_MIN_LEN = 128   # layers with upsampled length >= this use the roll path


def _layer_plan(n_layers):
    """(L_in, scale, L_out) per layer, following Decoder.forward."""
    plan = []
    L = 1
    for i in range(n_layers):
        scale = 2 if i == 0 else 4
        plan.append((L, scale, L * scale))
        L *= scale
    return tuple(plan)


def _decoder_kernel(x_ref, *refs, plan, max_pad, n_taps, n_layers):
    """Fused Decoder forward for ONE batch element (batch = parallel grid axis):
    6x (nearest-upsample -> packed multi-res conv -> ELU); the last layer is
    identity-activated with the channel-sum folded into its weights."""
    w_refs = refs[:n_layers]                     # (n_taps, Ctot_i, Cin_i) bf16
    b_refs = refs[n_layers:2 * n_layers]         # (Ctot_i, 1)             f32
    m_refs = refs[2 * n_layers:3 * n_layers]     # upsample masks          bf16
    out_ref = refs[3 * n_layers]                 # (1, L_final)            f32

    act = x_ref[...]                             # (latent_dim, 1) f32
    for i, (L, scale, Lp) in enumerate(plan):
        act_b = act.astype(jnp.bfloat16)         # MXU operands in bf16
        acc = None

        if Lp >= ROLL_MIN_LEN:
            # Large layers: one exact 0/1 upsample selection matmul, then one
            # small conv matmul per tap; the tap shift is applied to the conv
            # OUTPUT with pltpu.roll (XLU) + a (1, Lp) edge mask.  Everything
            # stays lane-dense; no iota mask builds, no unaligned slices.
            x_up = jnp.dot(act_b, m_refs[i][...],            # (cin, Lp), exact
                           preferred_element_type=jnp.float32)
            x_up_b = x_up.astype(jnp.bfloat16)               # exact (selection)
            col = lax.broadcasted_iota(jnp.int32, (1, Lp), 1)
            for t in range(n_taps):
                s_t = max_pad - t                            # signed tap shift
                lo, hi = max(s_t, 0), Lp + min(s_t, 0)
                if lo >= hi:                                 # tap never in range
                    continue
                w_t = w_refs[i][t]                           # load at use (bf16)
                v = jnp.dot(w_t, x_up_b,
                            preferred_element_type=jnp.float32)
                if s_t % Lp:
                    v = pltpu.roll(v, shift=s_t % Lp, axis=1)
                if lo > 0 or hi < Lp:                        # zero wrapped edges
                    v = jnp.where((col >= lo) & (col < hi), v, 0.0)
                acc = v if acc is None else acc + v
        else:
            # Tiny layers (Lp <= 32): per-tap host-built 0/1 masks combine
            # upsample + tap shift + zero padding (no sub-128-lane rolls).
            for t in range(n_taps):
                s_t = max_pad - t
                lo, hi = max(s_t, 0), Lp + min(s_t, 0)
                if lo >= hi:
                    continue
                u_t = m_refs[i][t]                           # (L, Lp) bf16 0/1
                if L == 1:
                    x_t = act_b * u_t                        # (cin,1)*(1,Lp)
                else:
                    x_t = jnp.dot(act_b, u_t,
                                  preferred_element_type=jnp.float32
                                  ).astype(jnp.bfloat16)     # exact selection
                w_t = w_refs[i][t]
                v = jnp.dot(w_t, x_t, preferred_element_type=jnp.float32)
                acc = v if acc is None else acc + v

        acc = acc + b_refs[i][...]                           # bias, f32
        if i < n_layers - 1:                                 # ELU; last = id
            acc = jnp.where(acc > 0.0, acc,
                            jnp.exp(jnp.minimum(acc, 0.0)) - 1.0)
        act = acc

    out_ref[...] = act.astype(out_ref.dtype)                 # (1, L_final)


def _full_spec(a):
    shape = tuple(a.shape)
    return pl.BlockSpec(shape, lambda b, _s=shape: (0,) * len(_s))


def decoder_forward(x, packed_w, packed_b, up_masks, latent_dim, *, max_pad, n_taps):
    """x: (B, latent_dim) -> (B, 1, L_out) via one fused Pallas kernel with a
    batch-parallel grid (both TensorCores on v7x)."""
    n_layers = len(packed_w)
    plan = _layer_plan(n_layers)
    B = x.shape[0]
    L_out = plan[-1][2]
    x3 = x.reshape(B, latent_dim, 1).astype(jnp.float32)     # x.view(-1, D, 1)

    kernel = functools.partial(_decoder_kernel, plan=plan, max_pad=max_pad,
                               n_taps=n_taps, n_layers=n_layers)

    in_specs = ([pl.BlockSpec((None, latent_dim, 1), lambda b: (b, 0, 0))]
                + [_full_spec(w) for w in packed_w]
                + [_full_spec(bb) for bb in packed_b]
                + [_full_spec(m) for m in up_masks])
    out_spec = pl.BlockSpec((None, 1, L_out), lambda b: (b, 0, 0))

    return pl.pallas_call(
        kernel,
        grid=(B,),
        in_specs=in_specs,
        out_specs=out_spec,
        out_shape=jax.ShapeDtypeStruct((B, 1, L_out), jnp.float32),
        compiler_params=pltpu.CompilerParams(
            dimension_semantics=("parallel",)),   # megacore split on v7x
    )(x3, *packed_w, *packed_b, *up_masks)


def init_decoder_params(key, latent_dim, kernel_sizes, n_filters):
    """PyTorch-layout Conv1d params matching Decoder.__init__:
    per layer ([ (Cout, Cin, k) per kernel size ], [ (Cout,) biases ])."""
    nk = len(kernel_sizes)
    layer_io = ([(latent_dim, n_filters)]
                + [(n_filters * nk, n_filters)] * 4
                + [(n_filters * nk, 1)])
    params = []
    for cin, cout in layer_io:
        lw, lb = [], []
        for k in kernel_sizes:
            key, kw, kb = jax.random.split(key, 3)
            bound = 1.0 / math.sqrt(cin * k)      # PyTorch Conv1d default range
            lw.append(jax.random.uniform(kw, (cout, cin, k), jnp.float32,
                                         -bound, bound))
            lb.append(jax.random.uniform(kb, (cout,), jnp.float32,
                                         -bound, bound))
        params.append((lw, lb))
    return params


def pack_decoder_params(params, kernel_sizes):
    """Pack each MultiResolutionBlock's nk Conv1d's into one
    (n_taps, C_total, Cin) bf16 weight + (C_total, 1) f32 bias in torch.cat
    channel order (shorter kernels aligned to the max padding).  The final
    layer's channel-sum (identity activation) is folded into its weights."""
    max_pad = max(k // 2 for k in kernel_sizes)
    n_taps = max(max_pad - k // 2 + k for k in kernel_sizes)
    n_layers = len(params)
    packed_w, packed_b = [], []
    for i, (lw, lb) in enumerate(params):
        cout, cin = lw[0].shape[0], lw[0].shape[1]
        Wp = jnp.zeros((n_taps, cout * len(lw), cin), jnp.float32)
        Bp = jnp.zeros((cout * len(lw), 1), jnp.float32)
        for j, (w, b, k) in enumerate(zip(lw, lb, kernel_sizes)):
            off = max_pad - k // 2
            Wp = Wp.at[off:off + k, j * cout:(j + 1) * cout, :].set(
                jnp.transpose(w, (2, 0, 1)))
            Bp = Bp.at[j * cout:(j + 1) * cout, 0].set(b)
        if i == n_layers - 1:          # fold torch.sum(dim=1, keepdim=True)
            Wp = jnp.sum(Wp, axis=1, keepdims=True)
            Bp = jnp.sum(Bp, axis=0, keepdims=True)
        packed_w.append(Wp.astype(jnp.bfloat16))
        packed_b.append(Bp)
    return packed_w, packed_b, max_pad, n_taps


def build_upsample_masks(plan, max_pad, n_taps):
    """Host-precomputed exact 0/1 nearest-upsample selection operators (bf16).
    Large layers: one (L, Lp) column-selection mask (tap shift done in-kernel
    with pltpu.roll).  Tiny layers: (n_taps, L, Lp) masks that also fold in the
    tap shift and zero padding."""
    masks = []
    for (L, scale, Lp) in plan:
        c = jnp.arange(Lp)
        r = jnp.arange(L)[:, None]
        if Lp >= ROLL_MIN_LEN:
            m = (c[None, :] // scale == r).astype(jnp.bfloat16)       # (L, Lp)
        else:
            per_tap = []
            for t in range(n_taps):
                u = c - (max_pad - t)            # index into upsampled signal
                valid = (u >= 0) & (u < Lp)
                src = jnp.where(valid, u // scale, -1)
                per_tap.append(((src[None, :] == r) & valid[None, :])
                               .astype(jnp.bfloat16))
            m = jnp.stack(per_tap, axis=0)                            # (T, L, Lp)
        masks.append(m)
    return masks


def _reference_bf16_matched(x, packed_w, packed_b, latent_dim, *, max_pad, n_taps):
    """Pure-JAX mirror of the kernel's exact numerics (bf16 matmul operands,
    f32 accumulation/elementwise).  Tight-tolerance correctness oracle."""
    plan = _layer_plan(len(packed_w))
    B = x.shape[0]
    hi = jax.lax.Precision.HIGHEST
    h = x.reshape(B, latent_dim, 1).astype(jnp.float32)
    for i, (L, scale, Lp) in enumerate(plan):
        hb = h.astype(jnp.bfloat16).astype(jnp.float32)
        up = jnp.repeat(hb, scale, axis=2)
        padded = jnp.pad(up, ((0, 0), (0, 0), (max_pad, max_pad)))
        ctot = packed_w[i].shape[1]
        acc = jnp.zeros((B, ctot, Lp), jnp.float32)
        for t in range(n_taps):
            wt = packed_w[i][t].astype(jnp.float32)
            acc = acc + jnp.einsum('oc,bcl->bol', wt, padded[:, :, t:t + Lp],
                                   precision=hi)
        acc = acc + packed_b[i][None, :, :]
        if i < len(packed_w) - 1:
            acc = jnp.where(acc > 0.0, acc,
                            jnp.exp(jnp.minimum(acc, 0.0)) - 1.0)
        h = acc
    return h


def _reference_f32(x, params, latent_dim, kernel_sizes):
    """Full-f32 mirror of Decoder.forward with the original (unpacked) params."""
    B = x.shape[0]
    h = x.reshape(B, latent_dim, 1)
    hi = jax.lax.Precision.HIGHEST
    n_layers = len(params)
    for i, (lw, lb) in enumerate(params):
        scale = 2 if i == 0 else 4
        h = jnp.repeat(h, scale, axis=2)          # F.upsample(nearest)
        L = h.shape[2]
        outs = []
        for w, bvec, k in zip(lw, lb, kernel_sizes):
            pad = k // 2
            hp = jnp.pad(h, ((0, 0), (0, 0), (pad, pad)))
            y = jnp.zeros((B, w.shape[0], L), jnp.float32)
            for t in range(k):
                y = y + jnp.einsum('oi,bil->bol', w[:, :, t], hp[:, :, t:t + L],
                                   precision=hi)
            outs.append(y + bvec[None, :, None])
        h = jnp.concatenate(outs, axis=1)
        if i < n_layers - 1:
            h = jax.nn.elu(h)
    return jnp.sum(h, axis=1, keepdims=True)


if __name__ == "__main__":
    latent_dim = 8
    n_filters = 4
    kernel_sizes = (1, 3, 5)   # odd kernels -> 'same' length (padding = k // 2)

    key = jax.random.PRNGKey(0)
    kp, kx = jax.random.split(key)
    params = init_decoder_params(kp, latent_dim, kernel_sizes, n_filters)
    packed_w, packed_b, max_pad, n_taps = pack_decoder_params(params, kernel_sizes)
    plan = _layer_plan(len(packed_w))
    up_masks = build_upsample_masks(plan, max_pad, n_taps)

    x = jax.random.normal(kx, (2, latent_dim), jnp.float32)
    out = decoder_forward(x, packed_w, packed_b, up_masks, latent_dim,
                          max_pad=max_pad, n_taps=n_taps)
    out = jax.block_until_ready(out)

    # length trace: 1 ->(x2)2 ->(x4)8 ->32 ->128 ->512 ->2048
    assert out.shape == (2, 1, 2048), out.shape
    assert out.dtype == jnp.float32

    # (a) tight check vs a reference with identical bf16-operand numerics:
    #     catches any packing / tap-shift / upsample-mask bug.
    ref_t = jax.block_until_ready(_reference_bf16_matched(
        x, packed_w, packed_b, latent_dim, max_pad=max_pad, n_taps=n_taps))
    rel_t = float(jnp.linalg.norm(out - ref_t) / (jnp.linalg.norm(ref_t) + 1e-12))
    assert rel_t < 1e-3, f"bf16-matched reference mismatch: rel L2 = {rel_t}"

    # (b) loose check vs the original full-f32 module math (gap is dominated by
    #     the intentional bf16 matmul operands through 6 layers).
    ref_f = jax.block_until_ready(
        _reference_f32(x, params, latent_dim, kernel_sizes))
    rel_f = float(jnp.linalg.norm(out - ref_f) / (jnp.linalg.norm(ref_f) + 1e-12))
    assert rel_f < 1.5e-2, f"f32 reference mismatch: rel L2 = {rel_f}"

    print("KERNEL_OK")
</pallas_src>

<mosaic_0001>
module attributes {stable_mosaic.version = 11 : i64} {
  func.func @_decoder_kernel(%arg0: i32, %arg1: memref<1x8x1xf32, #tpu.memory_space<vmem>>, %arg2: memref<5x12x8xbf16, #tpu.memory_space<vmem>>, %arg3: memref<5x12x12xbf16, #tpu.memory_space<vmem>>, %arg4: memref<5x12x12xbf16, #tpu.memory_space<vmem>>, %arg5: memref<5x12x12xbf16, #tpu.memory_space<vmem>>, %arg6: memref<5x12x12xbf16, #tpu.memory_space<vmem>>, %arg7: memref<5x1x12xbf16, #tpu.memory_space<vmem>>, %arg8: memref<12x1xf32, #tpu.memory_space<vmem>>, %arg9: memref<12x1xf32, #tpu.memory_space<vmem>>, %arg10: memref<12x1xf32, #tpu.memory_space<vmem>>, %arg11: memref<12x1xf32, #tpu.memory_space<vmem>>, %arg12: memref<12x1xf32, #tpu.memory_space<vmem>>, %arg13: memref<1x1xf32, #tpu.memory_space<vmem>>, %arg14: memref<5x1x2xbf16, #tpu.memory_space<vmem>>, %arg15: memref<5x2x8xbf16, #tpu.memory_space<vmem>>, %arg16: memref<5x8x32xbf16, #tpu.memory_space<vmem>>, %arg17: memref<32x128xbf16, #tpu.memory_space<vmem>>, %arg18: memref<128x512xbf16, #tpu.memory_space<vmem>>, %arg19: memref<512x2048xbf16, #tpu.memory_space<vmem>>, %arg20: memref<1x1x2048xf32, #tpu.memory_space<vmem>>) attributes {dimension_semantics = [#tpu.dimension_semantics<parallel>], iteration_bounds = array<i64: 2>, scalar_prefetch = 0 : i64, scratch_operands = 0 : i64, tpu.core_type = #tpu.core_type<tc>, window_params = [{transform_indices = @transform_0, window_bounds = array<i64: 1, 8, 1>}, {pipeline_mode = #tpu.pipeline_mode<synchronous>, transform_indices = @transform_1, window_bounds = array<i64: 5, 12, 8>}, {pipeline_mode = #tpu.pipeline_mode<synchronous>, transform_indices = @transform_2, window_bounds = array<i64: 5, 12, 12>}, {pipeline_mode = #tpu.pipeline_mode<synchronous>, transform_indices = @transform_3, window_bounds = array<i64: 5, 12, 12>}, {pipeline_mode = #tpu.pipeline_mode<synchronous>, transform_indices = @transform_4, window_bounds = array<i64: 5, 12, 12>}, {pipeline_mode = #tpu.pipeline_mode<synchronous>, transform_indices = @transform_5, window_bounds = array<i64: 5, 12, 12>}, {pipeline_mode = #tpu.pipeline_mode<synchronous>, transform_indices = @transform_6, window_bounds = array<i64: 5, 1, 12>}, {pipeline_mode = #tpu.pipeline_mode<synchronous>, transform_indices = @transform_7, window_bounds = array<i64: 12, 1>}, {pipeline_mode = #tpu.pipeline_mode<synchronous>, transform_indices = @transform_8, window_bounds = array<i64: 12, 1>}, {pipeline_mode = #tpu.pipeline_mode<synchronous>, transform_indices = @transform_9, window_bounds = array<i64: 12, 1>}, {pipeline_mode = #tpu.pipeline_mode<synchronous>, transform_indices = @transform_10, window_bounds = array<i64: 12, 1>}, {pipeline_mode = #tpu.pipeline_mode<synchronous>, transform_indices = @transform_11, window_bounds = array<i64: 12, 1>}, {pipeline_mode = #tpu.pipeline_mode<synchronous>, transform_indices = @transform_12, window_bounds = array<i64: 1, 1>}, {pipeline_mode = #tpu.pipeline_mode<synchronous>, transform_indices = @transform_13, window_bounds = array<i64: 5, 1, 2>}, {pipeline_mode = #tpu.pipeline_mode<synchronous>, transform_indices = @transform_14, window_bounds = array<i64: 5, 2, 8>}, {pipeline_mode = #tpu.pipeline_mode<synchronous>, transform_indices = @transform_15, window_bounds = array<i64: 5, 8, 32>}, {pipeline_mode = #tpu.pipeline_mode<synchronous>, transform_indices = @transform_16, window_bounds = array<i64: 32, 128>}, {pipeline_mode = #tpu.pipeline_mode<synchronous>, transform_indices = @transform_17, window_bounds = array<i64: 128, 512>}, {pipeline_mode = #tpu.pipeline_mode<synchronous>, transform_indices = @transform_18, window_bounds = array<i64: 512, 2048>}, {transform_indices = @transform_19, window_bounds = array<i64: 1, 1, 2048>}]} {
    %c0 = arith.constant 0 : index
    %c0_0 = arith.constant 0 : index
    %c0_1 = arith.constant 0 : index
    %0 = vector.load %arg1[%c0, %c0_0, %c0_1] : memref<1x8x1xf32, #tpu.memory_space<vmem>>, vector<1x8x1xf32>
    %1 = vector.shape_cast %0 : vector<1x8x1xf32> to vector<8x1xf32>
    %2 = arith.truncf %1 : vector<8x1xf32> to vector<8x1xbf16>
    %c1 = arith.constant 1 : index
    %c0_2 = arith.constant 0 : index
    %c0_3 = arith.constant 0 : index
    %3 = vector.load %arg14[%c1, %c0_2, %c0_3] : memref<5x1x2xbf16, #tpu.memory_space<vmem>>, vector<1x1x2xbf16>
    %4 = vector.shape_cast %3 : vector<1x1x2xbf16> to vector<1x2xbf16>
    %5 = vector.broadcast %2 : vector<8x1xbf16> to vector<8x2xbf16>
    %6 = vector.broadcast %4 : vector<1x2xbf16> to vector<8x2xbf16>
    %7 = arith.mulf %5, %6 : vector<8x2xbf16>
    %c1_4 = arith.constant 1 : index
    %c0_5 = arith.constant 0 : index
    %c0_6 = arith.constant 0 : index
    %8 = vector.load %arg2[%c1_4, %c0_5, %c0_6] : memref<5x12x8xbf16, #tpu.memory_space<vmem>>, vector<1x12x8xbf16>
    %9 = vector.shape_cast %8 : vector<1x12x8xbf16> to vector<12x8xbf16>
    %cst = arith.constant dense<0.000000e+00> : vector<12x2xf32>
    %10 = tpu.matmul %9, %7, %cst {dimension_numbers = #tpu.dot_dimension_numbers<[1], [0], [0], [1], [0, 0, 1, 1], [], []>} : vector<12x8xbf16>, vector<8x2xbf16>, vector<12x2xf32> -> vector<12x2xf32>
    %c2 = arith.constant 2 : index
    %c0_7 = arith.constant 0 : index
    %c0_8 = arith.constant 0 : index
    %11 = vector.load %arg14[%c2, %c0_7, %c0_8] : memref<5x1x2xbf16, #tpu.memory_space<vmem>>, vector<1x1x2xbf16>
    %12 = vector.shape_cast %11 : vector<1x1x2xbf16> to vector<1x2xbf16>
    %13 = vector.broadcast %2 : vector<8x1xbf16> to vector<8x2xbf16>
    %14 = vector.broadcast %12 : vector<1x2xbf16> to vector<8x2xbf16>
    %15 = arith.mulf %13, %14 : vector<8x2xbf16>
    %c2_9 = arith.constant 2 : index
    %c0_10 = arith.constant 0 : index
    %c0_11 = arith.constant 0 : index
    %16 = vector.load %arg2[%c2_9, %c0_10, %c0_11] : memref<5x12x8xbf16, #tpu.memory_space<vmem>>, vector<1x12x8xbf16>
    %17 = vector.shape_cast %16 : vector<1x12x8xbf16> to vector<12x8xbf16>
    %cst_12 = arith.constant dense<0.000000e+00> : vector<12x2xf32>
    %18 = tpu.matmul %17, %15, %cst_12 {dimension_numbers = #tpu.dot_dimension_numbers<[1], [0], [0], [1], [0, 0, 1, 1], [], []>} : vector<12x8xbf16>, vector<8x2xbf16>, vector<12x2xf32> -> vector<12x2xf32>
    %19 = arith.addf %10, %18 : vector<12x2xf32>
    %c3 = arith.constant 3 : index
    %c0_13 = arith.constant 0 : index
    %c0_14 = arith.constant 0 : index
    %20 = vector.load %arg14[%c3, %c0_13, %c0_14] : memref<5x1x2xbf16, #tpu.memory_space<vmem>>, vector<1x1x2xbf16>
    %21 = vector.shape_cast %20 : vector<1x1x2xbf16> to vector<1x2xbf16>
    %22 = vector.broadcast %2 : vector<8x1xbf16> to vector<8x2xbf16>
    %23 = vector.broadcast %21 : vector<1x2xbf16> to vector<8x2xbf16>
    %24 = arith.mulf %22, %23 : vector<8x2xbf16>
    %c3_15 = arith.constant 3 : index
    %c0_16 = arith.constant 0 : index
    %c0_17 = arith.constant 0 : index
    %25 = vector.load %arg2[%c3_15, %c0_16, %c0_17] : memref<5x12x8xbf16, #tpu.memory_space<vmem>>, vector<1x12x8xbf16>
    %26 = vector.shape_cast %25 : vector<1x12x8xbf16> to vector<12x8xbf16>
    %cst_18 = arith.constant dense<0.000000e+00> : vector<12x2xf32>
    %27 = tpu.matmul %26, %24, %cst_18 {dimension_numbers = #tpu.dot_dimension_numbers<[1], [0], [0], [1], [0, 0, 1, 1], [], []>} : vector<12x8xbf16>, vector<8x2xbf16>, vector<12x2xf32> -> vector<12x2xf32>
    %28 = arith.addf %19, %27 : vector<12x2xf32>
    %c0_19 = arith.constant 0 : index
    %c0_20 = arith.constant 0 : index
    %29 = vector.load %arg8[%c0_19, %c0_20] : memref<12x1xf32, #tpu.memory_space<vmem>>, vector<12x1xf32>
    %30 = vector.broadcast %29 : vector<12x1xf32> to vector<12x2xf32>
    %31 = arith.addf %28, %30 : vector<12x2xf32>
    %cst_21 = arith.constant 0.000000e+00 : f32
    %32 = vector.broadcast %cst_21 : f32 to vector<12x2xf32>
    %33 = arith.cmpf ogt, %31, %32 : vector<12x2xf32>
    %cst_22 = arith.constant 0.000000e+00 : f32
    %34 = vector.broadcast %cst_22 : f32 to vector<12x2xf32>
    %35 = arith.minimumf %31, %34 : vector<12x2xf32>
    %36 = math.exp %35 : vector<12x2xf32>
    %cst_23 = arith.constant 1.000000e+00 : f32
    %37 = vector.broadcast %cst_23 : f32 to vector<12x2xf32>
    %38 = arith.subf %36, %37 : vector<12x2xf32>
    %39 = arith.select %33, %31, %38 : vector<12x2xi1>, vector<12x2xf32>
    %40 = arith.truncf %39 : vector<12x2xf32> to vector<12x2xbf16>
    %c0_24 = arith.constant 0 : index
    %c0_25 = arith.constant 0 : index
    %c0_26 = arith.constant 0 : index
    %41 = vector.load %arg15[%c0_24, %c0_25, %c0_26] : memref<5x2x8xbf16, #tpu.memory_space<vmem>>, vector<1x2x8xbf16>
    %42 = vector.shape_cast %41 : vector<1x2x8xbf16> to vector<2x8xbf16>
    %cst_27 = arith.constant dense<0.000000e+00> : vector<12x8xf32>
    %43 = tpu.matmul %40, %42, %cst_27 {dimension_numbers = #tpu.dot_dimension_numbers<[1], [0], [0], [1], [0, 0, 1, 1], [], []>} : vector<12x2xbf16>, vector<2x8xbf16>, vector<12x8xf32> -> vector<12x8xf32>
    %44 = arith.truncf %43 : vector<12x8xf32> to vector<12x8xbf16>
    %c0_28 = arith.constant 0 : index
    %c0_29 = arith.constant 0 : index
    %c0_30 = arith.constant 0 : index
    %45 = vector.load %arg3[%c0_28, %c0_29, %c0_30] : memref<5x12x12xbf16, #tpu.memory_space<vmem>>, vector<1x12x12xbf16>
    %46 = vector.shape_cast %45 : vector<1x12x12xbf16> to vector<12x12xbf16>
    %cst_31 = arith.constant dense<0.000000e+00> : vector<12x8xf32>
    %47 = tpu.matmul %46, %44, %cst_31 {dimension_numbers = #tpu.dot_dimension_numbers<[1], [0], [0], [1], [0, 0, 1, 1], [], []>} : vector<12x12xbf16>, vector<12x8xbf16>, vector<12x8xf32> -> vector<12x8xf32>
    %c1_32 = arith.constant 1 : index
    %c0_33 = arith.constant 0 : index
    %c0_34 = arith.constant 0 : index
    %48 = vector.load %arg15[%c1_32, %c0_33, %c0_34] : memref<5x2x8xbf16, #tpu.memory_space<vmem>>, vector<1x2x8xbf16>
    %49 = vector.shape_cast %48 : vector<1x2x8xbf16> to vector<2x8xbf16>
    %cst_35 = arith.constant dense<0.000000e+00> : vector<12x8xf32>
    %50 = tpu.matmul %40, %49, %cst_35 {dimension_numbers = #tpu.dot_dimension_numbers<[1], [0], [0], [1], [0, 0, 1, 1], [], []>} : vector<12x2xbf16>, vector<2x8xbf16>, vector<12x8xf32> -> vector<12x8xf32>
    %51 = arith.truncf %50 : vector<12x8xf32> to vector<12x8xbf16>
    %c1_36 = arith.constant 1 : index
    %c0_37 = arith.constant 0 : index
    %c0_38 = arith.constant 0 : index
    %52 = vector.load %arg3[%c1_36, %c0_37, %c0_38] : memref<5x12x12xbf16, #tpu.memory_space<vmem>>, vector<1x12x12xbf16>
    %53 = vector.shape_cast %52 : vector<1x12x12xbf16> to vector<12x12xbf16>
    %cst_39 = arith.constant dense<0.000000e+00> : vector<12x8xf32>
    %54 = tpu.matmul %53, %51, %cst_39 {dimension_numbers = #tpu.dot_dimension_numbers<[1], [0], [0], [1], [0, 0, 1, 1], [], []>} : vector<12x12xbf16>, vector<12x8xbf16>, vector<12x8xf32> -> vector<12x8xf32>
    %55 = arith.addf %47, %54 : vector<12x8xf32>
    %c2_40 = arith.constant 2 : index
    %c0_41 = arith.constant 0 : index
    %c0_42 = arith.constant 0 : index
    %56 = vector.load %arg15[%c2_40, %c0_41, %c0_42] : memref<5x2x8xbf16, #tpu.memory_space<vmem>>, vector<1x2x8xbf16>
    %57 = vector.shape_cast %56 : vector<1x2x8xbf16> to vector<2x8xbf16>
    %cst_43 = arith.constant dense<0.000000e+00> : vector<12x8xf32>
    %58 = tpu.matmul %40, %57, %cst_43 {dimension_numbers = #tpu.dot_dimension_numbers<[1], [0], [0], [1], [0, 0, 1, 1], [], []>} : vector<12x2xbf16>, vector<2x8xbf16>, vector<12x8xf32> -> vector<12x8xf32>
    %59 = arith.truncf %58 : vector<12x8xf32> to vector<12x8xbf16>
    %c2_44 = arith.constant 2 : index
    %c0_45 = arith.constant 0 : index
    %c0_46 = arith.constant 0 : index
    %60 = vector.load %arg3[%c2_44, %c0_45, %c0_46] : memref<5x12x12xbf16, #tpu.memory_space<vmem>>, vector<1x12x12xbf16>
    %61 = vector.shape_cast %60 : vector<1x12x12xbf16> to vector<12x12xbf16>
    %cst_47 = arith.constant dense<0.000000e+00> : vector<12x8xf32>
    %62 = tpu.matmul %61, %59, %cst_47 {dimension_numbers = #tpu.dot_dimension_numbers<[1], [0], [0], [1], [0, 0, 1, 1], [], []>} : vector<12x12xbf16>, vector<12x8xbf16>, vector<12x8xf32> -> vector<12x8xf32>
    %63 = arith.addf %55, %62 : vector<12x8xf32>
    %c3_48 = arith.constant 3 : index
    %c0_49 = arith.constant 0 : index
    %c0_50 = arith.constant 0 : index
    %64 = vector.load %arg15[%c3_48, %c0_49, %c0_50] : memref<5x2x8xbf16, #tpu.memory_space<vmem>>, vector<1x2x8xbf16>
    %65 = vector.shape_cast %64 : vector<1x2x8xbf16> to vector<2x8xbf16>
    %cst_51 = arith.constant dense<0.000000e+00> : vector<12x8xf32>
    %66 = tpu.matmul %40, %65, %cst_51 {dimension_numbers = #tpu.dot_dimension_numbers<[1], [0], [0], [1], [0, 0, 1, 1], [], []>} : vector<12x2xbf16>, vector<2x8xbf16>, vector<12x8xf32> -> vector<12x8xf32>
    %67 = arith.truncf %66 : vector<12x8xf32> to vector<12x8xbf16>
    %c3_52 = arith.constant 3 : index
    %c0_53 = arith.constant 0 : index
    %c0_54 = arith.constant 0 : index
    %68 = vector.load %arg3[%c3_52, %c0_53, %c0_54] : memref<5x12x12xbf16, #tpu.memory_space<vmem>>, vector<1x12x12xbf16>
    %69 = vector.shape_cast %68 : vector<1x12x12xbf16> to vector<12x12xbf16>
    %cst_55 = arith.constant dense<0.000000e+00> : vector<12x8xf32>
    %70 = tpu.matmul %69, %67, %cst_55 {dimension_numbers = #tpu.dot_dimension_numbers<[1], [0], [0], [1], [0, 0, 1, 1], [], []>} : vector<12x12xbf16>, vector<12x8xbf16>, vector<12x8xf32> -> vector<12x8xf32>
    %71 = arith.addf %63, %70 : vector<12x8xf32>
    %c4 = arith.constant 4 : index
    %c0_56 = arith.constant 0 : index
    %c0_57 = arith.constant 0 : index
    %72 = vector.load %arg15[%c4, %c0_56, %c0_57] : memref<5x2x8xbf16, #tpu.memory_space<vmem>>, vector<1x2x8xbf16>
    %73 = vector.shape_cast %72 : vector<1x2x8xbf16> to vector<2x8xbf16>
    %cst_58 = arith.constant dense<0.000000e+00> : vector<12x8xf32>
    %74 = tpu.matmul %40, %73, %cst_58 {dimension_numbers = #tpu.dot_dimension_numbers<[1], [0], [0], [1], [0, 0, 1, 1], [], []>} : vector<12x2xbf16>, vector<2x8xbf16>, vector<12x8xf32> -> vector<12x8xf32>
    %75 = arith.truncf %74 : vector<12x8xf32> to vector<12x8xbf16>
    %c4_59 = arith.constant 4 : index
    %c0_60 = arith.constant 0 : index
    %c0_61 = arith.constant 0 : index
    %76 = vector.load %arg3[%c4_59, %c0_60, %c0_61] : memref<5x12x12xbf16, #tpu.memory_space<vmem>>, vector<1x12x12xbf16>
    %77 = vector.shape_cast %76 : vector<1x12x12xbf16> to vector<12x12xbf16>
    %cst_62 = arith.constant dense<0.000000e+00> : vector<12x8xf32>
    %78 = tpu.matmul %77, %75, %cst_62 {dimension_numbers = #tpu.dot_dimension_numbers<[1], [0], [0], [1], [0, 0, 1, 1], [], []>} : vector<12x12xbf16>, vector<12x8xbf16>, vector<12x8xf32> -> vector<12x8xf32>
    %79 = arith.addf %71, %78 : vector<12x8xf32>
    %c0_63 = arith.constant 0 : index
    %c0_64 = arith.constant 0 : index
    %80 = vector.load %arg9[%c0_63, %c0_64] : memref<12x1xf32, #tpu.memory_space<vmem>>, vector<12x1xf32>
    %81 = vector.broadcast %80 : vector<12x1xf32> to vector<12x8xf32>
    %82 = arith.addf %79, %81 : vector<12x8xf32>
    %cst_65 = arith.constant 0.000000e+00 : f32
    %83 = vector.broadcast %cst_65 : f32 to vector<12x8xf32>
    %84 = arith.cmpf ogt, %82, %83 : vector<12x8xf32>
    %cst_66 = arith.constant 0.000000e+00 : f32
    %85 = vector.broadcast %cst_66 : f32 to vector<12x8xf32>
    %86 = arith.minimumf %82, %85 : vector<12x8xf32>
    %87 = math.exp %86 : vector<12x8xf32>
    %cst_67 = arith.constant 1.000000e+00 : f32
    %88 = vector.broadcast %cst_67 : f32 to vector<12x8xf32>
    %89 = arith.subf %87, %88 : vector<12x8xf32>
    %90 = arith.select %84, %82, %89 : vector<12x8xi1>, vector<12x8xf32>
    %91 = arith.truncf %90 : vector<12x8xf32> to vector<12x8xbf16>
    %c0_68 = arith.constant 0 : index
    %c0_69 = arith.constant 0 : index
    %c0_70 = arith.constant 0 : index
    %92 = vector.load %arg16[%c0_68, %c0_69, %c0_70] : memref<5x8x32xbf16, #tpu.memory_space<vmem>>, vector<1x8x32xbf16>
    %93 = vector.shape_cast %92 : vector<1x8x32xbf16> to vector<8x32xbf16>
    %cst_71 = arith.constant dense<0.000000e+00> : vector<12x32xf32>
    %94 = tpu.matmul %91, %93, %cst_71 {dimension_numbers = #tpu.dot_dimension_numbers<[1], [0], [0], [1], [0, 0, 1, 1], [], []>} : vector<12x8xbf16>, vector<8x32xbf16>, vector<12x32xf32> -> vector<12x32xf32>
    %95 = arith.truncf %94 : vector<12x32xf32> to vector<12x32xbf16>
    %c0_72 = arith.constant 0 : index
    %c0_73 = arith.constant 0 : index
    %c0_74 = arith.constant 0 : index
    %96 = vector.load %arg4[%c0_72, %c0_73, %c0_74] : memref<5x12x12xbf16, #tpu.memory_space<vmem>>, vector<1x12x12xbf16>
    %97 = vector.shape_cast %96 : vector<1x12x12xbf16> to vector<12x12xbf16>
    %cst_75 = arith.constant dense<0.000000e+00> : vector<12x32xf32>
    %98 = tpu.matmul %97, %95, %cst_75 {dimension_numbers = #tpu.dot_dimension_numbers<[1], [0], [0], [1], [0, 0, 1, 1], [], []>} : vector<12x12xbf16>, vector<12x32xbf16>, vector<12x32xf32> -> vector<12x32xf32>
    %c1_76 = arith.constant 1 : index
    %c0_77 = arith.constant 0 : index
    %c0_78 = arith.constant 0 : index
    %99 = vector.load %arg16[%c1_76, %c0_77, %c0_78] : memref<5x8x32xbf16, #tpu.memory_space<vmem>>, vector<1x8x32xbf16>
    %100 = vector.shape_cast %99 : vector<1x8x32xbf16> to vector<8x32xbf16>
    %cst_79 = arith.constant dense<0.000000e+00> : vector<12x32xf32>
    %101 = tpu.matmul %91, %100, %cst_79 {dimension_numbers = #tpu.dot_dimension_numbers<[1], [0], [0], [1], [0, 0, 1, 1], [], []>} : vector<12x8xbf16>, vector<8x32xbf16>, vector<12x32xf32> -> vector<12x32xf32>
    %102 = arith.truncf %101 : vector<12x32xf32> to vector<12x32xbf16>
    %c1_80 = arith.constant 1 : index
    %c0_81 = arith.constant 0 : index
    %c0_82 = arith.constant 0 : index
    %103 = vector.load %arg4[%c1_80, %c0_81, %c0_82] : memref<5x12x12xbf16, #tpu.memory_space<vmem>>, vector<1x12x12xbf16>
    %104 = vector.shape_cast %103 : vector<1x12x12xbf16> to vector<12x12xbf16>
    %cst_83 = arith.constant dense<0.000000e+00> : vector<12x32xf32>
    %105 = tpu.matmul %104, %102, %cst_83 {dimension_numbers = #tpu.dot_dimension_numbers<[1], [0], [0], [1], [0, 0, 1, 1], [], []>} : vector<12x12xbf16>, vector<12x32xbf16>, vector<12x32xf32> -> vector<12x32xf32>
    %106 = arith.addf %98, %105 : vector<12x32xf32>
    %c2_84 = arith.constant 2 : index
    %c0_85 = arith.constant 0 : index
    %c0_86 = arith.constant 0 : index
    %107 = vector.load %arg16[%c2_84, %c0_85, %c0_86] : memref<5x8x32xbf16, #tpu.memory_space<vmem>>, vector<1x8x32xbf16>
    %108 = vector.shape_cast %107 : vector<1x8x32xbf16> to vector<8x32xbf16>
    %cst_87 = arith.constant dense<0.000000e+00> : vector<12x32xf32>
    %109 = tpu.matmul %91, %108, %cst_87 {dimension_numbers = #tpu.dot_dimension_numbers<[1], [0], [0], [1], [0, 0, 1, 1], [], []>} : vector<12x8xbf16>, vector<8x32xbf16>, vector<12x32xf32> -> vector<12x32xf32>
    %110 = arith.truncf %109 : vector<12x32xf32> to vector<12x32xbf16>
    %c2_88 = arith.constant 2 : index
    %c0_89 = arith.constant 0 : index
    %c0_90 = arith.constant 0 : index
    %111 = vector.load %arg4[%c2_88, %c0_89, %c0_90] : memref<5x12x12xbf16, #tpu.memory_space<vmem>>, vector<1x12x12xbf16>
    %112 = vector.shape_cast %111 : vector<1x12x12xbf16> to vector<12x12xbf16>
    %cst_91 = arith.constant dense<0.000000e+00> : vector<12x32xf32>
    %113 = tpu.matmul %112, %110, %cst_91 {dimension_numbers = #tpu.dot_dimension_numbers<[1], [0], [0], [1], [0, 0, 1, 1], [], []>} : vector<12x12xbf16>, vector<12x32xbf16>, vector<12x32xf32> -> vector<12x32xf32>
    %114 = arith.addf %106, %113 : vector<12x32xf32>
    %c3_92 = arith.constant 3 : index
    %c0_93 = arith.constant 0 : index
    %c0_94 = arith.constant 0 : index
    %115 = vector.load %arg16[%c3_92, %c0_93, %c0_94] : memref<5x8x32xbf16, #tpu.memory_space<vmem>>, vector<1x8x32xbf16>
    %116 = vector.shape_cast %115 : vector<1x8x32xbf16> to vector<8x32xbf16>
    %cst_95 = arith.constant dense<0.000000e+00> : vector<12x32xf32>
    %117 = tpu.matmul %91, %116, %cst_95 {dimension_numbers = #tpu.dot_dimension_numbers<[1], [0], [0], [1], [0, 0, 1, 1], [], []>} : vector<12x8xbf16>, vector<8x32xbf16>, vector<12x32xf32> -> vector<12x32xf32>
    %118 = arith.truncf %117 : vector<12x32xf32> to vector<12x32xbf16>
    %c3_96 = arith.constant 3 : index
    %c0_97 = arith.constant 0 : index
    %c0_98 = arith.constant 0 : index
    %119 = vector.load %arg4[%c3_96, %c0_97, %c0_98] : memref<5x12x12xbf16, #tpu.memory_space<vmem>>, vector<1x12x12xbf16>
    %120 = vector.shape_cast %119 : vector<1x12x12xbf16> to vector<12x12xbf16>
    %cst_99 = arith.constant dense<0.000000e+00> : vector<12x32xf32>
    %121 = tpu.matmul %120, %118, %cst_99 {dimension_numbers = #tpu.dot_dimension_numbers<[1], [0], [0], [1], [0, 0, 1, 1], [], []>} : vector<12x12xbf16>, vector<12x32xbf16>, vector<12x32xf32> -> vector<12x32xf32>
    %122 = arith.addf %114, %121 : vector<12x32xf32>
    %c4_100 = arith.constant 4 : index
    %c0_101 = arith.constant 0 : index
    %c0_102 = arith.constant 0 : index
    %123 = vector.load %arg16[%c4_100, %c0_101, %c0_102] : memref<5x8x32xbf16, #tpu.memory_space<vmem>>, vector<1x8x32xbf16>
    %124 = vector.shape_cast %123 : vector<1x8x32xbf16> to vector<8x32xbf16>
    %cst_103 = arith.constant dense<0.000000e+00> : vector<12x32xf32>
    %125 = tpu.matmul %91, %124, %cst_103 {dimension_numbers = #tpu.dot_dimension_numbers<[1], [0], [0], [1], [0, 0, 1, 1], [], []>} : vector<12x8xbf16>, vector<8x32xbf16>, vector<12x32xf32> -> vector<12x32xf32>
    %126 = arith.truncf %125 : vector<12x32xf32> to vector<12x32xbf16>
    %c4_104 = arith.constant 4 : index
    %c0_105 = arith.constant 0 : index
    %c0_106 = arith.constant 0 : index
    %127 = vector.load %arg4[%c4_104, %c0_105, %c0_106] : memref<5x12x12xbf16, #tpu.memory_space<vmem>>, vector<1x12x12xbf16>
    %128 = vector.shape_cast %127 : vector<1x12x12xbf16> to vector<12x12xbf16>
    %cst_107 = arith.constant dense<0.000000e+00> : vector<12x32xf32>
    %129 = tpu.matmul %128, %126, %cst_107 {dimension_numbers = #tpu.dot_dimension_numbers<[1], [0], [0], [1], [0, 0, 1, 1], [], []>} : vector<12x12xbf16>, vector<12x32xbf16>, vector<12x32xf32> -> vector<12x32xf32>
    %130 = arith.addf %122, %129 : vector<12x32xf32>
    %c0_108 = arith.constant 0 : index
    %c0_109 = arith.constant 0 : index
    %131 = vector.load %arg10[%c0_108, %c0_109] : memref<12x1xf32, #tpu.memory_space<vmem>>, vector<12x1xf32>
    %132 = vector.broadcast %131 : vector<12x1xf32> to vector<12x32xf32>
    %133 = arith.addf %130, %132 : vector<12x32xf32>
    %cst_110 = arith.constant 0.000000e+00 : f32
    %134 = vector.broadcast %cst_110 : f32 to vector<12x32xf32>
    %135 = arith.cmpf ogt, %133, %134 : vector<12x32xf32>
    %cst_111 = arith.constant 0.000000e+00 : f32
    %136 = vector.broadcast %cst_111 : f32 to vector<12x32xf32>
    %137 = arith.minimumf %133, %136 : vector<12x32xf32>
    %138 = math.exp %137 : vector<12x32xf32>
    %cst_112 = arith.constant 1.000000e+00 : f32
    %139 = vector.broadcast %cst_112 : f32 to vector<12x32xf32>
    %140 = arith.subf %138, %139 : vector<12x32xf32>
    %141 = arith.select %135, %133, %140 : vector<12x32xi1>, vector<12x32xf32>
    %142 = arith.truncf %141 : vector<12x32xf32> to vector<12x32xbf16>
    %c0_113 = arith.constant 0 : index
    %c0_114 = arith.constant 0 : index
    %143 = vector.load %arg17[%c0_113, %c0_114] : memref<32x128xbf16, #tpu.memory_space<vmem>>, vector<32x128xbf16>
    %cst_115 = arith.constant dense<0.000000e+00> : vector<12x128xf32>
    %144 = tpu.matmul %142, %143, %cst_115 {dimension_numbers = #tpu.dot_dimension_numbers<[1], [0], [0], [1], [0, 0, 1, 1], [], []>} : vector<12x32xbf16>, vector<32x128xbf16>, vector<12x128xf32> -> vector<12x128xf32>
    %145 = arith.truncf %144 : vector<12x128xf32> to vector<12x128xbf16>
    %146 = tpu.iota {dimensions = array<i32: 1>} : vector<1x128xi32>
    %c0_116 = arith.constant 0 : index
    %c0_117 = arith.constant 0 : index
    %c0_118 = arith.constant 0 : index
    %147 = vector.load %arg5[%c0_116, %c0_117, %c0_118] : memref<5x12x12xbf16, #tpu.memory_space<vmem>>, vector<1x12x12xbf16>
    %148 = vector.shape_cast %147 : vector<1x12x12xbf16> to vector<12x12xbf16>
    %cst_119 = arith.constant dense<0.000000e+00> : vector<12x128xf32>
    %149 = tpu.matmul %148, %145, %cst_119 {dimension_numbers = #tpu.dot_dimension_numbers<[1], [0], [0], [1], [0, 0, 1, 1], [], []>} : vector<12x12xbf16>, vector<12x128xbf16>, vector<12x128xf32> -> vector<12x128xf32>
    %c2_i32 = arith.constant 2 : i32
    %150 = tpu.dynamic_rotate %149 by %c2_i32 dim 1 : vector<12x128xf32>, i32 -> vector<12x128xf32>
    %c2_i32_120 = arith.constant 2 : i32
    %151 = vector.broadcast %c2_i32_120 : i32 to vector<1x128xi32>
    %152 = arith.cmpi sge, %146, %151 : vector<1x128xi32>
    %c128_i32 = arith.constant 128 : i32
    %153 = vector.broadcast %c128_i32 : i32 to vector<1x128xi32>
    %154 = arith.cmpi slt, %146, %153 : vector<1x128xi32>
    %155 = arith.andi %152, %154 : vector<1x128xi1>
    %cst_121 = arith.constant 0.000000e+00 : f32
    %156 = vector.shape_cast %155 : vector<1x128xi1> to vector<1x128xi1>
    %157 = vector.broadcast %156 : vector<1x128xi1> to vector<12x128xi1>
    %158 = vector.broadcast %cst_121 : f32 to vector<12x128xf32>
    %159 = arith.select %157, %150, %158 : vector<12x128xi1>, vector<12x128xf32>
    %c1_122 = arith.constant 1 : index
    %c0_123 = arith.constant 0 : index
    %c0_124 = arith.constant 0 : index
    %160 = vector.load %arg5[%c1_122, %c0_123, %c0_124] : memref<5x12x12xbf16, #tpu.memory_space<vmem>>, vector<1x12x12xbf16>
    %161 = vector.shape_cast %160 : vector<1x12x12xbf16> to vector<12x12xbf16>
    %cst_125 = arith.constant dense<0.000000e+00> : vector<12x128xf32>
    %162 = tpu.matmul %161, %145, %cst_125 {dimension_numbers = #tpu.dot_dimension_numbers<[1], [0], [0], [1], [0, 0, 1, 1], [], []>} : vector<12x12xbf16>, vector<12x128xbf16>, vector<12x128xf32> -> vector<12x128xf32>
    %c1_i32 = arith.constant 1 : i32
    %163 = tpu.dynamic_rotate %162 by %c1_i32 dim 1 : vector<12x128xf32>, i32 -> vector<12x128xf32>
    %c1_i32_126 = arith.constant 1 : i32
    %164 = vector.broadcast %c1_i32_126 : i32 to vector<1x128xi32>
    %165 = arith.cmpi sge, %146, %164 : vector<1x128xi32>
    %c128_i32_127 = arith.constant 128 : i32
    %166 = vector.broadcast %c128_i32_127 : i32 to vector<1x128xi32>
    %167 = arith.cmpi slt, %146, %166 : vector<1x128xi32>
    %168 = arith.andi %165, %167 : vector<1x128xi1>
    %cst_128 = arith.constant 0.000000e+00 : f32
    %169 = vector.shape_cast %168 : vector<1x128xi1> to vector<1x128xi1>
    %170 = vector.broadcast %169 : vector<1x128xi1> to vector<12x128xi1>
    %171 = vector.broadcast %cst_128 : f32 to vector<12x128xf32>
    %172 = arith.select %170, %163, %171 : vector<12x128xi1>, vector<12x128xf32>
    %173 = arith.addf %159, %172 : vector<12x128xf32>
    %c2_129 = arith.constant 2 : index
    %c0_130 = arith.constant 0 : index
    %c0_131 = arith.constant 0 : index
    %174 = vector.load %arg5[%c2_129, %c0_130, %c0_131] : memref<5x12x12xbf16, #tpu.memory_space<vmem>>, vector<1x12x12xbf16>
    %175 = vector.shape_cast %174 : vector<1x12x12xbf16> to vector<12x12xbf16>
    %cst_132 = arith.constant dense<0.000000e+00> : vector<12x128xf32>
    %176 = tpu.matmul %175, %145, %cst_132 {dimension_numbers = #tpu.dot_dimension_numbers<[1], [0], [0], [1], [0, 0, 1, 1], [], []>} : vector<12x12xbf16>, vector<12x128xbf16>, vector<12x128xf32> -> vector<12x128xf32>
    %177 = arith.addf %173, %176 : vector<12x128xf32>
    %c3_133 = arith.constant 3 : index
    %c0_134 = arith.constant 0 : index
    %c0_135 = arith.constant 0 : index
    %178 = vector.load %arg5[%c3_133, %c0_134, %c0_135] : memref<5x12x12xbf16, #tpu.memory_space<vmem>>, vector<1x12x12xbf16>
    %179 = vector.shape_cast %178 : vector<1x12x12xbf16> to vector<12x12xbf16>
    %cst_136 = arith.constant dense<0.000000e+00> : vector<12x128xf32>
    %180 = tpu.matmul %179, %145, %cst_136 {dimension_numbers = #tpu.dot_dimension_numbers<[1], [0], [0], [1], [0, 0, 1, 1], [], []>} : vector<12x12xbf16>, vector<12x128xbf16>, vector<12x128xf32> -> vector<12x128xf32>
    %c127_i32 = arith.constant 127 : i32
    %181 = tpu.dynamic_rotate %180 by %c127_i32 dim 1 : vector<12x128xf32>, i32 -> vector<12x128xf32>
    %c0_i32 = arith.constant 0 : i32
    %182 = vector.broadcast %c0_i32 : i32 to vector<1x128xi32>
    %183 = arith.cmpi sge, %146, %182 : vector<1x128xi32>
    %c127_i32_137 = arith.constant 127 : i32
    %184 = vector.broadcast %c127_i32_137 : i32 to vector<1x128xi32>
    %185 = arith.cmpi slt, %146, %184 : vector<1x128xi32>
    %186 = arith.andi %183, %185 : vector<1x128xi1>
    %cst_138 = arith.constant 0.000000e+00 : f32
    %187 = vector.shape_cast %186 : vector<1x128xi1> to vector<1x128xi1>
    %188 = vector.broadcast %187 : vector<1x128xi1> to vector<12x128xi1>
    %189 = vector.broadcast %cst_138 : f32 to vector<12x128xf32>
    %190 = arith.select %188, %181, %189 : vector<12x128xi1>, vector<12x128xf32>
    %191 = arith.addf %177, %190 : vector<12x128xf32>
    %c4_139 = arith.constant 4 : index
    %c0_140 = arith.constant 0 : index
    %c0_141 = arith.constant 0 : index
    %192 = vector.load %arg5[%c4_139, %c0_140, %c0_141] : memref<5x12x12xbf16, #tpu.memory_space<vmem>>, vector<1x12x12xbf16>
    %193 = vector.shape_cast %192 : vector<1x12x12xbf16> to vector<12x12xbf16>
    %cst_142 = arith.constant dense<0.000000e+00> : vector<12x128xf32>
    %194 = tpu.matmul %193, %145, %cst_142 {dimension_numbers = #tpu.dot_dimension_numbers<[1], [0], [0], [1], [0, 0, 1, 1], [], []>} : vector<12x12xbf16>, vector<12x128xbf16>, vector<12x128xf32> -> vector<12x128xf32>
    %c126_i32 = arith.constant 126 : i32
    %195 = tpu.dynamic_rotate %194 by %c126_i32 dim 1 : vector<12x128xf32>, i32 -> vector<12x128xf32>
    %c0_i32_143 = arith.constant 0 : i32
    %196 = vector.broadcast %c0_i32_143 : i32 to vector<1x128xi32>
    %197 = arith.cmpi sge, %146, %196 : vector<1x128xi32>
    %c126_i32_144 = arith.constant 126 : i32
    %198 = vector.broadcast %c126_i32_144 : i32 to vector<1x128xi32>
    %199 = arith.cmpi slt, %146, %198 : vector<1x128xi32>
    %200 = arith.andi %197, %199 : vector<1x128xi1>
    %cst_145 = arith.constant 0.000000e+00 : f32
    %201 = vector.shape_cast %200 : vector<1x128xi1> to vector<1x128xi1>
    %202 = vector.broadcast %201 : vector<1x128xi1> to vector<12x128xi1>
    %203 = vector.broadcast %cst_145 : f32 to vector<12x128xf32>
    %204 = arith.select %202, %195, %203 : vector<12x128xi1>, vector<12x128xf32>
    %205 = arith.addf %191, %204 : vector<12x128xf32>
    %c0_146 = arith.constant 0 : index
    %c0_147 = arith.constant 0 : index
    %206 = vector.load %arg11[%c0_146, %c0_147] : memref<12x1xf32, #tpu.memory_space<vmem>>, vector<12x1xf32>
    %207 = vector.broadcast %206 : vector<12x1xf32> to vector<12x128xf32>
    %208 = arith.addf %205, %207 : vector<12x128xf32>
    %cst_148 = arith.constant 0.000000e+00 : f32
    %209 = vector.broadcast %cst_148 : f32 to vector<12x128xf32>
    %210 = arith.cmpf ogt, %208, %209 : vector<12x128xf32>
    %cst_149 = arith.constant 0.000000e+00 : f32
    %211 = vector.broadcast %cst_149 : f32 to vector<12x128xf32>
    %212 = arith.minimumf %208, %211 : vector<12x128xf32>
    %213 = math.exp %212 : vector<12x128xf32>
    %cst_150 = arith.constant 1.000000e+00 : f32
    %214 = vector.broadcast %cst_150 : f32 to vector<12x128xf32>
    %215 = arith.subf %213, %214 : vector<12x128xf32>
    %216 = arith.select %210, %208, %215 : vector<12x128xi1>, vector<12x128xf32>
    %217 = arith.truncf %216 : vector<12x128xf32> to vector<12x128xbf16>
    %c0_151 = arith.constant 0 : index
    %c0_152 = arith.constant 0 : index
    %218 = vector.load %arg18[%c0_151, %c0_152] : memref<128x512xbf16, #tpu.memory_space<vmem>>, vector<128x512xbf16>
    %cst_153 = arith.constant dense<0.000000e+00> : vector<12x512xf32>
    %219 = tpu.matmul %217, %218, %cst_153 {dimension_numbers = #tpu.dot_dimension_numbers<[1], [0], [0], [1], [0, 0, 1, 1], [], []>} : vector<12x128xbf16>, vector<128x512xbf16>, vector<12x512xf32> -> vector<12x512xf32>
    %220 = arith.truncf %219 : vector<12x512xf32> to vector<12x512xbf16>
    %221 = tpu.iota {dimensions = array<i32: 1>} : vector<1x512xi32>
    %c0_154 = arith.constant 0 : index
    %c0_155 = arith.constant 0 : index
    %c0_156 = arith.constant 0 : index
    %222 = vector.load %arg6[%c0_154, %c0_155, %c0_156] : memref<5x12x12xbf16, #tpu.memory_space<vmem>>, vector<1x12x12xbf16>
    %223 = vector.shape_cast %222 : vector<1x12x12xbf16> to vector<12x12xbf16>
    %cst_157 = arith.constant dense<0.000000e+00> : vector<12x512xf32>
    %224 = tpu.matmul %223, %220, %cst_157 {dimension_numbers = #tpu.dot_dimension_numbers<[1], [0], [0], [1], [0, 0, 1, 1], [], []>} : vector<12x12xbf16>, vector<12x512xbf16>, vector<12x512xf32> -> vector<12x512xf32>
    %c2_i32_158 = arith.constant 2 : i32
    %225 = tpu.dynamic_rotate %224 by %c2_i32_158 dim 1 : vector<12x512xf32>, i32 -> vector<12x512xf32>
    %c2_i32_159 = arith.constant 2 : i32
    %226 = vector.broadcast %c2_i32_159 : i32 to vector<1x512xi32>
    %227 = arith.cmpi sge, %221, %226 : vector<1x512xi32>
    %c512_i32 = arith.constant 512 : i32
    %228 = vector.broadcast %c512_i32 : i32 to vector<1x512xi32>
    %229 = arith.cmpi slt, %221, %228 : vector<1x512xi32>
    %230 = arith.andi %227, %229 : vector<1x512xi1>
    %cst_160 = arith.constant 0.000000e+00 : f32
    %231 = vector.shape_cast %230 : vector<1x512xi1> to vector<1x512xi1>
    %232 = vector.broadcast %231 : vector<1x512xi1> to vector<12x512xi1>
    %233 = vector.broadcast %cst_160 : f32 to vector<12x512xf32>
    %234 = arith.select %232, %225, %233 : vector<12x512xi1>, vector<12x512xf32>
    %c1_161 = arith.constant 1 : index
    %c0_162 = arith.constant 0 : index
    %c0_163 = arith.constant 0 : index
    %235 = vector.load %arg6[%c1_161, %c0_162, %c0_163] : memref<5x12x12xbf16, #tpu.memory_space<vmem>>, vector<1x12x12xbf16>
    %236 = vector.shape_cast %235 : vector<1x12x12xbf16> to vector<12x12xbf16>
    %cst_164 = arith.constant dense<0.000000e+00> : vector<12x512xf32>
    %237 = tpu.matmul %236, %220, %cst_164 {dimension_numbers = #tpu.dot_dimension_numbers<[1], [0], [0], [1], [0, 0, 1, 1], [], []>} : vector<12x12xbf16>, vector<12x512xbf16>, vector<12x512xf32> -> vector<12x512xf32>
    %c1_i32_165 = arith.constant 1 : i32
    %238 = tpu.dynamic_rotate %237 by %c1_i32_165 dim 1 : vector<12x512xf32>, i32 -> vector<12x512xf32>
    %c1_i32_166 = arith.constant 1 : i32
    %239 = vector.broadcast %c1_i32_166 : i32 to vector<1x512xi32>
    %240 = arith.cmpi sge, %221, %239 : vector<1x512xi32>
    %c512_i32_167 = arith.constant 512 : i32
    %241 = vector.broadcast %c512_i32_167 : i32 to vector<1x512xi32>
    %242 = arith.cmpi slt, %221, %241 : vector<1x512xi32>
    %243 = arith.andi %240, %242 : vector<1x512xi1>
    %cst_168 = arith.constant 0.000000e+00 : f32
    %244 = vector.shape_cast %243 : vector<1x512xi1> to vector<1x512xi1>
    %245 = vector.broadcast %244 : vector<1x512xi1> to vector<12x512xi1>
    %246 = vector.broadcast %cst_168 : f32 to vector<12x512xf32>
    %247 = arith.select %245, %238, %246 : vector<12x512xi1>, vector<12x512xf32>
    %248 = arith.addf %234, %247 : vector<12x512xf32>
    %c2_169 = arith.constant 2 : index
    %c0_170 = arith.constant 0 : index
    %c0_171 = arith.constant 0 : index
    %249 = vector.load %arg6[%c2_169, %c0_170, %c0_171] : memref<5x12x12xbf16, #tpu.memory_space<vmem>>, vector<1x12x12xbf16>
    %250 = vector.shape_cast %249 : vector<1x12x12xbf16> to vector<12x12xbf16>
    %cst_172 = arith.constant dense<0.000000e+00> : vector<12x512xf32>
    %251 = tpu.matmul %250, %220, %cst_172 {dimension_numbers = #tpu.dot_dimension_numbers<[1], [0], [0], [1], [0, 0, 1, 1], [], []>} : vector<12x12xbf16>, vector<12x512xbf16>, vector<12x512xf32> -> vector<12x512xf32>
    %252 = arith.addf %248, %251 : vector<12x512xf32>
    %c3_173 = arith.constant 3 : index
    %c0_174 = arith.constant 0 : index
    %c0_175 = arith.constant 0 : index
    %253 = vector.load %arg6[%c3_173, %c0_174, %c0_175] : memref<5x12x12xbf16, #tpu.memory_space<vmem>>, vector<1x12x12xbf16>
    %254 = vector.shape_cast %253 : vector<1x12x12xbf16> to vector<12x12xbf16>
    %cst_176 = arith.constant dense<0.000000e+00> : vector<12x512xf32>
    %255 = tpu.matmul %254, %220, %cst_176 {dimension_numbers = #tpu.dot_dimension_numbers<[1], [0], [0], [1], [0, 0, 1, 1], [], []>} : vector<12x12xbf16>, vector<12x512xbf16>, vector<12x512xf32> -> vector<12x512xf32>
    %c511_i32 = arith.constant 511 : i32
    %256 = tpu.dynamic_rotate %255 by %c511_i32 dim 1 : vector<12x512xf32>, i32 -> vector<12x512xf32>
    %c0_i32_177 = arith.constant 0 : i32
    %257 = vector.broadcast %c0_i32_177 : i32 to vector<1x512xi32>
    %258 = arith.cmpi sge, %221, %257 : vector<1x512xi32>
    %c511_i32_178 = arith.constant 511 : i32
    %259 = vector.broadcast %c511_i32_178 : i32 to vector<1x512xi32>
    %260 = arith.cmpi slt, %221, %259 : vector<1x512xi32>
    %261 = arith.andi %258, %260 : vector<1x512xi1>
    %cst_179 = arith.constant 0.000000e+00 : f32
    %262 = vector.shape_cast %261 : vector<1x512xi1> to vector<1x512xi1>
    %263 = vector.broadcast %262 : vector<1x512xi1> to vector<12x512xi1>
    %264 = vector.broadcast %cst_179 : f32 to vector<12x512xf32>
    %265 = arith.select %263, %256, %264 : vector<12x512xi1>, vector<12x512xf32>
    %266 = arith.addf %252, %265 : vector<12x512xf32>
    %c4_180 = arith.constant 4 : index
    %c0_181 = arith.constant 0 : index
    %c0_182 = arith.constant 0 : index
    %267 = vector.load %arg6[%c4_180, %c0_181, %c0_182] : memref<5x12x12xbf16, #tpu.memory_space<vmem>>, vector<1x12x12xbf16>
    %268 = vector.shape_cast %267 : vector<1x12x12xbf16> to vector<12x12xbf16>
    %cst_183 = arith.constant dense<0.000000e+00> : vector<12x512xf32>
    %269 = tpu.matmul %268, %220, %cst_183 {dimension_numbers = #tpu.dot_dimension_numbers<[1], [0], [0], [1], [0, 0, 1, 1], [], []>} : vector<12x12xbf16>, vector<12x512xbf16>, vector<12x512xf32> -> vector<12x512xf32>
    %c510_i32 = arith.constant 510 : i32
    %270 = tpu.dynamic_rotate %269 by %c510_i32 dim 1 : vector<12x512xf32>, i32 -> vector<12x512xf32>
    %c0_i32_184 = arith.constant 0 : i32
    %271 = vector.broadcast %c0_i32_184 : i32 to vector<1x512xi32>
    %272 = arith.cmpi sge, %221, %271 : vector<1x512xi32>
    %c510_i32_185 = arith.constant 510 : i32
    %273 = vector.broadcast %c510_i32_185 : i32 to vector<1x512xi32>
    %274 = arith.cmpi slt, %221, %273 : vector<1x512xi32>
    %275 = arith.andi %272, %274 : vector<1x512xi1>
    %cst_186 = arith.constant 0.000000e+00 : f32
    %276 = vector.shape_cast %275 : vector<1x512xi1> to vector<1x512xi1>
    %277 = vector.broadcast %276 : vector<1x512xi1> to vector<12x512xi1>
    %278 = vector.broadcast %cst_186 : f32 to vector<12x512xf32>
    %279 = arith.select %277, %270, %278 : vector<12x512xi1>, vector<12x512xf32>
    %280 = arith.addf %266, %279 : vector<12x512xf32>
    %c0_187 = arith.constant 0 : index
    %c0_188 = arith.constant 0 : index
    %281 = vector.load %arg12[%c0_187, %c0_188] : memref<12x1xf32, #tpu.memory_space<vmem>>, vector<12x1xf32>
    %282 = vector.broadcast %281 : vector<12x1xf32> to vector<12x512xf32>
    %283 = arith.addf %280, %282 : vector<12x512xf32>
    %cst_189 = arith.constant 0.000000e+00 : f32
    %284 = vector.broadcast %cst_189 : f32 to vector<12x512xf32>
    %285 = arith.cmpf ogt, %283, %284 : vector<12x512xf32>
    %cst_190 = arith.constant 0.000000e+00 : f32
    %286 = vector.broadcast %cst_190 : f32 to vector<12x512xf32>
    %287 = arith.minimumf %283, %286 : vector<12x512xf32>
    %288 = math.exp %287 : vector<12x512xf32>
    %cst_191 = arith.constant 1.000000e+00 : f32
    %289 = vector.broadcast %cst_191 : f32 to vector<12x512xf32>
    %290 = arith.subf %288, %289 : vector<12x512xf32>
    %291 = arith.select %285, %283, %290 : vector<12x512xi1>, vector<12x512xf32>
    %292 = arith.truncf %291 : vector<12x512xf32> to vector<12x512xbf16>
    %c0_192 = arith.constant 0 : index
    %c0_193 = arith.constant 0 : index
    %293 = vector.load %arg19[%c0_192, %c0_193] : memref<512x2048xbf16, #tpu.memory_space<vmem>>, vector<512x2048xbf16>
    %cst_194 = arith.constant dense<0.000000e+00> : vector<12x2048xf32>
    %294 = tpu.matmul %292, %293, %cst_194 {dimension_numbers = #tpu.dot_dimension_numbers<[1], [0], [0], [1], [0, 0, 1, 1], [], []>} : vector<12x512xbf16>, vector<512x2048xbf16>, vector<12x2048xf32> -> vector<12x2048xf32>
    %295 = arith.truncf %294 : vector<12x2048xf32> to vector<12x2048xbf16>
    %296 = tpu.iota {dimensions = array<i32: 1>} : vector<1x2048xi32>
    %c0_195 = arith.constant 0 : index
    %c0_196 = arith.constant 0 : index
    %c0_197 = arith.constant 0 : index
    %297 = vector.load %arg7[%c0_195, %c0_196, %c0_197] : memref<5x1x12xbf16, #tpu.memory_space<vmem>>, vector<1x1x12xbf16>
    %298 = vector.shape_cast %297 : vector<1x1x12xbf16> to vector<1x12xbf16>
    %cst_198 = arith.constant dense<0.000000e+00> : vector<1x2048xf32>
    %299 = tpu.matmul %298, %295, %cst_198 {dimension_numbers = #tpu.dot_dimension_numbers<[1], [0], [0], [1], [0, 0, 1, 1], [], []>} : vector<1x12xbf16>, vector<12x2048xbf16>, vector<1x2048xf32> -> vector<1x2048xf32>
    %c2_i32_199 = arith.constant 2 : i32
    %300 = tpu.dynamic_rotate %299 by %c2_i32_199 dim 1 : vector<1x2048xf32>, i32 -> vector<1x2048xf32>
    %c2_i32_200 = arith.constant 2 : i32
    %301 = vector.broadcast %c2_i32_200 : i32 to vector<1x2048xi32>
    %302 = arith.cmpi sge, %296, %301 : vector<1x2048xi32>
    %c2048_i32 = arith.constant 2048 : i32
    %303 = vector.broadcast %c2048_i32 : i32 to vector<1x2048xi32>
    %304 = arith.cmpi slt, %296, %303 : vector<1x2048xi32>
    %305 = arith.andi %302, %304 : vector<1x2048xi1>
    %cst_201 = arith.constant 0.000000e+00 : f32
    %306 = vector.broadcast %cst_201 : f32 to vector<1x2048xf32>
    %307 = arith.select %305, %300, %306 : vector<1x2048xi1>, vector<1x2048xf32>
    %c1_202 = arith.constant 1 : index
    %c0_203 = arith.constant 0 : index
    %c0_204 = arith.constant 0 : index
    %308 = vector.load %arg7[%c1_202, %c0_203, %c0_204] : memref<5x1x12xbf16, #tpu.memory_space<vmem>>, vector<1x1x12xbf16>
    %309 = vector.shape_cast %308 : vector<1x1x12xbf16> to vector<1x12xbf16>
    %cst_205 = arith.constant dense<0.000000e+00> : vector<1x2048xf32>
    %310 = tpu.matmul %309, %295, %cst_205 {dimension_numbers = #tpu.dot_dimension_numbers<[1], [0], [0], [1], [0, 0, 1, 1], [], []>} : vector<1x12xbf16>, vector<12x2048xbf16>, vector<1x2048xf32> -> vector<1x2048xf32>
    %c1_i32_206 = arith.constant 1 : i32
    %311 = tpu.dynamic_rotate %310 by %c1_i32_206 dim 1 : vector<1x2048xf32>, i32 -> vector<1x2048xf32>
    %c1_i32_207 = arith.constant 1 : i32
    %312 = vector.broadcast %c1_i32_207 : i32 to vector<1x2048xi32>
    %313 = arith.cmpi sge, %296, %312 : vector<1x2048xi32>
    %c2048_i32_208 = arith.constant 2048 : i32
    %314 = vector.broadcast %c2048_i32_208 : i32 to vector<1x2048xi32>
    %315 = arith.cmpi slt, %296, %314 : vector<1x2048xi32>
    %316 = arith.andi %313, %315 : vector<1x2048xi1>
    %cst_209 = arith.constant 0.000000e+00 : f32
    %317 = vector.broadcast %cst_209 : f32 to vector<1x2048xf32>
    %318 = arith.select %316, %311, %317 : vector<1x2048xi1>, vector<1x2048xf32>
    %319 = arith.addf %307, %318 : vector<1x2048xf32>
    %c2_210 = arith.constant 2 : index
    %c0_211 = arith.constant 0 : index
    %c0_212 = arith.constant 0 : index
    %320 = vector.load %arg7[%c2_210, %c0_211, %c0_212] : memref<5x1x12xbf16, #tpu.memory_space<vmem>>, vector<1x1x12xbf16>
    %321 = vector.shape_cast %320 : vector<1x1x12xbf16> to vector<1x12xbf16>
    %cst_213 = arith.constant dense<0.000000e+00> : vector<1x2048xf32>
    %322 = tpu.matmul %321, %295, %cst_213 {dimension_numbers = #tpu.dot_dimension_numbers<[1], [0], [0], [1], [0, 0, 1, 1], [], []>} : vector<1x12xbf16>, vector<12x2048xbf16>, vector<1x2048xf32> -> vector<1x2048xf32>
    %323 = arith.addf %319, %322 : vector<1x2048xf32>
    %c3_214 = arith.constant 3 : index
    %c0_215 = arith.constant 0 : index
    %c0_216 = arith.constant 0 : index
    %324 = vector.load %arg7[%c3_214, %c0_215, %c0_216] : memref<5x1x12xbf16, #tpu.memory_space<vmem>>, vector<1x1x12xbf16>
    %325 = vector.shape_cast %324 : vector<1x1x12xbf16> to vector<1x12xbf16>
    %cst_217 = arith.constant dense<0.000000e+00> : vector<1x2048xf32>
    %326 = tpu.matmul %325, %295, %cst_217 {dimension_numbers = #tpu.dot_dimension_numbers<[1], [0], [0], [1], [0, 0, 1, 1], [], []>} : vector<1x12xbf16>, vector<12x2048xbf16>, vector<1x2048xf32> -> vector<1x2048xf32>
    %c2047_i32 = arith.constant 2047 : i32
    %327 = tpu.dynamic_rotate %326 by %c2047_i32 dim 1 : vector<1x2048xf32>, i32 -> vector<1x2048xf32>
    %c0_i32_218 = arith.constant 0 : i32
    %328 = vector.broadcast %c0_i32_218 : i32 to vector<1x2048xi32>
    %329 = arith.cmpi sge, %296, %328 : vector<1x2048xi32>
    %c2047_i32_219 = arith.constant 2047 : i32
    %330 = vector.broadcast %c2047_i32_219 : i32 to vector<1x2048xi32>
    %331 = arith.cmpi slt, %296, %330 : vector<1x2048xi32>
    %332 = arith.andi %329, %331 : vector<1x2048xi1>
    %cst_220 = arith.constant 0.000000e+00 : f32
    %333 = vector.broadcast %cst_220 : f32 to vector<1x2048xf32>
    %334 = arith.select %332, %327, %333 : vector<1x2048xi1>, vector<1x2048xf32>
    %335 = arith.addf %323, %334 : vector<1x2048xf32>
    %c4_221 = arith.constant 4 : index
    %c0_222 = arith.constant 0 : index
    %c0_223 = arith.constant 0 : index
    %336 = vector.load %arg7[%c4_221, %c0_222, %c0_223] : memref<5x1x12xbf16, #tpu.memory_space<vmem>>, vector<1x1x12xbf16>
    %337 = vector.shape_cast %336 : vector<1x1x12xbf16> to vector<1x12xbf16>
    %cst_224 = arith.constant dense<0.000000e+00> : vector<1x2048xf32>
    %338 = tpu.matmul %337, %295, %cst_224 {dimension_numbers = #tpu.dot_dimension_numbers<[1], [0], [0], [1], [0, 0, 1, 1], [], []>} : vector<1x12xbf16>, vector<12x2048xbf16>, vector<1x2048xf32> -> vector<1x2048xf32>
    %c2046_i32 = arith.constant 2046 : i32
    %339 = tpu.dynamic_rotate %338 by %c2046_i32 dim 1 : vector<1x2048xf32>, i32 -> vector<1x2048xf32>
    %c0_i32_225 = arith.constant 0 : i32
    %340 = vector.broadcast %c0_i32_225 : i32 to vector<1x2048xi32>
    %341 = arith.cmpi sge, %296, %340 : vector<1x2048xi32>
    %c2046_i32_226 = arith.constant 2046 : i32
    %342 = vector.broadcast %c2046_i32_226 : i32 to vector<1x2048xi32>
    %343 = arith.cmpi slt, %296, %342 : vector<1x2048xi32>
    %344 = arith.andi %341, %343 : vector<1x2048xi1>
    %cst_227 = arith.constant 0.000000e+00 : f32
    %345 = vector.broadcast %cst_227 : f32 to vector<1x2048xf32>
    %346 = arith.select %344, %339, %345 : vector<1x2048xi1>, vector<1x2048xf32>
    %347 = arith.addf %335, %346 : vector<1x2048xf32>
    %c0_228 = arith.constant 0 : index
    %c0_229 = arith.constant 0 : index
    %348 = vector.load %arg13[%c0_228, %c0_229] : memref<1x1xf32, #tpu.memory_space<vmem>>, vector<1x1xf32>
    %349 = vector.broadcast %348 : vector<1x1xf32> to vector<1x2048xf32>
    %350 = arith.addf %347, %349 : vector<1x2048xf32>
    %c0_230 = arith.constant 0 : index
    %c0_231 = arith.constant 0 : index
    %c0_232 = arith.constant 0 : index
    %351 = vector.load %arg20[%c0_230, %c0_231, %c0_232] : memref<1x1x2048xf32, #tpu.memory_space<vmem>>, vector<1x1x2048xf32>
    %352 = vector.shape_cast %351 : vector<1x1x2048xf32> to vector<1x2048xf32>
    %353 = vector.shape_cast %350 : vector<1x2048xf32> to vector<1x1x2048xf32>
    tpu.vector_store %arg20[%c0_230, %c0_231, %c0_232], %353 {strides = array<i32>} : memref<1x1x2048xf32, #tpu.memory_space<vmem>>, vector<1x1x2048xf32>,
    return
  }
  func.func @transform_0(%arg0: i32) -> (i32, i32, i32) {
    %c0_i32 = arith.constant 0 : i32
    %c0_i32_0 = arith.constant 0 : i32
    %c0_i32_1 = arith.constant 0 : i32
    return %arg0, %c0_i32, %c0_i32_0 : i32, i32, i32
  }
  func.func @transform_1(%arg0: i32) -> (i32, i32, i32) {
    %c0_i32 = arith.constant 0 : i32
    %c0_i32_0 = arith.constant 0 : i32
    %c0_i32_1 = arith.constant 0 : i32
    %c0_i32_2 = arith.constant 0 : i32
    return %c0_i32, %c0_i32_0, %c0_i32_1 : i32, i32, i32
  }
  func.func @transform_2(%arg0: i32) -> (i32, i32, i32) {
    %c0_i32 = arith.constant 0 : i32
    %c0_i32_0 = arith.constant 0 : i32
    %c0_i32_1 = arith.constant 0 : i32
    %c0_i32_2 = arith.constant 0 : i32
    return %c0_i32, %c0_i32_0, %c0_i32_1 : i32, i32, i32
  }
  func.func @transform_3(%arg0: i32) -> (i32, i32, i32) {
    %c0_i32 = arith.constant 0 : i32
    %c0_i32_0 = arith.constant 0 : i32
    %c0_i32_1 = arith.constant 0 : i32
    %c0_i32_2 = arith.constant 0 : i32
    return %c0_i32, %c0_i32_0, %c0_i32_1 : i32, i32, i32
  }
  func.func @transform_4(%arg0: i32) -> (i32, i32, i32) {
    %c0_i32 = arith.constant 0 : i32
    %c0_i32_0 = arith.constant 0 : i32
    %c0_i32_1 = arith.constant 0 : i32
    %c0_i32_2 = arith.constant 0 : i32
    return %c0_i32, %c0_i32_0, %c0_i32_1 : i32, i32, i32
  }
  func.func @transform_5(%arg0: i32) -> (i32, i32, i32) {
    %c0_i32 = arith.constant 0 : i32
    %c0_i32_0 = arith.constant 0 : i32
    %c0_i32_1 = arith.constant 0 : i32
    %c0_i32_2 = arith.constant 0 : i32
    return %c0_i32, %c0_i32_0, %c0_i32_1 : i32, i32, i32
  }
  func.func @transform_6(%arg0: i32) -> (i32, i32, i32) {
    %c0_i32 = arith.constant 0 : i32
    %c0_i32_0 = arith.constant 0 : i32
    %c0_i32_1 = arith.constant 0 : i32
    %c0_i32_2 = arith.constant 0 : i32
    return %c0_i32, %c0_i32_0, %c0_i32_1 : i32, i32, i32
  }
  func.func @transform_7(%arg0: i32) -> (i32, i32) {
    %c0_i32 = arith.constant 0 : i32
    %c0_i32_0 = arith.constant 0 : i32
    %c0_i32_1 = arith.constant 0 : i32
    return %c0_i32, %c0_i32_0 : i32, i32
  }
  func.func @transform_8(%arg0: i32) -> (i32, i32) {
    %c0_i32 = arith.constant 0 : i32
    %c0_i32_0 = arith.constant 0 : i32
    %c0_i32_1 = arith.constant 0 : i32
    return %c0_i32, %c0_i32_0 : i32, i32
  }
  func.func @transform_9(%arg0: i32) -> (i32, i32) {
    %c0_i32 = arith.constant 0 : i32
    %c0_i32_0 = arith.constant 0 : i32
    %c0_i32_1 = arith.constant 0 : i32
    return %c0_i32, %c0_i32_0 : i32, i32
  }
  func.func @transform_10(%arg0: i32) -> (i32, i32) {
    %c0_i32 = arith.constant 0 : i32
    %c0_i32_0 = arith.constant 0 : i32
    %c0_i32_1 = arith.constant 0 : i32
    return %c0_i32, %c0_i32_0 : i32, i32
  }
  func.func @transform_11(%arg0: i32) -> (i32, i32) {
    %c0_i32 = arith.constant 0 : i32
    %c0_i32_0 = arith.constant 0 : i32
    %c0_i32_1 = arith.constant 0 : i32
    return %c0_i32, %c0_i32_0 : i32, i32
  }
  func.func @transform_12(%arg0: i32) -> (i32, i32) {
    %c0_i32 = arith.constant 0 : i32
    %c0_i32_0 = arith.constant 0 : i32
    %c0_i32_1 = arith.constant 0 : i32
    return %c0_i32, %c0_i32_0 : i32, i32
  }
  func.func @transform_13(%arg0: i32) -> (i32, i32, i32) {
    %c0_i32 = arith.constant 0 : i32
    %c0_i32_0 = arith.constant 0 : i32
    %c0_i32_1 = arith.constant 0 : i32
    %c0_i32_2 = arith.constant 0 : i32
    return %c0_i32, %c0_i32_0, %c0_i32_1 : i32, i32, i32
  }
  func.func @transform_14(%arg0: i32) -> (i32, i32, i32) {
    %c0_i32 = arith.constant 0 : i32
    %c0_i32_0 = arith.constant 0 : i32
    %c0_i32_1 = arith.constant 0 : i32
    %c0_i32_2 = arith.constant 0 : i32
    return %c0_i32, %c0_i32_0, %c0_i32_1 : i32, i32, i32
  }
  func.func @transform_15(%arg0: i32) -> (i32, i32, i32) {
    %c0_i32 = arith.constant 0 : i32
    %c0_i32_0 = arith.constant 0 : i32
    %c0_i32_1 = arith.constant 0 : i32
    %c0_i32_2 = arith.constant 0 : i32
    return %c0_i32, %c0_i32_0, %c0_i32_1 : i32, i32, i32
  }
  func.func @transform_16(%arg0: i32) -> (i32, i32) {
    %c0_i32 = arith.constant 0 : i32
    %c0_i32_0 = arith.constant 0 : i32
    %c0_i32_1 = arith.constant 0 : i32
    return %c0_i32, %c0_i32_0 : i32, i32
  }
  func.func @transform_17(%arg0: i32) -> (i32, i32) {
    %c0_i32 = arith.constant 0 : i32
    %c0_i32_0 = arith.constant 0 : i32
    %c0_i32_1 = arith.constant 0 : i32
    return %c0_i32, %c0_i32_0 : i32, i32
  }
  func.func @transform_18(%arg0: i32) -> (i32, i32) {
    %c0_i32 = arith.constant 0 : i32
    %c0_i32_0 = arith.constant 0 : i32
    %c0_i32_1 = arith.constant 0 : i32
    return %c0_i32, %c0_i32_0 : i32, i32
  }
  func.func @transform_19(%arg0: i32) -> (i32, i32, i32) {
    %c0_i32 = arith.constant 0 : i32
    %c0_i32_0 = arith.constant 0 : i32
    %c0_i32_1 = arith.constant 0 : i32
    return %arg0, %c0_i32, %c0_i32_0 : i32, i32, i32
  }
}

</mosaic_0001>

<bundles_post_ra>
// kernel: tpu_custom_call.1
= control target key start
LH: loop header
LB: loop body
LE: loop exit
PB: predicated region body
PF: predicated region fallthrough
CT: control target
= control target key end

     0   :  { %s13236_s0 = inlined_call_operand.vmem [shape: f32[2,8,1], index: 0, kind: input, shape index: {}]   ;;  %s13237_s1 = inlined_call_operand.vmem [shape: bf16[5,12,8], index: 1, kind: input, shape index: {}]   ;;  %s13238_s2 = inlined_call_operand.hbm [shape: bf16[5,12,12], index: 2, kind: input, shape index: {}]   ;;  %s13239_s3 = inlined_call_operand.hbm [shape: bf16[5,12,12], index: 3, kind: input, shape index: {}]   ;;  %s13240_s4 = inlined_call_operand.hbm [shape: bf16[5,12,12], index: 4, kind: input, shape index: {}]   ;;  %s13241_s5 = inlined_call_operand.hbm [shape: bf16[5,12,12], index: 5, kind: input, shape index: {}]   ;;  %s13242_s6 = inlined_call_operand.vmem [shape: bf16[5,1,12], index: 6, kind: input, shape index: {}]   ;;  %s13243_s7 = inlined_call_operand.vmem [shape: f32[12,1], index: 7, kind: input, shape index: {}]   ;;  %s13244_s8 = inlined_call_operand.vmem [shape: f32[12,1], index: 8, kind: input, shape index: {}]   ;;  %s13245_s9 = inlined_call_operand.vmem [shape: f32[12,1], index: 9, kind: input, shape index: {}]   ;;  %s13246_s10 = inlined_call_operand.vmem [shape: f32[12,1], index: 10, kind: input, shape index: {}]   ;;  %s13247_s11 = inlined_call_operand.vmem [shape: f32[12,1], index: 11, kind: input, shape index: {}]   ;;  %s13248_s12 = inlined_call_operand.<no memory space> [shape: f32[1,1], index: 12, kind: input, shape index: {}]   ;;  %s13249_s13 = inlined_call_operand.vmem [shape: bf16[5,1,2], index: 13, kind: input, shape index: {}]   ;;  %s13250_s14 = inlined_call_operand.hbm [shape: bf16[5,2,8], index: 14, kind: input, shape index: {}]   ;;  %s13251_s15 = inlined_call_operand.hbm [shape: bf16[5,8,32], index: 15, kind: input, shape index: {}]   ;;  %s13252_s16 = inlined_call_operand.hbm [shape: bf16[32,128], index: 16, kind: input, shape index: {}]   ;;  %s13253_s17 = inlined_call_operand.hbm [shape: bf16[128,512], index: 17, kind: input, shape index: {}]   ;;  %s13254_s18 = inlined_call_operand.hbm [shape: bf16[512,2048], index: 18, kind: input, shape index: {}]   ;;  %s13255_s19 = inlined_call_operand.hbm [shape: f32[2,1,2048], index: 19, kind: output, shape index: {}]  }
   0x1   :  { %13279 = sst [smem:[#allocation33_spill]] %s13236_s0  ;;  %v24_v0 = vstv %s13248_s12 }
   0x2   :  { %13280 = sst [smem:[#allocation34_spill]] %s13237_s1  ;;  %25 = vst [vmem:[#allocation2] sm:$0x1] %v24_v0 }
   0x3   :  { %13281 = sst [smem:[#allocation35_spill]] %s13238_s2 }
   0x4   :  { %13282 = sst [smem:[#allocation36_spill]] %s13239_s3 }
   0x5   :  { %13283 = sst [smem:[#allocation37_spill]] %s13241_s5 }
   0x6   :  { %13284 = sst [smem:[#allocation38_spill]] %s13242_s6 }
   0x7   :  { %13285 = sst [smem:[#allocation39_spill]] %s13247_s11 }
   0x8   :  { %13286 = sst [smem:[#allocation40_spill]] %s13251_s15 }
   0x9   :  { %13287 = sst [smem:[#allocation41_spill]] %s13255_s19 }
   0xa   :  { %26 = vsyncpa [#allocation4], 0 }
   0xb   :  { %27 = vsyncpa [#allocation7], 0 }
   0xc   :  { %28 = vsyncpa [#allocation10], 0 }
   0xd   :  { %29 = vsyncpa [#allocation13], 0 }
   0xe   :  { %30 = vsyncpa [#allocation16], 0 }
   0xf   :  { %31 = vsyncpa [#allocation5], 0 }
  0x10   :  { %33 = vsyncpa [#allocation5 + $0x1], 0  ;;  %s11556_s20 = smov 0   ;;  %s11558_s21 = smov 0  }
  0x11   :  { %s11560_s1 = smov 0   ;;  %s11562_s22 = smov 0  }
  0x12 LB: > { %13288 = sst [smem:[#allocation25_spill]] %s11415_s20  ;;  %s11577_s12 = sadd.s32 4294967295, %s11427_s22   ;;  %s11427_s22 = sphi %s11562_s22, %s13331_s22   ;;  %s11423_s1 = sphi %s11560_s1, %s13334_s1   ;;  %s11419_s21 = sphi %s11558_s21, %s13333_s21   ;;  %s11415_s20 = sphi %s11556_s20, %s13332_s20  }
  0x13   : > { %13289 = sst [smem:[#allocation26_spill]] %s11419_s21  ;;  %s9818_s2 = sadd.s32 4294967294, %s11427_s22  }
  0x14   : > { %13290 = sst [smem:[#allocation27_spill]] %s11423_s1  ;;  %s11581_s23 = sadd.s32 1, %s11427_s22  }
  0x15   : > { %13291 = sst [smem:[#allocation28_spill]] %s11427_s22  ;;  %s450_s24 = sadd.s32 1, %s11423_s1 }
  0x16   : > { %13292 = sst [smem:[#allocation29_spill]] %s11581_s23  ;;  %s447_s25 = ssub.s32 %s11427_s22, %s11581_s23 }
  0x17   : > { %p460_p0 = scmp.ne.s32.totalorder %s11423_s1, %s11419_s21  ;;  %p448_p1 = scmp.eq.s32.totalorder %s447_s25, 0 }
  0x18   : > { %p461_p2 = scmp.eq.s32.totalorder %s11577_s12, 1  ;;  %p466_p3 = scmp.ne.s32.totalorder %s11419_s21, %s11415_s20 }
  0x19   : > { %p467_p4 = scmp.eq.s32.totalorder %s9818_s2, 1  ;;  %p9819_p7 = scmp.ge.s32.totalorder %s11427_s22, 1 }
  0x1a   : > { %s11592_s3 = scalar_select %p448_p1, %s11423_s1, %s450_s24  }
  0x1b   : > { %p11594_p5 = por %p461_p2, %p460_p0  ;;  %p11598_p6 = por %p467_p4, %p466_p3 }
  0x1c   : > { %13293 = sst [smem:[#allocation30_spill]] %s11592_s3  ;;  %p474_p8 = scmp.lt.s32.totalorder %s11427_s22, 3 }
  0x1d   : > { %s13294_s26 = scalar_select %p11594_p5, 1, 0 }
  0x1e   : > { %s13296_s27 = scalar_select %p11598_p6, 1, 0 }
  0x1f   : > { %13295 = sst [smem:[#allocation31_spill]] %s13294_s26  ;;  %p13266_p9 = scmp.eq.s32.totalorder %s11577_s12, 0 }
  0x20   : > { %13297 = sst [smem:[#allocation32_spill]] %s13296_s27  ;;  %p11605_p10 = pnand %p9819_p7, %p474_p8 }
  0x21   : > { %s11429_s29 = smov [#allocation6]   ;;  %s11430_s2 = smov [#allocation9]  }
  0x22   : > { %s13298_s28 = scalar_select %p11605_p10, 1, 0 }
  0x23   : > { %p10880_p11 = pneg %p11605_p10  ;;  %s502_s0 = sshll.u32 %s11429_s29, 4  ;;  %s11611_s0 = int_to_ptr.vmem [resolvable:$true] %s502_s0 }
  0x24   : > { %s528_s24 = sshll.u32 %s11430_s2, 4  ;;  %s11431_s25 = smov [#allocation12]   ;;  %s11619_s24 = int_to_ptr.vmem [resolvable:$true] %s528_s24 }
  0x25   : > { %p11615_p12 = pnand %p13266_p9, %p10880_p11  ;;  %s11621_s3 = sshll.u32 %s11431_s25, 4  ;;  %s579_s3 = int_to_ptr.vmem [resolvable:$true] %s11621_s3 }
  0x26   : > { %s13300_s27 = sld [smem:[#allocation36_spill]] }
  0x27   : > { %p11631_p0 = pneg %p11615_p12 }
  0x2c   : > { %s11093_s20 = scalar_lea.hbm %s13300_s27, 640 }
  0x2d   : > { %p11094_p13 = scmp.ne.s32.totalorder %s13300_s27, %s11093_s20  ;;  %p11100_p3 = scmp.lt.u32.totalorder %s11093_s20, %s13300_s27 }
  0x2f   : > { %p11096_p1 = pnand %p11631_p0, %p11094_p13 }
  0x31   : > { %p11097_p2 = pneg %p11096_p1 }
  0x33   : > { %p11102_p4 = pnand %p11100_p3, %p11097_p2 }
  0x35   : > { %11105 = shalt.err (!%p11102_p4)
}
  0x36   : > { %s11106_s1 = scalar_lea.vmem %s11611_s0, 640  ;;  %p11114_p9 = scmp.lt.s32.totalorder %s11611_s0, %s11611_s0 }
  0x37   : > { %p11107_p7 = scmp.ne.s32.totalorder %s11611_s0, %s11106_s1  ;;  %p11115_p6 = scmp.lt.s32.totalorder %s11106_s1, %s11106_s1 }
  0x39   : > { %p11109_p8 = pnand %p11107_p7, %p11631_p0  ;;  %p11116_p13 = por %p11115_p6, %p11114_p9 }
  0x3b   : > { %p11110_p11 = pneg %p11109_p8 }
  0x3d   : > { %p11117_p1 = pnand %p11116_p13, %p11110_p11 }
  0x3f   : > { %11120 = shalt.err (!%p11117_p1)
}
  0x40   : > { %s13275_s22 = smov 64   ;;  %s13278_s20 = smov 4  }
  0x41   : > { %10886 = dma.hbm_to_vmem [thread:$0]  (!%p11615_p12), %s13300_s27, 640, %s11611_s0, [#allocation7], %s13275_s22, %s13275_s22, %s13278_s20  }
  0x42   : > { %s13302_s5 = sld [smem:[#allocation37_spill]] }
  0x48   : > { %s11121_s1 = scalar_lea.hbm %s13302_s5, 640 }
  0x49   : > { %p11122_p6 = scmp.ne.s32.totalorder %s13302_s5, %s11121_s1  ;;  %p11128_p3 = scmp.lt.u32.totalorder %s11121_s1, %s13302_s5 }
  0x4b   : > { %p11124_p9 = pnand %p11122_p6, %p11631_p0 }
  0x4d   : > { %p11125_p2 = pneg %p11124_p9 }
  0x4f   : > { %p11130_p4 = pnand %p11128_p3, %p11125_p2 }
  0x51   : > { %11133 = shalt.err (!%p11130_p4)
}
  0x52   : > { %s11134_s0 = scalar_lea.vmem %s11619_s24, 640  ;;  %p11142_p13 = scmp.lt.s32.totalorder %s11619_s24, %s11619_s24 }
  0x53   : > { %p11135_p7 = scmp.ne.s32.totalorder %s11619_s24, %s11134_s0  ;;  %p11143_p1 = scmp.lt.s32.totalorder %s11134_s0, %s11134_s0 }
  0x55   : > { %p11137_p8 = pnand %p11135_p7, %p11631_p0  ;;  %p11144_p6 = por %p11143_p1, %p11142_p13 }
  0x57   : > { %p11138_p11 = pneg %p11137_p8 }
  0x59   : > { %p11145_p9 = pnand %p11144_p6, %p11138_p11 }
  0x5b   : > { %11148 = shalt.err (!%p11145_p9)
}
  0x5c   : > { %10892 = dma.hbm_to_vmem [thread:$0]  (!%p11615_p12), %s13302_s5, 640, %s11619_s24, [#allocation10], %s13275_s22, %s13275_s22, %s13278_s20  }
  0x5d   : > { %s13303_s15 = sld [smem:[#allocation40_spill]] }
  0x63   : > { %s11149_s23 = scalar_lea.hbm %s13303_s15, 320 }
  0x64   : > { %p11150_p2 = scmp.ne.s32.totalorder %s13303_s15, %s11149_s23  ;;  %p11156_p7 = scmp.lt.u32.totalorder %s11149_s23, %s13303_s15 }
  0x66   : > { %p11152_p3 = pnand %p11150_p2, %p11631_p0 }
  0x68   : > { %p11153_p4 = pneg %p11152_p3 }
  0x6a   : > { %p11158_p8 = pnand %p11156_p7, %p11153_p4 }
  0x6c   : > { %11161 = shalt.err (!%p11158_p8)
}
  0x6d   : > { %s11162_s0 = scalar_lea.vmem %s579_s3, 320  ;;  %p11170_p6 = scmp.lt.s32.totalorder %s579_s3, %s579_s3 }
  0x6e   : > { %p11163_p11 = scmp.ne.s32.totalorder %s579_s3, %s11162_s0  ;;  %p11171_p9 = scmp.lt.s32.totalorder %s11162_s0, %s11162_s0 }
  0x70   : > { %p11165_p13 = pnand %p11163_p11, %p11631_p0  ;;  %p11172_p5 = por %p11171_p9, %p11170_p6 }
  0x72   : > { %p11166_p1 = pneg %p11165_p13 }
  0x74   : > { %p11173_p10 = pnand %p11172_p5, %p11166_p1 }
  0x76   : > { %11176 = shalt.err (!%p11173_p10)
}
  0x77   : > { %10898 = dma.hbm_to_vmem [thread:$0]  (!%p11615_p12), %s13303_s15, 320, %s579_s3, [#allocation13], %s13275_s22, %s13275_s22, %s13278_s20  }
  0x78   : > { %s11434_s11 = smov [#allocation15]   ;;  %s11435_s26 = smov [#allocation3]  }
  0x79   : > { %s604_s21 = sshll.u32 %s11434_s11, 4  ;;  %s489_s23 = sshll.u32 %s11435_s26, 4  ;;  %s605_s21 = int_to_ptr.vmem [resolvable:$true] %s604_s21  ;;  %s490_s23 = int_to_ptr.vmem [resolvable:$true] %s489_s23 }
  0x7a   : > { %s11177_s25 = scalar_lea.hbm %s13253_s17, 4096 }
  0x7b   : > { %p11178_p5 = scmp.ne.s32.totalorder %s13253_s17, %s11177_s25  ;;  %p11184_p3 = scmp.lt.u32.totalorder %s11177_s25, %s13253_s17 }
  0x7d   : > { %p11180_p10 = pnand %p11178_p5, %p11631_p0 }
  0x7f   : > { %p11181_p2 = pneg %p11180_p10 }
  0x81   : > { %p11186_p4 = pnand %p11184_p3, %p11181_p2 }
  0x83   : > { %11189 = shalt.err (!%p11186_p4)
}
  0x84   : > { %s11190_s3 = scalar_lea.vmem %s605_s21, 4096  ;;  %p11198_p13 = scmp.lt.s32.totalorder %s605_s21, %s605_s21 }
  0x85   : > { %p11191_p7 = scmp.ne.s32.totalorder %s605_s21, %s11190_s3  ;;  %p11199_p1 = scmp.lt.s32.totalorder %s11190_s3, %s11190_s3 }
  0x87   : > { %p11193_p8 = pnand %p11191_p7, %p11631_p0  ;;  %p11200_p6 = por %p11199_p1, %p11198_p13 }
  0x89   : > { %p11194_p11 = pneg %p11193_p8 }
  0x8b   : > { %p11201_p9 = pnand %p11200_p6, %p11194_p11 }
  0x8d   : > { %11204 = shalt.err (!%p11201_p9)
}
  0x8e   : > { %s11436_s6 = smov 256   ;;  %s13277_s11 = smov 16  }
  0x8f   : > { %10904 = dma.hbm_to_vmem [thread:$0]  (!%p11615_p12), %s13253_s17, 4096, %s605_s21, [#allocation16], %s11436_s6, %s11436_s6, %s13277_s11  }
  0x90   : > { %s13304_s25 = sld [smem:[#allocation35_spill]] }
  0x96   : > { %s11205_s1 = scalar_lea.hbm %s13304_s25, 640 }
  0x97   : > { %p11206_p5 = scmp.ne.s32.totalorder %s13304_s25, %s11205_s1  ;;  %p11212_p3 = scmp.lt.u32.totalorder %s11205_s1, %s13304_s25 }
  0x99   : > { %p11208_p10 = pnand %p11206_p5, %p11631_p0 }
  0x9b   : > { %p11209_p2 = pneg %p11208_p10 }
  0x9d   : > { %p11214_p4 = pnand %p11212_p3, %p11209_p2 }
  0x9f   : > { %11217 = shalt.err (!%p11214_p4)
}
  0xa0   : > { %s11218_s5 = scalar_lea.vmem %s490_s23, 640  ;;  %p11226_p13 = scmp.lt.s32.totalorder %s490_s23, %s490_s23 }
  0xa1   : > { %p11219_p7 = scmp.ne.s32.totalorder %s490_s23, %s11218_s5  ;;  %p11227_p1 = scmp.lt.s32.totalorder %s11218_s5, %s11218_s5 }
  0xa3   : > { %p11221_p8 = pnand %p11219_p7, %p11631_p0  ;;  %p11228_p6 = por %p11227_p1, %p11226_p13 }
  0xa5   : > { %p11222_p11 = pneg %p11221_p8 }
  0xa7   : > { %p11229_p9 = pnand %p11228_p6, %p11222_p11 }
  0xa9   : > { %11232 = shalt.err (!%p11229_p9)
}
  0xaa   : > { %s13305_s21 = smov 64   ;;  %s11438_s26 = smov [#allocation8]  }
  0xab   : > { %10883 = dma.hbm_to_vmem [thread:$0]  (!%p11615_p12), %s13304_s25, 640, %s490_s23, [#allocation4], %s13305_s21, %s13305_s21, %s13278_s20  }
  0xac   : > { %s515_s29 = sshll.u32 %s11438_s26, 4  ;;  %s11439_s2 = smov [#allocation11]   ;;  %s516_s29 = int_to_ptr.vmem [resolvable:$true] %s515_s29 }
  0xad   : > { %s565_s1 = sshll.u32 %s11439_s2, 4  ;;  %s11233_s3 = scalar_lea.hbm %s13240_s4, 640  ;;  %s566_s1 = int_to_ptr.vmem [resolvable:$true] %s565_s1 }
  0xae   : > { %p11234_p5 = scmp.ne.s32.totalorder %s13240_s4, %s11233_s3  ;;  %p11240_p3 = scmp.lt.u32.totalorder %s11233_s3, %s13240_s4 }
  0xb0   : > { %p11236_p10 = pnand %p11234_p5, %p11631_p0 }
  0xb2   : > { %p11237_p2 = pneg %p11236_p10 }
  0xb4   : > { %p11242_p4 = pnand %p11240_p3, %p11237_p2 }
  0xb6   : > { %11245 = shalt.err (!%p11242_p4)
}
  0xb7   : > { %s11246_s23 = scalar_lea.vmem %s516_s29, 640  ;;  %p11254_p13 = scmp.lt.s32.totalorder %s516_s29, %s516_s29 }
  0xb8   : > { %p11247_p7 = scmp.ne.s32.totalorder %s516_s29, %s11246_s23  ;;  %p11255_p1 = scmp.lt.s32.totalorder %s11246_s23, %s11246_s23 }
  0xba   : > { %p11249_p8 = pnand %p11247_p7, %p11631_p0  ;;  %p11256_p6 = por %p11255_p1, %p11254_p13 }
  0xbc   : > { %p11250_p11 = pneg %p11249_p8 }
  0xbe   : > { %p11257_p9 = pnand %p11256_p6, %p11250_p11 }
  0xc0   : > { %11260 = shalt.err (!%p11257_p9)
}
  0xc1   : > { %10889 = dma.hbm_to_vmem [thread:$0]  (!%p11615_p12), %s13240_s4, 640, %s516_s29, [#allocation7], %s13305_s21, %s13305_s21, %s13278_s20  }
  0xc2   : > { %s11261_s2 = scalar_lea.hbm %s13250_s14, 80 }
  0xc3   : > { %p11262_p5 = scmp.ne.s32.totalorder %s13250_s14, %s11261_s2  ;;  %p11268_p3 = scmp.lt.u32.totalorder %s11261_s2, %s13250_s14 }
  0xc5   : > { %p11264_p10 = pnand %p11262_p5, %p11631_p0 }
  0xc7   : > { %p11265_p2 = pneg %p11264_p10 }
  0xc9   : > { %p11270_p4 = pnand %p11268_p3, %p11265_p2 }
  0xcb   : > { %11273 = shalt.err (!%p11270_p4)
}
  0xcc   : > { %s11274_s22 = scalar_lea.vmem %s566_s1, 80  ;;  %s11281_s29 = scalar_lea.vmem %s566_s1, 96 }
  0xcd   : > { %p11275_p7 = scmp.ne.s32.totalorder %s566_s1, %s11274_s22  ;;  %p11282_p13 = scmp.lt.s32.totalorder %s566_s1, %s566_s1 }
  0xce   : > { %p11283_p1 = scmp.lt.s32.totalorder %s11281_s29, %s11274_s22 }
  0xcf   : > { %p11277_p8 = pnand %p11275_p7, %p11631_p0 }
  0xd0   : > { %p11284_p6 = por %p11283_p1, %p11282_p13 }
  0xd1   : > { %p11278_p11 = pneg %p11277_p8 }
  0xd3   : > { %p11285_p9 = pnand %p11284_p6, %p11278_p11 }
  0xd5   : > { %11288 = shalt.err (!%p11285_p9)
}
  0xd6   : > { %s11440_s23 = smov 1   ;;  %s13306_s15 = smov 16  }
  0xd7   : > { %10895 = dma.hbm_to_vmem [thread:$0]  (!%p11615_p12), %s13250_s14, 80, %s566_s1, [#allocation10], %s13306_s15, %s13306_s15, %s11440_s23  }
  0xd8   : > { %s11441_s26 = smov [#allocation14]   ;;  %s11442_s0 = smov [#allocation17]  }
  0xd9   : > { %s591_s2 = sshll.u32 %s11441_s26, 4  ;;  %s617_s24 = sshll.u32 %s11442_s0, 4  ;;  %s592_s2 = int_to_ptr.vmem [resolvable:$true] %s591_s2  ;;  %s11784_s24 = int_to_ptr.vmem [resolvable:$true] %s617_s24 }
  0xda   : > { %s11289_s22 = scalar_lea.hbm %s13252_s16, 256 }
  0xdb   : > { %p11290_p5 = scmp.ne.s32.totalorder %s13252_s16, %s11289_s22  ;;  %p11296_p3 = scmp.lt.u32.totalorder %s11289_s22, %s13252_s16 }
  0xdd   : > { %p11292_p10 = pnand %p11290_p5, %p11631_p0 }
  0xdf   : > { %p11293_p2 = pneg %p11292_p10 }
  0xe1   : > { %p11298_p4 = pnand %p11296_p3, %p11293_p2 }
  0xe3   : > { %11301 = shalt.err (!%p11298_p4)
}
  0xe4   : > { %s11302_s23 = scalar_lea.vmem %s592_s2, 256  ;;  %p11310_p13 = scmp.lt.s32.totalorder %s592_s2, %s592_s2 }
  0xe5   : > { %p11303_p7 = scmp.ne.s32.totalorder %s592_s2, %s11302_s23  ;;  %p11311_p1 = scmp.lt.s32.totalorder %s11302_s23, %s11302_s23 }
  0xe7   : > { %p11305_p8 = pnand %p11303_p7, %p11631_p0  ;;  %p11312_p6 = por %p11311_p1, %p11310_p13 }
  0xe9   : > { %p11306_p11 = pneg %p11305_p8 }
  0xeb   : > { %p11313_p9 = pnand %p11312_p6, %p11306_p11 }
  0xed   : > { %11316 = shalt.err (!%p11313_p9)
}
  0xee   : > { %s13307_s20 = smov 4   ;;  %s11317_s3 = scalar_lea.hbm %s13254_s18, 65536 }
  0xef   : > { %10901 = dma.hbm_to_vmem [thread:$0]  (!%p11615_p12), %s13252_s16, 256, %s592_s2, [#allocation13], %s13305_s21, %s13305_s21, %s13307_s20  }
  0xf0   : > { %p11318_p5 = scmp.ne.s32.totalorder %s13254_s18, %s11317_s3  ;;  %p11324_p3 = scmp.lt.u32.totalorder %s11317_s3, %s13254_s18 }
  0xf2   : > { %p11320_p10 = pnand %p11318_p5, %p11631_p0 }
  0xf4   : > { %p11321_p2 = pneg %p11320_p10 }
  0xf6   : > { %p11326_p4 = pnand %p11324_p3, %p11321_p2 }
  0xf8   : > { %11329 = shalt.err (!%p11326_p4)
}
  0xf9   : > { %s11330_s2 = scalar_lea.vmem %s11784_s24, 65536  ;;  %p11338_p13 = scmp.lt.s32.totalorder %s11784_s24, %s11784_s24 }
  0xfa   : > { %p11331_p7 = scmp.ne.s32.totalorder %s11784_s24, %s11330_s2  ;;  %p11339_p1 = scmp.lt.s32.totalorder %s11330_s2, %s11330_s2 }
  0xfc   : > { %p11333_p8 = pnand %p11331_p7, %p11631_p0  ;;  %p11340_p6 = por %p11339_p1, %p11338_p13 }
  0xfe   : > { %p11334_p11 = pneg %p11333_p8 }
 0x100   : > { %p11341_p9 = pnand %p11340_p6, %p11334_p11 }
 0x102   : > { %11344 = shalt.err (!%p11341_p9)
}
 0x103   : > { %s11443_s1 = smov 1024   ;;  %p13308_p5 = scmp.ne.s32.totalorder %s13298_s28, 0 }
 0x104   : > { %10907 = dma.hbm_to_vmem [thread:$0]  (!%p11615_p12), %s13254_s18, 65536, %s11784_s24, [#allocation16], %s11443_s1, %s11443_s1, %s13305_s21  }
 0x105   : > { %640 = sbr.rel (%p13308_p5) target bundleno = 4446 (0x115e), region = 96  ;;  %p13309_p0 = scmp.eq.s32.totalorder (!%p13308_p5), %s11577_s12, 0 }
 0x10c   : > { %11390 = dma.done.wait (%p13309_p0), [#allocation4], 640   ;;  %p13310_p10 = pmov %p13309_p0 }
 0x10d   : > { %p13311_p2 = pmov %p13309_p0 }
 0x10e   : > { %11392 = vsyncadd (%p13310_p10), [#allocation4], 4294966656 }
 0x10f   : > { %11394 = dma.done.wait (%p13311_p2), [#allocation7], 1280   ;;  %p13312_p3 = pmov %p13309_p0 }
 0x110   : > { %p13313_p4 = pmov %p13309_p0 }
 0x111   : > { %11396 = vsyncadd (%p13312_p3), [#allocation7], 4294966016 }
 0x112   : > { %11398 = dma.done.wait (%p13313_p4), [#allocation10], 720   ;;  %p13314_p12 = pmov %p13309_p0 }
 0x113   : > { %p13315_p7 = pmov %p13309_p0 }
 0x114   : > { %11400 = vsyncadd (%p13314_p12), [#allocation10], 4294966576 }
 0x115   : > { %11402 = dma.done.wait (%p13315_p7), [#allocation13], 576   ;;  %p13316_p8 = pmov %p13309_p0 }
 0x116   : > { %p13317_p11 = pmov %p13309_p0 }
 0x117   : > { %11404 = vsyncadd (%p13316_p8), [#allocation13], 4294966720 }
 0x118   : > { %11406 = dma.done.wait (%p13317_p11), [#allocation16], 69632   ;;  %p13318_p13 = pmov %p13309_p0 }
 0x119   : > { %p727_p1 = scmp.lt.s32.totalorder %s11577_s12, 1  ;;  %v11444_v1 = vmov 0   ;;  %s13319_s24 = sld [smem:[#allocation33_spill]]  ;;  %v11445_v4 = vmov 0.0   ;;  %v938_v5 = vld [vmem:[%s13243_s7] sm:$0xff]  ;;  %vm11446_vm0 = vmmov 0   ;;  %v744_v13 = vlaneseq }
 0x11a   : > { %11408 = vsyncadd (%p13318_p13), [#allocation16], 4294897664  ;;  %10986 = vset.pattern.permute.xlu0 %v11444_v1  ;;  %10987 = vset.pattern.permute.xlu1 %v11444_v1  ;;  %v1487_v6 = vld [vmem:[%s13244_s8 + $0x8] sm:$0xf]  ;;  %v1486_v10 = vld [vmem:[%s13244_s8] sm:$0xff]  ;;  %vm774_vm1 = vcmask 1043456  }
 0x11b   : > { %s728_s19 = scalar_select %p727_p1, %s11577_s12, 1  ;;  %10634 = vmatprep.subr.bf16.mxu0 %v11445_v4  ;;  %10640 = vmatprep.subr.bf16.mxu1 %v11445_v4  ;;  %v2031_v7 = vld [vmem:[%s13245_s9 + $0x8] sm:$0xf]  ;;  %v2030_v11 = vld [vmem:[%s13245_s9] sm:$0xff]  ;;  %v11891_v14 = vshrl.u32 %v744_v13, 7  ;;  %vm770_vm2 = vcmask 64512  }
 0x11c   : > { %10636 = vmatprep.mubr.msk.bf16.mxu0 %vm11446_vm0, %v11445_v4  ;;  %10642 = vmatprep.mubr.msk.bf16.mxu1 %vm11446_vm0, %v11445_v4  ;;  %v2434_v8 = vld [vmem:[%s13246_s10 + $0x8] sm:$0xf]  ;;  %v2433_v12 = vld [vmem:[%s13246_s10] sm:$0xff]  ;;  %s13320_s29 = sld [smem:[#allocation34_spill]]  ;;  %vm970_vm3 = vcmask 1040384   ;;  %vm966_vm6 = vcmask 15360  }
 0x11d   : > { %s9841_s28 = sshll.u32 %s728_s19, 3  ;;  %v939_v9 = vld [vmem:[%s13243_s7 + $0x8] sm:$0xf]  ;;  %v9845_v15 = vld [vmem:[%s13249_s13 + $0x2] sm:$0x1]  ;;  %v11903_v18 = vsub.s32 0, %v11891_v14 }
 0x11e   : > { %947 = vperm.xlu1 %10987, %v939_v9   ;;  %v9842_v16 = vld [vmem:[%s13249_s13 + $0x1] sm:$0x1]  ;;  %v9852_v17 = vld [vmem:[%s13249_s13 + $0x3] sm:$0x1]  ;;  %v755_v19 = vpack.i.b16 %v9845_v15, %v9845_v15  ;;  %v1019_v36 = vld [vmem:[#allocation11 + $0x1] sm:$0x1] }
 0x11f   : > { %s730_s15 = scalar_lea.vmem %s13319_s24, %s9841_s28  ;;  %v742_v20 = vpack.i.b16 %v9842_v16, %v9842_v16  ;;  %v874_v21 = vpack.i.b16 %v9852_v17, %v9852_v17  ;;  %v965_v35 = vld [vmem:[#allocation11] sm:$0x1]  ;;  %v1021_v38 = vsel %vm970_vm3, %v1019_v36, 0  ;;  %vm1077_vm7 = vcmask 1045504   ;;  %s11447_s20 = smov 2  }
 0x120   : > { %v732_v2 = vld [vmem:[%s730_s15] sm:$0xff]  ;;  %v760_v22 = vrot.slane %v755_v19, %v11903_v18  ;;  %v972_v37 = vsel %vm970_vm3, %v965_v35, 0  ;;  %vm1073_vm8 = vcmask 97280   ;;  %vm2073_vm13 = vcmask 261120   ;;  %s11448_s19 = smov 1   ;;  %s11449_s28 = smov 127  }
 0x121   : > { %v733_v3 = vpack.c.bf16 %v732_v2, %v732_v2  ;;  %v747_v23 = vrot.slane %v742_v20, %v11903_v18  ;;  %v879_v24 = vrot.slane %v874_v21, %v11903_v18  ;;  %v1175_v21 = vld [vmem:[#allocation11 + $0x2] sm:$0x1]  ;;  %s11450_s30 = smov 126   ;;  %s13321_s15 = sld [smem:[#allocation39_spill]] }
 0x122   : > { %1490 = vperm.xlu1 %10987, %v1486_v10   ;;  %v10988_v30 = vld [vmem:[%s13320_s29 + $0x10] sm:$0x3f]   ;;  %v10989_v31 = vld [vmem:[%s13320_s29 + $0x8] sm:$0x3f]   ;;  %v10990_v34 = vld [vmem:[%s13320_s29 + $0x18] sm:$0x3f]  }
 0x123   : > { %738 = vperm.xlu0 %10986, %v733_v3   ;;  %s13322_s5 = sld [smem:[#allocation38_spill]]  ;;  %s13324_s26 = sld [smem:[#allocation31_spill]] }
 0x124   : > { %s10574_s0 = sshll.u32 %s11577_s12, 8  ;;  %s13325_s2 = sld [smem:[#allocation41_spill]] }
 0x125   : > { %s11452_s12 = smov [#allocation18]  }
 0x126   : > { %2034 = vperm.xlu1 %10987, %v2030_v11   ;;  %s11349_s24 = sshll.u32 %s11452_s12, 4  ;;  %s11350_s24 = int_to_ptr.vmem [resolvable:$false] %s11349_s24 }
 0x127   : > { %942 = vperm.xlu0 %10986, %v938_v5   ;;  %s11351_s6 = scalar_lea.vmem %s11350_s24, 512 }
 0x129   : > { %p13326_p9 = scmp.ne.s32.totalorder %s13324_s26, 0 }
 0x12a   : > { %2437 = vperm.xlu1 %10987, %v2433_v12   ;;  %s13192_s1 = scalar_lea.hbm %s13325_s2, %s10574_s0 }
 0x12b   : > { %1495 = vperm.xlu0 %10986, %v1487_v6  }
 0x12f   : > { %2039 = vperm.xlu0 %10986, %v2031_v7  }
 0x133   : > { %2442 = vperm.xlu0 %10986, %v2434_v8  }
 0x19d   : > { %v948_v57 = vpop.permute.xlu1 %947 }
 0x1a2   : > { %v739_v25 = vpop.permute.xlu0 %738 }
 0x1a3   : > { %v761_v26 = vmul.bf16 %v760_v22, %v739_v25  ;;  %v748_v27 = vmul.bf16 %v747_v23, %v739_v25  ;;  %v880_v32 = vmul.bf16 %v879_v24, %v739_v25  ;;  %v10991_v24 = vld [vmem:[#allocation3 + $0x8] sm:$0x3f]   ;;  %v10992_v25 = vld [vmem:[#allocation3] sm:$0x3f]  }
 0x1a5   : > { %v776_v28 = vsel %vm774_vm1, %v761_v26, 0  ;;  %v828_v29 = vsel %vm774_vm1, %v748_v27, 0  ;;  %v893_v33 = vsel %vm774_vm1, %v880_v32, 0  ;;  %v1177_v26 = vsel %vm970_vm3, %v1175_v21, 0  ;;  %v1279_v27 = vld [vmem:[#allocation11 + $0x3] sm:$0x1] }
 0x1a6   : > { %10635 = vmatpush3.bf16.msra.mxu0 %v776_v28  ;;  %10641 = vmatpush3.bf16.msra.mxu1 %v828_v29  ;;  %v943_v52 = vpop.permute.xlu0 %942  ;;  %v1281_v28 = vsel %vm970_vm3, %v1279_v27, 0  ;;  %v1383_v29 = vld [vmem:[#allocation11 + $0x4] sm:$0x1] }
 0x1a7   : > { %10646 = vmatprep.subr.bf16.mxu0 %v11445_v4  ;;  %10652 = vmatprep.subr.bf16.mxu1 %v11445_v4 }
 0x1a9   : > { %10637 = vmatmul.mubr.msk.bf16.vlgmr.msra.gmra.mrb[0].mxu0 %vm770_vm2, %v10988_v30  ;;  %10643 = vmatmul.mubr.msk.bf16.vlgmr.msra.gmra.mrb[0].mxu1 %vm770_vm2, %v10989_v31  ;;  %v1385_v30 = vsel %vm970_vm3, %v1383_v29, 0 }
 0x1aa   : > { %10647 = vmatpush3.bf16.msra.mxu0 %v893_v33  ;;  %10648 = vmatprep.mubr.msk.bf16.mxu0 %vm11446_vm0, %v11445_v4  ;;  %v1496_v27 = vpop.permute.xlu0 %1495 }
 0x1ab   : > { %10658 = vmatprep.subr.bf16.mxu0 %v11445_v4  ;;  %10654 = vmatprep.mubr.msk.bf16.mxu1 %vm11446_vm0, %v11445_v4 }
 0x1ac   : > { %10653 = vmatpush3.bf16.msra.mxu1 %v972_v37 }
 0x1ad   : > { %10664 = vmatprep.subr.bf16.mxu1 %v11445_v4 }
 0x1b1   : > { %10649 = vmatmul.mubr.msk.bf16.vlgmr.msra.gmra.mrb[4].mxu0 %vm770_vm2, %v10990_v34 }
 0x1b2   : > { %10660 = vmatprep.mubr.msk.bf16.mxu0 %vm11446_vm0, %v11445_v4  ;;  %10659 = vmatpush3.bf16.msra.mxu0 %v1021_v38 }
 0x1b3   : > { %10670 = vmatprep.subr.bf16.mxu0 %v11445_v4 }
 0x27c   : > { %v812_v39 = vpop.f32.mrb[0].mxu0  ;;  %v864_v40 = vpop.f32.mrb[0].mxu1 }
 0x27d   : > { %v865_v41 = vadd.f32 %v864_v40, %v812_v39  ;;  %v10638_v42 = vpop.f32.mrb[1].mxu0  ;;  %v10644_v43 = vpop.f32.mrb[1].mxu1 }
 0x27e   : > { %v815_v44 = vpop.f32.mrb[2].mxu0  ;;  %v867_v45 = vpop.f32.mrb[2].mxu1 }
 0x27f   : > { %v868_v46 = vadd.f32 %v867_v45, %v815_v44  ;;  %v10639_v47 = vpop.f32.mrb[3].mxu0  ;;  %v10645_v48 = vpop.f32.mrb[3].mxu1 }
 0x280   : > { %v10993_v47 = vld [vmem:[#allocation3 + $0x10] sm:$0x3f]  }
 0x284   : > { %v929_v49 = vpop.f32.mrb[4].mxu0 }
 0x285   : > { %v936_v50 = vadd.f32 %v929_v49, %v865_v41  ;;  %v10650_v51 = vpop.f32.mrb[5].mxu0 }
 0x286   : > { %v932_v53 = vpop.f32.mrb[6].mxu0 }
 0x287   : > { %v950_v54 = vadd.f32 %v943_v52, %v936_v50  ;;  %v937_v55 = vadd.f32 %v932_v53, %v868_v46  ;;  %v10651_v56 = vpop.f32.mrb[7].mxu0 }
 0x289   : > { %v954_v58 = vmin.f32 %v950_v54, 0.0  ;;  %v951_v59 = vadd.f32 %v948_v57, %v937_v55  ;;  %vm952_vm4 = vcmp.gt.f32.partialorder %v950_v54, 0.0 }
 0x28b   : > { %v956_v60 = vmul.f32 1.442695, %v954_v58  ;;  %v955_v61 = vmin.f32 %v951_v59, 0.0  ;;  %vm953_vm5 = vcmp.gt.f32.partialorder %v951_v59, 0.0 }
 0x28d   : > { %11061 = vpow2.f32 %v956_v60  ;;  %v958_v62 = vmul.f32 1.442695, %v955_v61  ;;  %v10995_v61 = vld [vmem:[#allocation3 + $0x20] sm:$0x3f]  }
 0x28f   : > { %11063 = vpow2.f32 %v958_v62  ;;  %v1513_v62 = vld [vmem:[#allocation12] sm:$0xf] }
 0x297   : > { %v11062_v63 = vpop.eup %11061 }
 0x298   : > { %v9857_v0 = vadd.f32 -1.0, %v11062_v63  ;;  %v1565_v63 = vld [vmem:[#allocation12 + $0x4] sm:$0xf] }
 0x299   : > { %v11064_v2 = vpop.eup %11063 }
 0x29a   : > { %v9858_v3 = vadd.f32 -1.0, %v11064_v2  ;;  %v962_v5 = vsel %vm952_vm4, %v950_v54, %v9857_v0  ;;  %v10994_v54 = vld [vmem:[#allocation3 + $0x18] sm:$0x3f]   ;;  %v1518_v0 = vsel %vm774_vm1, %v1513_v62, 0  ;;  %v1567_v2 = vsel %vm774_vm1, %v1565_v63, 0 }
 0x29c   : > { %v963_v6 = vsel %vm953_vm5, %v951_v59, %v9858_v3 }
 0x29d   : > { %v964_v7 = vpack.c.bf16 %v963_v6, %v962_v5 }
 0x29f   : > { %10655 = vmatmul.mubr.msk.bf16.vlgmr.msra.gmra.mrb[4].mxu1 %vm966_vm6, %v964_v7  ;;  %10661 = vmatmul.mubr.msk.bf16.vlgmr.msra.gmra.mrb[8].mxu0 %vm966_vm6, %v964_v7 }
 0x2a0   : > { %10666 = vmatprep.mubr.msk.bf16.mxu1 %vm11446_vm0, %v11445_v4  ;;  %10672 = vmatprep.mubr.msk.bf16.mxu0 %vm11446_vm0, %v11445_v4 }
 0x372   : > { %v1008_v8 = vpop.f32.mrb[4].mxu1  ;;  %v1057_v9 = vpop.f32.mrb[8].mxu0 }
 0x373   : > { %v10656_v10 = vpop.f32.mrb[5].mxu1  ;;  %v10662_v11 = vpop.f32.mrb[9].mxu0 }
 0x374   : > { %v1011_v12 = vpop.f32.mrb[6].mxu1  ;;  %v1060_v15 = vpop.f32.mrb[10].mxu0 }
 0x375   : > { %v1015_v16 = vpack.c.bf16 %v1011_v12, %v1008_v8  ;;  %v1064_v17 = vpack.c.bf16 %v1060_v15, %v1057_v9  ;;  %v10657_v19 = vpop.f32.mrb[7].mxu1  ;;  %v10663_v20 = vpop.f32.mrb[11].mxu0 }
 0x377   : > { %v1131_v22 = vsel %vm1077_vm7, %v1015_v16, 0  ;;  %v1079_v23 = vsel %vm1077_vm7, %v1064_v17, 0 }
 0x378   : > { %10665 = vmatpush3.bf16.msra.mxu1 %v1079_v23  ;;  %10671 = vmatpush3.bf16.msra.mxu0 %v1131_v22  ;;  %v1491_v22 = vpop.permute.xlu1 %1490 }
 0x379   : > { %10676 = vmatprep.subr.bf16.mxu1 %v11445_v4  ;;  %10682 = vmatprep.subr.bf16.mxu0 %v11445_v4 }
 0x37b   : > { %10667 = vmatmul.mubr.msk.bf16.vlgmr.msra.gmra.mrb[8].mxu1 %vm1073_vm8, %v10991_v24  ;;  %10673 = vmatmul.mubr.msk.bf16.vlgmr.msra.gmra.mrb[12].mxu0 %vm1073_vm8, %v10992_v25 }
 0x37c   : > { %10677 = vmatpush3.bf16.msra.mxu1 %v1177_v26  ;;  %10678 = vmatprep.mubr.msk.bf16.mxu1 %vm11446_vm0, %v11445_v4 }
 0x37d   : > { %10688 = vmatprep.subr.bf16.mxu1 %v11445_v4  ;;  %10684 = vmatprep.mubr.msk.bf16.mxu0 %vm11446_vm0, %v11445_v4 }
 0x383   : > { %10679 = vmatmul.mubr.msk.bf16.vlgmr.msra.gmra.mrb[12].mxu1 %vm966_vm6, %v964_v7 }
 0x384   : > { %10689 = vmatpush3.bf16.msra.mxu1 %v1281_v28  ;;  %10690 = vmatprep.mubr.msk.bf16.mxu1 %vm11446_vm0, %v11445_v4 }
 0x385   : > { %10700 = vmatprep.subr.bf16.mxu1 %v11445_v4 }
 0x38b   : > { %10691 = vmatmul.mubr.msk.bf16.vlgmr.msra.gmra.mrb[16].mxu1 %vm966_vm6, %v964_v7 }
 0x38c   : > { %10701 = vmatpush3.bf16.msra.mxu1 %v1385_v30  ;;  %10702 = vmatprep.mubr.msk.bf16.mxu1 %vm11446_vm0, %v11445_v4 }
 0x38d   : > { %10712 = vmatprep.subr.bf16.mxu1 %v11445_v4 }
 0x393   : > { %10703 = vmatmul.mubr.msk.bf16.vlgmr.msra.gmra.mrb[20].mxu1 %vm966_vm6, %v964_v7 }
 0x394   : > { %10714 = vmatprep.mubr.msk.bf16.mxu1 %vm11446_vm0, %v11445_v4  ;;  %10713 = vmatpush3.bf16.msra.mxu1 %v1518_v0 }
 0x395   : > { %10724 = vmatprep.subr.bf16.mxu1 %v11445_v4 }
 0x44e   : > { %v1115_v31 = vpop.f32.mrb[8].mxu1  ;;  %v1167_v32 = vpop.f32.mrb[12].mxu0 }
 0x44f   : > { %v1168_v33 = vadd.f32 %v1167_v32, %v1115_v31  ;;  %v10668_v34 = vpop.f32.mrb[9].mxu1  ;;  %v10674_v35 = vpop.f32.mrb[13].mxu0 }
 0x450   : > { %v1118_v36 = vpop.f32.mrb[10].mxu1  ;;  %v1170_v37 = vpop.f32.mrb[14].mxu0 }
 0x451   : > { %v1171_v38 = vadd.f32 %v1170_v37, %v1118_v36  ;;  %v10669_v39 = vpop.f32.mrb[11].mxu1  ;;  %v10675_v40 = vpop.f32.mrb[15].mxu0 }
 0x456   : > { %v1213_v41 = vpop.f32.mrb[12].mxu1 }
 0x457   : > { %v10680_v42 = vpop.f32.mrb[13].mxu1 }
 0x458   : > { %v1216_v43 = vpop.f32.mrb[14].mxu1 }
 0x459   : > { %v1220_v44 = vpack.c.bf16 %v1216_v43, %v1213_v41  ;;  %v10681_v45 = vpop.f32.mrb[15].mxu1 }
 0x45b   : > { %v1233_v46 = vsel %vm1077_vm7, %v1220_v44, 0 }
 0x45c   : > { %10683 = vmatpush3.bf16.msra.mxu0 %v1233_v46 }
 0x45d   : > { %10694 = vmatprep.subr.bf16.mxu0 %v11445_v4 }
 0x45e   : > { %v1317_v48 = vpop.f32.mrb[16].mxu1 }
 0x45f   : > { %10685 = vmatmul.mubr.msk.bf16.vlgmr.msra.gmra.mrb[16].mxu0 %vm1073_vm8, %v10993_v47  ;;  %v10692_v49 = vpop.f32.mrb[17].mxu1 }
 0x460   : > { %v1320_v50 = vpop.f32.mrb[18].mxu1  ;;  %10696 = vmatprep.mubr.msk.bf16.mxu0 %vm11446_vm0, %v11445_v4 }
 0x461   : > { %v1324_v51 = vpack.c.bf16 %v1320_v50, %v1317_v48  ;;  %v10693_v52 = vpop.f32.mrb[19].mxu1  ;;  %v1719_v50 = vld [vmem:[#allocation12 + $0x8] sm:$0xf] }
 0x463   : > { %v1337_v53 = vsel %vm1077_vm7, %v1324_v51, 0 }
 0x464   : > { %10695 = vmatpush3.bf16.msra.mxu0 %v1337_v53  ;;  %v10996_v53 = vld [vmem:[#allocation6 + $0x8] sm:$0x3f]  }
 0x465   : > { %10706 = vmatprep.subr.bf16.mxu0 %v11445_v4 }
 0x466   : > { %v1421_v55 = vpop.f32.mrb[20].mxu1 }
 0x467   : > { %10697 = vmatmul.mubr.msk.bf16.vlgmr.msra.gmra.mrb[20].mxu0 %vm1073_vm8, %v10994_v54  ;;  %v10704_v56 = vpop.f32.mrb[21].mxu1  ;;  %v10997_v54 = vld [vmem:[#allocation6] sm:$0x3f]  }
 0x468   : > { %v1424_v57 = vpop.f32.mrb[22].mxu1  ;;  %10708 = vmatprep.mubr.msk.bf16.mxu0 %vm11446_vm0, %v11445_v4  ;;  %v1823_v56 = vld [vmem:[#allocation12 + $0xc] sm:$0xf] }
 0x469   : > { %v1428_v58 = vpack.c.bf16 %v1424_v57, %v1421_v55  ;;  %v10705_v59 = vpop.f32.mrb[23].mxu1  ;;  %v1721_v55 = vsel %vm774_vm1, %v1719_v50, 0  ;;  %v1825_v57 = vsel %vm774_vm1, %v1823_v56, 0 }
 0x46b   : > { %v1441_v60 = vsel %vm1077_vm7, %v1428_v58, 0  ;;  %v1927_v58 = vld [vmem:[#allocation12 + $0x10] sm:$0xf] }
 0x46c   : > { %10707 = vmatpush3.bf16.msra.mxu0 %v1441_v60  ;;  %v1929_v59 = vsel %vm774_vm1, %v1927_v58, 0 }
 0x46d   : > { %10718 = vmatprep.subr.bf16.mxu0 %v11445_v4 }
 0x46f   : > { %10709 = vmatmul.mubr.msk.bf16.vlgmr.msra.gmra.mrb[24].mxu0 %vm1073_vm8, %v10995_v61 }
 0x470   : > { %10720 = vmatprep.mubr.msk.bf16.mxu0 %vm11446_vm0, %v11445_v4  ;;  %10719 = vmatpush3.bf16.msra.mxu0 %v1567_v2 }
 0x471   : > { %10730 = vmatprep.subr.bf16.mxu0 %v11445_v4 }
 0x532   : > { %v1269_v3 = vpop.f32.mrb[16].mxu0 }
 0x533   : > { %v1276_v5 = vadd.f32 %v1269_v3, %v1168_v33  ;;  %v10686_v6 = vpop.f32.mrb[17].mxu0 }
 0x534   : > { %v1272_v7 = vpop.f32.mrb[18].mxu0 }
 0x535   : > { %v1277_v8 = vadd.f32 %v1272_v7, %v1171_v38  ;;  %v10687_v9 = vpop.f32.mrb[19].mxu0 }
 0x53a   : > { %v1373_v10 = vpop.f32.mrb[20].mxu0 }
 0x53b   : > { %v1380_v11 = vadd.f32 %v1373_v10, %v1276_v5  ;;  %v10698_v12 = vpop.f32.mrb[21].mxu0 }
 0x53c   : > { %v1376_v15 = vpop.f32.mrb[22].mxu0 }
 0x53d   : > { %v1381_v16 = vadd.f32 %v1376_v15, %v1277_v8  ;;  %v10699_v17 = vpop.f32.mrb[23].mxu0 }
 0x542   : > { %v1477_v19 = vpop.f32.mrb[24].mxu0 }
 0x543   : > { %v1484_v20 = vadd.f32 %v1477_v19, %v1380_v11  ;;  %v10710_v21 = vpop.f32.mrb[25].mxu0 }
 0x544   : > { %v1480_v23 = vpop.f32.mrb[26].mxu0 }
 0x545   : > { %v1498_v24 = vadd.f32 %v1491_v22, %v1484_v20  ;;  %v1485_v25 = vadd.f32 %v1480_v23, %v1381_v16  ;;  %v10711_v26 = vpop.f32.mrb[27].mxu0  ;;  %v10998_v16 = vld [vmem:[#allocation6 + $0x10] sm:$0x3f]  }
 0x547   : > { %v1502_v28 = vmin.f32 %v1498_v24, 0.0  ;;  %v1499_v29 = vadd.f32 %v1496_v27, %v1485_v25  ;;  %vm1500_vm9 = vcmp.gt.f32.partialorder %v1498_v24, 0.0 }
 0x549   : > { %v1504_v30 = vmul.f32 1.442695, %v1502_v28  ;;  %v1503_v31 = vmin.f32 %v1499_v29, 0.0  ;;  %vm1501_vm10 = vcmp.gt.f32.partialorder %v1499_v29, 0.0 }
 0x54b   : > { %11065 = vpow2.f32 %v1504_v30  ;;  %v1506_v32 = vmul.f32 1.442695, %v1503_v31  ;;  %v11000_v31 = vld [vmem:[#allocation6 + $0x20] sm:$0x3f]  }
 0x54d   : > { %11067 = vpow2.f32 %v1506_v32  ;;  %v11001_v32 = vld [vmem:[#allocation14] sm:$0xff]  }
 0x555   : > { %v11066_v33 = vpop.eup %11065 }
 0x556   : > { %v9874_v34 = vadd.f32 -1.0, %v11066_v33  ;;  %v11002_v33 = vld [vmem:[#allocation14 + $0x8] sm:$0xff]  }
 0x557   : > { %v11068_v35 = vpop.eup %11067 }
 0x558   : > { %v9875_v36 = vadd.f32 -1.0, %v11068_v35  ;;  %v1510_v37 = vsel %vm1500_vm9, %v1498_v24, %v9874_v34  ;;  %v10999_v24 = vld [vmem:[#allocation6 + $0x18] sm:$0x3f]  }
 0x55a   : > { %v1511_v38 = vsel %vm1501_vm10, %v1499_v29, %v9875_v36 }
 0x55b   : > { %v1512_v39 = vpack.c.bf16 %v1511_v38, %v1510_v37 }
 0x55d   : > { %10715 = vmatmul.mubr.msk.bf16.vlgmr.msra.gmra.mrb[24].mxu1 %vm770_vm2, %v1512_v39  ;;  %10721 = vmatmul.mubr.msk.bf16.vlgmr.msra.gmra.mrb[28].mxu0 %vm770_vm2, %v1512_v39 }
 0x55e   : > { %10726 = vmatprep.mubr.msk.bf16.mxu1 %vm11446_vm0, %v11445_v4  ;;  %10732 = vmatprep.mubr.msk.bf16.mxu0 %vm11446_vm0, %v11445_v4 }
 0x630   : > { %v1554_v40 = vpop.f32.mrb[24].mxu1  ;;  %v1603_v41 = vpop.f32.mrb[28].mxu0 }
 0x631   : > { %v10716_v42 = vpop.f32.mrb[25].mxu1  ;;  %v10722_v43 = vpop.f32.mrb[29].mxu0 }
 0x632   : > { %v1557_v44 = vpop.f32.mrb[26].mxu1  ;;  %v1606_v45 = vpop.f32.mrb[30].mxu0 }
 0x633   : > { %v1561_v46 = vpack.c.bf16 %v1557_v44, %v1554_v40  ;;  %v1610_v47 = vpack.c.bf16 %v1606_v45, %v1603_v41  ;;  %v10717_v48 = vpop.f32.mrb[27].mxu1  ;;  %v10723_v49 = vpop.f32.mrb[31].mxu0 }
 0x634   : > { %v2035_v49 = vpop.permute.xlu1 %2034 }
 0x635   : > { %v1675_v51 = vsel %vm1077_vm7, %v1561_v46, 0  ;;  %v1623_v52 = vsel %vm1077_vm7, %v1610_v47, 0 }
 0x636   : > { %10725 = vmatpush3.bf16.msra.mxu1 %v1623_v52  ;;  %10731 = vmatpush3.bf16.msra.mxu0 %v1675_v51 }
 0x637   : > { %10736 = vmatprep.subr.bf16.mxu1 %v11445_v4  ;;  %10742 = vmatprep.subr.bf16.mxu0 %v11445_v4 }
 0x639   : > { %10727 = vmatmul.mubr.msk.bf16.vlgmr.msra.gmra.mrb[28].mxu1 %vm1073_vm8, %v10996_v53  ;;  %10733 = vmatmul.mubr.msk.bf16.vlgmr.msra.gmra.mrb[32].mxu0 %vm1073_vm8, %v10997_v54  ;;  %v2040_v54 = vpop.permute.xlu0 %2039 }
 0x63a   : > { %10737 = vmatpush3.bf16.msra.mxu1 %v1721_v55  ;;  %10738 = vmatprep.mubr.msk.bf16.mxu1 %vm11446_vm0, %v11445_v4 }
 0x63b   : > { %10748 = vmatprep.subr.bf16.mxu1 %v11445_v4  ;;  %10744 = vmatprep.mubr.msk.bf16.mxu0 %vm11446_vm0, %v11445_v4 }
 0x641   : > { %10739 = vmatmul.mubr.msk.bf16.vlgmr.msra.gmra.mrb[32].mxu1 %vm770_vm2, %v1512_v39 }
 0x642   : > { %10749 = vmatpush3.bf16.msra.mxu1 %v1825_v57  ;;  %10750 = vmatprep.mubr.msk.bf16.mxu1 %vm11446_vm0, %v11445_v4 }
 0x643   : > { %10760 = vmatprep.subr.bf16.mxu1 %v11445_v4 }
 0x649   : > { %10751 = vmatmul.mubr.msk.bf16.vlgmr.msra.gmra.mrb[36].mxu1 %vm770_vm2, %v1512_v39 }
 0x64a   : > { %10761 = vmatpush3.bf16.msra.mxu1 %v1929_v59  ;;  %10762 = vmatprep.mubr.msk.bf16.mxu1 %vm11446_vm0, %v11445_v4 }
 0x64b   : > { %10772 = vmatprep.subr.bf16.mxu1 %v11445_v4 }
 0x651   : > { %10763 = vmatmul.mubr.msk.bf16.vlgmr.msra.gmra.mrb[40].mxu1 %vm770_vm2, %v1512_v39 }
 0x652   : > { %10776 = vmatprep.mubr.msk.bf16.mxu1 %vm11446_vm0, %v11445_v4  ;;  %10773 = vmatpush3.bf16.msra.mxu1 %v11001_v32 }
 0x653   : > { %10774 = vmatprep.subr.bf16.mxu1 %v11445_v4 }
 0x656   : > { %10775 = vmatpush3.bf16.msra.mxu1 %v11002_v33 }
 0x657   : > { %10786 = vmatprep.subr.bf16.mxu1 %v11445_v4 }
 0x70c   : > { %v1659_v60 = vpop.f32.mrb[28].mxu1  ;;  %v1711_v61 = vpop.f32.mrb[32].mxu0 }
 0x70d   : > { %v1712_v62 = vadd.f32 %v1711_v61, %v1659_v60  ;;  %v10728_v63 = vpop.f32.mrb[29].mxu1  ;;  %v10734_v0 = vpop.f32.mrb[33].mxu0 }
 0x70e   : > { %v1662_v2 = vpop.f32.mrb[30].mxu1  ;;  %v1714_v3 = vpop.f32.mrb[34].mxu0 }
 0x70f   : > { %v1715_v5 = vadd.f32 %v1714_v3, %v1662_v2  ;;  %v10729_v6 = vpop.f32.mrb[31].mxu1  ;;  %v10735_v7 = vpop.f32.mrb[35].mxu0 }
 0x714   : > { %v1757_v8 = vpop.f32.mrb[32].mxu1 }
 0x715   : > { %v10740_v9 = vpop.f32.mrb[33].mxu1 }
 0x716   : > { %v1760_v10 = vpop.f32.mrb[34].mxu1 }
 0x717   : > { %v1764_v11 = vpack.c.bf16 %v1760_v10, %v1757_v8  ;;  %v10741_v12 = vpop.f32.mrb[35].mxu1 }
 0x718   : > { %v11004_v12 = vld [vmem:[#allocation8 + $0x8] sm:$0x3f]  }
 0x719   : > { %v1777_v15 = vsel %vm1077_vm7, %v1764_v11, 0  ;;  %v11003_v11 = vld [vmem:[#allocation8] sm:$0x3f]  }
 0x71a   : > { %10743 = vmatpush3.bf16.msra.mxu0 %v1777_v15  ;;  %v11005_v15 = vld [vmem:[#allocation8 + $0x10] sm:$0x3f]  }
 0x71b   : > { %10754 = vmatprep.subr.bf16.mxu0 %v11445_v4 }
 0x71c   : > { %v1861_v17 = vpop.f32.mrb[36].mxu1 }
 0x71d   : > { %10745 = vmatmul.mubr.msk.bf16.vlgmr.msra.gmra.mrb[36].mxu0 %vm1073_vm8, %v10998_v16  ;;  %v10752_v19 = vpop.f32.mrb[37].mxu1  ;;  %v11006_v16 = vld [vmem:[#allocation8 + $0x18] sm:$0x3f]  }
 0x71e   : > { %v1864_v20 = vpop.f32.mrb[38].mxu1  ;;  %10756 = vmatprep.mubr.msk.bf16.mxu0 %vm11446_vm0, %v11445_v4  ;;  %v11010_v19 = vld [vmem:[#allocation15 + $0x4] ss:$16 sps:$4 sm:$0xff]  }
 0x71f   : > { %v1868_v21 = vpack.c.bf16 %v1864_v20, %v1861_v17  ;;  %v10753_v22 = vpop.f32.mrb[39].mxu1  ;;  %v11007_v17 = vld [vmem:[#allocation8 + $0x20] sm:$0x3f]   ;;  %v11013_v20 = vld [vmem:[#allocation15 + $0xc] ss:$16 sps:$4 sm:$0xff]  }
 0x720   : > { %v11011_v22 = vld [vmem:[#allocation15 + $0x8] ss:$16 sps:$4 sm:$0xff]  }
 0x721   : > { %v1881_v23 = vsel %vm1077_vm7, %v1868_v21, 0  ;;  %v11008_v21 = vld [vmem:[#allocation15] ss:$16 sps:$4 sm:$0xff]  }
 0x722   : > { %10755 = vmatpush3.bf16.msra.mxu0 %v1881_v23 }
 0x723   : > { %10766 = vmatprep.subr.bf16.mxu0 %v11445_v4 }
 0x724   : > { %v1965_v25 = vpop.f32.mrb[40].mxu1 }
 0x725   : > { %10757 = vmatmul.mubr.msk.bf16.vlgmr.msra.gmra.mrb[40].mxu0 %vm1073_vm8, %v10999_v24  ;;  %v10764_v26 = vpop.f32.mrb[41].mxu1 }
 0x726   : > { %v1968_v27 = vpop.f32.mrb[42].mxu1  ;;  %10768 = vmatprep.mubr.msk.bf16.mxu0 %vm11446_vm0, %v11445_v4 }
 0x727   : > { %v1972_v28 = vpack.c.bf16 %v1968_v27, %v1965_v25  ;;  %v10765_v29 = vpop.f32.mrb[43].mxu1  ;;  %v11016_v25 = vld [vmem:[#allocation15 + $0x24] ss:$16 sps:$4 sm:$0xff]   ;;  %v11014_v27 = vld [vmem:[#allocation15 + $0x20] ss:$16 sps:$4 sm:$0xff]  }
 0x729   : > { %v1985_v30 = vsel %vm1077_vm7, %v1972_v28, 0  ;;  %v11019_v28 = vld [vmem:[#allocation15 + $0x2c] ss:$16 sps:$4 sm:$0xff]  }
 0x72a   : > { %10767 = vmatpush3.bf16.msra.mxu0 %v1985_v30 }
 0x72b   : > { %10780 = vmatprep.subr.bf16.mxu0 %v11445_v4 }
 0x72d   : > { %10769 = vmatmul.mubr.msk.bf16.vlgmr.msra.gmra.mrb[44].mxu0 %vm1073_vm8, %v11000_v31  ;;  %v11017_v31 = vld [vmem:[#allocation15 + $0x28] ss:$16 sps:$4 sm:$0xff]  }
 0x72e   : > { %10782 = vmatprep.mubr.msk.bf16.mxu0 %vm11446_vm0, %v11445_v4 }
 0x7f0   : > { %v1813_v34 = vpop.f32.mrb[36].mxu0 }
 0x7f1   : > { %v1820_v35 = vadd.f32 %v1813_v34, %v1712_v62  ;;  %v10746_v36 = vpop.f32.mrb[37].mxu0  ;;  %v11022_v34 = vld [vmem:[#allocation15 + $0x44] ss:$16 sps:$4 sm:$0xff]  }
 0x7f2   : > { %v1816_v37 = vpop.f32.mrb[38].mxu0  ;;  %v11020_v36 = vld [vmem:[#allocation15 + $0x40] ss:$16 sps:$4 sm:$0xff]  }
 0x7f3   : > { %v1821_v38 = vadd.f32 %v1816_v37, %v1715_v5  ;;  %v10747_v39 = vpop.f32.mrb[39].mxu0  ;;  %v11023_v37 = vld [vmem:[#allocation15 + $0x48] ss:$16 sps:$4 sm:$0xff]  }
 0x7f8   : > { %v1917_v40 = vpop.f32.mrb[40].mxu0 }
 0x7f9   : > { %v1924_v41 = vadd.f32 %v1917_v40, %v1820_v35  ;;  %v10758_v42 = vpop.f32.mrb[41].mxu0  ;;  %v11025_v35 = vld [vmem:[#allocation15 + $0x4c] ss:$16 sps:$4 sm:$0xff]  }
 0x7fa   : > { %v1920_v43 = vpop.f32.mrb[42].mxu0 }
 0x7fb   : > { %v1925_v44 = vadd.f32 %v1920_v43, %v1821_v38  ;;  %v10759_v45 = vpop.f32.mrb[43].mxu0 }
 0x7fc   : > { %v11031_v45 = vld [vmem:[#allocation15 + $0x6c] ss:$16 sps:$4 sm:$0xff]  }
 0x800   : > { %v2021_v46 = vpop.f32.mrb[44].mxu0 }
 0x801   : > { %v2028_v47 = vadd.f32 %v2021_v46, %v1924_v41  ;;  %v10770_v48 = vpop.f32.mrb[45].mxu0 }
 0x802   : > { %v2024_v50 = vpop.f32.mrb[46].mxu0  ;;  %v11026_v48 = vld [vmem:[#allocation15 + $0x60] ss:$16 sps:$4 sm:$0xff]  }
 0x803   : > { %v2042_v51 = vadd.f32 %v2035_v49, %v2028_v47  ;;  %v2029_v52 = vadd.f32 %v2024_v50, %v1925_v44  ;;  %v10771_v53 = vpop.f32.mrb[47].mxu0  ;;  %v11028_v44 = vld [vmem:[#allocation15 + $0x64] ss:$16 sps:$4 sm:$0xff]   ;;  %v11029_v49 = vld [vmem:[#allocation15 + $0x68] ss:$16 sps:$4 sm:$0xff]  }
 0x804   : > { %v11034_v50 = vld [vmem:[#allocation15 + $0x84] ss:$16 sps:$4 sm:$0xff]   ;;  %v11035_v53 = vld [vmem:[#allocation15 + $0x88] ss:$16 sps:$4 sm:$0xff]  }
 0x805   : > { %v2046_v55 = vmin.f32 %v2042_v51, 0.0  ;;  %v2043_v56 = vadd.f32 %v2040_v54, %v2029_v52  ;;  %vm2044_vm11 = vcmp.gt.f32.partialorder %v2042_v51, 0.0  ;;  %v11032_v52 = vld [vmem:[#allocation15 + $0x80] ss:$16 sps:$4 sm:$0xff]  }
 0x807   : > { %v2048_v57 = vmul.f32 1.442695, %v2046_v55  ;;  %v2047_v58 = vmin.f32 %v2043_v56, 0.0  ;;  %vm2045_vm12 = vcmp.gt.f32.partialorder %v2043_v56, 0.0  ;;  %v11040_v55 = vld [vmem:[#allocation15 + $0xa4] ss:$16 sps:$4 sm:$0xff]  }
 0x809   : > { %11069 = vpow2.f32 %v2048_v57  ;;  %v2050_v59 = vmul.f32 1.442695, %v2047_v58  ;;  %v11038_v57 = vld [vmem:[#allocation15 + $0xa0] ss:$16 sps:$4 sm:$0xff]   ;;  %v11043_v58 = vld [vmem:[#allocation15 + $0xac] ss:$16 sps:$4 sm:$0xff]  }
 0x80b   : > { %11071 = vpow2.f32 %v2050_v59 }
 0x813   : > { %v11070_v60 = vpop.eup %11069 }
 0x814   : > { %v9891_v61 = vadd.f32 -1.0, %v11070_v60  ;;  %v3472_v60 = vld [vmem:[%s13321_s15] sm:$0xff] }
 0x815   : > { %v11072_v62 = vpop.eup %11071 }
 0x816   : > { %v9892_v63 = vadd.f32 -1.0, %v11072_v62  ;;  %v2054_v0 = vsel %vm2044_vm11, %v2042_v51, %v9891_v61  ;;  %v11037_v51 = vld [vmem:[#allocation15 + $0x8c] ss:$16 sps:$4 sm:$0xff]   ;;  %v11041_v61 = vld [vmem:[#allocation15 + $0xa8] ss:$16 sps:$4 sm:$0xff]  }
 0x818   : > { %v2055_v2 = vsel %vm2045_vm12, %v2043_v56, %v9892_v63  ;;  %v3473_v63 = vld [vmem:[%s13321_s15 + $0x8] sm:$0xf] }
 0x819   : > { %v2056_v3 = vpack.c.bf16 %v2055_v2, %v2054_v0  ;;  %v11044_v0 = vld [vmem:[#allocation15 + $0xc0] ss:$16 sps:$4 sm:$0xff]   ;;  %v11046_v2 = vld [vmem:[#allocation15 + $0xc4] ss:$16 sps:$4 sm:$0xff]  }
 0x81b   : > { %10777 = vmatmul.mubr.msk.bf16.vlgmr.msra.gmra.mrb[44].mxu1 %vm2073_vm13, %v2056_v3  ;;  %v11047_v3 = vld [vmem:[#allocation15 + $0xc8] ss:$16 sps:$4 sm:$0xff]  }
 0x81c   : > { %10788 = vmatprep.mubr.msk.bf16.mxu1 %vm11446_vm0, %v11445_v4 }
 0x8ee   : > { %v2111_v5 = vpop.f32.mrb[44].mxu1 }
 0x8ef   : > { %v10778_v6 = vpop.f32.mrb[45].mxu1 }
 0x8f0   : > { %v2114_v7 = vpop.f32.mrb[46].mxu1  ;;  %v11052_v6 = vld [vmem:[#allocation15 + $0xe4] ss:$16 sps:$4 sm:$0xff]  }
 0x8f1   : > { %v2118_v8 = vpack.c.bf16 %v2114_v7, %v2111_v5  ;;  %v10779_v9 = vpop.f32.mrb[47].mxu1  ;;  %v11049_v5 = vld [vmem:[#allocation15 + $0xcc] ss:$16 sps:$4 sm:$0xff]  }
 0x8f2   : > { %v11055_v7 = vld [vmem:[#allocation15 + $0xec] ss:$16 sps:$4 sm:$0xff]   ;;  %v11053_v9 = vld [vmem:[#allocation15 + $0xe8] ss:$16 sps:$4 sm:$0xff]  }
 0x8f3   : > { %v2132_v10 = vsel %vm1077_vm7, %v2118_v8, 0  ;;  %v11050_v8 = vld [vmem:[#allocation15 + $0xe0] ss:$16 sps:$4 sm:$0xff]  }
 0x8f4   : > { %10781 = vmatpush3.bf16.msra.mxu0 %v2132_v10  ;;  %10787 = vmatpush3.bf16.msra.mxu1 %v2132_v10 }
 0x8f5   : > { %10792 = vmatprep.subr.bf16.mxu0 %v11445_v4  ;;  %10798 = vmatprep.subr.bf16.mxu1 %v11445_v4 }
 0x8f7   : > { %10783 = vmatmul.mubr.msk.bf16.vlgmr.msra.gmra.mrb[48].mxu0 %vm1073_vm8, %v11003_v11  ;;  %10789 = vmatmul.mubr.msk.bf16.vlgmr.msra.gmra.mrb[48].mxu1 %vm1073_vm8, %v11004_v12  ;;  %v2443_v11 = vpop.permute.xlu0 %2442  ;;  %v12072_v12 = vand.u32 127, %v744_v13 }
 0x8f8   : > { %10793 = vmatpush3.bf16.msra.mxu0 %v2132_v10  ;;  %10799 = vmatpush3.bf16.msra.mxu1 %v2132_v10 }
 0x8f9   : > { %10794 = vmatprep.mubr.msk.bf16.mxu0 %vm11446_vm0, %v11445_v4  ;;  %10800 = vmatprep.mubr.msk.bf16.mxu1 %vm11446_vm0, %v11445_v4  ;;  %vm2242_vm14 = vcmp.ge.s32.totalorder %v12072_v12, 1  ;;  %vm2179_vm15 = vcmp.ge.s32.totalorder %v12072_v12, 2  ;;  %vm2425_vm1 = vcmp.lt.s32.totalorder %v12072_v12, 126  ;;  %vm3018_vm4 = vcmp.lt.s32.totalorder %v12072_v12, 1 }
 0x8fa   : > { %10804 = vmatprep.subr.bf16.mxu0 %v11445_v4  ;;  %2652 = vmatprep.subr.bf16.mxu1 %v11010_v19  ;;  %vm2869_vm5 = vcmp.lt.s32.totalorder %v12072_v12, 2 }
 0x8ff   : > { %10795 = vmatmul.mubr.msk.bf16.vlgmr.msra.gmra.mrb[52].mxu0 %vm1073_vm8, %v11005_v15  ;;  %10801 = vmatmul.mubr.msk.bf16.vlgmr.msra.gmra.mrb[52].mxu1 %vm1073_vm8, %v11006_v16 }
 0x900   : > { %10805 = vmatpush3.bf16.msra.mxu0 %v2132_v10  ;;  %10806 = vmatprep.mubr.msk.bf16.mxu0 %vm11446_vm0, %v11445_v4  ;;  %v2438_v10 = vpop.permute.xlu1 %2437  ;;  %vm2361_vm0 = vcmp.lt.s32.totalorder %v12072_v12, 127 }
 0x901   : > { %2684 = vmatprep.mubr.bf16.mxu1 %v11444_v1  ;;  %2695 = vmatprep.subr.bf16.mxu0 %v11013_v20 }
 0x902   : > { %2653 = vmatpush1.bf16.msra.mxu1 %v11008_v21 }
 0x903   : > { %2654 = vmatprep.subr.bf16.mxu1 %v11016_v25 }
 0x906   : > { %2655 = vmatpush1.bf16.msra.mxu1 %v11014_v27 }
 0x907   : > { %10807 = vmatmul.mubr.msk.bf16.vlgmr.msra.gmra.mrb[56].mxu0 %vm1073_vm8, %v11007_v17  ;;  %2656 = vmatprep.subr.bf16.mxu1 %v11022_v34 }
 0x908   : > { %2727 = vmatprep.mubr.bf16.mxu0 %v11444_v1  ;;  %2696 = vmatpush1.bf16.msra.mxu0 %v11011_v22 }
 0x909   : > { %2697 = vmatprep.subr.bf16.mxu0 %v11019_v28 }
 0x90a   : > { %2657 = vmatpush1.bf16.msra.mxu1 %v11020_v36 }
 0x90b   : > { %2658 = vmatprep.subr.bf16.mxu1 %v11028_v44 }
 0x90c   : > { %2698 = vmatpush1.bf16.msra.mxu0 %v11017_v31 }
 0x90d   : > { %2699 = vmatprep.subr.bf16.mxu0 %v11025_v35 }
 0x90e   : > { %2659 = vmatpush1.bf16.msra.mxu1 %v11026_v48 }
 0x90f   : > { %2660 = vmatprep.subr.bf16.mxu1 %v11034_v50 }
 0x910   : > { %2700 = vmatpush1.bf16.msra.mxu0 %v11023_v37 }
 0x911   : > { %2701 = vmatprep.subr.bf16.mxu0 %v11031_v45 }
 0x912   : > { %2661 = vmatpush1.bf16.msra.mxu1 %v11032_v52 }
 0x913   : > { %2662 = vmatprep.subr.bf16.mxu1 %v11040_v55 }
 0x914   : > { %2702 = vmatpush1.bf16.msra.mxu0 %v11029_v49 }
 0x915   : > { %2703 = vmatprep.subr.bf16.mxu0 %v11037_v51 }
 0x916   : > { %2663 = vmatpush1.bf16.msra.mxu1 %v11038_v57 }
 0x917   : > { %2664 = vmatprep.subr.bf16.mxu1 %v11046_v2  ;;  %v11056_v2 = vld [vmem:[#allocation9] sm:$0x3f]  }
 0x918   : > { %2704 = vmatpush1.bf16.msra.mxu0 %v11035_v53 }
 0x919   : > { %2705 = vmatprep.subr.bf16.mxu0 %v11043_v58 }
 0x91a   : > { %2665 = vmatpush1.bf16.msra.mxu1 %v11044_v0 }
 0x91b   : > { %2666 = vmatprep.subr.bf16.mxu1 %v11052_v6  ;;  %v11059_v6 = vld [vmem:[#allocation9 + $0x18] sm:$0x3f]  }
 0x91c   : > { %2706 = vmatpush1.bf16.msra.mxu0 %v11041_v61 }
 0x91d   : > { %2707 = vmatprep.subr.bf16.mxu0 %v11049_v5  ;;  %v11058_v5 = vld [vmem:[#allocation9 + $0x10] sm:$0x3f]  }
 0x91e   : > { %2667 = vmatpush1.bf16.msra.mxu1 %v11050_v8  ;;  %v3544_v8 = vld [vmem:[#allocation17] sm:$0xff] }
 0x920   : > { %2708 = vmatpush1.bf16.msra.mxu0 %v11047_v3  ;;  %v11057_v3 = vld [vmem:[#allocation9 + $0x8] sm:$0x3f]  }
 0x921   : > { %2709 = vmatprep.subr.bf16.mxu0 %v11055_v7  ;;  %v11060_v7 = vld [vmem:[#allocation9 + $0x20] sm:$0x3f]  }
 0x924   : > { %2710 = vmatpush1.bf16.msra.mxu0 %v11053_v9  ;;  %v3552_v9 = vld [vmem:[#allocation17 + $0x40] sm:$0xff] }
 0x9ca   : > { %v2168_v23 = vpop.f32.mrb[48].mxu0  ;;  %v2231_v24 = vpop.f32.mrb[48].mxu1 }
 0x9cb   : > { %2175 = vrot.lane.b32.xlu1 %v2168_v23, %s11447_s20  ;;  %v10784_v4 = vpop.f32.mrb[49].mxu0  ;;  %v10790_v26 = vpop.f32.mrb[49].mxu1 }
 0x9cc   : > { %v2171_v29 = vpop.f32.mrb[50].mxu0  ;;  %v2234_v30 = vpop.f32.mrb[50].mxu1 }
 0x9cd   : > { %2177 = vrot.lane.b32.xlu0 %v2171_v29, %s11447_s20  ;;  %v10785_v32 = vpop.f32.mrb[51].mxu0  ;;  %v10791_v33 = vpop.f32.mrb[51].mxu1 }
 0x9cf   : > { %2238 = vrot.lane.b32.xlu1 %v2231_v24, %s11448_s19 }
 0x9d1   : > { %2240 = vrot.lane.b32.xlu0 %v2234_v30, %s11448_s19 }
 0x9d2   : > { %v12057_v38 = vpop.f32.mrb[52].mxu0  ;;  %v2349_v39 = vpop.f32.mrb[52].mxu1 }
 0x9d3   : > { %v10796_v40 = vpop.f32.mrb[53].mxu0  ;;  %2356 = vrot.lane.b32.xlu1 %v2349_v39, %s11449_s28  ;;  %v10802_v41 = vpop.f32.mrb[53].mxu1 }
 0x9d4   : > { %v12060_v42 = vpop.f32.mrb[54].mxu0  ;;  %v2352_v43 = vpop.f32.mrb[54].mxu1 }
 0x9d5   : > { %v10797_v46 = vpop.f32.mrb[55].mxu0  ;;  %2358 = vrot.lane.b32.xlu0 %v2352_v43, %s11449_s28  ;;  %v10803_v47 = vpop.f32.mrb[55].mxu1 }
 0x9da   : > { %v2414_v54 = vpop.f32.mrb[56].mxu0 }
 0x9db   : > { %v10808_v56 = vpop.f32.mrb[57].mxu0  ;;  %2421 = vrot.lane.b32.xlu1 %v2414_v54, %s11450_s30 }
 0x9dc   : > { %v2417_v59 = vpop.f32.mrb[58].mxu0 }
 0x9dd   : > { %v10809_v62 = vpop.f32.mrb[59].mxu0  ;;  %2423 = vrot.lane.b32.xlu0 %v2417_v59, %s11450_s30 }
 0x9df   : > { %3476 = vperm.xlu1 %10987, %v3472_v60  }
 0x9e1   : > { %3481 = vperm.xlu0 %10986, %v3473_v63  }
 0xa3d   : > { %v2176_v15 = vpop.permute.xlu1 %2175 }
 0xa3e   : > { %v2184_v21 = vsel %vm2179_vm15, %v2176_v15, 0.0  ;;  %v3553_v15 = vld [vmem:[#allocation17 + $0x48] sm:$0xff] }
 0xa3f   : > { %v2178_v16 = vpop.permute.xlu0 %2177 }
 0xa40   : > { %v2185_v13 = vsel %vm2179_vm15, %v2178_v16, 0.0  ;;  %v9973_v16 = vcombine.low %v3544_v8, %v3552_v9 }
 0xa41   : > { %v2239_v17 = vpop.permute.xlu1 %2238 }
 0xa42   : > { %v2246_v19 = vsel %vm2242_vm14, %v2239_v17, 0.0 }
 0xa43   : > { %v2241_v20 = vpop.permute.xlu0 %2240  ;;  %v2248_v23 = vadd.f32 %v2246_v19, %v2184_v21  ;;  %v3568_v21 = vld [vmem:[#allocation17 + $0xc0] sm:$0xff] }
 0xa44   : > { %v2247_v22 = vsel %vm2242_vm14, %v2241_v20, 0.0  ;;  %v3560_v20 = vld [vmem:[#allocation17 + $0x80] sm:$0xff] }
 0xa45   : > { %v2249_v24 = vadd.f32 %v2247_v22, %v2185_v13  ;;  %v2357_v25 = vpop.permute.xlu1 %2356  ;;  %v2302_v4 = vadd.f32 %v12057_v38, %v2248_v23  ;;  %v3561_v22 = vld [vmem:[#allocation17 + $0x88] sm:$0xff]  ;;  %v9990_v23 = vcombine.high %v3560_v20, %v3568_v21 }
 0xa46   : > { %v2365_v27 = vsel %vm2361_vm0, %v2357_v25, 0.0  ;;  %v3569_v13 = vld [vmem:[#allocation17 + $0xc8] sm:$0xff] }
 0xa47   : > { %v2359_v26 = vpop.permute.xlu0 %2358  ;;  %v2303_v28 = vadd.f32 %v12060_v42, %v2249_v24  ;;  %v2367_v30 = vadd.f32 %v2365_v27, %v2302_v4  ;;  %v9989_v24 = vcombine.low %v3560_v20, %v3568_v21  ;;  %v9991_v25 = vcombine.low %v3561_v22, %v3569_v13  ;;  %v3641_v20 = vld [vmem:[#allocation17 + $0x308] sm:$0xff] }
 0xa48   : > { %v2366_v29 = vsel %vm2361_vm0, %v2359_v26, 0.0  ;;  %v9992_v4 = vcombine.high %v3561_v22, %v3569_v13 }
 0xa49   : > { %v2368_v33 = vadd.f32 %v2366_v29, %v2303_v28  ;;  %v3576_v28 = vld [vmem:[#allocation17 + $0x100] sm:$0xff] }
 0xa4a   : > { %v3584_v29 = vld [vmem:[#allocation17 + $0x140] sm:$0xff] }
 0xa4d   : > { %v2422_v31 = vpop.permute.xlu1 %2421 }
 0xa4e   : > { %v2429_v32 = vsel %vm2425_vm1, %v2422_v31, 0.0 }
 0xa4f   : > { %v2431_v34 = vadd.f32 %v2429_v32, %v2367_v30  ;;  %v2424_v35 = vpop.permute.xlu0 %2423  ;;  %v3577_v30 = vld [vmem:[#allocation17 + $0x108] sm:$0xff] }
 0xa50   : > { %v2430_v36 = vsel %vm2425_vm1, %v2424_v35, 0.0  ;;  %v3585_v35 = vld [vmem:[#allocation17 + $0x148] sm:$0xff] }
 0xa51   : > { %v2445_v37 = vadd.f32 %v2438_v10, %v2431_v34  ;;  %v2432_v38 = vadd.f32 %v2430_v36, %v2368_v33  ;;  %v3545_v10 = vld [vmem:[#allocation17 + $0x8] sm:$0xff]  ;;  %v10005_v33 = vcombine.low %v3576_v28, %v3584_v29  ;;  %v10006_v34 = vcombine.high %v3576_v28, %v3584_v29 }
 0xa52   : > { %v9975_v17 = vcombine.low %v3545_v10, %v3553_v15  ;;  %v9976_v19 = vcombine.high %v3545_v10, %v3553_v15 }
 0xa53   : > { %v2449_v39 = vmin.f32 %v2445_v37, 0.0  ;;  %v2446_v40 = vadd.f32 %v2443_v11, %v2432_v38  ;;  %vm2447_vm2 = vcmp.gt.f32.partialorder %v2445_v37, 0.0  ;;  %v9974_v11 = vcombine.high %v3544_v8, %v3552_v9  ;;  %v3633_v9 = vld [vmem:[#allocation17 + $0x2c8] sm:$0xff] }
 0xa54   : > { %v10007_v38 = vcombine.low %v3577_v30, %v3585_v35 }
 0xa55   : > { %v2451_v41 = vmul.f32 1.442695, %v2449_v39  ;;  %v2450_v42 = vmin.f32 %v2446_v40, 0.0  ;;  %vm2448_vm3 = vcmp.gt.f32.partialorder %v2446_v40, 0.0  ;;  %v10008_v39 = vcombine.high %v3577_v30, %v3585_v35  ;;  %v3665_v35 = vld [vmem:[#allocation17 + $0x3c8] sm:$0xff] }
 0xa57   : > { %11073 = vpow2.f32 %v2451_v41  ;;  %v2453_v43 = vmul.f32 1.442695, %v2450_v42  ;;  %v3592_v42 = vld [vmem:[#allocation17 + $0x180] sm:$0xff] }
 0xa59   : > { %11075 = vpow2.f32 %v2453_v43  ;;  %v3600_v43 = vld [vmem:[#allocation17 + $0x1c0] sm:$0xff] }
 0xa61   : > { %v11074_v44 = vpop.eup %11073 }
 0xa62   : > { %v9906_v45 = vadd.f32 -1.0, %v11074_v44  ;;  %v3593_v44 = vld [vmem:[#allocation17 + $0x188] sm:$0xff] }
 0xa63   : > { %v11076_v46 = vpop.eup %11075 }
 0xa64   : > { %v9907_v47 = vadd.f32 -1.0, %v11076_v46  ;;  %v2457_v48 = vsel %vm2447_vm2, %v2445_v37, %v9906_v45  ;;  %v10022_v45 = vcombine.high %v3592_v42, %v3600_v43  ;;  %v3601_v46 = vld [vmem:[#allocation17 + $0x1c8] sm:$0xff] }
 0xa66   : > { %v2458_v49 = vsel %vm2448_vm3, %v2446_v40, %v9907_v47  ;;  %v10021_v47 = vcombine.low %v3592_v42, %v3600_v43  ;;  %v3672_v42 = vld [vmem:[#allocation17 + $0x400] sm:$0xff] }
 0xa67   : > { %v2459_v50 = vpack.c.bf16 %v2458_v49, %v2457_v48  ;;  %v10023_v48 = vcombine.low %v3593_v44, %v3601_v46  ;;  %v10024_v49 = vcombine.high %v3593_v44, %v3601_v46  ;;  %v3680_v43 = vld [vmem:[#allocation17 + $0x440] sm:$0xff]  ;;  %v3673_v44 = vld [vmem:[#allocation17 + $0x408] sm:$0xff] }
 0xa69   : > { %2685 = vmatmul.mubr.bf16.vlgmr.msra.gmra.mrb[56].mxu1 %v2459_v50  ;;  %2728 = vmatmul.mubr.bf16.vlgmr.msra.gmra.mrb[60].mxu0 %v2459_v50 }
 0xa6a   : > { %2799 = vmatprep.mubr.bf16.mxu1 %v11444_v1  ;;  %2842 = vmatprep.mubr.bf16.mxu0 %v11444_v1 }
 0xb3c   : > { %v2686_v51 = vpop.f32.mrb[56].mxu1  ;;  %v2729_v52 = vpop.f32.mrb[60].mxu0 }
 0xb3d   : > { %v2688_v53 = vpop.f32.mrb[57].mxu1  ;;  %v2731_v54 = vpop.f32.mrb[61].mxu0 }
 0xb3e   : > { %v2690_v55 = vpop.f32.mrb[58].mxu1  ;;  %v2733_v56 = vpop.f32.mrb[62].mxu0 }
 0xb3f   : > { %v2738_v57 = vpack.c.bf16 %v2690_v55, %v2686_v51  ;;  %v2740_v58 = vpack.c.bf16 %v2733_v56, %v2729_v52  ;;  %v2692_v59 = vpop.f32.mrb[59].mxu1  ;;  %v2735_v60 = vpop.f32.mrb[63].mxu0  ;;  %v3608_v52 = vld [vmem:[#allocation17 + $0x200] sm:$0xff] }
 0xb40   : > { %v2739_v61 = vpack.c.bf16 %v2692_v59, %v2688_v53  ;;  %v2741_v62 = vpack.c.bf16 %v2735_v60, %v2731_v54  ;;  %v3616_v53 = vld [vmem:[#allocation17 + $0x240] sm:$0xff]  ;;  %v3609_v54 = vld [vmem:[#allocation17 + $0x208] sm:$0xff] }
 0xb41   : > { %v2756_v63 = vsel %vm1077_vm7, %v2738_v57, 0  ;;  %v2762_v0 = vsel %vm1077_vm7, %v2740_v58, 0  ;;  %v10038_v57 = vcombine.high %v3608_v52, %v3616_v53  ;;  %v3617_v58 = vld [vmem:[#allocation17 + $0x248] sm:$0xff] }
 0xb42   : > { %9941 = vmatprep.subr.msk.bf16.mxu1 %vm1077_vm7, %v2739_v61  ;;  %9943 = vmatprep.subr.msk.bf16.mxu0 %vm1077_vm7, %v2741_v62 }
 0xb43   : > { %2768 = vmatpush1.bf16.msra.mxu1 %v2756_v63  ;;  %2811 = vmatpush1.bf16.msra.mxu0 %v2762_v0 }
 0xb44   : > { %9946 = vmatprep.subr.msk.bf16.mxu1 %vm1077_vm7, %v2739_v61  ;;  %9948 = vmatprep.subr.msk.bf16.mxu0 %vm1077_vm7, %v2741_v62 }
 0xb46   : > { %9942 = vmatmul.mubr.msk.bf16.vlgmr.msra.gmra.mrb[60].mxu1 %vm1073_vm8, %v11056_v2  ;;  %9944 = vmatmul.mubr.msk.bf16.vlgmr.msra.gmra.mrb[64].mxu0 %vm1073_vm8, %v11056_v2 }
 0xb47   : > { %2917 = vmatpush1.bf16.msra.mxu1 %v2756_v63  ;;  %2960 = vmatpush1.bf16.msra.mxu0 %v2762_v0 }
 0xb48   : > { %9951 = vmatprep.subr.msk.bf16.mxu1 %vm1077_vm7, %v2739_v61  ;;  %9953 = vmatprep.subr.msk.bf16.mxu0 %vm1077_vm7, %v2741_v62 }
 0xb49   : > { %2948 = vmatprep.mubr.bf16.mxu1 %v11444_v1  ;;  %2991 = vmatprep.mubr.bf16.mxu0 %v11444_v1 }
 0xb4e   : > { %9947 = vmatmul.mubr.msk.bf16.vlgmr.msra.gmra.mrb[64].mxu1 %vm1073_vm8, %v11057_v3  ;;  %9949 = vmatmul.mubr.msk.bf16.vlgmr.msra.gmra.mrb[68].mxu0 %vm1073_vm8, %v11057_v3  ;;  %v3624_v3 = vld [vmem:[#allocation17 + $0x280] sm:$0xff] }
 0xb4f   : > { %3070 = vmatpush1.bf16.msra.mxu1 %v2756_v63  ;;  %3113 = vmatpush1.bf16.msra.mxu0 %v2762_v0 }
 0xb50   : > { %9956 = vmatprep.subr.msk.bf16.mxu1 %vm1077_vm7, %v2739_v61  ;;  %9958 = vmatprep.subr.msk.bf16.mxu0 %vm1077_vm7, %v2741_v62 }
 0xb51   : > { %3101 = vmatprep.mubr.bf16.mxu1 %v11444_v1  ;;  %3144 = vmatprep.mubr.bf16.mxu0 %v11444_v1 }
 0xb56   : > { %9952 = vmatmul.mubr.msk.bf16.vlgmr.msra.gmra.mrb[68].mxu1 %vm1073_vm8, %v11058_v5  ;;  %9954 = vmatmul.mubr.msk.bf16.vlgmr.msra.gmra.mrb[72].mxu0 %vm1073_vm8, %v11058_v5  ;;  %v3632_v5 = vld [vmem:[#allocation17 + $0x2c0] sm:$0xff] }
 0xb57   : > { %3175 = vmatpush1.bf16.msra.mxu1 %v2756_v63  ;;  %3218 = vmatpush1.bf16.msra.mxu0 %v2762_v0  ;;  %v10054_v8 = vcombine.high %v3624_v3, %v3632_v5 }
 0xb58   : > { %9961 = vmatprep.subr.msk.bf16.mxu1 %vm1077_vm7, %v2739_v61  ;;  %9963 = vmatprep.subr.msk.bf16.mxu0 %vm1077_vm7, %v2741_v62  ;;  %v10037_v61 = vcombine.low %v3608_v52, %v3616_v53  ;;  %v10039_v62 = vcombine.low %v3609_v54, %v3617_v58 }
 0xb59   : > { %3206 = vmatprep.mubr.bf16.mxu1 %v11444_v1  ;;  %3249 = vmatprep.mubr.bf16.mxu0 %v11444_v1 }
 0xb5e   : > { %9957 = vmatmul.mubr.msk.bf16.vlgmr.msra.gmra.mrb[72].mxu1 %vm1073_vm8, %v11059_v6  ;;  %9959 = vmatmul.mubr.msk.bf16.vlgmr.msra.gmra.mrb[76].mxu0 %vm1073_vm8, %v11059_v6  ;;  %v3625_v6 = vld [vmem:[#allocation17 + $0x288] sm:$0xff] }
 0xb5f   : > { %3331 = vmatpush1.bf16.msra.mxu1 %v2756_v63  ;;  %3374 = vmatpush1.bf16.msra.mxu0 %v2762_v0  ;;  %v10040_v63 = vcombine.high %v3609_v54, %v3617_v58  ;;  %v10055_v10 = vcombine.low %v3625_v6, %v3633_v9  ;;  %v3696_v58 = vld [vmem:[#allocation17 + $0x4c0] sm:$0xff] }
 0xb60   : > { %3405 = vmatprep.mubr.bf16.mxu0 %v11444_v1  ;;  %3362 = vmatprep.mubr.bf16.mxu1 %v11444_v1 }
 0xb61   : > { %6616 = vmatprep.subr.bf16.mxu1 %v9974_v11  ;;  %6702 = vmatprep.subr.bf16.mxu0 %v9976_v19  ;;  %v10056_v11 = vcombine.high %v3625_v6, %v3633_v9  ;;  %v3648_v19 = vld [vmem:[#allocation17 + $0x340] sm:$0xff] }
 0xb62   : > { %v3704_v6 = vld [vmem:[#allocation17 + $0x500] sm:$0xff] }
 0xb66   : > { %9964 = vmatmul.mubr.msk.bf16.vlgmr.msra.gmra.mrb[80].mxu0 %vm1073_vm8, %v11060_v7  ;;  %9962 = vmatmul.mubr.msk.bf16.vlgmr.msra.gmra.mrb[76].mxu1 %vm1073_vm8, %v11060_v7  ;;  %v10053_v7 = vcombine.low %v3624_v3, %v3632_v5 }
 0xb67   : > { %6617 = vmatpush1.bf16.msra.mxu1 %v9973_v16  ;;  %6703 = vmatpush1.bf16.msra.mxu0 %v9975_v17  ;;  %v3640_v17 = vld [vmem:[#allocation17 + $0x300] sm:$0xff] }
 0xb68   : > { %6618 = vmatprep.subr.bf16.mxu1 %v9990_v23  ;;  %6704 = vmatprep.subr.bf16.mxu0 %v9992_v4  ;;  %v10069_v23 = vcombine.low %v3640_v17, %v3648_v19  ;;  %v10070_v13 = vcombine.high %v3640_v17, %v3648_v19  ;;  %v3713_v17 = vld [vmem:[#allocation17 + $0x548] sm:$0xff] }
 0xb6b   : > { %6619 = vmatpush1.bf16.msra.mxu1 %v9989_v24  ;;  %6705 = vmatpush1.bf16.msra.mxu0 %v9991_v25  ;;  %v3649_v24 = vld [vmem:[#allocation17 + $0x348] sm:$0xff] }
 0xb6c   : > { %6620 = vmatprep.subr.bf16.mxu1 %v10006_v34  ;;  %6706 = vmatprep.subr.bf16.mxu0 %v10008_v39  ;;  %v10072_v28 = vcombine.high %v3641_v20, %v3649_v24 }
 0xb6f   : > { %6621 = vmatpush1.bf16.msra.mxu1 %v10005_v33  ;;  %6707 = vmatpush1.bf16.msra.mxu0 %v10007_v38  ;;  %v3657_v33 = vld [vmem:[#allocation17 + $0x388] sm:$0xff] }
 0xb70   : > { %6622 = vmatprep.subr.bf16.mxu1 %v10022_v45  ;;  %6708 = vmatprep.subr.bf16.mxu0 %v10024_v49  ;;  %v10087_v38 = vcombine.low %v3657_v33, %v3665_v35  ;;  %v10088_v39 = vcombine.high %v3657_v33, %v3665_v35  ;;  %v3681_v49 = vld [vmem:[#allocation17 + $0x448] sm:$0xff] }
 0xb71   : > { %v10103_v53 = vcombine.low %v3673_v44, %v3681_v49  ;;  %v10104_v54 = vcombine.high %v3673_v44, %v3681_v49  ;;  %v3721_v33 = vld [vmem:[#allocation17 + $0x588] sm:$0xff]  ;;  %v3752_v49 = vld [vmem:[#allocation17 + $0x680] sm:$0xff] }
 0xb72   : > { %v3729_v35 = vld [vmem:[#allocation17 + $0x5c8] sm:$0xff] }
 0xb73   : > { %6623 = vmatpush1.bf16.msra.mxu1 %v10021_v47  ;;  %6709 = vmatpush1.bf16.msra.mxu0 %v10023_v48  ;;  %v10101_v47 = vcombine.low %v3672_v42, %v3680_v43  ;;  %v10102_v48 = vcombine.high %v3672_v42, %v3680_v43  ;;  %v3737_v42 = vld [vmem:[#allocation17 + $0x608] sm:$0xff] }
 0xb74   : > { %6624 = vmatprep.subr.bf16.mxu1 %v10038_v57  ;;  %6710 = vmatprep.subr.bf16.mxu0 %v10040_v63  ;;  %v3688_v57 = vld [vmem:[#allocation17 + $0x480] sm:$0xff]  ;;  %v3745_v44 = vld [vmem:[#allocation17 + $0x648] sm:$0xff] }
 0xb75   : > { %v10117_v63 = vcombine.low %v3688_v57, %v3696_v58 }
 0xb77   : > { %6625 = vmatpush1.bf16.msra.mxu1 %v10037_v61  ;;  %6711 = vmatpush1.bf16.msra.mxu0 %v10039_v62  ;;  %v10118_v61 = vcombine.high %v3688_v57, %v3696_v58  ;;  %v3697_v62 = vld [vmem:[#allocation17 + $0x4c8] sm:$0xff] }
 0xb78   : > { %6626 = vmatprep.subr.bf16.mxu1 %v10054_v8  ;;  %6712 = vmatprep.subr.bf16.mxu0 %v10056_v11  ;;  %v3705_v8 = vld [vmem:[#allocation17 + $0x508] sm:$0xff] }
 0xb7b   : > { %6627 = vmatpush1.bf16.msra.mxu1 %v10053_v7  ;;  %6713 = vmatpush1.bf16.msra.mxu0 %v10055_v10  ;;  %v3712_v7 = vld [vmem:[#allocation17 + $0x540] sm:$0xff] }
 0xb7c   : > { %6628 = vmatprep.subr.bf16.mxu1 %v10070_v13  ;;  %6714 = vmatprep.subr.bf16.mxu0 %v10072_v28  ;;  %v10134_v11 = vcombine.high %v3704_v6, %v3712_v7  ;;  %v10135_v13 = vcombine.low %v3705_v8, %v3713_v17 }
 0xb7f   : > { %6629 = vmatpush1.bf16.msra.mxu1 %v10069_v23  ;;  %v10133_v23 = vcombine.low %v3704_v6, %v3712_v7  ;;  %v3784_v6 = vld [vmem:[#allocation17 + $0x780] sm:$0xff] }
 0xb80   : > { %v3792_v7 = vld [vmem:[#allocation17 + $0x7c0] sm:$0xff] }
 0xc19   : > { %v2801_v26 = vpop.f32.mrb[60].mxu1  ;;  %v12128_v27 = vpop.f32.mrb[64].mxu0 }
 0xc1a   : > { %v2846_v31 = vpop.f32.mrb[65].mxu0  ;;  %2853 = vrot.lane.b32.xlu1 %v2801_v26, %s11447_s20  ;;  %v2803_v32 = vpop.f32.mrb[61].mxu1  ;;  %v10071_v26 = vcombine.low %v3641_v20, %v3649_v24  ;;  %v10136_v24 = vcombine.high %v3705_v8, %v3713_v17  ;;  %v3785_v8 = vld [vmem:[#allocation17 + $0x788] sm:$0xff] }
 0xc1b   : > { %v2805_v36 = vpop.f32.mrb[62].mxu1  ;;  %v12131_v37 = vpop.f32.mrb[66].mxu0 }
 0xc1c   : > { %v2850_v40 = vpop.f32.mrb[67].mxu0  ;;  %2855 = vrot.lane.b32.xlu0 %v2805_v36, %s11447_s20  ;;  %v2807_v41 = vpop.f32.mrb[63].mxu1  ;;  %6715 = vmatpush1.bf16.msra.mxu0 %v10071_v26 }
 0xc1d   : > { %6716 = vmatprep.subr.bf16.mxu0 %v10088_v39  ;;  %v10152_v39 = vcombine.high %v3721_v33, %v3729_v35 }
 0xc1e   : > { %2857 = vrot.lane.b32.xlu1 %v2803_v32, %s11447_s20  ;;  %v3664_v32 = vld [vmem:[#allocation17 + $0x3c0] sm:$0xff] }
 0xc20   : > { %2859 = vrot.lane.b32.xlu0 %v2807_v41, %s11447_s20  ;;  %6717 = vmatpush1.bf16.msra.mxu0 %v10087_v38  ;;  %v10151_v38 = vcombine.low %v3721_v33, %v3729_v35 }
 0xc21   : > { %v12136_v50 = vpop.f32.mrb[68].mxu0  ;;  %v2950_v51 = vpop.f32.mrb[64].mxu1  ;;  %6718 = vmatprep.subr.bf16.mxu0 %v10104_v54  ;;  %v3761_v54 = vld [vmem:[#allocation17 + $0x6c8] sm:$0xff] }
 0xc22   : > { %v2995_v55 = vpop.f32.mrb[69].mxu0  ;;  %2865 = vrot.lane.b32.xlu1 %v2846_v31, %s11447_s20  ;;  %v2952_v56 = vpop.f32.mrb[65].mxu1  ;;  %v3656_v31 = vld [vmem:[#allocation17 + $0x380] sm:$0xff] }
 0xc23   : > { %v12139_v59 = vpop.f32.mrb[70].mxu0  ;;  %v2954_v60 = vpop.f32.mrb[66].mxu1  ;;  %v10086_v34 = vcombine.high %v3656_v31, %v3664_v32  ;;  %v10085_v36 = vcombine.low %v3656_v31, %v3664_v32  ;;  %v3720_v31 = vld [vmem:[#allocation17 + $0x580] sm:$0xff] }
 0xc24   : > { %v2999_v0 = vpop.f32.mrb[71].mxu0  ;;  %2867 = vrot.lane.b32.xlu0 %v2850_v40, %s11447_s20  ;;  %v2956_v2 = vpop.f32.mrb[67].mxu1  ;;  %6719 = vmatpush1.bf16.msra.mxu0 %v10103_v53  ;;  %v3728_v32 = vld [vmem:[#allocation17 + $0x5c0] sm:$0xff] }
 0xc25   : > { %6630 = vmatprep.subr.bf16.mxu1 %v10086_v34  ;;  %v10150_v34 = vcombine.high %v3720_v31, %v3728_v32 }
 0xc26   : > { %3002 = vrot.lane.b32.xlu1 %v2950_v51, %s11448_s19  ;;  %6631 = vmatpush1.bf16.msra.mxu1 %v10085_v36  ;;  %v10149_v36 = vcombine.low %v3720_v31, %v3728_v32  ;;  %v12216_v31 = vpop.permute.xlu1 %3476  ;;  %v12218_v32 = vpop.permute.xlu0 %3481 }
 0xc27   : > { %6632 = vmatprep.subr.bf16.mxu1 %v10102_v48  ;;  %v10168_v48 = vcombine.high %v3737_v42, %v3745_v44 }
 0xc28   : > { %3004 = vrot.lane.b32.xlu0 %v2954_v60, %s11448_s19  ;;  %v3689_v60 = vld [vmem:[#allocation17 + $0x488] sm:$0xff] }
 0xc29   : > { %v12144_v15 = vpop.f32.mrb[72].mxu0  ;;  %v12146_v16 = vpop.f32.mrb[68].mxu1 }
 0xc2a   : > { %v12148_v21 = vpop.f32.mrb[73].mxu0  ;;  %3006 = vrot.lane.b32.xlu1 %v2952_v56, %s11448_s19  ;;  %v12151_v22 = vpop.f32.mrb[69].mxu1  ;;  %6633 = vmatpush1.bf16.msra.mxu1 %v10101_v47  ;;  %v10167_v47 = vcombine.low %v3737_v42, %v3745_v44 }
 0xc2b   : > { %v12153_v25 = vpop.f32.mrb[74].mxu0  ;;  %v12155_v4 = vpop.f32.mrb[70].mxu1  ;;  %6634 = vmatprep.subr.bf16.mxu1 %v10118_v61  ;;  %v3776_v61 = vld [vmem:[#allocation17 + $0x740] sm:$0xff] }
 0xc2c   : > { %v12157_v29 = vpop.f32.mrb[75].mxu0  ;;  %3008 = vrot.lane.b32.xlu0 %v2956_v2, %s11448_s19  ;;  %v12160_v30 = vpop.f32.mrb[71].mxu1  ;;  %v10120_v2 = vcombine.high %v3689_v60, %v3697_v62 }
 0xc2e   : > { %3014 = vrot.lane.b32.xlu1 %v2995_v55, %s11448_s19  ;;  %6720 = vmatprep.subr.bf16.mxu0 %v10120_v2 }
 0xc2f   : > { %6635 = vmatpush1.bf16.msra.mxu1 %v10117_v63 }
 0xc30   : > { %3016 = vrot.lane.b32.xlu0 %v2999_v0, %s11448_s19  ;;  %v10119_v0 = vcombine.low %v3689_v60, %v3697_v62  ;;  %6636 = vmatprep.subr.bf16.mxu1 %v10134_v11  ;;  %v3768_v60 = vld [vmem:[#allocation17 + $0x700] sm:$0xff]  ;;  %v3769_v62 = vld [vmem:[#allocation17 + $0x708] sm:$0xff]  ;;  %v10213_v11 = vcombine.low %v3784_v6, %v3792_v7 }
 0xc31   : > { %v3251_v40 = vpop.f32.mrb[76].mxu0  ;;  %v3208_v41 = vpop.f32.mrb[72].mxu1  ;;  %v10198_v63 = vcombine.high %v3768_v60, %v3776_v61  ;;  %v10197_v2 = vcombine.low %v3768_v60, %v3776_v61 }
 0xc32   : > { %v12164_v45 = vpop.f32.mrb[77].mxu0  ;;  %3268 = vrot.lane.b32.xlu1 %v3251_v40, %s11449_s28  ;;  %v3210_v46 = vpop.f32.mrb[73].mxu1  ;;  %6721 = vmatpush1.bf16.msra.mxu0 %v10119_v0  ;;  %v3736_v40 = vld [vmem:[#allocation17 + $0x600] sm:$0xff]  ;;  %v3777_v0 = vld [vmem:[#allocation17 + $0x748] sm:$0xff] }
 0xc33   : > { %v3255_v51 = vpop.f32.mrb[78].mxu0  ;;  %v3212_v52 = vpop.f32.mrb[74].mxu1  ;;  %6722 = vmatprep.subr.bf16.mxu0 %v10136_v24  ;;  %6637 = vmatpush1.bf16.msra.mxu1 %v10133_v23  ;;  %v12196_v23 = vld [vmem:[#allocation17 + $0x808] sm:$0xff] }
 0xc34   : > { %v12167_v55 = vpop.f32.mrb[79].mxu0  ;;  %3270 = vrot.lane.b32.xlu0 %v3255_v51, %s11449_s28  ;;  %v3214_v56 = vpop.f32.mrb[75].mxu1  ;;  %6638 = vmatprep.subr.bf16.mxu1 %v10150_v34  ;;  %v3760_v51 = vld [vmem:[#allocation17 + $0x6c0] sm:$0xff] }
 0xc35   : > { %v10182_v53 = vcombine.high %v3752_v49, %v3760_v51 }
 0xc36   : > { %3260 = vrot.lane.b32.xlu1 %v3208_v41, %s11449_s28  ;;  %6723 = vmatpush1.bf16.msra.mxu0 %v10135_v13  ;;  %v3744_v41 = vld [vmem:[#allocation17 + $0x640] sm:$0xff]  ;;  %v12202_v13 = vld [vmem:[#allocation17 + $0x848] sm:$0xff] }
 0xc37   : > { %6724 = vmatprep.subr.bf16.mxu0 %v10152_v39  ;;  %6639 = vmatpush1.bf16.msra.mxu1 %v10149_v36  ;;  %v10166_v43 = vcombine.high %v3736_v40, %v3744_v41  ;;  %v10231_v24 = vcombine.low %v12196_v23, %v12202_v13 }
 0xc38   : > { %3262 = vrot.lane.b32.xlu0 %v3212_v52, %s11449_s28  ;;  %v3753_v52 = vld [vmem:[#allocation17 + $0x688] sm:$0xff] }
 0xc39   : > { %v3407_v3 = vpop.f32.mrb[80].mxu0  ;;  %v3364_v5 = vpop.f32.mrb[76].mxu1  ;;  %6640 = vmatprep.subr.bf16.mxu1 %v10166_v43  ;;  %v10183_v57 = vcombine.low %v3753_v52, %v3761_v54  ;;  %v10184_v58 = vcombine.high %v3753_v52, %v3761_v54 }
 0xc3a   : > { %3264 = vrot.lane.b32.xlu1 %v3210_v46, %s11449_s28  ;;  %v12173_v9 = vpop.f32.mrb[81].mxu0  ;;  %v3366_v10 = vpop.f32.mrb[77].mxu1  ;;  %6725 = vmatpush1.bf16.msra.mxu0 %v10151_v38  ;;  %v10165_v46 = vcombine.low %v3736_v40, %v3744_v41 }
 0xc3b   : > { %v3411_v19 = vpop.f32.mrb[82].mxu0  ;;  %v3368_v20 = vpop.f32.mrb[78].mxu1  ;;  %6726 = vmatprep.subr.bf16.mxu0 %v10168_v48 }
 0xc3c   : > { %3266 = vrot.lane.b32.xlu0 %v3214_v56, %s11449_s28  ;;  %v12176_v26 = vpop.f32.mrb[83].mxu0  ;;  %v3370_v28 = vpop.f32.mrb[79].mxu1  ;;  %6641 = vmatpush1.bf16.msra.mxu1 %v10165_v46  ;;  %v10181_v56 = vcombine.low %v3752_v49, %v3760_v51 }
 0xc3d   : > { %6642 = vmatprep.subr.bf16.mxu1 %v10182_v53 }
 0xc3e   : > { %3424 = vrot.lane.b32.xlu1 %v3407_v3, %s11450_s30  ;;  %6727 = vmatpush1.bf16.msra.mxu0 %v10167_v47  ;;  %v10199_v3 = vcombine.low %v3769_v62, %v3777_v0 }
 0xc3f   : > { %6728 = vmatprep.subr.bf16.mxu0 %v10184_v58 }
 0xc40   : > { %3426 = vrot.lane.b32.xlu0 %v3411_v19, %s11450_s30  ;;  %6643 = vmatpush1.bf16.msra.mxu1 %v10181_v56 }
 0xc41   : > { %6644 = vmatprep.subr.bf16.mxu1 %v10198_v63 }
 0xc42   : > { %3420 = vrot.lane.b32.xlu1 %v3366_v10, %s11450_s30  ;;  %6729 = vmatpush1.bf16.msra.mxu0 %v10183_v57  ;;  %v3793_v10 = vld [vmem:[#allocation17 + $0x7c8] sm:$0xff] }
 0xc43   : > { %v10215_v17 = vcombine.low %v3785_v8, %v3793_v10  ;;  %v10216_v19 = vcombine.high %v3785_v8, %v3793_v10 }
 0xc44   : > { %3422 = vrot.lane.b32.xlu0 %v3370_v28, %s11450_s30  ;;  %6645 = vmatpush1.bf16.msra.mxu1 %v10197_v2  ;;  %v10232_v28 = vcombine.high %v12196_v23, %v12202_v13  ;;  %v3864_v23 = vld [vmem:[#allocation17 + $0xa00] sm:$0xff] }
 0xc46   : > { %3416 = vrot.lane.b32.xlu1 %v3364_v5, %s11450_s30  ;;  %v10200_v5 = vcombine.high %v3769_v62, %v3777_v0 }
 0xc48   : > { %3418 = vrot.lane.b32.xlu0 %v3368_v20, %s11450_s30  ;;  %6730 = vmatprep.subr.bf16.mxu0 %v10200_v5  ;;  %v12194_v20 = vld [vmem:[#allocation17 + $0x840] sm:$0xff] }
 0xc49   : > { %6731 = vmatpush1.bf16.msra.mxu0 %v10199_v3 }
 0xc4a   : > { %2861 = vrot.lane.b32.xlu1 %v12128_v27, %s11447_s20  ;;  %v10214_v27 = vcombine.high %v3784_v6, %v3792_v7  ;;  %6732 = vmatprep.subr.bf16.mxu0 %v10216_v19 }
 0xc4c   : > { %2863 = vrot.lane.b32.xlu0 %v12131_v37, %s11447_s20  ;;  %6646 = vmatprep.subr.bf16.mxu1 %v10214_v27  ;;  %v12192_v37 = vld [vmem:[#allocation17 + $0x800] sm:$0xff] }
 0xc4d   : > { %6647 = vmatpush1.bf16.msra.mxu1 %v10213_v11  ;;  %6733 = vmatpush1.bf16.msra.mxu0 %v10215_v17 }
 0xc4e   : > { %3010 = vrot.lane.b32.xlu1 %v12136_v50, %s11448_s19  ;;  %v10230_v50 = vcombine.high %v12192_v37, %v12194_v20  ;;  %6745 = vmatprep.subr.bf16.mxu0 %v10232_v28 }
 0xc50   : > { %3012 = vrot.lane.b32.xlu0 %v12139_v59, %s11448_s19  ;;  %v10229_v59 = vcombine.low %v12192_v37, %v12194_v20  ;;  %6659 = vmatprep.subr.bf16.mxu1 %v10230_v50 }
 0xc52   : > { %3272 = vrot.lane.b32.xlu1 %v12164_v45, %s11449_s28  ;;  %v9512_v45 = vld [vmem:[#allocation2] sm:$0x1] }
 0xc54   : > { %3274 = vrot.lane.b32.xlu0 %v12167_v55, %s11449_s28 }
 0xc56   : > { %3428 = vrot.lane.b32.xlu1 %v12173_v9, %s11450_s30 }
 0xc58   : > { %3430 = vrot.lane.b32.xlu0 %v12176_v26, %s11450_s30 }
 0xc5a   : > { %9515 = vperm.xlu1 %10987, %v9512_v45  }
 0xc8c   : > { %v2854_v33 = vpop.permute.xlu1 %2853 }
 0xc8e   : > { %v2856_v34 = vpop.permute.xlu0 %2855 }
 0xc90   : > { %v12220_v35 = vpop.permute.xlu1 %2857 }
 0xc91   : > { %v2874_v52 = vsel %vm2869_vm5, %v2854_v33, %v12220_v35 }
 0xc92   : > { %v12222_v36 = vpop.permute.xlu0 %2859 }
 0xc93   : > { %v2875_v58 = vsel %vm2869_vm5, %v2856_v34, %v12222_v36 }
 0xc94   : > { %v12224_v55 = vpop.permute.xlu1 %2865 }
 0xc95   : > { %v2876_v54 = vsel %vm2869_vm5, %v12224_v55, %v2854_v33 }
 0xc96   : > { %v12226_v38 = vpop.permute.xlu0 %2867  ;;  %v2897_v0 = vsel %vm2179_vm15, %v2876_v54, 0.0 }
 0xc97   : > { %v2877_v2 = vsel %vm2869_vm5, %v12226_v38, %v2856_v34 }
 0xc98   : > { %v3003_v9 = vpop.permute.xlu1 %3002  ;;  %v2901_v10 = vsel %vm2179_vm15, %v2877_v2, 0.0 }
 0xc9a   : > { %v3005_v39 = vpop.permute.xlu0 %3004 }
 0xc9c   : > { %v12228_v40 = vpop.permute.xlu1 %3006 }
 0xc9d   : > { %v3023_v48 = vsel %vm3018_vm4, %v3003_v9, %v12228_v40 }
 0xc9e   : > { %v12230_v26 = vpop.permute.xlu0 %3008  ;;  %v3051_v56 = vadd.f32 %v3023_v48, %v2874_v52 }
 0xc9f   : > { %v3024_v53 = vsel %vm3018_vm4, %v3005_v39, %v12230_v26 }
 0xca0   : > { %v12232_v41 = vpop.permute.xlu1 %3014  ;;  %v3055_v62 = vadd.f32 %v3024_v53, %v2875_v58  ;;  %v3156_v7 = vadd.f32 %v12151_v22, %v3051_v56 }
 0xca1   : > { %v3025_v49 = vsel %vm3018_vm4, %v12232_v41, %v3003_v9 }
 0xca2   : > { %v12234_v42 = vpop.permute.xlu0 %3016  ;;  %v3042_v60 = vsel %vm2242_vm14, %v3025_v49, 0.0  ;;  %v3160_v17 = vadd.f32 %v12160_v30, %v3055_v62 }
 0xca3   : > { %v3026_v61 = vsel %vm3018_vm4, %v12234_v42, %v3005_v39  ;;  %v3050_v5 = vadd.f32 %v3042_v60, %v2897_v0 }
 0xca4   : > { %v12236_v43 = vpop.permute.xlu1 %3268  ;;  %v3046_v6 = vsel %vm2242_vm14, %v3026_v61, 0.0 }
 0xca5   : > { %v3054_v50 = vadd.f32 %v3046_v6, %v2901_v10  ;;  %v3155_v45 = vadd.f32 %v12146_v16, %v3050_v5 }
 0xca6   : > { %v12238_v44 = vpop.permute.xlu0 %3270 }
 0xca7   : > { %v3159_v53 = vadd.f32 %v12155_v4, %v3054_v50 }
 0xca8   : > { %v12241_v46 = vpop.permute.xlu1 %3260 }
 0xcaa   : > { %v12244_v47 = vpop.permute.xlu0 %3262 }
 0xcac   : > { %v3265_v51 = vpop.permute.xlu1 %3264 }
 0xcad   : > { %v3278_v3 = vsel %vm2361_vm0, %v3265_v51, %v12236_v43  ;;  %v3280_v28 = vsel %vm2361_vm0, %v12241_v46, %v3265_v51 }
 0xcae   : > { %v3267_v57 = vpop.permute.xlu0 %3266  ;;  %v3312_v11 = vadd.f32 %v3278_v3, %v3156_v7  ;;  %v3311_v30 = vadd.f32 %v3280_v28, %v3155_v45  ;;  %v12323_v3 = vadd.s32 384, %v12072_v12 }
 0xcaf   : > { %v3279_v27 = vsel %vm2361_vm0, %v3267_v57, %v12238_v44  ;;  %v3281_v48 = vsel %vm2361_vm0, %v12244_v47, %v3267_v57 }
 0xcb0   : > { %v12269_v63 = vpop.permute.xlu1 %3424  ;;  %v3316_v33 = vadd.f32 %v3279_v27, %v3160_v17  ;;  %v3315_v61 = vadd.f32 %v3281_v48, %v3159_v53  ;;  %vm3290_vm6 = vcmp.lt.s32.totalorder %v12323_v3, 511  ;;  %vm3443_vm9 = vcmp.lt.s32.totalorder %v12323_v3, 510 }
 0xcb2   : > { %v12282_v8 = vpop.permute.xlu0 %3426 }
 0xcb4   : > { %v3421_v19 = vpop.permute.xlu1 %3420 }
 0xcb5   : > { %v3434_v22 = vsel %vm2425_vm1, %v3421_v19, %v12269_v63 }
 0xcb6   : > { %v3465_v34 = vadd.f32 %v3434_v22, %v3312_v11  ;;  %v3423_v9 = vpop.permute.xlu0 %3422 }
 0xcb7   : > { %v3435_v39 = vsel %vm2425_vm1, %v3423_v9, %v12282_v8 }
 0xcb8   : > { %v12304_v49 = vadd.f32 %v12216_v31, %v3465_v34  ;;  %v3469_v51 = vadd.f32 %v3435_v39, %v3316_v33  ;;  %v3417_v52 = vpop.permute.xlu1 %3416 }
 0xcb9   : > { %v3436_v16 = vsel %vm2425_vm1, %v3417_v52, %v3421_v19 }
 0xcba   : > { %v3501_v54 = vmin.f32 %v12304_v49, 0.0  ;;  %v12311_v56 = vadd.f32 %v12218_v32, %v3469_v51  ;;  %v3464_v58 = vadd.f32 %v3436_v16, %v3311_v30  ;;  %v12313_v60 = vpop.permute.xlu0 %3418  ;;  %vm3493_vm10 = vcmp.gt.f32.partialorder %v12304_v49, 0.0 }
 0xcbb   : > { %v3437_v57 = vsel %vm2425_vm1, %v12313_v60, %v3423_v9 }
 0xcbc   : > { %v3510_v62 = vmul.f32 1.442695, %v3501_v54  ;;  %v3505_v0 = vmin.f32 %v12311_v56, 0.0  ;;  %v12320_v4 = vadd.f32 %v12216_v31, %v3464_v58  ;;  %v2862_v2 = vpop.permute.xlu1 %2861  ;;  %v3468_v5 = vadd.f32 %v3437_v57, %v3315_v61 }
 0xcbd   : > { %v2870_v17 = vsel %vm2869_vm5, %v2862_v2, %v12224_v55  ;;  %v2872_v28 = vsel %vm2869_vm5, %v12220_v35, %v2862_v2  ;;  %vm3497_vm11 = vcmp.gt.f32.partialorder %v12311_v56, 0.0 }
 0xcbe   : > { %11077 = vpow2.f32 %v3510_v62  ;;  %v3518_v6 = vmul.f32 1.442695, %v3505_v0  ;;  %v3500_v7 = vmin.f32 %v12320_v4, 0.0  ;;  %v2864_v27 = vpop.permute.xlu0 %2863  ;;  %v12327_v10 = vadd.f32 %v12218_v32, %v3468_v5 }
 0xcbf   : > { %v2871_v55 = vsel %vm2869_vm5, %v2864_v27, %v12226_v38  ;;  %v2873_v35 = vsel %vm2869_vm5, %v12222_v36, %v2864_v27  ;;  %vm3492_vm12 = vcmp.gt.f32.partialorder %v12320_v4, 0.0 }
 0xcc0   : > { %11079 = vpow2.f32 %v3518_v6  ;;  %v3508_v11 = vmul.f32 1.442695, %v3500_v7  ;;  %v3011_v19 = vpop.permute.xlu1 %3010  ;;  %v3504_v50 = vmin.f32 %v12327_v10, 0.0  ;;  %vm3496_vm13 = vcmp.gt.f32.partialorder %v12327_v10, 0.0 }
 0xcc1   : > { %v3019_v22 = vsel %vm3018_vm4, %v3011_v19, %v12232_v41  ;;  %v3021_v45 = vsel %vm3018_vm4, %v12228_v40, %v3011_v19 }
 0xcc2   : > { %11081 = vpow2.f32 %v3508_v11  ;;  %v3052_v33 = vadd.f32 %v3021_v45, %v2872_v28  ;;  %v3053_v34 = vadd.f32 %v3019_v22, %v2870_v17  ;;  %v3013_v9 = vpop.permute.xlu0 %3012  ;;  %v3516_v39 = vmul.f32 1.442695, %v3504_v50 }
 0xcc3   : > { %v3020_v41 = vsel %vm3018_vm4, %v3013_v9, %v12234_v42  ;;  %v3022_v40 = vsel %vm3018_vm4, %v12230_v26, %v3013_v9 }
 0xcc4   : > { %v3158_v30 = vadd.f32 %v12148_v21, %v3053_v34  ;;  %v3056_v48 = vadd.f32 %v3022_v40, %v2873_v35  ;;  %v3057_v38 = vadd.f32 %v3020_v41, %v2871_v55  ;;  %v3157_v51 = vadd.f32 %v12144_v15, %v3052_v33  ;;  %v3273_v53 = vpop.permute.xlu1 %3272  ;;  %v3816_v55 = vld [vmem:[#allocation17 + $0x880] sm:$0xff] }
 0xcc5   : > { %11083 = vpow2.f32 %v3516_v39  ;;  %v3276_v36 = vsel %vm2361_vm0, %v12236_v43, %v3273_v53  ;;  %v3282_v42 = vsel %vm2361_vm0, %v3273_v53, %v12241_v46  ;;  %v3824_v33 = vld [vmem:[#allocation17 + $0x8c0] sm:$0xff] }
 0xcc6   : > { %v3306_v16 = vsel %vm3290_vm6, %v3282_v42, 0.0  ;;  %v3313_v26 = vadd.f32 %v3276_v36, %v3157_v51  ;;  %v3161_v21 = vadd.f32 %v12153_v25, %v3056_v48  ;;  %v3275_v54 = vpop.permute.xlu0 %3274  ;;  %v3162_v46 = vadd.f32 %v12157_v29, %v3057_v38  ;;  %v3825_v48 = vld [vmem:[#allocation17 + $0x8c8] sm:$0xff] }
 0xcc7   : > { %v3277_v15 = vsel %vm2361_vm0, %v12238_v44, %v3275_v54  ;;  %v3283_v58 = vsel %vm2361_vm0, %v3275_v54, %v12244_v47  ;;  %v3314_v61 = vadd.f32 %v3306_v16, %v3158_v30  ;;  %v10246_v3 = vcombine.high %v3816_v55, %v3824_v33  ;;  %v3817_v30 = vld [vmem:[#allocation17 + $0x888] sm:$0xff] }
 0xcc8   : > { %v11078_v43 = vpop.eup %11077  ;;  %v3317_v57 = vadd.f32 %v3277_v15, %v3161_v21  ;;  %v3429_v62 = vpop.permute.xlu1 %3428  ;;  %v3310_v25 = vsel %vm3290_vm6, %v3283_v58, 0.0  ;;  %v3832_v21 = vld [vmem:[#allocation17 + $0x900] sm:$0xff]  ;;  %v3833_v58 = vld [vmem:[#allocation17 + $0x908] sm:$0xff] }
 0xcc9   : > { %v9966_v0 = vadd.f32 -1.0, %v11078_v43  ;;  %v3432_v44 = vsel %vm2425_vm1, %v12269_v63, %v3429_v62  ;;  %v3438_v2 = vsel %vm2425_vm1, %v3429_v62, %v3417_v52  ;;  %v3318_v17 = vadd.f32 %v3310_v25, %v3162_v46  ;;  %v3840_v15 = vld [vmem:[#allocation17 + $0x940] sm:$0xff]  ;;  %v3841_v43 = vld [vmem:[#allocation17 + $0x948] sm:$0xff] }
 0xcca   : > { %v11080_v47 = vpop.eup %11079  ;;  %v3459_v29 = vsel %vm3443_vm9, %v3438_v2, 0.0  ;;  %v3466_v5 = vadd.f32 %v3432_v44, %v3313_v26  ;;  %v3431_v6 = vpop.permute.xlu0 %3430  ;;  %v10248_v26 = vcombine.high %v3817_v30, %v3825_v48  ;;  %v10262_v46 = vcombine.high %v3832_v21, %v3840_v15  ;;  %v3856_v62 = vld [vmem:[#allocation17 + $0x9c0] sm:$0xff]  ;;  %v3857_v25 = vld [vmem:[#allocation17 + $0x9c8] sm:$0xff] }
 0xccb   : > { %v9970_v7 = vadd.f32 -1.0, %v11080_v47  ;;  %v3467_v27 = vadd.f32 %v3459_v29, %v3314_v61  ;;  %v3433_v11 = vsel %vm2425_vm1, %v12282_v8, %v3431_v6  ;;  %v3439_v19 = vsel %vm2425_vm1, %v3431_v6, %v12313_v60  ;;  %v3873_v47 = vld [vmem:[#allocation17 + $0xa48] sm:$0xff] }
 0xccc   : > { %v11082_v63 = vpop.eup %11081  ;;  %v12389_v52 = vadd.f32 %v12216_v31, %v3466_v5  ;;  %v3470_v50 = vadd.f32 %v3433_v11, %v3317_v57  ;;  %v3533_v28 = vsel %vm3493_vm10, %v12304_v49, %v9966_v0  ;;  %v3463_v8 = vsel %vm3443_vm9, %v3439_v19, 0.0  ;;  %v3848_v57 = vld [vmem:[#allocation17 + $0x980] sm:$0xff]  ;;  %v3849_v0 = vld [vmem:[#allocation17 + $0x988] sm:$0xff] }
 0xccd   : > { %v3537_v22 = vsel %vm3497_vm11, %v12311_v56, %v9970_v7  ;;  %v12397_v45 = vadd.f32 %v12216_v31, %v3467_v27  ;;  %v9965_v9 = vadd.f32 -1.0, %v11082_v63  ;;  %v3471_v35 = vadd.f32 %v3463_v8, %v3318_v17 }
 0xcce   : > { %v12401_v34 = vpack.c.bf16 %v3537_v22, %v3533_v28  ;;  %v3502_v39 = vmin.f32 %v12389_v52, 0.0  ;;  %v12406_v49 = vadd.f32 %v12218_v32, %v3470_v50  ;;  %v10264_v61 = vcombine.high %v3833_v58, %v3841_v43  ;;  %v3880_v22 = vld [vmem:[#allocation17 + $0xa80] sm:$0xff] }
 0xccf   : > { %v11084_v60 = vpop.eup %11083  ;;  %v3503_v41 = vmin.f32 %v12397_v45, 0.0  ;;  %v12409_v40 = vadd.f32 %v12218_v32, %v3471_v35  ;;  %v3532_v53 = vsel %vm3492_vm12, %v12320_v4, %v9965_v9  ;;  %v10245_v4 = vcombine.low %v3816_v55, %v3824_v33  ;;  %v3888_v33 = vld [vmem:[#allocation17 + $0xac0] sm:$0xff]  ;;  %v3881_v9 = vld [vmem:[#allocation17 + $0xa88] sm:$0xff] }
 0xcd0   : > { %v9969_v56 = vadd.f32 -1.0, %v11084_v60  ;;  %v3512_v31 = vmul.f32 1.442695, %v3502_v39  ;;  %6648 = vmatprep.mubr.bf16.mxu1 %v12401_v34  ;;  %6734 = vmatprep.mubr.bf16.mxu0 %v12401_v34  ;;  %v3506_v51 = vmin.f32 %v12406_v49, 0.0  ;;  %v10261_v44 = vcombine.low %v3832_v21, %v3840_v15  ;;  %v3889_v39 = vld [vmem:[#allocation17 + $0xac8] sm:$0xff] }
 0xcd1   : > { %v3514_v38 = vmul.f32 1.442695, %v3503_v41  ;;  %v3507_v32 = vmin.f32 %v12409_v40, 0.0  ;;  %v10263_v2 = vcombine.low %v3833_v58, %v3841_v43  ;;  %v10278_v37 = vcombine.high %v3848_v57, %v3856_v62  ;;  %v3921_v21 = vld [vmem:[#allocation17 + $0xbc8] sm:$0xff] }
 0xcd2   : > { %v3536_v36 = vsel %vm3496_vm13, %v12327_v10, %v9969_v56  ;;  %11085 = vpow2.f32 %v3512_v31  ;;  %v3520_v16 = vmul.f32 1.442695, %v3506_v51  ;;  %v10247_v10 = vcombine.low %v3817_v30, %v3825_v48  ;;  %v3897_v51 = vld [vmem:[#allocation17 + $0xb08] sm:$0xff] }
 0xcd3   : > { %v12419_v42 = vpack.c.bf16 %v3536_v36, %v3532_v53  ;;  %11087 = vpow2.f32 %v3514_v38  ;;  %v3522_v54 = vmul.f32 1.442695, %v3507_v32  ;;  %v10280_v20 = vcombine.high %v3849_v0, %v3857_v25  ;;  %v3905_v53 = vld [vmem:[#allocation17 + $0xb48] sm:$0xff]  ;;  %v3912_v32 = vld [vmem:[#allocation17 + $0xb80] sm:$0xff] }
 0xcd4   : > { %11089 = vpow2.f32 %v3520_v16  ;;  %v10277_v6 = vcombine.low %v3848_v57, %v3856_v62  ;;  %v10279_v7 = vcombine.low %v3849_v0, %v3857_v25  ;;  %vm3494_vm2 = vcmp.gt.f32.partialorder %v12389_v52, 0.0  ;;  %v3920_v16 = vld [vmem:[#allocation17 + $0xbc0] sm:$0xff] }
 0xcd5   : > { %6649 = vmatmul.mubr.bf16.vlgmr.msra.gmra.mrb[80].mxu1 %v12419_v42  ;;  %6735 = vmatmul.mubr.bf16.vlgmr.msra.gmra.mrb[84].mxu0 %v12419_v42  ;;  %11091 = vpow2.f32 %v3522_v54  ;;  %vm3498_vm3 = vcmp.gt.f32.partialorder %v12406_v49, 0.0  ;;  %vm3495_vm6 = vcmp.gt.f32.partialorder %v12397_v45, 0.0  ;;  %vm3499_vm9 = vcmp.gt.f32.partialorder %v12409_v40, 0.0 }
 0xcd6   : > { %6660 = vmatpush1.bf16.msra.mxu1 %v10229_v59  ;;  %6746 = vmatpush1.bf16.msra.mxu0 %v10231_v24  ;;  %v3872_v59 = vld [vmem:[#allocation17 + $0xa40] sm:$0xff]  ;;  %v3865_v24 = vld [vmem:[#allocation17 + $0xa08] sm:$0xff]  ;;  %v10310_v48 = vcombine.high %v3880_v22, %v3888_v33  ;;  %v10312_v38 = vcombine.high %v3881_v9, %v3889_v39  ;;  %v10311_v36 = vcombine.low %v3881_v9, %v3889_v39 }
 0xcd7   : > { %6661 = vmatprep.subr.bf16.mxu1 %v10246_v3  ;;  %6747 = vmatprep.subr.bf16.mxu0 %v10248_v26  ;;  %v10294_v63 = vcombine.high %v3864_v23, %v3872_v59  ;;  %v10296_v17 = vcombine.high %v3865_v24, %v3873_v47  ;;  %v10293_v28 = vcombine.low %v3864_v23, %v3872_v59  ;;  %v3896_v3 = vld [vmem:[#allocation17 + $0xb00] sm:$0xff]  ;;  %v3913_v26 = vld [vmem:[#allocation17 + $0xb88] sm:$0xff] }
 0xcd8   : > { %v10295_v55 = vcombine.low %v3865_v24, %v3873_v47  ;;  %v10327_v15 = vcombine.low %v3897_v51, %v3905_v53  ;;  %v10342_v58 = vcombine.high %v3912_v32, %v3920_v16  ;;  %v10344_v43 = vcombine.high %v3913_v26, %v3921_v21  ;;  %v3960_v47 = vld [vmem:[#allocation17 + $0xd00] sm:$0xff] }
 0xcd9   : > { %v10341_v57 = vcombine.low %v3912_v32, %v3920_v16  ;;  %v10343_v62 = vcombine.low %v3913_v26, %v3921_v21  ;;  %v3992_v9 = vld [vmem:[#allocation17 + $0xe00] sm:$0xff]  ;;  %v4025_v26 = vld [vmem:[#allocation17 + $0xf08] sm:$0xff] }
 0xcda   : > { %6662 = vmatpush1.bf16.msra.mxu1 %v10245_v4  ;;  %6748 = vmatpush1.bf16.msra.mxu0 %v10247_v10  ;;  %v3928_v4 = vld [vmem:[#allocation17 + $0xc00] sm:$0xff]  ;;  %v4033_v21 = vld [vmem:[#allocation17 + $0xf48] sm:$0xff] }
 0xcdb   : > { %6663 = vmatprep.subr.bf16.mxu1 %v10262_v46  ;;  %6749 = vmatprep.subr.bf16.mxu0 %v10264_v61  ;;  %v3936_v10 = vld [vmem:[#allocation17 + $0xc40] sm:$0xff]  ;;  %v3929_v46 = vld [vmem:[#allocation17 + $0xc08] sm:$0xff] }
 0xcdc   : > { %v11086_v13 = vpop.eup %11085  ;;  %v3937_v61 = vld [vmem:[#allocation17 + $0xc48] sm:$0xff]  ;;  %v10358_v0 = vcombine.high %v3928_v4, %v3936_v10  ;;  %v10357_v23 = vcombine.low %v3928_v4, %v3936_v10  ;;  %v4000_v39 = vld [vmem:[#allocation17 + $0xe40] sm:$0xff] }
 0xcdd   : > { %v11088_v29 = vpop.eup %11087  ;;  %v9967_v5 = vadd.f32 -1.0, %v11086_v13  ;;  %v10360_v25 = vcombine.high %v3929_v46, %v3937_v61  ;;  %v10359_v13 = vcombine.low %v3929_v46, %v3937_v61  ;;  %v4024_v32 = vld [vmem:[#allocation17 + $0xf00] sm:$0xff]  ;;  %v4041_v46 = vld [vmem:[#allocation17 + $0xf88] sm:$0xff] }
 0xcde   : > { %6664 = vmatpush1.bf16.msra.mxu1 %v10261_v44  ;;  %6750 = vmatpush1.bf16.msra.mxu0 %v10263_v2  ;;  %v11090_v27 = vpop.eup %11089  ;;  %v9968_v11 = vadd.f32 -1.0, %v11088_v29  ;;  %v3944_v44 = vld [vmem:[#allocation17 + $0xc80] sm:$0xff]  ;;  %v4049_v61 = vld [vmem:[#allocation17 + $0xfc8] sm:$0xff] }
 0xcdf   : > { %6665 = vmatprep.subr.bf16.mxu1 %v10278_v37  ;;  %6751 = vmatprep.subr.bf16.mxu0 %v10280_v20  ;;  %v11092_v19 = vpop.eup %11091  ;;  %v9971_v50 = vadd.f32 -1.0, %v11090_v27  ;;  %v3534_v35 = vsel %vm3494_vm2, %v12389_v52, %v9967_v5  ;;  %v3904_v52 = vld [vmem:[#allocation17 + $0xb40] sm:$0xff]  ;;  %v3945_v37 = vld [vmem:[#allocation17 + $0xc88] sm:$0xff] }
 0xce0   : > { %v9972_v8 = vadd.f32 -1.0, %v11092_v19  ;;  %v3535_v41 = vsel %vm3495_vm6, %v12397_v45, %v9968_v11  ;;  %v10326_v45 = vcombine.high %v3896_v3, %v3904_v52  ;;  %v10325_v54 = vcombine.low %v3896_v3, %v3904_v52  ;;  %v3952_v2 = vld [vmem:[#allocation17 + $0xcc0] sm:$0xff]  ;;  %v3953_v20 = vld [vmem:[#allocation17 + $0xcc8] sm:$0xff] }
 0xce1   : > { %v3538_v60 = vsel %vm3498_vm3, %v12406_v49, %v9971_v50  ;;  %v10309_v49 = vcombine.low %v3880_v22, %v3888_v33  ;;  %v10374_v59 = vcombine.high %v3944_v44, %v3952_v2  ;;  %v10376_v24 = vcombine.high %v3945_v37, %v3953_v20  ;;  %v3968_v29 = vld [vmem:[#allocation17 + $0xd40] sm:$0xff]  ;;  %v3961_v5 = vld [vmem:[#allocation17 + $0xd08] sm:$0xff] }
 0xce2   : > { %6666 = vmatpush1.bf16.msra.mxu1 %v10277_v6  ;;  %6752 = vmatpush1.bf16.msra.mxu0 %v10279_v7  ;;  %v3539_v56 = vsel %vm3499_vm9, %v12409_v40, %v9972_v8  ;;  %v12437_v31 = vpack.c.bf16 %v3538_v60, %v3534_v35  ;;  %v10328_v40 = vcombine.high %v3897_v51, %v3905_v53  ;;  %v3969_v6 = vld [vmem:[#allocation17 + $0xd48] sm:$0xff]  ;;  %v3984_v19 = vld [vmem:[#allocation17 + $0xdc0] sm:$0xff] }
 0xce3   : > { %6667 = vmatprep.subr.bf16.mxu1 %v10294_v63  ;;  %6753 = vmatprep.subr.bf16.mxu0 %v10296_v17  ;;  %v12439_v30 = vpack.c.bf16 %v3539_v56, %v3535_v41  ;;  %v10373_v7 = vcombine.low %v3944_v44, %v3952_v2  ;;  %v10375_v27 = vcombine.low %v3945_v37, %v3953_v20  ;;  %v3976_v17 = vld [vmem:[#allocation17 + $0xd80] sm:$0xff]  ;;  %v3977_v50 = vld [vmem:[#allocation17 + $0xd88] sm:$0xff]  ;;  %v3546_v44 = vld [vmem:[#allocation17 + $0x10] sm:$0xff] }
 0xce4   : > { %v10390_v11 = vcombine.high %v3960_v47, %v3968_v29  ;;  %v10392_v63 = vcombine.high %v3961_v5, %v3969_v6  ;;  %v10389_v22 = vcombine.low %v3960_v47, %v3968_v29  ;;  %v10391_v8 = vcombine.low %v3961_v5, %v3969_v6  ;;  %v3993_v35 = vld [vmem:[#allocation17 + $0xe08] sm:$0xff]  ;;  %v4016_v52 = vld [vmem:[#allocation17 + $0xec0] sm:$0xff]  ;;  %v3554_v2 = vld [vmem:[#allocation17 + $0x50] sm:$0xff] }
 0xce5   : > { %6691 = vmatprep.mubr.bf16.mxu1 %v12439_v30  ;;  %6777 = vmatprep.mubr.bf16.mxu0 %v12439_v30  ;;  %v4001_v60 = vld [vmem:[#allocation17 + $0xe48] sm:$0xff]  ;;  %v10405_v41 = vcombine.low %v3976_v17, %v3984_v19  ;;  %v10422_v3 = vcombine.high %v3992_v9, %v4000_v39  ;;  %v4032_v16 = vld [vmem:[#allocation17 + $0xf40] sm:$0xff]  ;;  %v3547_v37 = vld [vmem:[#allocation17 + $0x18] sm:$0xff] }
 0xce6   : > { %6668 = vmatpush1.bf16.msra.mxu1 %v10293_v28  ;;  %6754 = vmatpush1.bf16.msra.mxu0 %v10295_v55  ;;  %v3985_v28 = vld [vmem:[#allocation17 + $0xdc8] sm:$0xff]  ;;  %v10406_v55 = vcombine.high %v3976_v17, %v3984_v19  ;;  %v4040_v4 = vld [vmem:[#allocation17 + $0xf80] sm:$0xff]  ;;  %v3555_v20 = vld [vmem:[#allocation17 + $0x58] sm:$0xff] }
 0xce7   : > { %6669 = vmatprep.subr.bf16.mxu1 %v10310_v48  ;;  %6755 = vmatprep.subr.bf16.mxu0 %v10312_v38  ;;  %v10408_v33 = vcombine.high %v3977_v50, %v3985_v28  ;;  %v10407_v56 = vcombine.low %v3977_v50, %v3985_v28  ;;  %v10424_v48 = vcombine.high %v3993_v35, %v4001_v60  ;;  %v4008_v38 = vld [vmem:[#allocation17 + $0xe80] sm:$0xff]  ;;  %v4009_v51 = vld [vmem:[#allocation17 + $0xe88] sm:$0xff]  ;;  %v3562_v47 = vld [vmem:[#allocation17 + $0x90] sm:$0xff] }
 0xce8   : > { %v4017_v53 = vld [vmem:[#allocation17 + $0xec8] sm:$0xff]  ;;  %v4048_v10 = vld [vmem:[#allocation17 + $0xfc0] sm:$0xff]  ;;  %v3570_v29 = vld [vmem:[#allocation17 + $0xd0] sm:$0xff] }
 0xce9   : > { %v3563_v5 = vld [vmem:[#allocation17 + $0x98] sm:$0xff]  ;;  %v3578_v17 = vld [vmem:[#allocation17 + $0x110] sm:$0xff] }
 0xcea   : > { %6670 = vmatpush1.bf16.msra.mxu1 %v10309_v49  ;;  %6756 = vmatpush1.bf16.msra.mxu0 %v10311_v36  ;;  %v10421_v49 = vcombine.low %v3992_v9, %v4000_v39  ;;  %v10423_v36 = vcombine.low %v3993_v35, %v4001_v60  ;;  %v3571_v6 = vld [vmem:[#allocation17 + $0xd8] sm:$0xff]  ;;  %v3586_v19 = vld [vmem:[#allocation17 + $0x150] sm:$0xff] }
 0xceb   : > { %6671 = vmatprep.subr.bf16.mxu1 %v10326_v45  ;;  %6757 = vmatprep.subr.bf16.mxu0 %v10328_v40  ;;  %v10438_v45 = vcombine.high %v4008_v38, %v4016_v52  ;;  %v10440_v40 = vcombine.high %v4009_v51, %v4017_v53  ;;  %v3579_v50 = vld [vmem:[#allocation17 + $0x118] sm:$0xff]  ;;  %v3594_v9 = vld [vmem:[#allocation17 + $0x190] sm:$0xff] }
 0xcec   : > { %v3587_v28 = vld [vmem:[#allocation17 + $0x158] sm:$0xff]  ;;  %v3602_v39 = vld [vmem:[#allocation17 + $0x1d0] sm:$0xff] }
 0xced   : > { %v3595_v35 = vld [vmem:[#allocation17 + $0x198] sm:$0xff] }
 0xcee   : > { %6672 = vmatpush1.bf16.msra.mxu1 %v10325_v54  ;;  %6758 = vmatpush1.bf16.msra.mxu0 %v10327_v15  ;;  %v10437_v54 = vcombine.low %v4008_v38, %v4016_v52  ;;  %v10439_v15 = vcombine.low %v4009_v51, %v4017_v53  ;;  %v3603_v60 = vld [vmem:[#allocation17 + $0x1d8] sm:$0xff]  ;;  %v3610_v38 = vld [vmem:[#allocation17 + $0x210] sm:$0xff] }
 0xcef   : > { %6673 = vmatprep.subr.bf16.mxu1 %v10342_v58  ;;  %6759 = vmatprep.subr.bf16.mxu0 %v10344_v43  ;;  %v10454_v58 = vcombine.high %v4024_v32, %v4032_v16  ;;  %v10456_v43 = vcombine.high %v4025_v26, %v4033_v21  ;;  %v3618_v52 = vld [vmem:[#allocation17 + $0x250] sm:$0xff]  ;;  %v3611_v51 = vld [vmem:[#allocation17 + $0x218] sm:$0xff] }
 0xcf0   : > { %v3619_v53 = vld [vmem:[#allocation17 + $0x258] sm:$0xff] }
 0xcf2   : > { %6674 = vmatpush1.bf16.msra.mxu1 %v10341_v57  ;;  %6760 = vmatpush1.bf16.msra.mxu0 %v10343_v62  ;;  %v10453_v57 = vcombine.low %v4024_v32, %v4032_v16  ;;  %v10455_v62 = vcombine.low %v4025_v26, %v4033_v21  ;;  %v3626_v32 = vld [vmem:[#allocation17 + $0x290] sm:$0xff]  ;;  %v3627_v26 = vld [vmem:[#allocation17 + $0x298] sm:$0xff] }
 0xcf3   : > { %6675 = vmatprep.subr.bf16.mxu1 %v10358_v0  ;;  %6761 = vmatprep.subr.bf16.mxu0 %v10360_v25  ;;  %v10470_v0 = vcombine.high %v4040_v4, %v4048_v10  ;;  %v10472_v25 = vcombine.high %v4041_v46, %v4049_v61  ;;  %v3634_v16 = vld [vmem:[#allocation17 + $0x2d0] sm:$0xff]  ;;  %v3635_v21 = vld [vmem:[#allocation17 + $0x2d8] sm:$0xff] }
 0xcf6   : > { %6676 = vmatpush1.bf16.msra.mxu1 %v10357_v23  ;;  %6762 = vmatpush1.bf16.msra.mxu0 %v10359_v13  ;;  %v10469_v23 = vcombine.low %v4040_v4, %v4048_v10  ;;  %v10471_v13 = vcombine.low %v4041_v46, %v4049_v61  ;;  %v3642_v4 = vld [vmem:[#allocation17 + $0x310] sm:$0xff]  ;;  %v3643_v46 = vld [vmem:[#allocation17 + $0x318] sm:$0xff] }
 0xcf7   : > { %6677 = vmatprep.subr.bf16.mxu1 %v10374_v59  ;;  %6763 = vmatprep.subr.bf16.mxu0 %v10376_v24  ;;  %v9978_v59 = vcombine.high %v3546_v44, %v3554_v2  ;;  %v9980_v24 = vcombine.high %v3547_v37, %v3555_v20  ;;  %v3650_v10 = vld [vmem:[#allocation17 + $0x350] sm:$0xff]  ;;  %v3651_v61 = vld [vmem:[#allocation17 + $0x358] sm:$0xff] }
 0xcfa   : > { %6678 = vmatpush1.bf16.msra.mxu1 %v10373_v7  ;;  %6764 = vmatpush1.bf16.msra.mxu0 %v10375_v27  ;;  %v9977_v7 = vcombine.low %v3546_v44, %v3554_v2  ;;  %v9979_v27 = vcombine.low %v3547_v37, %v3555_v20  ;;  %v3658_v44 = vld [vmem:[#allocation17 + $0x390] sm:$0xff]  ;;  %v3659_v37 = vld [vmem:[#allocation17 + $0x398] sm:$0xff] }
 0xcfb   : > { %6679 = vmatprep.subr.bf16.mxu1 %v10390_v11  ;;  %6765 = vmatprep.subr.bf16.mxu0 %v10392_v63  ;;  %v9994_v11 = vcombine.high %v3562_v47, %v3570_v29  ;;  %v9996_v63 = vcombine.high %v3563_v5, %v3571_v6  ;;  %v3666_v2 = vld [vmem:[#allocation17 + $0x3d0] sm:$0xff]  ;;  %v3667_v20 = vld [vmem:[#allocation17 + $0x3d8] sm:$0xff] }
 0xcfe   : > { %6680 = vmatpush1.bf16.msra.mxu1 %v10389_v22  ;;  %6766 = vmatpush1.bf16.msra.mxu0 %v10391_v8  ;;  %v9993_v22 = vcombine.low %v3562_v47, %v3570_v29  ;;  %v9995_v8 = vcombine.low %v3563_v5, %v3571_v6  ;;  %v3674_v47 = vld [vmem:[#allocation17 + $0x410] sm:$0xff]  ;;  %v3675_v5 = vld [vmem:[#allocation17 + $0x418] sm:$0xff] }
 0xcff   : > { %6681 = vmatprep.subr.bf16.mxu1 %v10406_v55  ;;  %6767 = vmatprep.subr.bf16.mxu0 %v10408_v33  ;;  %v10010_v55 = vcombine.high %v3578_v17, %v3586_v19  ;;  %v10012_v33 = vcombine.high %v3579_v50, %v3587_v28  ;;  %v3682_v29 = vld [vmem:[#allocation17 + $0x450] sm:$0xff]  ;;  %v3683_v6 = vld [vmem:[#allocation17 + $0x458] sm:$0xff] }
 0xd02   : > { %6682 = vmatpush1.bf16.msra.mxu1 %v10405_v41  ;;  %6768 = vmatpush1.bf16.msra.mxu0 %v10407_v56  ;;  %v10009_v41 = vcombine.low %v3578_v17, %v3586_v19  ;;  %v10011_v56 = vcombine.low %v3579_v50, %v3587_v28  ;;  %v3690_v17 = vld [vmem:[#allocation17 + $0x490] sm:$0xff]  ;;  %v3691_v50 = vld [vmem:[#allocation17 + $0x498] sm:$0xff] }
 0xd03   : > { %6683 = vmatprep.subr.bf16.mxu1 %v10422_v3  ;;  %6769 = vmatprep.subr.bf16.mxu0 %v10424_v48  ;;  %v10026_v3 = vcombine.high %v3594_v9, %v3602_v39  ;;  %v10028_v48 = vcombine.high %v3595_v35, %v3603_v60  ;;  %v3698_v19 = vld [vmem:[#allocation17 + $0x4d0] sm:$0xff]  ;;  %v3699_v28 = vld [vmem:[#allocation17 + $0x4d8] sm:$0xff] }
 0xd06   : > { %6684 = vmatpush1.bf16.msra.mxu1 %v10421_v49  ;;  %6770 = vmatpush1.bf16.msra.mxu0 %v10423_v36  ;;  %v10025_v49 = vcombine.low %v3594_v9, %v3602_v39  ;;  %v10027_v36 = vcombine.low %v3595_v35, %v3603_v60  ;;  %v3706_v9 = vld [vmem:[#allocation17 + $0x510] sm:$0xff]  ;;  %v3707_v35 = vld [vmem:[#allocation17 + $0x518] sm:$0xff] }
 0xd07   : > { %6685 = vmatprep.subr.bf16.mxu1 %v10438_v45  ;;  %6771 = vmatprep.subr.bf16.mxu0 %v10440_v40  ;;  %v10042_v45 = vcombine.high %v3610_v38, %v3618_v52  ;;  %v10044_v40 = vcombine.high %v3611_v51, %v3619_v53  ;;  %v3714_v39 = vld [vmem:[#allocation17 + $0x550] sm:$0xff]  ;;  %v3715_v60 = vld [vmem:[#allocation17 + $0x558] sm:$0xff] }
 0xd0a   : > { %6686 = vmatpush1.bf16.msra.mxu1 %v10437_v54  ;;  %6772 = vmatpush1.bf16.msra.mxu0 %v10439_v15  ;;  %v10041_v54 = vcombine.low %v3610_v38, %v3618_v52  ;;  %v10043_v15 = vcombine.low %v3611_v51, %v3619_v53  ;;  %v3722_v38 = vld [vmem:[#allocation17 + $0x590] sm:$0xff]  ;;  %v3723_v51 = vld [vmem:[#allocation17 + $0x598] sm:$0xff] }
 0xd0b   : > { %6687 = vmatprep.subr.bf16.mxu1 %v10454_v58  ;;  %6773 = vmatprep.subr.bf16.mxu0 %v10456_v43  ;;  %v10058_v58 = vcombine.high %v3626_v32, %v3634_v16  ;;  %v10060_v43 = vcombine.high %v3627_v26, %v3635_v21  ;;  %v3730_v52 = vld [vmem:[#allocation17 + $0x5d0] sm:$0xff]  ;;  %v3731_v53 = vld [vmem:[#allocation17 + $0x5d8] sm:$0xff] }
 0xd0e   : > { %6688 = vmatpush1.bf16.msra.mxu1 %v10453_v57  ;;  %6774 = vmatpush1.bf16.msra.mxu0 %v10455_v62  ;;  %v10057_v57 = vcombine.low %v3626_v32, %v3634_v16  ;;  %v10059_v62 = vcombine.low %v3627_v26, %v3635_v21  ;;  %v3738_v32 = vld [vmem:[#allocation17 + $0x610] sm:$0xff]  ;;  %v3739_v26 = vld [vmem:[#allocation17 + $0x618] sm:$0xff] }
 0xd0f   : > { %6689 = vmatprep.subr.bf16.mxu1 %v10470_v0  ;;  %6775 = vmatprep.subr.bf16.mxu0 %v10472_v25  ;;  %v10074_v0 = vcombine.high %v3642_v4, %v3650_v10  ;;  %v10076_v25 = vcombine.high %v3643_v46, %v3651_v61  ;;  %v3746_v16 = vld [vmem:[#allocation17 + $0x650] sm:$0xff]  ;;  %v3747_v21 = vld [vmem:[#allocation17 + $0x658] sm:$0xff] }
 0xd12   : > { %6690 = vmatpush1.bf16.msra.mxu1 %v10469_v23  ;;  %6776 = vmatpush1.bf16.msra.mxu0 %v10471_v13  ;;  %v10073_v23 = vcombine.low %v3642_v4, %v3650_v10  ;;  %v10075_v13 = vcombine.low %v3643_v46, %v3651_v61  ;;  %v3754_v4 = vld [vmem:[#allocation17 + $0x690] sm:$0xff]  ;;  %v3755_v46 = vld [vmem:[#allocation17 + $0x698] sm:$0xff] }
 0xd13   : > { %6788 = vmatprep.subr.bf16.mxu1 %v9978_v59  ;;  %6874 = vmatprep.subr.bf16.mxu0 %v9980_v24  ;;  %v10090_v59 = vcombine.high %v3658_v44, %v3666_v2  ;;  %v10092_v24 = vcombine.high %v3659_v37, %v3667_v20  ;;  %v3762_v10 = vld [vmem:[#allocation17 + $0x6d0] sm:$0xff]  ;;  %v3763_v61 = vld [vmem:[#allocation17 + $0x6d8] sm:$0xff] }
 0xd15   : > { %6692 = vmatmul.mubr.bf16.vlgmr.msra.gmra.mrb[80].mxu1 %v12437_v31  ;;  %6778 = vmatmul.mubr.bf16.vlgmr.msra.gmra.mrb[84].mxu0 %v12437_v31 }
 0xd16   : > { %6789 = vmatpush1.bf16.msra.mxu1 %v9977_v7  ;;  %6820 = vmatprep.mubr.bf16.mxu1 %v12401_v34  ;;  %v10089_v7 = vcombine.low %v3658_v44, %v3666_v2  ;;  %v3770_v44 = vld [vmem:[#allocation17 + $0x710] sm:$0xff] }
 0xd17   : > { %6875 = vmatpush1.bf16.msra.mxu0 %v9979_v27  ;;  %6906 = vmatprep.mubr.bf16.mxu0 %v12401_v34  ;;  %v10091_v27 = vcombine.low %v3659_v37, %v3667_v20  ;;  %v3778_v2 = vld [vmem:[#allocation17 + $0x750] sm:$0xff]  ;;  %v3771_v37 = vld [vmem:[#allocation17 + $0x718] sm:$0xff] }
 0xd18   : > { %6790 = vmatprep.subr.bf16.mxu1 %v9994_v11  ;;  %6876 = vmatprep.subr.bf16.mxu0 %v9996_v63  ;;  %v10106_v11 = vcombine.high %v3674_v47, %v3682_v29  ;;  %v10108_v63 = vcombine.high %v3675_v5, %v3683_v6  ;;  %v3779_v20 = vld [vmem:[#allocation17 + $0x758] sm:$0xff] }
 0xd1a   : > { %6791 = vmatpush1.bf16.msra.mxu1 %v9993_v22  ;;  %v10105_v22 = vcombine.low %v3674_v47, %v3682_v29  ;;  %v3786_v47 = vld [vmem:[#allocation17 + $0x790] sm:$0xff] }
 0xd1b   : > { %6877 = vmatpush1.bf16.msra.mxu0 %v9995_v8  ;;  %6792 = vmatprep.subr.bf16.mxu1 %v10010_v55  ;;  %v10107_v8 = vcombine.low %v3675_v5, %v3683_v6  ;;  %v10122_v55 = vcombine.high %v3690_v17, %v3698_v19  ;;  %v3794_v29 = vld [vmem:[#allocation17 + $0x7d0] sm:$0xff]  ;;  %v3787_v5 = vld [vmem:[#allocation17 + $0x798] sm:$0xff] }
 0xd1c   : > { %6878 = vmatprep.subr.bf16.mxu0 %v10012_v33  ;;  %v10124_v33 = vcombine.high %v3691_v50, %v3699_v28  ;;  %v3795_v6 = vld [vmem:[#allocation17 + $0x7d8] sm:$0xff] }
 0xd1e   : > { %6793 = vmatpush1.bf16.msra.mxu1 %v10009_v41  ;;  %v10121_v41 = vcombine.low %v3690_v17, %v3698_v19  ;;  %v3802_v17 = vld [vmem:[#allocation17 + $0x810] sm:$0xff] }
 0xd1f   : > { %6879 = vmatpush1.bf16.msra.mxu0 %v10011_v56  ;;  %6794 = vmatprep.subr.bf16.mxu1 %v10026_v3  ;;  %v10123_v56 = vcombine.low %v3691_v50, %v3699_v28  ;;  %v10138_v3 = vcombine.high %v3706_v9, %v3714_v39  ;;  %v3810_v19 = vld [vmem:[#allocation17 + $0x850] sm:$0xff]  ;;  %v3803_v50 = vld [vmem:[#allocation17 + $0x818] sm:$0xff] }
 0xd20   : > { %6880 = vmatprep.subr.bf16.mxu0 %v10028_v48  ;;  %v10140_v48 = vcombine.high %v3707_v35, %v3715_v60  ;;  %v3811_v28 = vld [vmem:[#allocation17 + $0x858] sm:$0xff] }
 0xd22   : > { %6795 = vmatpush1.bf16.msra.mxu1 %v10025_v49  ;;  %v10137_v49 = vcombine.low %v3706_v9, %v3714_v39  ;;  %v3818_v9 = vld [vmem:[#allocation17 + $0x890] sm:$0xff] }
 0xd23   : > { %6881 = vmatpush1.bf16.msra.mxu0 %v10027_v36  ;;  %6796 = vmatprep.subr.bf16.mxu1 %v10042_v45  ;;  %v10139_v36 = vcombine.low %v3707_v35, %v3715_v60  ;;  %v10154_v45 = vcombine.high %v3722_v38, %v3730_v52  ;;  %v3826_v39 = vld [vmem:[#allocation17 + $0x8d0] sm:$0xff]  ;;  %v10233_v35 = vcombine.low %v3802_v17, %v3810_v19  ;;  %v3819_v60 = vld [vmem:[#allocation17 + $0x898] sm:$0xff] }
 0xd24   : > { %6882 = vmatprep.subr.bf16.mxu0 %v10044_v40  ;;  %v10156_v40 = vcombine.high %v3723_v51, %v3731_v53 }
 0xd26   : > { %6797 = vmatpush1.bf16.msra.mxu1 %v10041_v54  ;;  %v10153_v54 = vcombine.low %v3722_v38, %v3730_v52  ;;  %v3842_v38 = vld [vmem:[#allocation17 + $0x950] sm:$0xff] }
 0xd27   : > { %6883 = vmatpush1.bf16.msra.mxu0 %v10043_v15  ;;  %6798 = vmatprep.subr.bf16.mxu1 %v10058_v58  ;;  %v10155_v15 = vcombine.low %v3723_v51, %v3731_v53  ;;  %v10170_v58 = vcombine.high %v3738_v32, %v3746_v16  ;;  %v3835_v51 = vld [vmem:[#allocation17 + $0x918] sm:$0xff] }
 0xd28   : > { %6884 = vmatprep.subr.bf16.mxu0 %v10060_v43  ;;  %v10172_v43 = vcombine.high %v3739_v26, %v3747_v21  ;;  %v3843_v53 = vld [vmem:[#allocation17 + $0x958] sm:$0xff] }
 0xd2a   : > { %6799 = vmatpush1.bf16.msra.mxu1 %v10057_v57  ;;  %v10169_v57 = vcombine.low %v3738_v32, %v3746_v16  ;;  %v3850_v32 = vld [vmem:[#allocation17 + $0x990] sm:$0xff] }
 0xd2b   : > { %6885 = vmatpush1.bf16.msra.mxu0 %v10059_v62  ;;  %6800 = vmatprep.subr.bf16.mxu1 %v10074_v0  ;;  %v10171_v62 = vcombine.low %v3739_v26, %v3747_v21  ;;  %v10186_v0 = vcombine.high %v3754_v4, %v3762_v10  ;;  %v3858_v16 = vld [vmem:[#allocation17 + $0x9d0] sm:$0xff]  ;;  %v3851_v26 = vld [vmem:[#allocation17 + $0x998] sm:$0xff] }
 0xd2c   : > { %6886 = vmatprep.subr.bf16.mxu0 %v10076_v25  ;;  %v10188_v25 = vcombine.high %v3755_v46, %v3763_v61  ;;  %v3859_v21 = vld [vmem:[#allocation17 + $0x9d8] sm:$0xff] }
 0xd2e   : > { %6801 = vmatpush1.bf16.msra.mxu1 %v10073_v23  ;;  %v10185_v23 = vcombine.low %v3754_v4, %v3762_v10  ;;  %v3866_v4 = vld [vmem:[#allocation17 + $0xa10] sm:$0xff] }
 0xd2f   : > { %6887 = vmatpush1.bf16.msra.mxu0 %v10075_v13  ;;  %6802 = vmatprep.subr.bf16.mxu1 %v10090_v59  ;;  %v10187_v13 = vcombine.low %v3755_v46, %v3763_v61  ;;  %v10202_v59 = vcombine.high %v3770_v44, %v3778_v2  ;;  %v3874_v10 = vld [vmem:[#allocation17 + $0xa50] sm:$0xff]  ;;  %v3867_v46 = vld [vmem:[#allocation17 + $0xa18] sm:$0xff] }
 0xd30   : > { %6888 = vmatprep.subr.bf16.mxu0 %v10092_v24  ;;  %v10204_v24 = vcombine.high %v3771_v37, %v3779_v20  ;;  %v3875_v61 = vld [vmem:[#allocation17 + $0xa58] sm:$0xff] }
 0xd32   : > { %6803 = vmatpush1.bf16.msra.mxu1 %v10089_v7  ;;  %v10201_v7 = vcombine.low %v3770_v44, %v3778_v2  ;;  %v3882_v44 = vld [vmem:[#allocation17 + $0xa90] sm:$0xff] }
 0xd33   : > { %6889 = vmatpush1.bf16.msra.mxu0 %v10091_v27  ;;  %6804 = vmatprep.subr.bf16.mxu1 %v10106_v11  ;;  %v10203_v27 = vcombine.low %v3771_v37, %v3779_v20  ;;  %v10218_v11 = vcombine.high %v3786_v47, %v3794_v29  ;;  %v3890_v2 = vld [vmem:[#allocation17 + $0xad0] sm:$0xff]  ;;  %v3883_v37 = vld [vmem:[#allocation17 + $0xa98] sm:$0xff] }
 0xd34   : > { %6890 = vmatprep.subr.bf16.mxu0 %v10108_v63  ;;  %v10220_v63 = vcombine.high %v3787_v5, %v3795_v6  ;;  %v3891_v20 = vld [vmem:[#allocation17 + $0xad8] sm:$0xff] }
 0xd36   : > { %6805 = vmatpush1.bf16.msra.mxu1 %v10105_v22  ;;  %v10217_v22 = vcombine.low %v3786_v47, %v3794_v29  ;;  %v3898_v47 = vld [vmem:[#allocation17 + $0xb10] sm:$0xff] }
 0xd37   : > { %6891 = vmatpush1.bf16.msra.mxu0 %v10107_v8  ;;  %6806 = vmatprep.subr.bf16.mxu1 %v10122_v55  ;;  %v10219_v8 = vcombine.low %v3787_v5, %v3795_v6  ;;  %v10234_v55 = vcombine.high %v3802_v17, %v3810_v19  ;;  %v3906_v29 = vld [vmem:[#allocation17 + $0xb50] sm:$0xff]  ;;  %v3899_v5 = vld [vmem:[#allocation17 + $0xb18] sm:$0xff] }
 0xd38   : > { %6892 = vmatprep.subr.bf16.mxu0 %v10124_v33  ;;  %v10236_v33 = vcombine.high %v3803_v50, %v3811_v28  ;;  %v3907_v6 = vld [vmem:[#allocation17 + $0xb58] sm:$0xff]  ;;  %v3914_v17 = vld [vmem:[#allocation17 + $0xb90] sm:$0xff] }
 0xd39   : > { %v3922_v19 = vld [vmem:[#allocation17 + $0xbd0] sm:$0xff] }
 0xd3a   : > { %6807 = vmatpush1.bf16.msra.mxu1 %v10121_v41  ;;  %v3827_v41 = vld [vmem:[#allocation17 + $0x8d8] sm:$0xff] }
 0xd3b   : > { %6893 = vmatpush1.bf16.msra.mxu0 %v10123_v56  ;;  %6808 = vmatprep.subr.bf16.mxu1 %v10138_v3  ;;  %v10235_v56 = vcombine.low %v3803_v50, %v3811_v28  ;;  %v10250_v3 = vcombine.high %v3818_v9, %v3826_v39  ;;  %v10252_v52 = vcombine.high %v3819_v60, %v3827_v41  ;;  %v3915_v50 = vld [vmem:[#allocation17 + $0xb98] sm:$0xff] }
 0xd3c   : > { %6894 = vmatprep.subr.bf16.mxu0 %v10140_v48  ;;  %v3834_v48 = vld [vmem:[#allocation17 + $0x910] sm:$0xff]  ;;  %v3923_v28 = vld [vmem:[#allocation17 + $0xbd8] sm:$0xff] }
 0xd3e   : > { %6809 = vmatpush1.bf16.msra.mxu1 %v10137_v49  ;;  %v10249_v49 = vcombine.low %v3818_v9, %v3826_v39  ;;  %v3930_v9 = vld [vmem:[#allocation17 + $0xc10] sm:$0xff] }
 0xd3f   : > { %6895 = vmatpush1.bf16.msra.mxu0 %v10139_v36  ;;  %6810 = vmatprep.subr.bf16.mxu1 %v10154_v45  ;;  %v10251_v36 = vcombine.low %v3819_v60, %v3827_v41  ;;  %v10266_v45 = vcombine.high %v3834_v48, %v3842_v38  ;;  %v3938_v39 = vld [vmem:[#allocation17 + $0xc50] sm:$0xff]  ;;  %v3939_v60 = vld [vmem:[#allocation17 + $0xc58] sm:$0xff]  ;;  %v10345_v41 = vcombine.low %v3914_v17, %v3922_v19 }
 0xd40   : > { %6896 = vmatprep.subr.bf16.mxu0 %v10156_v40  ;;  %v10268_v40 = vcombine.high %v3835_v51, %v3843_v53 }
 0xd42   : > { %6811 = vmatpush1.bf16.msra.mxu1 %v10153_v54  ;;  %v10265_v54 = vcombine.low %v3834_v48, %v3842_v38  ;;  %v3946_v38 = vld [vmem:[#allocation17 + $0xc90] sm:$0xff] }
 0xd43   : > { %6897 = vmatpush1.bf16.msra.mxu0 %v10155_v15  ;;  %6812 = vmatprep.subr.bf16.mxu1 %v10170_v58  ;;  %v10267_v15 = vcombine.low %v3835_v51, %v3843_v53  ;;  %v10282_v58 = vcombine.high %v3850_v32, %v3858_v16  ;;  %v3947_v51 = vld [vmem:[#allocation17 + $0xc98] sm:$0xff] }
 0xd44   : > { %6898 = vmatprep.subr.bf16.mxu0 %v10172_v43  ;;  %v10284_v43 = vcombine.high %v3851_v26, %v3859_v21  ;;  %v3955_v53 = vld [vmem:[#allocation17 + $0xcd8] sm:$0xff] }
 0xd46   : > { %6813 = vmatpush1.bf16.msra.mxu1 %v10169_v57  ;;  %v10281_v57 = vcombine.low %v3850_v32, %v3858_v16  ;;  %v3962_v32 = vld [vmem:[#allocation17 + $0xd10] sm:$0xff] }
 0xd47   : > { %6899 = vmatpush1.bf16.msra.mxu0 %v10171_v62  ;;  %6814 = vmatprep.subr.bf16.mxu1 %v10186_v0  ;;  %v10283_v62 = vcombine.low %v3851_v26, %v3859_v21  ;;  %v10298_v0 = vcombine.high %v3866_v4, %v3874_v10  ;;  %v3970_v16 = vld [vmem:[#allocation17 + $0xd50] sm:$0xff]  ;;  %v3963_v26 = vld [vmem:[#allocation17 + $0xd18] sm:$0xff] }
 0xd48   : > { %6900 = vmatprep.subr.bf16.mxu0 %v10188_v25  ;;  %v10300_v25 = vcombine.high %v3867_v46, %v3875_v61  ;;  %v3971_v21 = vld [vmem:[#allocation17 + $0xd58] sm:$0xff] }
 0xd4a   : > { %6815 = vmatpush1.bf16.msra.mxu1 %v10185_v23  ;;  %v10297_v23 = vcombine.low %v3866_v4, %v3874_v10  ;;  %v3978_v4 = vld [vmem:[#allocation17 + $0xd90] sm:$0xff] }
 0xd4b   : > { %6901 = vmatpush1.bf16.msra.mxu0 %v10187_v13  ;;  %6816 = vmatprep.subr.bf16.mxu1 %v10202_v59  ;;  %v10299_v13 = vcombine.low %v3867_v46, %v3875_v61  ;;  %v10314_v59 = vcombine.high %v3882_v44, %v3890_v2  ;;  %v3986_v10 = vld [vmem:[#allocation17 + $0xdd0] sm:$0xff]  ;;  %v3979_v46 = vld [vmem:[#allocation17 + $0xd98] sm:$0xff] }
 0xd4c   : > { %6902 = vmatprep.subr.bf16.mxu0 %v10204_v24  ;;  %v10316_v24 = vcombine.high %v3883_v37, %v3891_v20  ;;  %v3987_v61 = vld [vmem:[#allocation17 + $0xdd8] sm:$0xff] }
 0xd4e   : > { %6817 = vmatpush1.bf16.msra.mxu1 %v10201_v7  ;;  %v10313_v7 = vcombine.low %v3882_v44, %v3890_v2  ;;  %v3994_v44 = vld [vmem:[#allocation17 + $0xe10] sm:$0xff] }
 0xd4f   : > { %6903 = vmatpush1.bf16.msra.mxu0 %v10203_v27  ;;  %6818 = vmatprep.subr.bf16.mxu1 %v10218_v11  ;;  %v10315_v27 = vcombine.low %v3883_v37, %v3891_v20  ;;  %v10330_v11 = vcombine.high %v3898_v47, %v3906_v29  ;;  %v4002_v2 = vld [vmem:[#allocation17 + $0xe50] sm:$0xff]  ;;  %v3995_v37 = vld [vmem:[#allocation17 + $0xe18] sm:$0xff] }
 0xd50   : > { %6904 = vmatprep.subr.bf16.mxu0 %v10220_v63  ;;  %v10332_v63 = vcombine.high %v3899_v5, %v3907_v6  ;;  %v4003_v20 = vld [vmem:[#allocation17 + $0xe58] sm:$0xff] }
 0xd52   : > { %6819 = vmatpush1.bf16.msra.mxu1 %v10217_v22  ;;  %v10329_v22 = vcombine.low %v3898_v47, %v3906_v29  ;;  %v4010_v47 = vld [vmem:[#allocation17 + $0xe90] sm:$0xff] }
 0xd53   : > { %6905 = vmatpush1.bf16.msra.mxu0 %v10219_v8  ;;  %6831 = vmatprep.subr.bf16.mxu1 %v10234_v55  ;;  %v10331_v8 = vcombine.low %v3899_v5, %v3907_v6  ;;  %v10346_v55 = vcombine.high %v3914_v17, %v3922_v19  ;;  %v4018_v29 = vld [vmem:[#allocation17 + $0xed0] sm:$0xff]  ;;  %v4011_v5 = vld [vmem:[#allocation17 + $0xe98] sm:$0xff] }
 0xd54   : > { %6917 = vmatprep.subr.bf16.mxu0 %v10236_v33  ;;  %v10348_v33 = vcombine.high %v3915_v50, %v3923_v28  ;;  %v4019_v6 = vld [vmem:[#allocation17 + $0xed8] sm:$0xff]  ;;  %v4026_v17 = vld [vmem:[#allocation17 + $0xf10] sm:$0xff] }
 0xd55   : > { %6821 = vmatmul.mubr.bf16.vlgmr.msra.gmra.mrb[84].mxu1 %v12419_v42  ;;  %v4034_v19 = vld [vmem:[#allocation17 + $0xf50] sm:$0xff] }
 0xd56   : > { %6907 = vmatmul.mubr.bf16.vlgmr.msra.gmra.mrb[88].mxu0 %v12419_v42  ;;  %6832 = vmatpush1.bf16.msra.mxu1 %v10233_v35  ;;  %v3931_v35 = vld [vmem:[#allocation17 + $0xc18] sm:$0xff] }
 0xd57   : > { %6863 = vmatprep.mubr.bf16.mxu1 %v12439_v30  ;;  %6918 = vmatpush1.bf16.msra.mxu0 %v10235_v56  ;;  %v10347_v56 = vcombine.low %v3915_v50, %v3923_v28  ;;  %v10364_v48 = vcombine.high %v3931_v35, %v3939_v60  ;;  %v4027_v50 = vld [vmem:[#allocation17 + $0xf18] sm:$0xff] }
 0xd58   : > { %6949 = vmatprep.mubr.bf16.mxu0 %v12439_v30  ;;  %6833 = vmatprep.subr.bf16.mxu1 %v10250_v3  ;;  %v10362_v3 = vcombine.high %v3930_v9, %v3938_v39  ;;  %v4035_v28 = vld [vmem:[#allocation17 + $0xf58] sm:$0xff] }
 0xd59   : > { %6919 = vmatprep.subr.bf16.mxu0 %v10252_v52  ;;  %v3954_v52 = vld [vmem:[#allocation17 + $0xcd0] sm:$0xff] }
 0xd5a   : > { %6834 = vmatpush1.bf16.msra.mxu1 %v10249_v49  ;;  %v10361_v49 = vcombine.low %v3930_v9, %v3938_v39  ;;  %v4042_v9 = vld [vmem:[#allocation17 + $0xf90] sm:$0xff] }
 0xd5b   : > { %6920 = vmatpush1.bf16.msra.mxu0 %v10251_v36  ;;  %6835 = vmatprep.subr.bf16.mxu1 %v10266_v45  ;;  %v10363_v36 = vcombine.low %v3931_v35, %v3939_v60  ;;  %v10378_v45 = vcombine.high %v3946_v38, %v3954_v52  ;;  %v4050_v39 = vld [vmem:[#allocation17 + $0xfd0] sm:$0xff]  ;;  %v4043_v35 = vld [vmem:[#allocation17 + $0xf98] sm:$0xff] }
 0xd5c   : > { %6921 = vmatprep.subr.bf16.mxu0 %v10268_v40  ;;  %v10380_v40 = vcombine.high %v3947_v51, %v3955_v53  ;;  %v4051_v60 = vld [vmem:[#allocation17 + $0xfd8] sm:$0xff] }
 0xd5e   : > { %6836 = vmatpush1.bf16.msra.mxu1 %v10265_v54  ;;  %v10377_v54 = vcombine.low %v3946_v38, %v3954_v52  ;;  %v3548_v38 = vld [vmem:[#allocation17 + $0x20] sm:$0xff] }
 0xd5f   : > { %6922 = vmatpush1.bf16.msra.mxu0 %v10267_v15  ;;  %6837 = vmatprep.subr.bf16.mxu1 %v10282_v58  ;;  %v10379_v15 = vcombine.low %v3947_v51, %v3955_v53  ;;  %v10394_v58 = vcombine.high %v3962_v32, %v3970_v16  ;;  %v3556_v52 = vld [vmem:[#allocation17 + $0x60] sm:$0xff]  ;;  %v3549_v51 = vld [vmem:[#allocation17 + $0x28] sm:$0xff] }
 0xd60   : > { %6923 = vmatprep.subr.bf16.mxu0 %v10284_v43  ;;  %v10396_v43 = vcombine.high %v3963_v26, %v3971_v21  ;;  %v3557_v53 = vld [vmem:[#allocation17 + $0x68] sm:$0xff] }
 0xd62   : > { %6838 = vmatpush1.bf16.msra.mxu1 %v10281_v57  ;;  %v10393_v57 = vcombine.low %v3962_v32, %v3970_v16  ;;  %v3564_v32 = vld [vmem:[#allocation17 + $0xa0] sm:$0xff] }
 0xd63   : > { %6924 = vmatpush1.bf16.msra.mxu0 %v10283_v62  ;;  %6839 = vmatprep.subr.bf16.mxu1 %v10298_v0  ;;  %v10395_v62 = vcombine.low %v3963_v26, %v3971_v21  ;;  %v10410_v0 = vcombine.high %v3978_v4, %v3986_v10  ;;  %v3572_v16 = vld [vmem:[#allocation17 + $0xe0] sm:$0xff]  ;;  %v9981_v26 = vcombine.low %v3548_v38, %v3556_v52  ;;  %v3565_v21 = vld [vmem:[#allocation17 + $0xa8] sm:$0xff] }
 0xd64   : > { %6925 = vmatprep.subr.bf16.mxu0 %v10300_v25  ;;  %v10412_v25 = vcombine.high %v3979_v46, %v3987_v61 }
 0xd66   : > { %6840 = vmatpush1.bf16.msra.mxu1 %v10297_v23  ;;  %v10409_v23 = vcombine.low %v3978_v4, %v3986_v10  ;;  %v3588_v4 = vld [vmem:[#allocation17 + $0x160] sm:$0xff] }
 0xd67   : > { %6926 = vmatpush1.bf16.msra.mxu0 %v10299_v13  ;;  %6841 = vmatprep.subr.bf16.mxu1 %v10314_v59  ;;  %v10411_v13 = vcombine.low %v3979_v46, %v3987_v61  ;;  %v10426_v59 = vcombine.high %v3994_v44, %v4002_v2  ;;  %v3581_v46 = vld [vmem:[#allocation17 + $0x128] sm:$0xff] }
 0xd68   : > { %6927 = vmatprep.subr.bf16.mxu0 %v10316_v24  ;;  %v10428_v24 = vcombine.high %v3995_v37, %v4003_v20  ;;  %v3589_v61 = vld [vmem:[#allocation17 + $0x168] sm:$0xff] }
 0xd6a   : > { %6842 = vmatpush1.bf16.msra.mxu1 %v10313_v7  ;;  %v10425_v7 = vcombine.low %v3994_v44, %v4002_v2  ;;  %v3596_v44 = vld [vmem:[#allocation17 + $0x1a0] sm:$0xff] }
 0xd6b   : > { %6928 = vmatpush1.bf16.msra.mxu0 %v10315_v27  ;;  %6843 = vmatprep.subr.bf16.mxu1 %v10330_v11  ;;  %v10427_v27 = vcombine.low %v3995_v37, %v4003_v20  ;;  %v10442_v11 = vcombine.high %v4010_v47, %v4018_v29  ;;  %v3604_v2 = vld [vmem:[#allocation17 + $0x1e0] sm:$0xff]  ;;  %v3597_v37 = vld [vmem:[#allocation17 + $0x1a8] sm:$0xff] }
 0xd6c   : > { %6929 = vmatprep.subr.bf16.mxu0 %v10332_v63  ;;  %v10444_v63 = vcombine.high %v4011_v5, %v4019_v6  ;;  %v3605_v20 = vld [vmem:[#allocation17 + $0x1e8] sm:$0xff] }
 0xd6e   : > { %6844 = vmatpush1.bf16.msra.mxu1 %v10329_v22  ;;  %v10441_v22 = vcombine.low %v4010_v47, %v4018_v29  ;;  %v3612_v47 = vld [vmem:[#allocation17 + $0x220] sm:$0xff] }
 0xd6f   : > { %6930 = vmatpush1.bf16.msra.mxu0 %v10331_v8  ;;  %6845 = vmatprep.subr.bf16.mxu1 %v10346_v55  ;;  %v10443_v8 = vcombine.low %v4011_v5, %v4019_v6  ;;  %v10458_v55 = vcombine.high %v4026_v17, %v4034_v19  ;;  %v3620_v29 = vld [vmem:[#allocation17 + $0x260] sm:$0xff]  ;;  %v3613_v5 = vld [vmem:[#allocation17 + $0x228] sm:$0xff] }
 0xd70   : > { %6931 = vmatprep.subr.bf16.mxu0 %v10348_v33  ;;  %v10460_v33 = vcombine.high %v4027_v50, %v4035_v28  ;;  %v3621_v6 = vld [vmem:[#allocation17 + $0x268] sm:$0xff] }
 0xd72   : > { %6846 = vmatpush1.bf16.msra.mxu1 %v10345_v41  ;;  %v10457_v41 = vcombine.low %v4026_v17, %v4034_v19  ;;  %v3628_v17 = vld [vmem:[#allocation17 + $0x2a0] sm:$0xff] }
 0xd73   : > { %6932 = vmatpush1.bf16.msra.mxu0 %v10347_v56  ;;  %6847 = vmatprep.subr.bf16.mxu1 %v10362_v3  ;;  %v10459_v56 = vcombine.low %v4027_v50, %v4035_v28  ;;  %v10474_v3 = vcombine.high %v4042_v9, %v4050_v39  ;;  %v3636_v19 = vld [vmem:[#allocation17 + $0x2e0] sm:$0xff]  ;;  %v3629_v50 = vld [vmem:[#allocation17 + $0x2a8] sm:$0xff] }
 0xd74   : > { %6933 = vmatprep.subr.bf16.mxu0 %v10364_v48  ;;  %v10476_v48 = vcombine.high %v4043_v35, %v4051_v60  ;;  %v3637_v28 = vld [vmem:[#allocation17 + $0x2e8] sm:$0xff] }
 0xd76   : > { %6848 = vmatpush1.bf16.msra.mxu1 %v10361_v49  ;;  %v10473_v49 = vcombine.low %v4042_v9, %v4050_v39  ;;  %v3644_v9 = vld [vmem:[#allocation17 + $0x320] sm:$0xff] }
 0xd77   : > { %6934 = vmatpush1.bf16.msra.mxu0 %v10363_v36  ;;  %6849 = vmatprep.subr.bf16.mxu1 %v10378_v45  ;;  %v10475_v36 = vcombine.low %v4043_v35, %v4051_v60  ;;  %v9982_v45 = vcombine.high %v3548_v38, %v3556_v52  ;;  %v3652_v39 = vld [vmem:[#allocation17 + $0x360] sm:$0xff]  ;;  %v3645_v35 = vld [vmem:[#allocation17 + $0x328] sm:$0xff] }
 0xd78   : > { %6935 = vmatprep.subr.bf16.mxu0 %v10380_v40  ;;  %v9984_v40 = vcombine.high %v3549_v51, %v3557_v53  ;;  %v3653_v60 = vld [vmem:[#allocation17 + $0x368] sm:$0xff]  ;;  %v3660_v38 = vld [vmem:[#allocation17 + $0x3a0] sm:$0xff] }
 0xd79   : > { %v3668_v52 = vld [vmem:[#allocation17 + $0x3e0] sm:$0xff] }
 0xd7a   : > { %6850 = vmatpush1.bf16.msra.mxu1 %v10377_v54  ;;  %v3573_v54 = vld [vmem:[#allocation17 + $0xe8] sm:$0xff] }
 0xd7b   : > { %6936 = vmatpush1.bf16.msra.mxu0 %v10379_v15  ;;  %6851 = vmatprep.subr.bf16.mxu1 %v10394_v58  ;;  %v9983_v15 = vcombine.low %v3549_v51, %v3557_v53  ;;  %v9998_v58 = vcombine.high %v3564_v32, %v3572_v16  ;;  %v10000_v10 = vcombine.high %v3565_v21, %v3573_v54  ;;  %v3661_v51 = vld [vmem:[#allocation17 + $0x3a8] sm:$0xff] }
 0xd7c   : > { %6937 = vmatprep.subr.bf16.mxu0 %v10396_v43  ;;  %v3580_v43 = vld [vmem:[#allocation17 + $0x120] sm:$0xff]  ;;  %v3669_v53 = vld [vmem:[#allocation17 + $0x3e8] sm:$0xff] }
 0xd7e   : > { %6852 = vmatpush1.bf16.msra.mxu1 %v10393_v57  ;;  %v9997_v57 = vcombine.low %v3564_v32, %v3572_v16  ;;  %v3676_v32 = vld [vmem:[#allocation17 + $0x420] sm:$0xff] }
 0xd7f   : > { %6938 = vmatpush1.bf16.msra.mxu0 %v10395_v62  ;;  %6853 = vmatprep.subr.bf16.mxu1 %v10410_v0  ;;  %v9999_v62 = vcombine.low %v3565_v21, %v3573_v54  ;;  %v10014_v0 = vcombine.high %v3580_v43, %v3588_v4  ;;  %v3684_v16 = vld [vmem:[#allocation17 + $0x460] sm:$0xff]  ;;  %v3685_v21 = vld [vmem:[#allocation17 + $0x468] sm:$0xff]  ;;  %v10093_v54 = vcombine.low %v3660_v38, %v3668_v52 }
 0xd80   : > { %6939 = vmatprep.subr.bf16.mxu0 %v10412_v25  ;;  %v10016_v25 = vcombine.high %v3581_v46, %v3589_v61 }
 0xd82   : > { %6854 = vmatpush1.bf16.msra.mxu1 %v10409_v23  ;;  %v10013_v23 = vcombine.low %v3580_v43, %v3588_v4  ;;  %v3692_v4 = vld [vmem:[#allocation17 + $0x4a0] sm:$0xff] }
 0xd83   : > { %6940 = vmatpush1.bf16.msra.mxu0 %v10411_v13  ;;  %6855 = vmatprep.subr.bf16.mxu1 %v10426_v59  ;;  %v10015_v13 = vcombine.low %v3581_v46, %v3589_v61  ;;  %v10030_v59 = vcombine.high %v3596_v44, %v3604_v2  ;;  %v3693_v46 = vld [vmem:[#allocation17 + $0x4a8] sm:$0xff] }
 0xd84   : > { %6941 = vmatprep.subr.bf16.mxu0 %v10428_v24  ;;  %v10032_v24 = vcombine.high %v3597_v37, %v3605_v20  ;;  %v3701_v61 = vld [vmem:[#allocation17 + $0x4e8] sm:$0xff] }
 0xd86   : > { %6856 = vmatpush1.bf16.msra.mxu1 %v10425_v7  ;;  %v10029_v7 = vcombine.low %v3596_v44, %v3604_v2  ;;  %v3708_v44 = vld [vmem:[#allocation17 + $0x520] sm:$0xff] }
 0xd87   : > { %6942 = vmatpush1.bf16.msra.mxu0 %v10427_v27  ;;  %6857 = vmatprep.subr.bf16.mxu1 %v10442_v11  ;;  %v10031_v27 = vcombine.low %v3597_v37, %v3605_v20  ;;  %v10046_v11 = vcombine.high %v3612_v47, %v3620_v29  ;;  %v3716_v2 = vld [vmem:[#allocation17 + $0x560] sm:$0xff]  ;;  %v3709_v37 = vld [vmem:[#allocation17 + $0x528] sm:$0xff] }
 0xd88   : > { %6943 = vmatprep.subr.bf16.mxu0 %v10444_v63  ;;  %v10048_v63 = vcombine.high %v3613_v5, %v3621_v6  ;;  %v3717_v20 = vld [vmem:[#allocation17 + $0x568] sm:$0xff] }
 0xd8a   : > { %6858 = vmatpush1.bf16.msra.mxu1 %v10441_v22  ;;  %v10045_v22 = vcombine.low %v3612_v47, %v3620_v29  ;;  %v3724_v47 = vld [vmem:[#allocation17 + $0x5a0] sm:$0xff] }
 0xd8b   : > { %6944 = vmatpush1.bf16.msra.mxu0 %v10443_v8  ;;  %6859 = vmatprep.subr.bf16.mxu1 %v10458_v55  ;;  %v10047_v8 = vcombine.low %v3613_v5, %v3621_v6  ;;  %v10062_v55 = vcombine.high %v3628_v17, %v3636_v19  ;;  %v3732_v29 = vld [vmem:[#allocation17 + $0x5e0] sm:$0xff]  ;;  %v3725_v5 = vld [vmem:[#allocation17 + $0x5a8] sm:$0xff] }
 0xd8c   : > { %6945 = vmatprep.subr.bf16.mxu0 %v10460_v33  ;;  %v10064_v33 = vcombine.high %v3629_v50, %v3637_v28  ;;  %v3733_v6 = vld [vmem:[#allocation17 + $0x5e8] sm:$0xff] }
 0xd8e   : > { %6860 = vmatpush1.bf16.msra.mxu1 %v10457_v41  ;;  %v10061_v41 = vcombine.low %v3628_v17, %v3636_v19  ;;  %v3740_v17 = vld [vmem:[#allocation17 + $0x620] sm:$0xff] }
 0xd8f   : > { %6946 = vmatpush1.bf16.msra.mxu0 %v10459_v56  ;;  %6861 = vmatprep.subr.bf16.mxu1 %v10474_v3  ;;  %v10063_v56 = vcombine.low %v3629_v50, %v3637_v28  ;;  %v10078_v3 = vcombine.high %v3644_v9, %v3652_v39  ;;  %v3748_v19 = vld [vmem:[#allocation17 + $0x660] sm:$0xff]  ;;  %v3741_v50 = vld [vmem:[#allocation17 + $0x628] sm:$0xff] }
 0xd90   : > { %6947 = vmatprep.subr.bf16.mxu0 %v10476_v48  ;;  %v10080_v48 = vcombine.high %v3645_v35, %v3653_v60  ;;  %v3749_v28 = vld [vmem:[#allocation17 + $0x668] sm:$0xff] }
 0xd92   : > { %6862 = vmatpush1.bf16.msra.mxu1 %v10473_v49  ;;  %v10077_v49 = vcombine.low %v3644_v9, %v3652_v39  ;;  %v3756_v9 = vld [vmem:[#allocation17 + $0x6a0] sm:$0xff] }
 0xd93   : > { %6948 = vmatpush1.bf16.msra.mxu0 %v10475_v36  ;;  %6960 = vmatprep.subr.bf16.mxu1 %v9982_v45  ;;  %v10079_v36 = vcombine.low %v3645_v35, %v3653_v60  ;;  %v10094_v45 = vcombine.high %v3660_v38, %v3668_v52  ;;  %v3764_v39 = vld [vmem:[#allocation17 + $0x6e0] sm:$0xff]  ;;  %v3757_v35 = vld [vmem:[#allocation17 + $0x6a8] sm:$0xff] }
 0xd94   : > { %7046 = vmatprep.subr.bf16.mxu0 %v9984_v40  ;;  %v10096_v40 = vcombine.high %v3661_v51, %v3669_v53  ;;  %v3765_v60 = vld [vmem:[#allocation17 + $0x6e8] sm:$0xff]  ;;  %v3772_v38 = vld [vmem:[#allocation17 + $0x720] sm:$0xff] }
 0xd95   : > { %6864 = vmatmul.mubr.bf16.vlgmr.msra.gmra.mrb[84].mxu1 %v12437_v31  ;;  %v3780_v52 = vld [vmem:[#allocation17 + $0x760] sm:$0xff] }
 0xd96   : > { %6950 = vmatmul.mubr.bf16.vlgmr.msra.gmra.mrb[88].mxu0 %v12437_v31  ;;  %6961 = vmatpush1.bf16.msra.mxu1 %v9981_v26  ;;  %v3677_v26 = vld [vmem:[#allocation17 + $0x428] sm:$0xff] }
 0xd97   : > { %6992 = vmatprep.mubr.bf16.mxu1 %v12401_v34  ;;  %7047 = vmatpush1.bf16.msra.mxu0 %v9983_v15  ;;  %v10095_v15 = vcombine.low %v3661_v51, %v3669_v53  ;;  %v10112_v43 = vcombine.high %v3677_v26, %v3685_v21  ;;  %v3773_v51 = vld [vmem:[#allocation17 + $0x728] sm:$0xff] }
 0xd98   : > { %7078 = vmatprep.mubr.bf16.mxu0 %v12401_v34  ;;  %6962 = vmatprep.subr.bf16.mxu1 %v9998_v58  ;;  %v10110_v58 = vcombine.high %v3676_v32, %v3684_v16  ;;  %v3781_v53 = vld [vmem:[#allocation17 + $0x768] sm:$0xff] }
 0xd99   : > { %7048 = vmatprep.subr.bf16.mxu0 %v10000_v10  ;;  %v3700_v10 = vld [vmem:[#allocation17 + $0x4e0] sm:$0xff] }
 0xd9a   : > { %6963 = vmatpush1.bf16.msra.mxu1 %v9997_v57  ;;  %v10109_v57 = vcombine.low %v3676_v32, %v3684_v16  ;;  %v3788_v32 = vld [vmem:[#allocation17 + $0x7a0] sm:$0xff] }
 0xd9b   : > { %7049 = vmatpush1.bf16.msra.mxu0 %v9999_v62  ;;  %6964 = vmatprep.subr.bf16.mxu1 %v10014_v0  ;;  %v10111_v62 = vcombine.low %v3677_v26, %v3685_v21  ;;  %v10126_v0 = vcombine.high %v3692_v4, %v3700_v10  ;;  %v3796_v16 = vld [vmem:[#allocation17 + $0x7e0] sm:$0xff]  ;;  %v3789_v26 = vld [vmem:[#allocation17 + $0x7a8] sm:$0xff] }
 0xd9c   : > { %7050 = vmatprep.subr.bf16.mxu0 %v10016_v25  ;;  %v10128_v25 = vcombine.high %v3693_v46, %v3701_v61  ;;  %v3797_v21 = vld [vmem:[#allocation17 + $0x7e8] sm:$0xff] }
 0xd9e   : > { %6965 = vmatpush1.bf16.msra.mxu1 %v10013_v23  ;;  %v10125_v23 = vcombine.low %v3692_v4, %v3700_v10  ;;  %v3804_v4 = vld [vmem:[#allocation17 + $0x820] sm:$0xff] }
 0xd9f   : > { %7051 = vmatpush1.bf16.msra.mxu0 %v10015_v13  ;;  %6966 = vmatprep.subr.bf16.mxu1 %v10030_v59  ;;  %v10127_v13 = vcombine.low %v3693_v46, %v3701_v61  ;;  %v10142_v59 = vcombine.high %v3708_v44, %v3716_v2  ;;  %v3812_v10 = vld [vmem:[#allocation17 + $0x860] sm:$0xff]  ;;  %v3805_v46 = vld [vmem:[#allocation17 + $0x828] sm:$0xff] }
 0xda0   : > { %7052 = vmatprep.subr.bf16.mxu0 %v10032_v24  ;;  %v10144_v24 = vcombine.high %v3709_v37, %v3717_v20  ;;  %v3813_v61 = vld [vmem:[#allocation17 + $0x868] sm:$0xff] }
 0xda2   : > { %6967 = vmatpush1.bf16.msra.mxu1 %v10029_v7  ;;  %v10141_v7 = vcombine.low %v3708_v44, %v3716_v2  ;;  %v3820_v44 = vld [vmem:[#allocation17 + $0x8a0] sm:$0xff] }
 0xda3   : > { %7053 = vmatpush1.bf16.msra.mxu0 %v10031_v27  ;;  %6968 = vmatprep.subr.bf16.mxu1 %v10046_v11  ;;  %v10143_v27 = vcombine.low %v3709_v37, %v3717_v20  ;;  %v10158_v11 = vcombine.high %v3724_v47, %v3732_v29  ;;  %v3828_v2 = vld [vmem:[#allocation17 + $0x8e0] sm:$0xff]  ;;  %v10237_v37 = vcombine.low %v3804_v4, %v3812_v10  ;;  %v3821_v20 = vld [vmem:[#allocation17 + $0x8a8] sm:$0xff] }
 0xda4   : > { %7054 = vmatprep.subr.bf16.mxu0 %v10048_v63  ;;  %v10160_v63 = vcombine.high %v3725_v5, %v3733_v6 }
 0xda6   : > { %6969 = vmatpush1.bf16.msra.mxu1 %v10045_v22  ;;  %v10157_v22 = vcombine.low %v3724_v47, %v3732_v29  ;;  %v3844_v47 = vld [vmem:[#allocation17 + $0x960] sm:$0xff] }
 0xda7   : > { %7055 = vmatpush1.bf16.msra.mxu0 %v10047_v8  ;;  %6970 = vmatprep.subr.bf16.mxu1 %v10062_v55  ;;  %v10159_v8 = vcombine.low %v3725_v5, %v3733_v6  ;;  %v10174_v55 = vcombine.high %v3740_v17, %v3748_v19  ;;  %v3837_v5 = vld [vmem:[#allocation17 + $0x928] sm:$0xff] }
 0xda8   : > { %7056 = vmatprep.subr.bf16.mxu0 %v10064_v33  ;;  %v10176_v33 = vcombine.high %v3741_v50, %v3749_v28  ;;  %v3845_v6 = vld [vmem:[#allocation17 + $0x968] sm:$0xff] }
 0xdaa   : > { %6971 = vmatpush1.bf16.msra.mxu1 %v10061_v41  ;;  %v10173_v41 = vcombine.low %v3740_v17, %v3748_v19  ;;  %v3852_v17 = vld [vmem:[#allocation17 + $0x9a0] sm:$0xff] }
 0xdab   : > { %7057 = vmatpush1.bf16.msra.mxu0 %v10063_v56  ;;  %6972 = vmatprep.subr.bf16.mxu1 %v10078_v3  ;;  %v10175_v56 = vcombine.low %v3741_v50, %v3749_v28  ;;  %v10190_v3 = vcombine.high %v3756_v9, %v3764_v39  ;;  %v3860_v19 = vld [vmem:[#allocation17 + $0x9e0] sm:$0xff]  ;;  %v3853_v50 = vld [vmem:[#allocation17 + $0x9a8] sm:$0xff] }
 0xdac   : > { %7058 = vmatprep.subr.bf16.mxu0 %v10080_v48  ;;  %v10192_v48 = vcombine.high %v3757_v35, %v3765_v60  ;;  %v3861_v28 = vld [vmem:[#allocation17 + $0x9e8] sm:$0xff] }
 0xdae   : > { %6973 = vmatpush1.bf16.msra.mxu1 %v10077_v49  ;;  %v10189_v49 = vcombine.low %v3756_v9, %v3764_v39  ;;  %v3868_v9 = vld [vmem:[#allocation17 + $0xa20] sm:$0xff] }
 0xdaf   : > { %7059 = vmatpush1.bf16.msra.mxu0 %v10079_v36  ;;  %6974 = vmatprep.subr.bf16.mxu1 %v10094_v45  ;;  %v10191_v36 = vcombine.low %v3757_v35, %v3765_v60  ;;  %v10206_v45 = vcombine.high %v3772_v38, %v3780_v52  ;;  %v3876_v39 = vld [vmem:[#allocation17 + $0xa60] sm:$0xff]  ;;  %v3869_v35 = vld [vmem:[#allocation17 + $0xa28] sm:$0xff] }
 0xdb0   : > { %7060 = vmatprep.subr.bf16.mxu0 %v10096_v40  ;;  %v10208_v40 = vcombine.high %v3773_v51, %v3781_v53  ;;  %v3877_v60 = vld [vmem:[#allocation17 + $0xa68] sm:$0xff] }
 0xdb2   : > { %6975 = vmatpush1.bf16.msra.mxu1 %v10093_v54  ;;  %v10205_v54 = vcombine.low %v3772_v38, %v3780_v52  ;;  %v3884_v38 = vld [vmem:[#allocation17 + $0xaa0] sm:$0xff] }
 0xdb3   : > { %7061 = vmatpush1.bf16.msra.mxu0 %v10095_v15  ;;  %6976 = vmatprep.subr.bf16.mxu1 %v10110_v58  ;;  %v10207_v15 = vcombine.low %v3773_v51, %v3781_v53  ;;  %v10222_v58 = vcombine.high %v3788_v32, %v3796_v16  ;;  %v3892_v52 = vld [vmem:[#allocation17 + $0xae0] sm:$0xff]  ;;  %v3885_v51 = vld [vmem:[#allocation17 + $0xaa8] sm:$0xff] }
 0xdb4   : > { %7062 = vmatprep.subr.bf16.mxu0 %v10112_v43  ;;  %v10224_v43 = vcombine.high %v3789_v26, %v3797_v21  ;;  %v3893_v53 = vld [vmem:[#allocation17 + $0xae8] sm:$0xff] }
 0xdb6   : > { %6977 = vmatpush1.bf16.msra.mxu1 %v10109_v57  ;;  %v10221_v57 = vcombine.low %v3788_v32, %v3796_v16  ;;  %v3900_v32 = vld [vmem:[#allocation17 + $0xb20] sm:$0xff] }
 0xdb7   : > { %7063 = vmatpush1.bf16.msra.mxu0 %v10111_v62  ;;  %6978 = vmatprep.subr.bf16.mxu1 %v10126_v0  ;;  %v10223_v62 = vcombine.low %v3789_v26, %v3797_v21  ;;  %v10238_v0 = vcombine.high %v3804_v4, %v3812_v10  ;;  %v3908_v16 = vld [vmem:[#allocation17 + $0xb60] sm:$0xff]  ;;  %v3901_v26 = vld [vmem:[#allocation17 + $0xb28] sm:$0xff] }
 0xdb8   : > { %7064 = vmatprep.subr.bf16.mxu0 %v10128_v25  ;;  %v10240_v25 = vcombine.high %v3805_v46, %v3813_v61  ;;  %v3909_v21 = vld [vmem:[#allocation17 + $0xb68] sm:$0xff] }
 0xdb9   : > { %v10336_v10 = vcombine.high %v3901_v26, %v3909_v21 }
 0xdba   : > { %6979 = vmatpush1.bf16.msra.mxu1 %v10125_v23  ;;  %v3829_v23 = vld [vmem:[#allocation17 + $0x8e8] sm:$0xff] }
 0xdbb   : > { %7065 = vmatpush1.bf16.msra.mxu0 %v10127_v13  ;;  %6980 = vmatprep.subr.bf16.mxu1 %v10142_v59  ;;  %v10239_v13 = vcombine.low %v3805_v46, %v3813_v61  ;;  %v10254_v59 = vcombine.high %v3820_v44, %v3828_v2  ;;  %v10256_v29 = vcombine.high %v3821_v20, %v3829_v23  ;;  %v3916_v46 = vld [vmem:[#allocation17 + $0xba0] sm:$0xff] }
 0xdbc   : > { %7066 = vmatprep.subr.bf16.mxu0 %v10144_v24  ;;  %v3836_v24 = vld [vmem:[#allocation17 + $0x920] sm:$0xff] }
 0xdbd   : > { %v3924_v61 = vld [vmem:[#allocation17 + $0xbe0] sm:$0xff] }
 0xdbe   : > { %6981 = vmatpush1.bf16.msra.mxu1 %v10141_v7  ;;  %v10253_v7 = vcombine.low %v3820_v44, %v3828_v2 }
 0xdbf   : > { %7067 = vmatpush1.bf16.msra.mxu0 %v10143_v27  ;;  %6982 = vmatprep.subr.bf16.mxu1 %v10158_v11  ;;  %v10255_v27 = vcombine.low %v3821_v20, %v3829_v23  ;;  %v10270_v11 = vcombine.high %v3836_v24, %v3844_v47  ;;  %v10335_v20 = vcombine.low %v3901_v26, %v3909_v21 }
 0xdc0   : > { %7068 = vmatprep.subr.bf16.mxu0 %v10160_v63  ;;  %v10272_v63 = vcombine.high %v3837_v5, %v3845_v6 }
 0xdc2   : > { %6983 = vmatpush1.bf16.msra.mxu1 %v10157_v22  ;;  %v10269_v22 = vcombine.low %v3836_v24, %v3844_v47  ;;  %v10350_v47 = vcombine.high %v3916_v46, %v3924_v61 }
 0xdc3   : > { %7069 = vmatpush1.bf16.msra.mxu0 %v10159_v8  ;;  %6984 = vmatprep.subr.bf16.mxu1 %v10174_v55  ;;  %v10271_v8 = vcombine.low %v3837_v5, %v3845_v6  ;;  %v10286_v55 = vcombine.high %v3852_v17, %v3860_v19 }
 0xdc4   : > { %7070 = vmatprep.subr.bf16.mxu0 %v10176_v33  ;;  %v10288_v33 = vcombine.high %v3853_v50, %v3861_v28 }
 0xdc6   : > { %6985 = vmatpush1.bf16.msra.mxu1 %v10173_v41  ;;  %v10285_v41 = vcombine.low %v3852_v17, %v3860_v19  ;;  %v10349_v17 = vcombine.low %v3916_v46, %v3924_v61 }
 0xdc7   : > { %7071 = vmatpush1.bf16.msra.mxu0 %v10175_v56  ;;  %6986 = vmatprep.subr.bf16.mxu1 %v10190_v3  ;;  %v10287_v56 = vcombine.low %v3853_v50, %v3861_v28  ;;  %v10302_v3 = vcombine.high %v3868_v9, %v3876_v39 }
 0xdc8   : > { %7072 = vmatprep.subr.bf16.mxu0 %v10192_v48  ;;  %v10304_v48 = vcombine.high %v3869_v35, %v3877_v60 }
 0xdca   : > { %6987 = vmatpush1.bf16.msra.mxu1 %v10189_v49  ;;  %v10301_v49 = vcombine.low %v3868_v9, %v3876_v39 }
 0xdcb   : > { %7073 = vmatpush1.bf16.msra.mxu0 %v10191_v36  ;;  %6988 = vmatprep.subr.bf16.mxu1 %v10206_v45  ;;  %v10303_v36 = vcombine.low %v3869_v35, %v3877_v60  ;;  %v10318_v45 = vcombine.high %v3884_v38, %v3892_v52 }
 0xdcc   : > { %7074 = vmatprep.subr.bf16.mxu0 %v10208_v40  ;;  %v10320_v40 = vcombine.high %v3885_v51, %v3893_v53 }
 0xdce   : > { %6989 = vmatpush1.bf16.msra.mxu1 %v10205_v54  ;;  %v10317_v54 = vcombine.low %v3884_v38, %v3892_v52 }
 0xdcf   : > { %7075 = vmatpush1.bf16.msra.mxu0 %v10207_v15  ;;  %6990 = vmatprep.subr.bf16.mxu1 %v10222_v58  ;;  %v10319_v15 = vcombine.low %v3885_v51, %v3893_v53  ;;  %v10334_v58 = vcombine.high %v3900_v32, %v3908_v16 }
 0xdd0   : > { %7076 = vmatprep.subr.bf16.mxu0 %v10224_v43 }
 0xdd2   : > { %6991 = vmatpush1.bf16.msra.mxu1 %v10221_v57 }
 0xdd3   : > { %7077 = vmatpush1.bf16.msra.mxu0 %v10223_v62  ;;  %7003 = vmatprep.subr.bf16.mxu1 %v10238_v0  ;;  %v3917_v0 = vld [vmem:[#allocation17 + $0xba8] sm:$0xff] }
 0xdd4   : > { %7089 = vmatprep.subr.bf16.mxu0 %v10240_v25  ;;  %v3925_v25 = vld [vmem:[#allocation17 + $0xbe8] sm:$0xff] }
 0xdd5   : > { %6993 = vmatmul.mubr.bf16.vlgmr.msra.gmra.mrb[88].mxu1 %v12419_v42  ;;  %v10352_v6 = vcombine.high %v3917_v0, %v3925_v25  ;;  %v10351_v19 = vcombine.low %v3917_v0, %v3925_v25  ;;  %v4012_v0 = vld [vmem:[#allocation17 + $0xea0] sm:$0xff] }
 0xdd6   : > { %7079 = vmatmul.mubr.bf16.vlgmr.msra.gmra.mrb[92].mxu0 %v12419_v42  ;;  %7004 = vmatpush1.bf16.msra.mxu1 %v10237_v37  ;;  %v10333_v37 = vcombine.low %v3900_v32, %v3908_v16  ;;  %v4020_v25 = vld [vmem:[#allocation17 + $0xee0] sm:$0xff] }
 0xdd7   : > { %7035 = vmatprep.mubr.bf16.mxu1 %v12439_v30  ;;  %7090 = vmatpush1.bf16.msra.mxu0 %v10239_v13 }
 0xdd8   : > { %7121 = vmatprep.mubr.bf16.mxu0 %v12439_v30  ;;  %7005 = vmatprep.subr.bf16.mxu1 %v10254_v59 }
 0xdd9   : > { %7091 = vmatprep.subr.bf16.mxu0 %v10256_v29 }
 0xdda   : > { %7006 = vmatpush1.bf16.msra.mxu1 %v10253_v7  ;;  %v3932_v7 = vld [vmem:[#allocation17 + $0xc20] sm:$0xff] }
 0xddb   : > { %7092 = vmatpush1.bf16.msra.mxu0 %v10255_v27  ;;  %7007 = vmatprep.subr.bf16.mxu1 %v10270_v11  ;;  %v3940_v27 = vld [vmem:[#allocation17 + $0xc60] sm:$0xff]  ;;  %v3933_v11 = vld [vmem:[#allocation17 + $0xc28] sm:$0xff] }
 0xddc   : > { %7093 = vmatprep.subr.bf16.mxu0 %v10272_v63  ;;  %v3941_v63 = vld [vmem:[#allocation17 + $0xc68] sm:$0xff]  ;;  %v10366_v50 = vcombine.high %v3932_v7, %v3940_v27  ;;  %v10365_v9 = vcombine.low %v3932_v7, %v3940_v27  ;;  %v4028_v7 = vld [vmem:[#allocation17 + $0xf20] sm:$0xff] }
 0xddd   : > { %v10368_v28 = vcombine.high %v3933_v11, %v3941_v63  ;;  %v10367_v39 = vcombine.low %v3933_v11, %v3941_v63  ;;  %v4036_v27 = vld [vmem:[#allocation17 + $0xf60] sm:$0xff]  ;;  %v4029_v11 = vld [vmem:[#allocation17 + $0xf28] sm:$0xff] }
 0xdde   : > { %7008 = vmatpush1.bf16.msra.mxu1 %v10269_v22  ;;  %v3948_v22 = vld [vmem:[#allocation17 + $0xca0] sm:$0xff]  ;;  %v4037_v63 = vld [vmem:[#allocation17 + $0xf68] sm:$0xff] }
 0xddf   : > { %7094 = vmatpush1.bf16.msra.mxu0 %v10271_v8  ;;  %7009 = vmatprep.subr.bf16.mxu1 %v10286_v55  ;;  %v3956_v8 = vld [vmem:[#allocation17 + $0xce0] sm:$0xff]  ;;  %v3949_v55 = vld [vmem:[#allocation17 + $0xca8] sm:$0xff] }
 0xde0   : > { %7095 = vmatprep.subr.bf16.mxu0 %v10288_v33  ;;  %v3957_v33 = vld [vmem:[#allocation17 + $0xce8] sm:$0xff]  ;;  %v10382_v35 = vcombine.high %v3948_v22, %v3956_v8  ;;  %v10381_v38 = vcombine.low %v3948_v22, %v3956_v8  ;;  %v4044_v22 = vld [vmem:[#allocation17 + $0xfa0] sm:$0xff] }
 0xde1   : > { %v10384_v60 = vcombine.high %v3949_v55, %v3957_v33  ;;  %v10383_v52 = vcombine.low %v3949_v55, %v3957_v33  ;;  %v4052_v8 = vld [vmem:[#allocation17 + $0xfe0] sm:$0xff]  ;;  %v4045_v55 = vld [vmem:[#allocation17 + $0xfa8] sm:$0xff] }
 0xde2   : > { %7010 = vmatpush1.bf16.msra.mxu1 %v10285_v41  ;;  %v3964_v41 = vld [vmem:[#allocation17 + $0xd20] sm:$0xff]  ;;  %v4053_v33 = vld [vmem:[#allocation17 + $0xfe8] sm:$0xff] }
 0xde3   : > { %7096 = vmatpush1.bf16.msra.mxu0 %v10287_v56  ;;  %7011 = vmatprep.subr.bf16.mxu1 %v10302_v3  ;;  %v3972_v56 = vld [vmem:[#allocation17 + $0xd60] sm:$0xff]  ;;  %v3965_v3 = vld [vmem:[#allocation17 + $0xd28] sm:$0xff] }
 0xde4   : > { %7097 = vmatprep.subr.bf16.mxu0 %v10304_v48  ;;  %v3973_v48 = vld [vmem:[#allocation17 + $0xd68] sm:$0xff]  ;;  %v10398_v51 = vcombine.high %v3964_v41, %v3972_v56  ;;  %v10397_v32 = vcombine.low %v3964_v41, %v3972_v56  ;;  %v3550_v41 = vld [vmem:[#allocation17 + $0x30] sm:$0xff] }
 0xde5   : > { %v10400_v53 = vcombine.high %v3965_v3, %v3973_v48  ;;  %v10399_v16 = vcombine.low %v3965_v3, %v3973_v48  ;;  %v3558_v56 = vld [vmem:[#allocation17 + $0x70] sm:$0xff]  ;;  %v3551_v3 = vld [vmem:[#allocation17 + $0x38] sm:$0xff] }
 0xde6   : > { %7012 = vmatpush1.bf16.msra.mxu1 %v10301_v49  ;;  %v3980_v49 = vld [vmem:[#allocation17 + $0xda0] sm:$0xff]  ;;  %v3559_v48 = vld [vmem:[#allocation17 + $0x78] sm:$0xff] }
 0xde7   : > { %7098 = vmatpush1.bf16.msra.mxu0 %v10303_v36  ;;  %7013 = vmatprep.subr.bf16.mxu1 %v10318_v45  ;;  %v3988_v36 = vld [vmem:[#allocation17 + $0xde0] sm:$0xff]  ;;  %v3981_v45 = vld [vmem:[#allocation17 + $0xda8] sm:$0xff] }
 0xde8   : > { %v12459_v43 = vpop.f32.mrb[80].mxu1  ;;  %v12461_v4 = vpop.f32.mrb[84].mxu0  ;;  %7099 = vmatprep.subr.bf16.mxu0 %v10320_v40  ;;  %v3989_v40 = vld [vmem:[#allocation17 + $0xde8] sm:$0xff]  ;;  %v10414_v26 = vcombine.high %v3980_v49, %v3988_v36  ;;  %v10413_v46 = vcombine.low %v3980_v49, %v3988_v36  ;;  %v3566_v49 = vld [vmem:[#allocation17 + $0xb0] sm:$0xff] }
 0xde9   : > { %v6695_v57 = vpop.f32.mrb[81].mxu1  ;;  %v6781_v62 = vpop.f32.mrb[85].mxu0  ;;  %v10416_v21 = vcombine.high %v3981_v45, %v3989_v40  ;;  %v10415_v61 = vcombine.low %v3981_v45, %v3989_v40  ;;  %v3574_v36 = vld [vmem:[#allocation17 + $0xf0] sm:$0xff]  ;;  %v9985_v45 = vcombine.low %v3550_v41, %v3558_v56  ;;  %v3567_v40 = vld [vmem:[#allocation17 + $0xb8] sm:$0xff] }
 0xdea   : > { %v12463_v44 = vpop.f32.mrb[82].mxu1  ;;  %v12465_v2 = vpop.f32.mrb[86].mxu0  ;;  %7014 = vmatpush1.bf16.msra.mxu1 %v10317_v54  ;;  %v3996_v54 = vld [vmem:[#allocation17 + $0xe20] sm:$0xff] }
 0xdeb   : > { %v7304_v23 = vpack.c.bf16 %v12463_v44, %v12459_v43  ;;  %v7306_v13 = vpack.c.bf16 %v12465_v2, %v12461_v4  ;;  %7100 = vmatpush1.bf16.msra.mxu0 %v10319_v15  ;;  %v6699_v59 = vpop.f32.mrb[83].mxu1  ;;  %v6785_v24 = vpop.f32.mrb[87].mxu0  ;;  %7015 = vmatprep.subr.bf16.mxu1 %v10334_v58  ;;  %v4004_v15 = vld [vmem:[#allocation17 + $0xe60] sm:$0xff]  ;;  %v3997_v58 = vld [vmem:[#allocation17 + $0xe28] sm:$0xff]  ;;  %v7332_v43 = vld [vmem:[%s13322_s5] sm:$0x1] }
 0xdec   : > { %v12471_v29 = vpack.c.bf16 %v6699_v59, %v6695_v57  ;;  %v12473_v5 = vpack.c.bf16 %v6785_v24, %v6781_v62  ;;  %7101 = vmatprep.subr.bf16.mxu0 %v10336_v10  ;;  %v4005_v10 = vld [vmem:[#allocation17 + $0xe68] sm:$0xff]  ;;  %v10430_v57 = vcombine.high %v3996_v54, %v4004_v15  ;;  %v10429_v59 = vcombine.low %v3996_v54, %v4004_v15  ;;  %v3590_v54 = vld [vmem:[#allocation17 + $0x170] sm:$0xff] }
 0xded   : > { %v10432_v62 = vcombine.high %v3997_v58, %v4005_v10  ;;  %v10431_v24 = vcombine.low %v3997_v58, %v4005_v10  ;;  %v3583_v58 = vld [vmem:[#allocation17 + $0x138] sm:$0xff] }
 0xdee   : > { %7016 = vmatpush1.bf16.msra.mxu1 %v10333_v37  ;;  %v4013_v37 = vld [vmem:[#allocation17 + $0xea8] sm:$0xff]  ;;  %v3591_v10 = vld [vmem:[#allocation17 + $0x178] sm:$0xff] }
 0xdef   : > { %7102 = vmatpush1.bf16.msra.mxu0 %v10335_v20  ;;  %7017 = vmatprep.subr.bf16.mxu1 %v10350_v47  ;;  %v4021_v20 = vld [vmem:[#allocation17 + $0xee8] sm:$0xff]  ;;  %v10446_v47 = vcombine.high %v4012_v0, %v4020_v25 }
 0xdf0   : > { %7103 = vmatprep.subr.bf16.mxu0 %v10352_v6  ;;  %v10448_v6 = vcombine.high %v4013_v37, %v4021_v20 }
 0xdf2   : > { %7018 = vmatpush1.bf16.msra.mxu1 %v10349_v17  ;;  %v10445_v17 = vcombine.low %v4012_v0, %v4020_v25  ;;  %v3598_v0 = vld [vmem:[#allocation17 + $0x1b0] sm:$0xff] }
 0xdf3   : > { %7104 = vmatpush1.bf16.msra.mxu0 %v10351_v19  ;;  %7019 = vmatprep.subr.bf16.mxu1 %v10366_v50  ;;  %v10447_v19 = vcombine.low %v4013_v37, %v4021_v20  ;;  %v10462_v50 = vcombine.high %v4028_v7, %v4036_v27  ;;  %v3606_v25 = vld [vmem:[#allocation17 + $0x1f0] sm:$0xff]  ;;  %v3599_v37 = vld [vmem:[#allocation17 + $0x1b8] sm:$0xff] }
 0xdf4   : > { %7105 = vmatprep.subr.bf16.mxu0 %v10368_v28  ;;  %v10464_v28 = vcombine.high %v4029_v11, %v4037_v63  ;;  %v3607_v20 = vld [vmem:[#allocation17 + $0x1f8] sm:$0xff] }
 0xdf6   : > { %7020 = vmatpush1.bf16.msra.mxu1 %v10365_v9  ;;  %v10461_v9 = vcombine.low %v4028_v7, %v4036_v27  ;;  %v3614_v7 = vld [vmem:[#allocation17 + $0x230] sm:$0xff] }
 0xdf7   : > { %7106 = vmatpush1.bf16.msra.mxu0 %v10367_v39  ;;  %7021 = vmatprep.subr.bf16.mxu1 %v10382_v35  ;;  %v10463_v39 = vcombine.low %v4029_v11, %v4037_v63  ;;  %v10478_v35 = vcombine.high %v4044_v22, %v4052_v8  ;;  %v3622_v27 = vld [vmem:[#allocation17 + $0x270] sm:$0xff]  ;;  %v3615_v11 = vld [vmem:[#allocation17 + $0x238] sm:$0xff] }
 0xdf8   : > { %7107 = vmatprep.subr.bf16.mxu0 %v10384_v60  ;;  %v10480_v60 = vcombine.high %v4045_v55, %v4053_v33  ;;  %v3623_v63 = vld [vmem:[#allocation17 + $0x278] sm:$0xff] }
 0xdfa   : > { %7022 = vmatpush1.bf16.msra.mxu1 %v10381_v38  ;;  %v10477_v38 = vcombine.low %v4044_v22, %v4052_v8  ;;  %v3638_v22 = vld [vmem:[#allocation17 + $0x2f0] sm:$0xff]  ;;  %v3631_v8 = vld [vmem:[#allocation17 + $0x2b8] sm:$0xff] }
 0xdfb   : > { %7108 = vmatpush1.bf16.msra.mxu0 %v10383_v52  ;;  %7023 = vmatprep.subr.bf16.mxu1 %v10398_v51  ;;  %v10479_v52 = vcombine.low %v4045_v55, %v4053_v33  ;;  %v9986_v51 = vcombine.high %v3550_v41, %v3558_v56  ;;  %v3639_v55 = vld [vmem:[#allocation17 + $0x2f8] sm:$0xff]  ;;  %v10049_v33 = vcombine.low %v3614_v7, %v3622_v27  ;;  %v3654_v41 = vld [vmem:[#allocation17 + $0x370] sm:$0xff] }
 0xdfc   : > { %7109 = vmatprep.subr.bf16.mxu0 %v10400_v53  ;;  %v9988_v53 = vcombine.high %v3551_v3, %v3559_v48  ;;  %v3647_v56 = vld [vmem:[#allocation17 + $0x338] sm:$0xff] }
 0xdfe   : > { %7024 = vmatpush1.bf16.msra.mxu1 %v10397_v32  ;;  %v3575_v32 = vld [vmem:[#allocation17 + $0xf8] sm:$0xff] }
 0xdff   : > { %7110 = vmatpush1.bf16.msra.mxu0 %v10399_v16  ;;  %7025 = vmatprep.subr.bf16.mxu1 %v10414_v26  ;;  %v9987_v16 = vcombine.low %v3551_v3, %v3559_v48  ;;  %v10002_v26 = vcombine.high %v3566_v49, %v3574_v36  ;;  %v10004_v15 = vcombine.high %v3567_v40, %v3575_v32  ;;  %v3655_v3 = vld [vmem:[#allocation17 + $0x378] sm:$0xff] }
 0xe00   : > { %7111 = vmatprep.subr.bf16.mxu0 %v10416_v21  ;;  %v3582_v21 = vld [vmem:[#allocation17 + $0x130] sm:$0xff] }
 0xe02   : > { %7026 = vmatpush1.bf16.msra.mxu1 %v10413_v46  ;;  %v10001_v46 = vcombine.low %v3566_v49, %v3574_v36  ;;  %v3670_v49 = vld [vmem:[#allocation17 + $0x3f0] sm:$0xff]  ;;  %v3663_v36 = vld [vmem:[#allocation17 + $0x3b8] sm:$0xff] }
 0xe03   : > { %7112 = vmatpush1.bf16.msra.mxu0 %v10415_v61  ;;  %7027 = vmatprep.subr.bf16.mxu1 %v10430_v57  ;;  %v10003_v61 = vcombine.low %v3567_v40, %v3575_v32  ;;  %v10018_v57 = vcombine.high %v3582_v21, %v3590_v54  ;;  %v10083_v32 = vcombine.low %v3647_v56, %v3655_v3 }
 0xe04   : > { %7113 = vmatprep.subr.bf16.mxu0 %v10432_v62  ;;  %v10020_v62 = vcombine.high %v3583_v58, %v3591_v10 }
 0xe06   : > { %7028 = vmatpush1.bf16.msra.mxu1 %v10429_v59  ;;  %v10017_v59 = vcombine.low %v3582_v21, %v3590_v54  ;;  %v3678_v21 = vld [vmem:[#allocation17 + $0x430] sm:$0xff] }
 0xe07   : > { %7114 = vmatpush1.bf16.msra.mxu0 %v10431_v24  ;;  %7029 = vmatprep.subr.bf16.mxu1 %v10446_v47  ;;  %v10019_v24 = vcombine.low %v3583_v58, %v3591_v10  ;;  %v10034_v47 = vcombine.high %v3598_v0, %v3606_v25  ;;  %v3686_v54 = vld [vmem:[#allocation17 + $0x470] sm:$0xff]  ;;  %v3687_v58 = vld [vmem:[#allocation17 + $0x478] sm:$0xff] }
 0xe08   : > { %7115 = vmatprep.subr.bf16.mxu0 %v10448_v6  ;;  %v10036_v6 = vcombine.high %v3599_v37, %v3607_v20 }
 0xe0a   : > { %7030 = vmatpush1.bf16.msra.mxu1 %v10445_v17  ;;  %v10035_v17 = vcombine.low %v3599_v37, %v3607_v20  ;;  %v3703_v37 = vld [vmem:[#allocation17 + $0x4f8] sm:$0xff]  ;;  %v10113_v20 = vcombine.low %v3678_v21, %v3686_v54 }
 0xe0b   : > { %7116 = vmatpush1.bf16.msra.mxu0 %v10447_v19  ;;  %7031 = vmatprep.subr.bf16.mxu1 %v10462_v50  ;;  %v10050_v19 = vcombine.high %v3614_v7, %v3622_v27  ;;  %v10052_v50 = vcombine.high %v3615_v11, %v3623_v63  ;;  %v3718_v7 = vld [vmem:[#allocation17 + $0x570] sm:$0xff]  ;;  %v3711_v27 = vld [vmem:[#allocation17 + $0x538] sm:$0xff] }
 0xe0c   : > { %7117 = vmatprep.subr.bf16.mxu0 %v10464_v28  ;;  %v3630_v28 = vld [vmem:[#allocation17 + $0x2b0] sm:$0xff] }
 0xe0d   : > { %v10065_v48 = vcombine.low %v3630_v28, %v3638_v22 }
 0xe0e   : > { %7032 = vmatpush1.bf16.msra.mxu1 %v10461_v9  ;;  %v10051_v9 = vcombine.low %v3615_v11, %v3623_v63  ;;  %v3719_v11 = vld [vmem:[#allocation17 + $0x578] sm:$0xff] }
 0xe0f   : > { %7118 = vmatpush1.bf16.msra.mxu0 %v10463_v39  ;;  %7033 = vmatprep.subr.bf16.mxu1 %v10478_v35  ;;  %v10066_v39 = vcombine.high %v3630_v28, %v3638_v22  ;;  %v10068_v35 = vcombine.high %v3631_v8, %v3639_v55  ;;  %v3734_v28 = vld [vmem:[#allocation17 + $0x5f0] sm:$0xff]  ;;  %v3727_v22 = vld [vmem:[#allocation17 + $0x5b8] sm:$0xff] }
 0xe10   : > { %7119 = vmatprep.subr.bf16.mxu0 %v10480_v60  ;;  %v3646_v60 = vld [vmem:[#allocation17 + $0x330] sm:$0xff] }
 0xe11   : > { %v10081_v40 = vcombine.low %v3646_v60, %v3654_v41 }
 0xe12   : > { %7034 = vmatpush1.bf16.msra.mxu1 %v10477_v38  ;;  %v10067_v38 = vcombine.low %v3631_v8, %v3639_v55  ;;  %v3735_v8 = vld [vmem:[#allocation17 + $0x5f8] sm:$0xff] }
 0xe13   : > { %7120 = vmatpush1.bf16.msra.mxu0 %v10479_v52  ;;  %7132 = vmatprep.subr.bf16.mxu1 %v9986_v51  ;;  %v10082_v52 = vcombine.high %v3646_v60, %v3654_v41  ;;  %v10084_v51 = vcombine.high %v3647_v56, %v3655_v3  ;;  %v3750_v60 = vld [vmem:[#allocation17 + $0x670] sm:$0xff]  ;;  %v3743_v41 = vld [vmem:[#allocation17 + $0x638] sm:$0xff] }
 0xe14   : > { %7218 = vmatprep.subr.bf16.mxu0 %v9988_v53  ;;  %v3662_v53 = vld [vmem:[#allocation17 + $0x3b0] sm:$0xff]  ;;  %v3751_v56 = vld [vmem:[#allocation17 + $0x678] sm:$0xff] }
 0xe15   : > { %7036 = vmatmul.mubr.bf16.vlgmr.msra.gmra.mrb[88].mxu1 %v12437_v31  ;;  %v10097_v10 = vcombine.low %v3662_v53, %v3670_v49 }
 0xe16   : > { %7122 = vmatmul.mubr.bf16.vlgmr.msra.gmra.mrb[92].mxu0 %v12437_v31  ;;  %7133 = vmatpush1.bf16.msra.mxu1 %v9985_v45  ;;  %v3671_v45 = vld [vmem:[#allocation17 + $0x3f8] sm:$0xff] }
 0xe17   : > { %7164 = vmatprep.mubr.bf16.mxu1 %v12401_v34  ;;  %7219 = vmatpush1.bf16.msra.mxu0 %v9987_v16  ;;  %v10098_v16 = vcombine.high %v3662_v53, %v3670_v49  ;;  %v3766_v53 = vld [vmem:[#allocation17 + $0x6f0] sm:$0xff]  ;;  %v3759_v49 = vld [vmem:[#allocation17 + $0x6b8] sm:$0xff] }
 0xe18   : > { %7250 = vmatprep.mubr.bf16.mxu0 %v12401_v34  ;;  %7134 = vmatprep.subr.bf16.mxu1 %v10002_v26  ;;  %v10033_v34 = vcombine.low %v3598_v0, %v3606_v25  ;;  %v10100_v26 = vcombine.high %v3663_v36, %v3671_v45  ;;  %v3702_v0 = vld [vmem:[#allocation17 + $0x4f0] sm:$0xff]  ;;  %v3695_v25 = vld [vmem:[#allocation17 + $0x4b8] sm:$0xff] }
 0xe19   : > { %7220 = vmatprep.subr.bf16.mxu0 %v10004_v15  ;;  %v3679_v15 = vld [vmem:[#allocation17 + $0x438] sm:$0xff] }
 0xe1a   : > { %7135 = vmatpush1.bf16.msra.mxu1 %v10001_v46  ;;  %v10099_v46 = vcombine.low %v3663_v36, %v3671_v45  ;;  %v3767_v36 = vld [vmem:[#allocation17 + $0x6f8] sm:$0xff] }
 0xe1b   : > { %7221 = vmatpush1.bf16.msra.mxu0 %v10003_v61  ;;  %7136 = vmatprep.subr.bf16.mxu1 %v10018_v57  ;;  %v10114_v61 = vcombine.high %v3678_v21, %v3686_v54  ;;  %v10116_v57 = vcombine.high %v3679_v15, %v3687_v58  ;;  %v3782_v21 = vld [vmem:[#allocation17 + $0x770] sm:$0xff]  ;;  %v3775_v54 = vld [vmem:[#allocation17 + $0x738] sm:$0xff] }
 0xe1c   : > { %7222 = vmatprep.subr.bf16.mxu0 %v10020_v62  ;;  %v3694_v62 = vld [vmem:[#allocation17 + $0x4b0] sm:$0xff] }
 0xe1d   : > { %v10129_v63 = vcombine.low %v3694_v62, %v3702_v0 }
 0xe1e   : > { %7137 = vmatpush1.bf16.msra.mxu1 %v10017_v59  ;;  %v10115_v59 = vcombine.low %v3679_v15, %v3687_v58  ;;  %v3783_v15 = vld [vmem:[#allocation17 + $0x778] sm:$0xff] }
 0xe1f   : > { %7223 = vmatpush1.bf16.msra.mxu0 %v10019_v24  ;;  %7138 = vmatprep.subr.bf16.mxu1 %v10034_v47  ;;  %v10130_v24 = vcombine.high %v3694_v62, %v3702_v0  ;;  %v10132_v47 = vcombine.high %v3695_v25, %v3703_v37  ;;  %v3798_v62 = vld [vmem:[#allocation17 + $0x7f0] sm:$0xff]  ;;  %v3791_v0 = vld [vmem:[#allocation17 + $0x7b8] sm:$0xff] }
 0xe20   : > { %7224 = vmatprep.subr.bf16.mxu0 %v10036_v6  ;;  %v3710_v6 = vld [vmem:[#allocation17 + $0x530] sm:$0xff] }
 0xe21   : > { %v10145_v55 = vcombine.low %v3710_v6, %v3718_v7 }
 0xe22   : > { %7139 = vmatpush1.bf16.msra.mxu1 %v10033_v34  ;;  %v10131_v34 = vcombine.low %v3695_v25, %v3703_v37  ;;  %v3799_v25 = vld [vmem:[#allocation17 + $0x7f8] sm:$0xff] }
 0xe23   : > { %7225 = vmatpush1.bf16.msra.mxu0 %v10035_v17  ;;  %7140 = vmatprep.subr.bf16.mxu1 %v10050_v19  ;;  %v10146_v17 = vcombine.high %v3710_v6, %v3718_v7  ;;  %v10148_v19 = vcombine.high %v3711_v27, %v3719_v11  ;;  %v3814_v6 = vld [vmem:[#allocation17 + $0x870] sm:$0xff]  ;;  %v3807_v7 = vld [vmem:[#allocation17 + $0x838] sm:$0xff] }
 0xe24   : > { %7226 = vmatprep.subr.bf16.mxu0 %v10052_v50  ;;  %v3726_v50 = vld [vmem:[#allocation17 + $0x5b0] sm:$0xff] }
 0xe25   : > { %v10161_v3 = vcombine.low %v3726_v50, %v3734_v28 }
 0xe26   : > { %7141 = vmatpush1.bf16.msra.mxu1 %v10049_v33  ;;  %v10147_v33 = vcombine.low %v3711_v27, %v3719_v11  ;;  %v3815_v27 = vld [vmem:[#allocation17 + $0x878] sm:$0xff] }
 0xe27   : > { %7227 = vmatpush1.bf16.msra.mxu0 %v10051_v9  ;;  %7142 = vmatprep.subr.bf16.mxu1 %v10066_v39  ;;  %v10162_v9 = vcombine.high %v3726_v50, %v3734_v28  ;;  %v10164_v39 = vcombine.high %v3727_v22, %v3735_v8  ;;  %v3830_v50 = vld [vmem:[#allocation17 + $0x8f0] sm:$0xff] }
 0xe28   : > { %7228 = vmatprep.subr.bf16.mxu0 %v10068_v35  ;;  %v3742_v35 = vld [vmem:[#allocation17 + $0x630] sm:$0xff] }
 0xe29   : > { %v10177_v45 = vcombine.low %v3742_v35, %v3750_v60 }
 0xe2a   : > { %7143 = vmatpush1.bf16.msra.mxu1 %v10065_v48  ;;  %v10163_v48 = vcombine.low %v3727_v22, %v3735_v8  ;;  %v3823_v22 = vld [vmem:[#allocation17 + $0x8b8] sm:$0xff] }
 0xe2b   : > { %7229 = vmatpush1.bf16.msra.mxu0 %v10067_v38  ;;  %7144 = vmatprep.subr.bf16.mxu1 %v10082_v52  ;;  %v10178_v38 = vcombine.high %v3742_v35, %v3750_v60  ;;  %v10180_v52 = vcombine.high %v3743_v41, %v3751_v56  ;;  %v3831_v8 = vld [vmem:[#allocation17 + $0x8f8] sm:$0xff] }
 0xe2c   : > { %7230 = vmatprep.subr.bf16.mxu0 %v10084_v51  ;;  %v3758_v51 = vld [vmem:[#allocation17 + $0x6b0] sm:$0xff]  ;;  %v10260_v35 = vcombine.high %v3823_v22, %v3831_v8  ;;  %v3839_v60 = vld [vmem:[#allocation17 + $0x938] sm:$0xff] }
 0xe2d   : > { %v10193_v58 = vcombine.low %v3758_v51, %v3766_v53 }
 0xe2e   : > { %7145 = vmatpush1.bf16.msra.mxu1 %v10081_v40  ;;  %v10179_v40 = vcombine.low %v3743_v41, %v3751_v56  ;;  %v3847_v41 = vld [vmem:[#allocation17 + $0x978] sm:$0xff] }
 0xe2f   : > { %7231 = vmatpush1.bf16.msra.mxu0 %v10083_v32  ;;  %7146 = vmatprep.subr.bf16.mxu1 %v10098_v16  ;;  %v10194_v32 = vcombine.high %v3758_v51, %v3766_v53  ;;  %v10196_v16 = vcombine.high %v3759_v49, %v3767_v36  ;;  %v3862_v51 = vld [vmem:[#allocation17 + $0x9f0] sm:$0xff]  ;;  %v3855_v53 = vld [vmem:[#allocation17 + $0x9b8] sm:$0xff] }
 0xe30   : > { %7232 = vmatprep.subr.bf16.mxu0 %v10100_v26  ;;  %v3774_v26 = vld [vmem:[#allocation17 + $0x730] sm:$0xff] }
 0xe31   : > { %v10209_v37 = vcombine.low %v3774_v26, %v3782_v21 }
 0xe32   : > { %7147 = vmatpush1.bf16.msra.mxu1 %v10097_v10  ;;  %v10195_v10 = vcombine.low %v3759_v49, %v3767_v36  ;;  %v3863_v49 = vld [vmem:[#allocation17 + $0x9f8] sm:$0xff] }
 0xe33   : > { %7233 = vmatpush1.bf16.msra.mxu0 %v10099_v46  ;;  %7148 = vmatprep.subr.bf16.mxu1 %v10114_v61  ;;  %v10210_v46 = vcombine.high %v3774_v26, %v3782_v21  ;;  %v10212_v61 = vcombine.high %v3775_v54, %v3783_v15  ;;  %v3871_v26 = vld [vmem:[#allocation17 + $0xa38] sm:$0xff] }
 0xe34   : > { %7234 = vmatprep.subr.bf16.mxu0 %v10116_v57  ;;  %v3790_v57 = vld [vmem:[#allocation17 + $0x7b0] sm:$0xff]  ;;  %v3879_v21 = vld [vmem:[#allocation17 + $0xa78] sm:$0xff] }
 0xe35   : > { %v10225_v11 = vcombine.low %v3790_v57, %v3798_v62 }
 0xe36   : > { %7149 = vmatpush1.bf16.msra.mxu1 %v10113_v20  ;;  %v10211_v20 = vcombine.low %v3775_v54, %v3783_v15  ;;  %v10291_v54 = vcombine.low %v3855_v53, %v3863_v49 }
 0xe37   : > { %7235 = vmatpush1.bf16.msra.mxu0 %v10115_v59  ;;  %7150 = vmatprep.subr.bf16.mxu1 %v10130_v24  ;;  %v10226_v59 = vcombine.high %v3790_v57, %v3798_v62  ;;  %v10228_v24 = vcombine.high %v3791_v0, %v3799_v25  ;;  %v3895_v57 = vld [vmem:[#allocation17 + $0xaf8] sm:$0xff] }
 0xe38   : > { %7236 = vmatprep.subr.bf16.mxu0 %v10132_v47  ;;  %v3806_v47 = vld [vmem:[#allocation17 + $0x830] sm:$0xff] }
 0xe39   : > { %v10241_v28 = vcombine.low %v3806_v47, %v3814_v6 }
 0xe3a   : > { %7151 = vmatpush1.bf16.msra.mxu1 %v10129_v63  ;;  %v10227_v63 = vcombine.low %v3791_v0, %v3799_v25  ;;  %v10307_v0 = vcombine.low %v3871_v26, %v3879_v21 }
 0xe3b   : > { %7237 = vmatpush1.bf16.msra.mxu0 %v10131_v34  ;;  %7152 = vmatprep.subr.bf16.mxu1 %v10146_v17  ;;  %v10242_v34 = vcombine.high %v3806_v47, %v3814_v6  ;;  %v10244_v17 = vcombine.high %v3807_v7, %v3815_v27  ;;  %v3911_v47 = vld [vmem:[#allocation17 + $0xb78] sm:$0xff] }
 0xe3c   : > { %7238 = vmatprep.subr.bf16.mxu0 %v10148_v19  ;;  %v3822_v19 = vld [vmem:[#allocation17 + $0x8b0] sm:$0xff] }
 0xe3d   : > { %v10257_v56 = vcombine.low %v3822_v19, %v3830_v50 }
 0xe3e   : > { %7153 = vmatpush1.bf16.msra.mxu1 %v10145_v55  ;;  %v10243_v55 = vcombine.low %v3807_v7, %v3815_v27 }
 0xe3f   : > { %7239 = vmatpush1.bf16.msra.mxu0 %v10147_v33  ;;  %7154 = vmatprep.subr.bf16.mxu1 %v10162_v9  ;;  %v10258_v33 = vcombine.high %v3822_v19, %v3830_v50  ;;  %v3838_v9 = vld [vmem:[#allocation17 + $0x930] sm:$0xff] }
 0xe40   : > { %7240 = vmatprep.subr.bf16.mxu0 %v10164_v39  ;;  %v3846_v39 = vld [vmem:[#allocation17 + $0x970] sm:$0xff] }
 0xe41   : > { %v10273_v36 = vcombine.low %v3838_v9, %v3846_v39 }
 0xe42   : > { %7155 = vmatpush1.bf16.msra.mxu1 %v10161_v3  ;;  %v10259_v3 = vcombine.low %v3823_v22, %v3831_v8  ;;  %v3927_v22 = vld [vmem:[#allocation17 + $0xbf8] sm:$0xff] }
 0xe43   : > { %7241 = vmatpush1.bf16.msra.mxu0 %v10163_v48  ;;  %7156 = vmatprep.subr.bf16.mxu1 %v10178_v38  ;;  %v10274_v48 = vcombine.high %v3838_v9, %v3846_v39  ;;  %v10276_v38 = vcombine.high %v3839_v60, %v3847_v41 }
 0xe44   : > { %7242 = vmatprep.subr.bf16.mxu0 %v10180_v52  ;;  %v3854_v52 = vld [vmem:[#allocation17 + $0x9b0] sm:$0xff] }
 0xe46   : > { %7157 = vmatpush1.bf16.msra.mxu1 %v10177_v45  ;;  %v10290_v45 = vcombine.high %v3854_v52, %v3862_v51 }
 0xe47   : > { %7243 = vmatpush1.bf16.msra.mxu0 %v10179_v40  ;;  %7158 = vmatprep.subr.bf16.mxu1 %v10194_v32  ;;  %v10292_v40 = vcombine.high %v3855_v53, %v3863_v49  ;;  %v3870_v32 = vld [vmem:[#allocation17 + $0xa30] sm:$0xff]  ;;  %v3935_v49 = vld [vmem:[#allocation17 + $0xc38] sm:$0xff] }
 0xe48   : > { %7244 = vmatprep.subr.bf16.mxu0 %v10196_v16  ;;  %v3878_v16 = vld [vmem:[#allocation17 + $0xa70] sm:$0xff] }
 0xe49   : > { %v10306_v15 = vcombine.high %v3870_v32, %v3878_v16  ;;  %v10305_v62 = vcombine.low %v3870_v32, %v3878_v16  ;;  %v3950_v16 = vld [vmem:[#allocation17 + $0xcb0] sm:$0xff] }
 0xe4a   : > { %7159 = vmatpush1.bf16.msra.mxu1 %v10193_v58  ;;  %v10308_v58 = vcombine.high %v3871_v26, %v3879_v21  ;;  %v3958_v26 = vld [vmem:[#allocation17 + $0xcf0] sm:$0xff]  ;;  %v3951_v21 = vld [vmem:[#allocation17 + $0xcb8] sm:$0xff] }
 0xe4b   : > { %7245 = vmatpush1.bf16.msra.mxu0 %v10195_v10  ;;  %7160 = vmatprep.subr.bf16.mxu1 %v10210_v46  ;;  %v3886_v10 = vld [vmem:[#allocation17 + $0xab0] sm:$0xff] }
 0xe4c   : > { %7246 = vmatprep.subr.bf16.mxu0 %v10212_v61  ;;  %v3894_v46 = vld [vmem:[#allocation17 + $0xaf0] sm:$0xff]  ;;  %v3887_v61 = vld [vmem:[#allocation17 + $0xab8] sm:$0xff] }
 0xe4d   : > { %v10322_v25 = vcombine.high %v3886_v10, %v3894_v46  ;;  %v10321_v6 = vcombine.low %v3886_v10, %v3894_v46  ;;  %v10323_v7 = vcombine.low %v3887_v61, %v3895_v57  ;;  %v3966_v46 = vld [vmem:[#allocation17 + $0xd30] sm:$0xff] }
 0xe4e   : > { %7161 = vmatpush1.bf16.msra.mxu1 %v10209_v37  ;;  %v10324_v37 = vcombine.high %v3887_v61, %v3895_v57  ;;  %v3974_v61 = vld [vmem:[#allocation17 + $0xd70] sm:$0xff]  ;;  %v3967_v57 = vld [vmem:[#allocation17 + $0xd38] sm:$0xff] }
 0xe4f   : > { %7247 = vmatpush1.bf16.msra.mxu0 %v10211_v20  ;;  %7162 = vmatprep.subr.bf16.mxu1 %v10226_v59  ;;  %v3902_v20 = vld [vmem:[#allocation17 + $0xb30] sm:$0xff] }
 0xe50   : > { %7248 = vmatprep.subr.bf16.mxu0 %v10228_v24  ;;  %v3910_v59 = vld [vmem:[#allocation17 + $0xb70] sm:$0xff]  ;;  %v3903_v24 = vld [vmem:[#allocation17 + $0xb38] sm:$0xff] }
 0xe51   : > { %v10338_v27 = vcombine.high %v3902_v20, %v3910_v59 }
 0xe52   : > { %7163 = vmatpush1.bf16.msra.mxu1 %v10225_v11 }
 0xe53   : > { %7249 = vmatpush1.bf16.msra.mxu0 %v10227_v63  ;;  %7175 = vmatprep.subr.bf16.mxu1 %v10242_v34  ;;  %v10340_v63 = vcombine.high %v3903_v24, %v3911_v47  ;;  %v3918_v34 = vld [vmem:[#allocation17 + $0xbb0] sm:$0xff] }
 0xe54   : > { %7261 = vmatprep.subr.bf16.mxu0 %v10244_v17  ;;  %v3926_v17 = vld [vmem:[#allocation17 + $0xbf0] sm:$0xff] }
 0xe55   : > { %7165 = vmatmul.mubr.bf16.vlgmr.msra.gmra.mrb[92].mxu1 %v12419_v42 }
 0xe56   : > { %7251 = vmatmul.mubr.bf16.vlgmr.msra.gmra.mrb[96].mxu0 %v12419_v42  ;;  %7176 = vmatpush1.bf16.msra.mxu1 %v10241_v28  ;;  %v10275_v42 = vcombine.low %v3839_v60, %v3847_v41  ;;  %v3919_v28 = vld [vmem:[#allocation17 + $0xbb8] sm:$0xff]  ;;  %v10339_v60 = vcombine.low %v3903_v24, %v3911_v47  ;;  %v10354_v41 = vcombine.high %v3918_v34, %v3926_v17  ;;  %v3990_v24 = vld [vmem:[#allocation17 + $0xdf0] sm:$0xff] }
 0xe57   : > { %7207 = vmatprep.mubr.bf16.mxu1 %v12439_v30  ;;  %7262 = vmatpush1.bf16.msra.mxu0 %v10243_v55  ;;  %v3983_v47 = vld [vmem:[#allocation17 + $0xdb8] sm:$0xff] }
 0xe58   : > { %7293 = vmatprep.mubr.bf16.mxu0 %v12439_v30  ;;  %7177 = vmatprep.subr.bf16.mxu1 %v10258_v33  ;;  %v10289_v30 = vcombine.low %v3854_v52, %v3862_v51  ;;  %v10337_v33 = vcombine.low %v3902_v20, %v3910_v59  ;;  %v3934_v52 = vld [vmem:[#allocation17 + $0xc30] sm:$0xff] }
 0xe59   : > { %7263 = vmatprep.subr.bf16.mxu0 %v10260_v35  ;;  %v3942_v51 = vld [vmem:[#allocation17 + $0xc70] sm:$0xff] }
 0xe5a   : > { %7178 = vmatpush1.bf16.msra.mxu1 %v10257_v56  ;;  %v3982_v59 = vld [vmem:[#allocation17 + $0xdb0] sm:$0xff] }
 0xe5b   : > { %7264 = vmatpush1.bf16.msra.mxu0 %v10259_v3  ;;  %7179 = vmatprep.subr.bf16.mxu1 %v10274_v48 }
 0xe5c   : > { %7265 = vmatprep.subr.bf16.mxu0 %v10276_v38  ;;  %v10356_v38 = vcombine.high %v3919_v28, %v3927_v22 }
 0xe5e   : > { %7180 = vmatpush1.bf16.msra.mxu1 %v10273_v36  ;;  %v3943_v36 = vld [vmem:[#allocation17 + $0xc78] sm:$0xff] }
 0xe5f   : > { %7266 = vmatpush1.bf16.msra.mxu0 %v10275_v42  ;;  %7181 = vmatprep.subr.bf16.mxu1 %v10290_v45  ;;  %v10353_v42 = vcombine.low %v3918_v34, %v3926_v17  ;;  %v10355_v45 = vcombine.low %v3919_v28, %v3927_v22  ;;  %v10372_v32 = vcombine.high %v3935_v49, %v3943_v36  ;;  %v3998_v17 = vld [vmem:[#allocation17 + $0xe30] sm:$0xff]  ;;  %v3999_v28 = vld [vmem:[#allocation17 + $0xe38] sm:$0xff] }
 0xe60   : > { %7267 = vmatprep.subr.bf16.mxu0 %v10292_v40  ;;  %v10370_v40 = vcombine.high %v3934_v52, %v3942_v51  ;;  %v4007_v22 = vld [vmem:[#allocation17 + $0xe78] sm:$0xff] }
 0xe62   : > { %7182 = vmatpush1.bf16.msra.mxu1 %v10289_v30  ;;  %v3959_v30 = vld [vmem:[#allocation17 + $0xcf8] sm:$0xff] }
 0xe63   : > { %7268 = vmatpush1.bf16.msra.mxu0 %v10291_v54  ;;  %7183 = vmatprep.subr.bf16.mxu1 %v10306_v15  ;;  %v10369_v54 = vcombine.low %v3934_v52, %v3942_v51  ;;  %v10371_v15 = vcombine.low %v3935_v49, %v3943_v36  ;;  %v10388_v10 = vcombine.high %v3951_v21, %v3959_v30  ;;  %v4023_v52 = vld [vmem:[#allocation17 + $0xef8] sm:$0xff] }
 0xe64   : > { %7269 = vmatprep.subr.bf16.mxu0 %v10308_v58  ;;  %v10386_v58 = vcombine.high %v3950_v16, %v3958_v26  ;;  %v10435_v49 = vcombine.low %v3999_v28, %v4007_v22 }
 0xe66   : > { %7184 = vmatpush1.bf16.msra.mxu1 %v10305_v62  ;;  %v3975_v62 = vld [vmem:[#allocation17 + $0xd78] sm:$0xff] }
 0xe67   : > { %7270 = vmatpush1.bf16.msra.mxu0 %v10307_v0  ;;  %7185 = vmatprep.subr.bf16.mxu1 %v10322_v25  ;;  %v10385_v0 = vcombine.low %v3950_v16, %v3958_v26  ;;  %v10387_v25 = vcombine.low %v3951_v21, %v3959_v30  ;;  %v10404_v20 = vcombine.high %v3967_v57, %v3975_v62  ;;  %v4039_v16 = vld [vmem:[#allocation17 + $0xf78] sm:$0xff] }
 0xe68   : > { %v12483_v11 = vpop.f32.mrb[84].mxu1  ;;  %7271 = vmatprep.subr.bf16.mxu0 %v10324_v37  ;;  %v10402_v37 = vcombine.high %v3966_v46, %v3974_v61 }
 0xe69   : > { %v12485_v19 = vpop.f32.mrb[88].mxu0  ;;  %v6867_v50 = vpop.f32.mrb[85].mxu1 }
 0xe6a   : > { %v6953_v8 = vpop.f32.mrb[89].mxu0  ;;  %v12487_v55 = vpop.f32.mrb[86].mxu1  ;;  %7186 = vmatpush1.bf16.msra.mxu1 %v10321_v6  ;;  %v3991_v6 = vld [vmem:[#allocation17 + $0xdf8] sm:$0xff] }
 0xe6b   : > { %v7308_v9 = vpack.c.bf16 %v12487_v55, %v12483_v11  ;;  %v12491_v39 = vpop.f32.mrb[90].mxu0  ;;  %7272 = vmatpush1.bf16.msra.mxu0 %v10323_v7  ;;  %v6871_v35 = vpop.f32.mrb[87].mxu1  ;;  %7187 = vmatprep.subr.bf16.mxu1 %v10338_v27  ;;  %v10401_v7 = vcombine.low %v3966_v46, %v3974_v61  ;;  %v10403_v27 = vcombine.low %v3967_v57, %v3975_v62  ;;  %v4055_v46 = vld [vmem:[#allocation17 + $0xff8] sm:$0xff] }
 0xe6c   : > { %v7310_v56 = vpack.c.bf16 %v12491_v39, %v12485_v19  ;;  %v12495_v3 = vpack.c.bf16 %v6871_v35, %v6867_v50  ;;  %v6957_v48 = vpop.f32.mrb[91].mxu0  ;;  %7273 = vmatprep.subr.bf16.mxu0 %v10340_v63  ;;  %v10418_v63 = vcombine.high %v3982_v59, %v3990_v24  ;;  %v10420_v34 = vcombine.high %v3983_v47, %v3991_v6  ;;  %v4006_v50 = vld [vmem:[#allocation17 + $0xe70] sm:$0xff] }
 0xe6d   : > { %v12497_v53 = vpack.c.bf16 %v6957_v48, %v6953_v8  ;;  %v10417_v8 = vcombine.low %v3982_v59, %v3990_v24  ;;  %v10434_v35 = vcombine.high %v3998_v17, %v4006_v50  ;;  %v4022_v48 = vld [vmem:[#allocation17 + $0xef0] sm:$0xff]  ;;  %v10433_v51 = vcombine.low %v3998_v17, %v4006_v50 }
 0xe6e   : > { %7188 = vmatpush1.bf16.msra.mxu1 %v10337_v33  ;;  %v10419_v33 = vcombine.low %v3983_v47, %v3991_v6  ;;  %v12514_v59 = vsel %vm1077_vm7, %v7306_v13, 0  ;;  %v12539_v4 = vsel %vm1077_vm7, %v7310_v56, 0 }
 0xe6f   : > { %7274 = vmatpush1.bf16.msra.mxu0 %v10339_v60  ;;  %7189 = vmatprep.subr.bf16.mxu1 %v10354_v41  ;;  %v10436_v60 = vcombine.high %v3999_v28, %v4007_v22  ;;  %v4014_v41 = vld [vmem:[#allocation17 + $0xeb0] sm:$0xff] }
 0xe70   : > { %7275 = vmatprep.subr.bf16.mxu0 %v10356_v38  ;;  %v4015_v38 = vld [vmem:[#allocation17 + $0xeb8] sm:$0xff]  ;;  %v10450_v36 = vcombine.high %v4014_v41, %v4022_v48  ;;  %v10449_v26 = vcombine.low %v4014_v41, %v4022_v48 }
 0xe71   : > { %v10451_v21 = vcombine.low %v4015_v38, %v4023_v52 }
 0xe72   : > { %7190 = vmatpush1.bf16.msra.mxu1 %v10353_v42  ;;  %v10452_v42 = vcombine.high %v4015_v38, %v4023_v52 }
 0xe73   : > { %7276 = vmatpush1.bf16.msra.mxu0 %v10355_v45  ;;  %7191 = vmatprep.subr.bf16.mxu1 %v10370_v40  ;;  %v4030_v45 = vld [vmem:[#allocation17 + $0xf30] sm:$0xff] }
 0xe74   : > { %7277 = vmatprep.subr.bf16.mxu0 %v10372_v32  ;;  %v4038_v40 = vld [vmem:[#allocation17 + $0xf70] sm:$0xff]  ;;  %v4031_v32 = vld [vmem:[#allocation17 + $0xf38] sm:$0xff] }
 0xe75   : > { %v10466_v30 = vcombine.high %v4030_v45, %v4038_v40  ;;  %v10465_v61 = vcombine.low %v4030_v45, %v4038_v40  ;;  %v10467_v57 = vcombine.low %v4031_v32, %v4039_v16 }
 0xe76   : > { %7192 = vmatpush1.bf16.msra.mxu1 %v10369_v54  ;;  %v10468_v54 = vcombine.high %v4031_v32, %v4039_v16  ;;  %v10501_v16 = vld [vmem:[%s13322_s5 + $0x1] sm:$0x1] }
 0xe77   : > { %7278 = vmatpush1.bf16.msra.mxu0 %v10371_v15  ;;  %7193 = vmatprep.subr.bf16.mxu1 %v10386_v58  ;;  %v4046_v15 = vld [vmem:[#allocation17 + $0xfb0] sm:$0xff] }
 0xe78   : > { %7279 = vmatprep.subr.bf16.mxu0 %v10388_v10  ;;  %v4054_v58 = vld [vmem:[#allocation17 + $0xff0] sm:$0xff]  ;;  %v4047_v10 = vld [vmem:[#allocation17 + $0xfb8] sm:$0xff] }
 0xe79   : > { %v10482_v62 = vcombine.high %v4046_v15, %v4054_v58 }
 0xe7a   : > { %7194 = vmatpush1.bf16.msra.mxu1 %v10385_v0  ;;  %v10484_v0 = vcombine.high %v4047_v10, %v4055_v46 }
 0xe7b   : > { %7280 = vmatpush1.bf16.msra.mxu0 %v10387_v25  ;;  %7195 = vmatprep.subr.bf16.mxu1 %v10402_v37  ;;  %v10481_v25 = vcombine.low %v4046_v15, %v4054_v58  ;;  %v10483_v37 = vcombine.low %v4047_v10, %v4055_v46 }
 0xe7c   : > { %7281 = vmatprep.subr.bf16.mxu0 %v10404_v20  ;;  %v12507_v20 = vsel %vm1077_vm7, %v7304_v23, 0 }
 0xe7e   : > { %7196 = vmatpush1.bf16.msra.mxu1 %v10401_v7 }
 0xe7f   : > { %7282 = vmatpush1.bf16.msra.mxu0 %v10403_v27  ;;  %7197 = vmatprep.subr.bf16.mxu1 %v10418_v63 }
 0xe80   : > { %7283 = vmatprep.subr.bf16.mxu0 %v10420_v34 }
 0xe82   : > { %7198 = vmatpush1.bf16.msra.mxu1 %v10417_v8 }
 0xe83   : > { %7284 = vmatpush1.bf16.msra.mxu0 %v10419_v33  ;;  %7199 = vmatprep.subr.bf16.mxu1 %v10434_v35 }
 0xe84   : > { %7285 = vmatprep.subr.bf16.mxu0 %v10436_v60 }
 0xe86   : > { %7200 = vmatpush1.bf16.msra.mxu1 %v10433_v51 }
 0xe87   : > { %7286 = vmatpush1.bf16.msra.mxu0 %v10435_v49  ;;  %7201 = vmatprep.subr.bf16.mxu1 %v10450_v36 }
 0xe88   : > { %7287 = vmatprep.subr.bf16.mxu0 %v10452_v42 }
 0xe8a   : > { %7202 = vmatpush1.bf16.msra.mxu1 %v10449_v26 }
 0xe8b   : > { %7288 = vmatpush1.bf16.msra.mxu0 %v10451_v21  ;;  %7203 = vmatprep.subr.bf16.mxu1 %v10466_v30 }
 0xe8c   : > { %7289 = vmatprep.subr.bf16.mxu0 %v10468_v54 }
 0xe8e   : > { %7204 = vmatpush1.bf16.msra.mxu1 %v10465_v61  ;;  %v10518_v61 = vld [vmem:[%s13322_s5 + $0x2] sm:$0x1] }
 0xe8f   : > { %7290 = vmatpush1.bf16.msra.mxu0 %v10467_v57  ;;  %7205 = vmatprep.subr.bf16.mxu1 %v10482_v62  ;;  %v10535_v57 = vld [vmem:[%s13322_s5 + $0x3] sm:$0x1] }
 0xe90   : > { %7291 = vmatprep.subr.bf16.mxu0 %v10484_v0 }
 0xe92   : > { %7206 = vmatpush1.bf16.msra.mxu1 %v10481_v25 }
 0xe93   : > { %7292 = vmatpush1.bf16.msra.mxu0 %v10483_v37  ;;  %10485 = vmatprep.subr.msk.bf16.mxu1 %vm1077_vm7, %v12471_v29 }
 0xe94   : > { %10487 = vmatprep.subr.msk.bf16.mxu0 %vm1077_vm7, %v12473_v5 }
 0xe95   : > { %7208 = vmatmul.mubr.bf16.vlgmr.msra.gmra.mrb[92].mxu1 %v12437_v31 }
 0xe96   : > { %7294 = vmatmul.mubr.bf16.vlgmr.msra.gmra.mrb[96].mxu0 %v12437_v31  ;;  %7385 = vmatpush1.bf16.msra.mxu1 %v12507_v20  ;;  %v12532_v31 = vsel %vm1077_vm7, %v7308_v9, 0 }
 0xe97   : > { %7426 = vmatpush1.bf16.msra.mxu0 %v12514_v59  ;;  %10489 = vmatprep.subr.msk.bf16.mxu1 %vm1077_vm7, %v12495_v3 }
 0xe98   : > { %10491 = vmatprep.subr.msk.bf16.mxu0 %vm1077_vm7, %v12497_v53  ;;  %7416 = vmatprep.mubr.bf16.mxu1 %v11444_v1 }
 0xe99   : > { %7457 = vmatprep.mubr.bf16.mxu0 %v11444_v1 }
 0xe9d   : > { %10486 = vmatmul.mubr.msk.bf16.vlgmr.msra.gmra.mrb[96].mxu1 %vm1073_vm8, %v7332_v43 }
 0xe9e   : > { %10488 = vmatmul.mubr.msk.bf16.vlgmr.msra.gmra.mrb[100].mxu0 %vm1073_vm8, %v7332_v43  ;;  %7467 = vmatpush1.bf16.msra.mxu1 %v12532_v31 }
 0xe9f   : > { %7508 = vmatpush1.bf16.msra.mxu0 %v12539_v4  ;;  %7498 = vmatprep.mubr.bf16.mxu1 %v11444_v1 }
 0xea0   : > { %7539 = vmatprep.mubr.bf16.mxu0 %v11444_v1 }
 0xea5   : > { %10490 = vmatmul.mubr.msk.bf16.vlgmr.msra.gmra.mrb[100].mxu1 %vm1073_vm8, %v7332_v43 }
 0xea6   : > { %10492 = vmatmul.mubr.msk.bf16.vlgmr.msra.gmra.mrb[104].mxu0 %vm1073_vm8, %v7332_v43  ;;  %7580 = vmatprep.mubr.bf16.mxu1 %v11444_v1 }
 0xea7   : > { %7621 = vmatprep.mubr.bf16.mxu0 %v11444_v1 }
 0xee8   : > { %v7037_v44 = vpop.f32.mrb[88].mxu1 }
 0xee9   : > { %v7123_v2 = vpop.f32.mrb[92].mxu0  ;;  %v7039_v23 = vpop.f32.mrb[89].mxu1 }
 0xeea   : > { %v7125_v13 = vpop.f32.mrb[93].mxu0  ;;  %v7041_v11 = vpop.f32.mrb[90].mxu1 }
 0xeeb   : > { %v7312_v19 = vpack.c.bf16 %v7041_v11, %v7037_v44  ;;  %v7127_v55 = vpop.f32.mrb[94].mxu0  ;;  %v7043_v9 = vpop.f32.mrb[91].mxu1 }
 0xeec   : > { %v7314_v39 = vpack.c.bf16 %v7127_v55, %v7123_v2  ;;  %v12550_v56 = vpack.c.bf16 %v7043_v9, %v7039_v23  ;;  %v7129_v24 = vpop.f32.mrb[95].mxu0 }
 0xeed   : > { %v12553_v47 = vsel %vm1077_vm7, %v7312_v19, 0  ;;  %v12555_v6 = vpack.c.bf16 %v7129_v24, %v7125_v13 }
 0xeee   : > { %v12558_v7 = vsel %vm1077_vm7, %v7314_v39, 0  ;;  %10493 = vmatprep.subr.msk.bf16.mxu1 %vm1077_vm7, %v12550_v56 }
 0xeef   : > { %10495 = vmatprep.subr.msk.bf16.mxu0 %vm1077_vm7, %v12555_v6  ;;  %7549 = vmatpush1.bf16.msra.mxu1 %v12553_v47 }
 0xef0   : > { %7590 = vmatpush1.bf16.msra.mxu0 %v12558_v7 }
 0xef2   : > { %10494 = vmatmul.mubr.msk.bf16.vlgmr.msra.gmra.mrb[104].mxu1 %vm1073_vm8, %v7332_v43 }
 0xef3   : > { %10496 = vmatmul.mubr.msk.bf16.vlgmr.msra.gmra.mrb[108].mxu0 %vm1073_vm8, %v7332_v43  ;;  %7662 = vmatprep.mubr.bf16.mxu1 %v11444_v1 }
 0xef4   : > { %7703 = vmatprep.mubr.bf16.mxu0 %v11444_v1 }
 0xf68   : > { %v7209_v27 = vpop.f32.mrb[92].mxu1 }
 0xf69   : > { %v7295_v63 = vpop.f32.mrb[96].mxu0  ;;  %v7211_v34 = vpop.f32.mrb[93].mxu1 }
 0xf6a   : > { %v7297_v17 = vpop.f32.mrb[97].mxu0  ;;  %v7213_v50 = vpop.f32.mrb[94].mxu1 }
 0xf6b   : > { %v7316_v28 = vpack.c.bf16 %v7213_v50, %v7209_v27  ;;  %v7299_v22 = vpop.f32.mrb[98].mxu0  ;;  %v7215_v8 = vpop.f32.mrb[95].mxu1 }
 0xf6c   : > { %v7318_v33 = vpack.c.bf16 %v7299_v22, %v7295_v63  ;;  %v12570_v35 = vpack.c.bf16 %v7215_v8, %v7211_v34  ;;  %v7301_v60 = vpop.f32.mrb[99].mxu0 }
 0xf6d   : > { %v12573_v41 = vsel %vm1077_vm7, %v7316_v28, 0  ;;  %v12575_v48 = vpack.c.bf16 %v7301_v60, %v7297_v17 }
 0xf6e   : > { %v12578_v38 = vsel %vm1077_vm7, %v7318_v33, 0  ;;  %10497 = vmatprep.subr.msk.bf16.mxu1 %vm1077_vm7, %v12570_v35 }
 0xf6f   : > { %10499 = vmatprep.subr.msk.bf16.mxu0 %vm1077_vm7, %v12575_v48  ;;  %7631 = vmatpush1.bf16.msra.mxu1 %v12573_v41 }
 0xf70   : > { %7672 = vmatpush1.bf16.msra.mxu0 %v12578_v38  ;;  %10502 = vmatprep.subr.msk.bf16.mxu1 %vm1077_vm7, %v12471_v29  ;;  %v7418_v52 = vpop.f32.mrb[96].mxu1 }
 0xf71   : > { %10504 = vmatprep.subr.msk.bf16.mxu0 %vm1077_vm7, %v12473_v5  ;;  %v7459_v51 = vpop.f32.mrb[100].mxu0  ;;  %v7420_v49 = vpop.f32.mrb[97].mxu1  ;;  %7712 = vrot.lane.b32.xlu1 %v7418_v52, %s11447_s20 }
 0xf72   : > { %10498 = vmatmul.mubr.msk.bf16.vlgmr.msra.gmra.mrb[108].mxu1 %vm1073_vm8, %v7332_v43  ;;  %v7461_v36 = vpop.f32.mrb[101].mxu0  ;;  %v7422_v42 = vpop.f32.mrb[98].mxu1  ;;  %7714 = vrot.lane.b32.xlu0 %v7420_v49, %s11447_s20 }
 0xf73   : > { %10500 = vmatmul.mubr.msk.bf16.vlgmr.msra.gmra.mrb[112].mxu0 %vm1073_vm8, %v7332_v43  ;;  %7826 = vmatpush1.bf16.msra.mxu1 %v12507_v20  ;;  %v7463_v45 = vpop.f32.mrb[102].mxu0  ;;  %v7423_v40 = vpop.f32.mrb[99].mxu1 }
 0xf74   : > { %7867 = vmatpush1.bf16.msra.mxu0 %v12514_v59  ;;  %10506 = vmatprep.subr.msk.bf16.mxu1 %vm1077_vm7, %v12495_v3  ;;  %v7464_v32 = vpop.f32.mrb[103].mxu0 }
 0xf75   : > { %10508 = vmatprep.subr.msk.bf16.mxu0 %vm1077_vm7, %v12497_v53  ;;  %7857 = vmatprep.mubr.bf16.mxu1 %v11444_v1 }
 0xf76   : > { %7898 = vmatprep.mubr.bf16.mxu0 %v11444_v1  ;;  %7716 = vrot.lane.b32.xlu1 %v7459_v51, %s11447_s20 }
 0xf77   : > { %7718 = vrot.lane.b32.xlu0 %v7461_v36, %s11447_s20 }
 0xf78   : > { %v7500_v26 = vpop.f32.mrb[100].mxu1 }
 0xf79   : > { %v7502_v21 = vpop.f32.mrb[101].mxu1  ;;  %v7541_v30 = vpop.f32.mrb[104].mxu0 }
 0xf7a   : > { %10503 = vmatmul.mubr.msk.bf16.vlgmr.msra.gmra.mrb[112].mxu1 %vm1073_vm8, %v10501_v16  ;;  %v7504_v54 = vpop.f32.mrb[102].mxu1  ;;  %v7543_v15 = vpop.f32.mrb[105].mxu0  ;;  %7720 = vrot.lane.b32.xlu1 %v7500_v26, %s11447_s20 }
 0xf7b   : > { %10505 = vmatmul.mubr.msk.bf16.vlgmr.msra.gmra.mrb[116].mxu0 %vm1073_vm8, %v10501_v16  ;;  %7908 = vmatpush1.bf16.msra.mxu1 %v12532_v31  ;;  %v7505_v58 = vpop.f32.mrb[103].mxu1  ;;  %v7545_v10 = vpop.f32.mrb[106].mxu0 }
 0xf7c   : > { %7949 = vmatpush1.bf16.msra.mxu0 %v12539_v4  ;;  %10510 = vmatprep.subr.msk.bf16.mxu1 %vm1077_vm7, %v12550_v56  ;;  %v7546_v46 = vpop.f32.mrb[107].mxu0 }
 0xf7d   : > { %10512 = vmatprep.subr.msk.bf16.mxu0 %vm1077_vm7, %v12555_v6  ;;  %7939 = vmatprep.mubr.bf16.mxu1 %v11444_v1 }
 0xf7e   : > { %7980 = vmatprep.mubr.bf16.mxu0 %v11444_v1  ;;  %7722 = vrot.lane.b32.xlu0 %v7502_v21, %s11447_s20 }
 0xf7f   : > { %7724 = vrot.lane.b32.xlu1 %v7541_v30, %s11447_s20 }
 0xf82   : > { %10507 = vmatmul.mubr.msk.bf16.vlgmr.msra.gmra.mrb[116].mxu1 %vm1073_vm8, %v10501_v16  ;;  %7726 = vrot.lane.b32.xlu0 %v7543_v15, %s11447_s20 }
 0xf83   : > { %10509 = vmatmul.mubr.msk.bf16.vlgmr.msra.gmra.mrb[120].mxu0 %vm1073_vm8, %v10501_v16  ;;  %7990 = vmatpush1.bf16.msra.mxu1 %v12553_v47 }
 0xf84   : > { %8031 = vmatpush1.bf16.msra.mxu0 %v12558_v7  ;;  %10514 = vmatprep.subr.msk.bf16.mxu1 %vm1077_vm7, %v12570_v35 }
 0xf85   : > { %10516 = vmatprep.subr.msk.bf16.mxu0 %vm1077_vm7, %v12575_v48  ;;  %8021 = vmatprep.mubr.bf16.mxu1 %v11444_v1 }
 0xf86   : > { %8062 = vmatprep.mubr.bf16.mxu0 %v11444_v1 }
 0xf8a   : > { %10511 = vmatmul.mubr.msk.bf16.vlgmr.msra.gmra.mrb[120].mxu1 %vm1073_vm8, %v10501_v16 }
 0xf8b   : > { %10513 = vmatmul.mubr.msk.bf16.vlgmr.msra.gmra.mrb[124].mxu0 %vm1073_vm8, %v10501_v16  ;;  %8072 = vmatpush1.bf16.msra.mxu1 %v12573_v41 }
 0xf8c   : > { %8113 = vmatpush1.bf16.msra.mxu0 %v12578_v38  ;;  %10519 = vmatprep.subr.msk.bf16.mxu1 %vm1077_vm7, %v12471_v29 }
 0xf8d   : > { %10521 = vmatprep.subr.msk.bf16.mxu0 %vm1077_vm7, %v12473_v5  ;;  %8103 = vmatprep.mubr.bf16.mxu1 %v11444_v1 }
 0xf8e   : > { %8144 = vmatprep.mubr.bf16.mxu0 %v11444_v1 }
 0xf92   : > { %10515 = vmatmul.mubr.msk.bf16.vlgmr.msra.gmra.mrb[124].mxu1 %vm1073_vm8, %v10501_v16 }
 0xf93   : > { %10517 = vmatmul.mubr.msk.bf16.vlgmr.msra.gmra.mrb[128].mxu0 %vm1073_vm8, %v10501_v16  ;;  %8267 = vmatpush1.bf16.msra.mxu1 %v12507_v20 }
 0xf94   : > { %8308 = vmatpush1.bf16.msra.mxu0 %v12514_v59  ;;  %10523 = vmatprep.subr.msk.bf16.mxu1 %vm1077_vm7, %v12495_v3 }
 0xf95   : > { %10525 = vmatprep.subr.msk.bf16.mxu0 %vm1077_vm7, %v12497_v53  ;;  %8298 = vmatprep.mubr.bf16.mxu1 %v11444_v1 }
 0xf96   : > { %8339 = vmatprep.mubr.bf16.mxu0 %v11444_v1 }
 0xf9a   : > { %10520 = vmatmul.mubr.msk.bf16.vlgmr.msra.gmra.mrb[128].mxu1 %vm1073_vm8, %v10518_v61 }
 0xf9b   : > { %10522 = vmatmul.mubr.msk.bf16.vlgmr.msra.gmra.mrb[132].mxu0 %vm1073_vm8, %v10518_v61  ;;  %8349 = vmatpush1.bf16.msra.mxu1 %v12532_v31 }
 0xf9c   : > { %8390 = vmatpush1.bf16.msra.mxu0 %v12539_v4  ;;  %10527 = vmatprep.subr.msk.bf16.mxu1 %vm1077_vm7, %v12550_v56 }
 0xf9d   : > { %10529 = vmatprep.subr.msk.bf16.mxu0 %vm1077_vm7, %v12555_v6  ;;  %8380 = vmatprep.mubr.bf16.mxu1 %v11444_v1 }
 0xf9e   : > { %8421 = vmatprep.mubr.bf16.mxu0 %v11444_v1 }
 0xfa2   : > { %10524 = vmatmul.mubr.msk.bf16.vlgmr.msra.gmra.mrb[132].mxu1 %vm1073_vm8, %v10518_v61 }
 0xfa3   : > { %10526 = vmatmul.mubr.msk.bf16.vlgmr.msra.gmra.mrb[136].mxu0 %vm1073_vm8, %v10518_v61  ;;  %8431 = vmatpush1.bf16.msra.mxu1 %v12553_v47 }
 0xfa4   : > { %8472 = vmatpush1.bf16.msra.mxu0 %v12558_v7  ;;  %10531 = vmatprep.subr.msk.bf16.mxu1 %vm1077_vm7, %v12570_v35 }
 0xfa5   : > { %10533 = vmatprep.subr.msk.bf16.mxu0 %vm1077_vm7, %v12575_v48  ;;  %8462 = vmatprep.mubr.bf16.mxu1 %v11444_v1 }
 0xfa6   : > { %8503 = vmatprep.mubr.bf16.mxu0 %v11444_v1 }
 0xfaa   : > { %10528 = vmatmul.mubr.msk.bf16.vlgmr.msra.gmra.mrb[136].mxu1 %vm1073_vm8, %v10518_v61 }
 0xfab   : > { %10530 = vmatmul.mubr.msk.bf16.vlgmr.msra.gmra.mrb[140].mxu0 %vm1073_vm8, %v10518_v61  ;;  %8513 = vmatpush1.bf16.msra.mxu1 %v12573_v41 }
 0xfac   : > { %8554 = vmatpush1.bf16.msra.mxu0 %v12578_v38  ;;  %10536 = vmatprep.subr.msk.bf16.mxu1 %vm1077_vm7, %v12471_v29 }
 0xfad   : > { %10538 = vmatprep.subr.msk.bf16.mxu0 %vm1077_vm7, %v12473_v5  ;;  %8544 = vmatprep.mubr.bf16.mxu1 %v11444_v1 }
 0xfae   : > { %8585 = vmatprep.mubr.bf16.mxu0 %v11444_v1 }
 0xfb2   : > { %10532 = vmatmul.mubr.msk.bf16.vlgmr.msra.gmra.mrb[140].mxu1 %vm1073_vm8, %v10518_v61 }
 0xfb3   : > { %10534 = vmatmul.mubr.msk.bf16.vlgmr.msra.gmra.mrb[144].mxu0 %vm1073_vm8, %v10518_v61  ;;  %8616 = vmatpush1.bf16.msra.mxu1 %v12507_v20 }
 0xfb4   : > { %8657 = vmatpush1.bf16.msra.mxu0 %v12514_v59  ;;  %10540 = vmatprep.subr.msk.bf16.mxu1 %vm1077_vm7, %v12495_v3 }
 0xfb5   : > { %10542 = vmatprep.subr.msk.bf16.mxu0 %vm1077_vm7, %v12497_v53  ;;  %8647 = vmatprep.mubr.bf16.mxu1 %v11444_v1 }
 0xfb6   : > { %8688 = vmatprep.mubr.bf16.mxu0 %v11444_v1 }
 0xfba   : > { %10537 = vmatmul.mubr.msk.bf16.vlgmr.msra.gmra.mrb[144].mxu1 %vm1073_vm8, %v10535_v57 }
 0xfbb   : > { %10539 = vmatmul.mubr.msk.bf16.vlgmr.msra.gmra.mrb[148].mxu0 %vm1073_vm8, %v10535_v57  ;;  %8698 = vmatpush1.bf16.msra.mxu1 %v12532_v31 }
 0xfbc   : > { %8739 = vmatpush1.bf16.msra.mxu0 %v12539_v4  ;;  %10544 = vmatprep.subr.msk.bf16.mxu1 %vm1077_vm7, %v12550_v56 }
 0xfbd   : > { %10546 = vmatprep.subr.msk.bf16.mxu0 %vm1077_vm7, %v12555_v6  ;;  %8729 = vmatprep.mubr.bf16.mxu1 %v11444_v1 }
 0xfbe   : > { %8770 = vmatprep.mubr.bf16.mxu0 %v11444_v1 }
 0xfc2   : > { %10541 = vmatmul.mubr.msk.bf16.vlgmr.msra.gmra.mrb[148].mxu1 %vm1073_vm8, %v10535_v57 }
 0xfc3   : > { %10543 = vmatmul.mubr.msk.bf16.vlgmr.msra.gmra.mrb[152].mxu0 %vm1073_vm8, %v10535_v57  ;;  %8780 = vmatpush1.bf16.msra.mxu1 %v12553_v47 }
 0xfc4   : > { %8821 = vmatpush1.bf16.msra.mxu0 %v12558_v7  ;;  %10548 = vmatprep.subr.msk.bf16.mxu1 %vm1077_vm7, %v12570_v35 }
 0xfc5   : > { %10550 = vmatprep.subr.msk.bf16.mxu0 %vm1077_vm7, %v12575_v48  ;;  %8811 = vmatprep.mubr.bf16.mxu1 %v11444_v1  ;;  %v7582_v62 = vpop.f32.mrb[104].mxu1 }
 0xfc6   : > { %8852 = vmatprep.mubr.bf16.mxu0 %v11444_v1  ;;  %7728 = vrot.lane.b32.xlu1 %v7582_v62, %s11447_s20  ;;  %v7584_v0 = vpop.f32.mrb[105].mxu1  ;;  %v7623_v25 = vpop.f32.mrb[108].mxu0 }
 0xfc7   : > { %7730 = vrot.lane.b32.xlu0 %v7584_v0, %s11447_s20  ;;  %v7586_v37 = vpop.f32.mrb[106].mxu1  ;;  %v7625_v43 = vpop.f32.mrb[109].mxu0 }
 0xfc8   : > { %v7587_v44 = vpop.f32.mrb[107].mxu1  ;;  %v7627_v2 = vpop.f32.mrb[110].mxu0 }
 0xfc9   : > { %v7628_v23 = vpop.f32.mrb[111].mxu0 }
 0xfca   : > { %10545 = vmatmul.mubr.msk.bf16.vlgmr.msra.gmra.mrb[152].mxu1 %vm1073_vm8, %v10535_v57  ;;  %7732 = vrot.lane.b32.xlu1 %v7623_v25, %s11447_s20 }
 0xfcb   : > { %10547 = vmatmul.mubr.msk.bf16.vlgmr.msra.gmra.mrb[156].mxu0 %vm1073_vm8, %v10535_v57  ;;  %8862 = vmatpush1.bf16.msra.mxu1 %v12573_v41 }
 0xfcc   : > { %8903 = vmatpush1.bf16.msra.mxu0 %v12578_v38  ;;  %10553 = vmatprep.subr.msk.bf16.mxu1 %vm1077_vm7, %v12471_v29  ;;  %v10552_v29 = vld [vmem:[%s13322_s5 + $0x4] sm:$0x1] }
 0xfcd   : > { %10555 = vmatprep.subr.msk.bf16.mxu0 %vm1077_vm7, %v12473_v5  ;;  %8893 = vmatprep.mubr.bf16.mxu1 %v11444_v1  ;;  %v12772_v5 = vpop.permute.xlu1 %9515 }
 0xfce   : > { %8934 = vmatprep.mubr.bf16.mxu0 %v11444_v1  ;;  %7734 = vrot.lane.b32.xlu0 %v7625_v43, %s11447_s20 }
 0xfd2   : > { %10549 = vmatmul.mubr.msk.bf16.vlgmr.msra.gmra.mrb[156].mxu1 %vm1073_vm8, %v10535_v57 }
 0xfd3   : > { %10551 = vmatmul.mubr.msk.bf16.vlgmr.msra.gmra.mrb[160].mxu0 %vm1073_vm8, %v10535_v57  ;;  %9073 = vmatpush1.bf16.msra.mxu1 %v12507_v20 }
 0xfd4   : > { %9114 = vmatpush1.bf16.msra.mxu0 %v12514_v59  ;;  %10557 = vmatprep.subr.msk.bf16.mxu1 %vm1077_vm7, %v12495_v3 }
 0xfd5   : > { %10559 = vmatprep.subr.msk.bf16.mxu0 %vm1077_vm7, %v12497_v53  ;;  %9104 = vmatprep.mubr.bf16.mxu1 %v11444_v1 }
 0xfd6   : > { %9145 = vmatprep.mubr.bf16.mxu0 %v11444_v1 }
 0xfda   : > { %10554 = vmatmul.mubr.msk.bf16.vlgmr.msra.gmra.mrb[160].mxu1 %vm1073_vm8, %v10552_v29 }
 0xfdb   : > { %10556 = vmatmul.mubr.msk.bf16.vlgmr.msra.gmra.mrb[164].mxu0 %vm1073_vm8, %v10552_v29  ;;  %9155 = vmatpush1.bf16.msra.mxu1 %v12532_v31 }
 0xfdc   : > { %9196 = vmatpush1.bf16.msra.mxu0 %v12539_v4  ;;  %10561 = vmatprep.subr.msk.bf16.mxu1 %vm1077_vm7, %v12550_v56 }
 0xfdd   : > { %10563 = vmatprep.subr.msk.bf16.mxu0 %vm1077_vm7, %v12555_v6  ;;  %9186 = vmatprep.mubr.bf16.mxu1 %v11444_v1 }
 0xfde   : > { %9227 = vmatprep.mubr.bf16.mxu0 %v11444_v1 }
 0xfe2   : > { %10558 = vmatmul.mubr.msk.bf16.vlgmr.msra.gmra.mrb[164].mxu1 %vm1073_vm8, %v10552_v29 }
 0xfe3   : > { %10560 = vmatmul.mubr.msk.bf16.vlgmr.msra.gmra.mrb[168].mxu0 %vm1073_vm8, %v10552_v29  ;;  %9237 = vmatpush1.bf16.msra.mxu1 %v12553_v47  ;;  %v12774_v3 = vpop.permute.xlu1 %7712 }
 0xfe4   : > { %9278 = vmatpush1.bf16.msra.mxu0 %v12558_v7  ;;  %10565 = vmatprep.subr.msk.bf16.mxu1 %vm1077_vm7, %v12570_v35  ;;  %v12776_v53 = vpop.permute.xlu0 %7714 }
 0xfe5   : > { %10567 = vmatprep.subr.msk.bf16.mxu0 %vm1077_vm7, %v12575_v48  ;;  %9268 = vmatprep.mubr.bf16.mxu1 %v11444_v1 }
 0xfe6   : > { %9309 = vmatprep.mubr.bf16.mxu0 %v11444_v1 }
 0xfe8   : > { %v7717_v20 = vpop.permute.xlu1 %7716 }
 0xfe9   : > { %v12781_v59 = vsel %vm2869_vm5, %v12776_v53, %v7717_v20  ;;  %v7719_v31 = vpop.permute.xlu0 %7718 }
 0xfea   : > { %10562 = vmatmul.mubr.msk.bf16.vlgmr.msra.gmra.mrb[168].mxu1 %vm1073_vm8, %v10552_v29 }
 0xfeb   : > { %10564 = vmatmul.mubr.msk.bf16.vlgmr.msra.gmra.mrb[172].mxu0 %vm1073_vm8, %v10552_v29  ;;  %9319 = vmatpush1.bf16.msra.mxu1 %v12573_v41 }
 0xfec   : > { %9360 = vmatpush1.bf16.msra.mxu0 %v12578_v38  ;;  %9350 = vmatprep.mubr.bf16.mxu1 %v11444_v1  ;;  %v7721_v4 = vpop.permute.xlu1 %7720 }
 0xfed   : > { %9391 = vmatprep.mubr.bf16.mxu0 %v11444_v1  ;;  %v12785_v1 = vsel %vm2869_vm5, %v7717_v20, %v7719_v31  ;;  %v12789_v13 = vsel %vm2869_vm5, %v7719_v31, %v7721_v4 }
 0xff0   : > { %v7723_v11 = vpop.permute.xlu0 %7722 }
 0xff1   : > { %v12793_v19 = vsel %vm2869_vm5, %v7721_v4, %v7723_v11  ;;  %v7725_v55 = vpop.permute.xlu1 %7724 }
 0xff2   : > { %10566 = vmatmul.mubr.msk.bf16.vlgmr.msra.gmra.mrb[172].mxu1 %vm1073_vm8, %v10552_v29  ;;  %v12797_v9 = vsel %vm2869_vm5, %v7723_v11, %v7725_v55 }
 0xff3   : > { %10568 = vmatmul.mubr.msk.bf16.vlgmr.msra.gmra.mrb[176].mxu0 %vm1073_vm8, %v10552_v29 }
 0xff4   : > { %v7727_v39 = vpop.permute.xlu0 %7726 }
 0xff5   : > { %v12801_v56 = vsel %vm2869_vm5, %v7725_v55, %v7727_v39 }
0x1038   : > { %v7729_v24 = vpop.permute.xlu1 %7728 }
0x1039   : > { %v12805_v47 = vsel %vm2869_vm5, %v7727_v39, %v7729_v24  ;;  %v12807_v6 = vpop.permute.xlu0 %7730 }
0x103a   : > { %v12812_v7 = vsel %vm2869_vm5, %v7729_v24, %v12807_v6 }
0x1045   : > { %v7664_v27 = vpop.f32.mrb[108].mxu1 }
0x1046   : > { %7736 = vrot.lane.b32.xlu1 %v7664_v27, %s11447_s20  ;;  %v7666_v63 = vpop.f32.mrb[109].mxu1  ;;  %v7705_v34 = vpop.f32.mrb[112].mxu0 }
0x1047   : > { %7738 = vrot.lane.b32.xlu0 %v7666_v63, %s11447_s20  ;;  %v7668_v17 = vpop.f32.mrb[110].mxu1  ;;  %v7707_v50 = vpop.f32.mrb[113].mxu0 }
0x1048   : > { %v7669_v28 = vpop.f32.mrb[111].mxu1  ;;  %v7709_v22 = vpop.f32.mrb[114].mxu0 }
0x1049   : > { %v7710_v8 = vpop.f32.mrb[115].mxu0 }
0x104a   : > { %7740 = vrot.lane.b32.xlu1 %v7705_v34, %s11447_s20 }
0x104b   : > { %7742 = vrot.lane.b32.xlu0 %v7707_v50, %s11447_s20  ;;  %s13323_s20 = sld [smem:[#allocation26_spill]] }
0x104d   : > { %v7859_v33 = vpop.f32.mrb[112].mxu1 }
0x104e   : > { %8153 = vrot.lane.b32.xlu1 %v7859_v33, %s11448_s19  ;;  %v7861_v35 = vpop.f32.mrb[113].mxu1  ;;  %v7900_v60 = vpop.f32.mrb[116].mxu0 }
0x104f   : > { %8155 = vrot.lane.b32.xlu0 %v7861_v35, %s11448_s19  ;;  %v7863_v41 = vpop.f32.mrb[114].mxu1  ;;  %v7902_v48 = vpop.f32.mrb[117].mxu0 }
0x1050   : > { %v7864_v38 = vpop.f32.mrb[115].mxu1  ;;  %v7904_v52 = vpop.f32.mrb[118].mxu0 }
0x1051   : > { %v7905_v51 = vpop.f32.mrb[119].mxu0 }
0x1052   : > { %8157 = vrot.lane.b32.xlu1 %v7900_v60, %s11448_s19 }
0x1053   : > { %8159 = vrot.lane.b32.xlu0 %v7902_v48, %s11448_s19 }
0x1055   : > { %v7941_v49 = vpop.f32.mrb[116].mxu1 }
0x1056   : > { %8161 = vrot.lane.b32.xlu1 %v7941_v49, %s11448_s19  ;;  %v7943_v36 = vpop.f32.mrb[117].mxu1  ;;  %v7982_v42 = vpop.f32.mrb[120].mxu0 }
0x1057   : > { %8163 = vrot.lane.b32.xlu0 %v7943_v36, %s11448_s19  ;;  %v7945_v45 = vpop.f32.mrb[118].mxu1  ;;  %v7984_v40 = vpop.f32.mrb[121].mxu0 }
0x1058   : > { %v7946_v32 = vpop.f32.mrb[119].mxu1  ;;  %v7986_v16 = vpop.f32.mrb[122].mxu0 }
0x1059   : > { %v7987_v26 = vpop.f32.mrb[123].mxu0 }
0x105a   : > { %8165 = vrot.lane.b32.xlu1 %v7982_v42, %s11448_s19 }
0x105b   : > { %8167 = vrot.lane.b32.xlu0 %v7984_v40, %s11448_s19 }
0x105d   : > { %v8023_v21 = vpop.f32.mrb[120].mxu1 }
0x105e   : > { %v8064_v30 = vpop.f32.mrb[124].mxu0  ;;  %8169 = vrot.lane.b32.xlu1 %v8023_v21, %s11448_s19  ;;  %v8025_v54 = vpop.f32.mrb[121].mxu1 }
0x105f   : > { %8173 = vrot.lane.b32.xlu0 %v8064_v30, %s11448_s19  ;;  %v8027_v15 = vpop.f32.mrb[122].mxu1  ;;  %v8066_v58 = vpop.f32.mrb[125].mxu0 }
0x1060   : > { %v8028_v10 = vpop.f32.mrb[123].mxu1  ;;  %v8068_v46 = vpop.f32.mrb[126].mxu0 }
0x1061   : > { %v8069_v61 = vpop.f32.mrb[127].mxu0 }
0x1062   : > { %8175 = vrot.lane.b32.xlu1 %v8066_v58, %s11448_s19 }
0x1063   : > { %8171 = vrot.lane.b32.xlu0 %v8025_v54, %s11448_s19 }
0x1065   : > { %v8105_v57 = vpop.f32.mrb[124].mxu1 }
0x1066   : > { %v8146_v62 = vpop.f32.mrb[128].mxu0  ;;  %v8107_v0 = vpop.f32.mrb[125].mxu1 }
0x1067   : > { %v8148_v25 = vpop.f32.mrb[129].mxu0  ;;  %8177 = vrot.lane.b32.xlu0 %v8105_v57, %s11448_s19  ;;  %v8109_v37 = vpop.f32.mrb[126].mxu1 }
0x1068   : > { %8183 = vrot.lane.b32.xlu1 %v8148_v25, %s11448_s19  ;;  %v8110_v43 = vpop.f32.mrb[127].mxu1  ;;  %v8150_v44 = vpop.f32.mrb[130].mxu0 }
0x1069   : > { %v8151_v2 = vpop.f32.mrb[131].mxu0 }
0x106b   : > { %8181 = vrot.lane.b32.xlu0 %v8146_v62, %s11448_s19 }
0x106c   : > { %8179 = vrot.lane.b32.xlu1 %v8107_v0, %s11448_s19  ;;  %s724_s19 = sand.u32 1, %s13323_s20  }
0x106d   : > { %v12834_v23 = vpop.f32.mrb[128].mxu1  ;;  %s9657_s23 = scalar_lea.sflag [#allocation5], %s724_s19 }
0x106e   : > { %v12836_v29 = vpop.f32.mrb[129].mxu1  ;;  %v12838_v20 = vpop.f32.mrb[132].mxu0 }
0x106f   : > { %v8304_v31 = vpop.f32.mrb[130].mxu1  ;;  %v12840_v4 = vpop.f32.mrb[133].mxu0 }
0x1070   : > { %v8305_v11 = vpop.f32.mrb[131].mxu1  ;;  %v8345_v55 = vpop.f32.mrb[134].mxu0 }
0x1071   : > { %v8346_v39 = vpop.f32.mrb[135].mxu0 }
0x1075   : > { %v12842_v24 = vpop.f32.mrb[132].mxu1 }
0x1076   : > { %v12844_v27 = vpop.f32.mrb[133].mxu1  ;;  %v12846_v63 = vpop.f32.mrb[136].mxu0 }
0x1077   : > { %v8386_v34 = vpop.f32.mrb[134].mxu1  ;;  %v12848_v17 = vpop.f32.mrb[137].mxu0 }
0x1078   : > { %v8387_v50 = vpop.f32.mrb[135].mxu1  ;;  %v8427_v28 = vpop.f32.mrb[138].mxu0 }
0x1079   : > { %v8428_v22 = vpop.f32.mrb[139].mxu0 }
0x107d   : > { %v12850_v8 = vpop.f32.mrb[136].mxu1 }
0x107e   : > { %v12852_v33 = vpop.f32.mrb[137].mxu1  ;;  %v12854_v35 = vpop.f32.mrb[140].mxu0 }
0x107f   : > { %v8468_v60 = vpop.f32.mrb[138].mxu1  ;;  %v12856_v41 = vpop.f32.mrb[141].mxu0 }
0x1080   : > { %v8469_v48 = vpop.f32.mrb[139].mxu1  ;;  %v8509_v38 = vpop.f32.mrb[142].mxu0 }
0x1081   : > { %v8510_v52 = vpop.f32.mrb[143].mxu0 }
0x1085   : > { %v12858_v51 = vpop.f32.mrb[140].mxu1 }
0x1086   : > { %v12860_v49 = vpop.f32.mrb[141].mxu1  ;;  %v12862_v36 = vpop.f32.mrb[144].mxu0 }
0x1087   : > { %v8550_v42 = vpop.f32.mrb[142].mxu1  ;;  %v12864_v45 = vpop.f32.mrb[145].mxu0 }
0x1088   : > { %v8551_v40 = vpop.f32.mrb[143].mxu1  ;;  %v8591_v32 = vpop.f32.mrb[146].mxu0 }
0x1089   : > { %v8592_v16 = vpop.f32.mrb[147].mxu0 }
0x108d   : > { %v8649_v26 = vpop.f32.mrb[144].mxu1 }
0x108e   : > { %8943 = vrot.lane.b32.xlu0 %v8649_v26, %s11449_s28  ;;  %v8651_v21 = vpop.f32.mrb[145].mxu1  ;;  %v8690_v30 = vpop.f32.mrb[148].mxu0 }
0x108f   : > { %v8653_v54 = vpop.f32.mrb[146].mxu1  ;;  %8947 = vrot.lane.b32.xlu1 %v8690_v30, %s11449_s28  ;;  %v8692_v15 = vpop.f32.mrb[149].mxu0 }
0x1090   : > { %v8654_v58 = vpop.f32.mrb[147].mxu1  ;;  %v8694_v10 = vpop.f32.mrb[150].mxu0 }
0x1091   : > { %v8695_v46 = vpop.f32.mrb[151].mxu0 }
0x1092   : > { %8945 = vrot.lane.b32.xlu0 %v8651_v21, %s11449_s28  ;;  %v12885_v46 = vpop.permute.xlu1 %7732 }
0x1095   : > { %v8731_v61 = vpop.f32.mrb[148].mxu1 }
0x1096   : > { %8949 = vrot.lane.b32.xlu0 %v8692_v15, %s11449_s28  ;;  %8951 = vrot.lane.b32.xlu1 %v8731_v61, %s11449_s28  ;;  %v8733_v57 = vpop.f32.mrb[149].mxu1  ;;  %v8772_v62 = vpop.f32.mrb[152].mxu0 }
0x1097   : > { %v8735_v0 = vpop.f32.mrb[150].mxu1  ;;  %v8774_v25 = vpop.f32.mrb[153].mxu0 }
0x1098   : > { %v8736_v37 = vpop.f32.mrb[151].mxu1  ;;  %v8776_v43 = vpop.f32.mrb[154].mxu0 }
0x1099   : > { %v8777_v44 = vpop.f32.mrb[155].mxu0  ;;  %v12887_v61 = vpop.permute.xlu0 %7734 }
0x109a   : > { %8955 = vrot.lane.b32.xlu1 %v8772_v62, %s11449_s28  ;;  %8953 = vrot.lane.b32.xlu0 %v8733_v57, %s11449_s28 }
0x109d   : > { %v8813_v2 = vpop.f32.mrb[152].mxu1 }
0x109e   : > { %8957 = vrot.lane.b32.xlu0 %v8774_v25, %s11449_s28  ;;  %8959 = vrot.lane.b32.xlu1 %v8813_v2, %s11449_s28  ;;  %v8815_v31 = vpop.f32.mrb[153].mxu1  ;;  %v8854_v11 = vpop.f32.mrb[156].mxu0 }
0x109f   : > { %v8817_v55 = vpop.f32.mrb[154].mxu1  ;;  %v8856_v39 = vpop.f32.mrb[157].mxu0 }
0x10a0   : > { %v8818_v34 = vpop.f32.mrb[155].mxu1  ;;  %v8858_v50 = vpop.f32.mrb[158].mxu0 }
0x10a1   : > { %v8859_v28 = vpop.f32.mrb[159].mxu0 }
0x10a2   : > { %8963 = vrot.lane.b32.xlu1 %v8854_v11, %s11449_s28  ;;  %8961 = vrot.lane.b32.xlu0 %v8815_v31, %s11449_s28 }
0x10a5   : > { %v8895_v22 = vpop.f32.mrb[156].mxu1 }
0x10a6   : > { %8965 = vrot.lane.b32.xlu0 %v8856_v39, %s11449_s28  ;;  %8967 = vrot.lane.b32.xlu1 %v8895_v22, %s11449_s28  ;;  %v8897_v60 = vpop.f32.mrb[157].mxu1  ;;  %v8936_v48 = vpop.f32.mrb[160].mxu0 }
0x10a7   : > { %v8899_v38 = vpop.f32.mrb[158].mxu1  ;;  %v8938_v52 = vpop.f32.mrb[161].mxu0 }
0x10a8   : > { %v8900_v42 = vpop.f32.mrb[159].mxu1  ;;  %v8940_v40 = vpop.f32.mrb[162].mxu0 }
0x10a9   : > { %v8941_v32 = vpop.f32.mrb[163].mxu0 }
0x10aa   : > { %8971 = vrot.lane.b32.xlu1 %v8936_v48, %s11449_s28  ;;  %8969 = vrot.lane.b32.xlu0 %v8897_v60, %s11449_s28 }
0x10ad   : > { %v9106_v16 = vpop.f32.mrb[160].mxu1 }
0x10ae   : > { %8973 = vrot.lane.b32.xlu1 %v8938_v52, %s11449_s28  ;;  %9400 = vrot.lane.b32.xlu0 %v9106_v16, %s11450_s30  ;;  %v9108_v26 = vpop.f32.mrb[161].mxu1  ;;  %v9147_v21 = vpop.f32.mrb[164].mxu0  ;;  %s9840_s28 = sshll.u32 %s724_s19, 4 }
0x10af   : > { %v9110_v30 = vpop.f32.mrb[162].mxu1  ;;  %v9149_v54 = vpop.f32.mrb[165].mxu0 }
0x10b0   : > { %v9111_v15 = vpop.f32.mrb[163].mxu1  ;;  %v9151_v58 = vpop.f32.mrb[166].mxu0 }
0x10b1   : > { %v9152_v10 = vpop.f32.mrb[167].mxu0 }
0x10b2   : > { %9404 = vrot.lane.b32.xlu1 %v9147_v21, %s11450_s30  ;;  %9402 = vrot.lane.b32.xlu0 %v9108_v26, %s11450_s30  ;;  %v7758_v26 = vsel %vm2869_vm5, %v12774_v3, %v12776_v53 }
0x10b5   : > { %v9188_v57 = vpop.f32.mrb[164].mxu1 }
0x10b6   : > { %9406 = vrot.lane.b32.xlu0 %v9149_v54, %s11450_s30  ;;  %9408 = vrot.lane.b32.xlu1 %v9188_v57, %s11450_s30  ;;  %v9190_v62 = vpop.f32.mrb[165].mxu1  ;;  %v9229_v0 = vpop.f32.mrb[168].mxu0 }
0x10b7   : > { %v9192_v25 = vpop.f32.mrb[166].mxu1  ;;  %v9231_v37 = vpop.f32.mrb[169].mxu0 }
0x10b8   : > { %v12891_v43 = vpop.permute.xlu1 %7736  ;;  %v9193_v44 = vpop.f32.mrb[167].mxu1 }
0x10b9   : > { %v7739_v2 = vpop.permute.xlu0 %7738  ;;  %v9233_v31 = vpop.f32.mrb[170].mxu0 }
0x10ba   : > { %v12896_v11 = vsel %vm2869_vm5, %v12891_v43, %v7739_v2  ;;  %9412 = vrot.lane.b32.xlu1 %v9229_v0, %s11450_s30  ;;  %9410 = vrot.lane.b32.xlu0 %v9190_v62, %s11450_s30  ;;  %v9234_v55 = vpop.f32.mrb[171].mxu0 }
0x10bc   : > { %v7741_v39 = vpop.permute.xlu1 %7740 }
0x10bd   : > { %v12902_v34 = vsel %vm2869_vm5, %v7739_v2, %v7741_v39  ;;  %v12904_v50 = vpop.permute.xlu0 %7742  ;;  %v9270_v28 = vpop.f32.mrb[168].mxu1 }
0x10be   : > { %v12909_v22 = vsel %vm2869_vm5, %v7741_v39, %v12904_v50  ;;  %9414 = vrot.lane.b32.xlu0 %v9231_v37, %s11450_s30  ;;  %9416 = vrot.lane.b32.xlu1 %v9270_v28, %s11450_s30  ;;  %v9272_v60 = vpop.f32.mrb[169].mxu1  ;;  %v9311_v48 = vpop.f32.mrb[172].mxu0 }
0x10bf   : > { %v9274_v38 = vpop.f32.mrb[170].mxu1  ;;  %v9313_v52 = vpop.f32.mrb[173].mxu0 }
0x10c0   : > { %v12913_v42 = vpop.permute.xlu1 %8153  ;;  %v9275_v40 = vpop.f32.mrb[171].mxu1 }
0x10c1   : > { %v8156_v32 = vpop.permute.xlu0 %8155  ;;  %v9315_v16 = vpop.f32.mrb[174].mxu0 }
0x10c2   : > { %v8199_v21 = vsel %vm3018_vm4, %v12913_v42, %v8156_v32  ;;  %9420 = vrot.lane.b32.xlu1 %v9311_v48, %s11450_s30  ;;  %9418 = vrot.lane.b32.xlu0 %v9272_v60, %s11450_s30  ;;  %v9316_v30 = vpop.f32.mrb[175].mxu0 }
0x10c3   : > { %v8246_v54 = vadd.f32 %v8199_v21, %v7758_v26 }
0x10c4   : > { %v8158_v15 = vpop.permute.xlu1 %8157 }
0x10c5   : > { %v8198_v58 = vsel %vm3018_vm4, %v8156_v32, %v8158_v15  ;;  %v8160_v10 = vpop.permute.xlu0 %8159  ;;  %v9352_v57 = vpop.f32.mrb[172].mxu1  ;;  %v12927_v62 = vadd.f32 %v12836_v29, %v8246_v54 }
0x10c6   : > { %v8247_v53 = vadd.f32 %v8198_v58, %v12781_v59  ;;  %v8197_v0 = vsel %vm3018_vm4, %v8158_v15, %v8160_v10  ;;  %9422 = vrot.lane.b32.xlu0 %v9313_v52, %s11450_s30  ;;  %9424 = vrot.lane.b32.xlu1 %v9352_v57, %s11450_s30  ;;  %v9393_v25 = vpop.f32.mrb[176].mxu0  ;;  %v9354_v37 = vpop.f32.mrb[173].mxu1 }
0x10c7   : > { %v8248_v44 = vadd.f32 %v8197_v0, %v12785_v1  ;;  %v9395_v2 = vpop.f32.mrb[177].mxu0  ;;  %v9356_v31 = vpop.f32.mrb[174].mxu1 }
0x10c8   : > { %v8162_v55 = vpop.permute.xlu1 %8161  ;;  %v9357_v39 = vpop.f32.mrb[175].mxu1  ;;  %v12936_v29 = vadd.f32 %v12838_v20, %v8247_v53 }
0x10c9   : > { %v8196_v59 = vsel %vm3018_vm4, %v8160_v10, %v8162_v55  ;;  %v8164_v28 = vpop.permute.xlu0 %8163  ;;  %v9397_v60 = vpop.f32.mrb[178].mxu0  ;;  %v12941_v48 = vadd.f32 %v12840_v4, %v8248_v44  ;;  %v7759_v44 = vsel %vm2869_vm5, %v12904_v50, %v12774_v3 }
0x10ca   : > { %v8249_v38 = vadd.f32 %v8196_v59, %v12789_v13  ;;  %v8195_v1 = vsel %vm3018_vm4, %v8162_v55, %v8164_v28  ;;  %9430 = vrot.lane.b32.xlu1 %v9395_v2, %s11450_s30  ;;  %9426 = vrot.lane.b32.xlu0 %v9354_v37, %s11450_s30  ;;  %v9398_v52 = vpop.f32.mrb[179].mxu0 }
0x10cb   : > { %v8250_v20 = vadd.f32 %v8195_v1, %v12793_v19 }
0x10cc   : > { %v8166_v40 = vpop.permute.xlu1 %8165  ;;  %v12950_v32 = vadd.f32 %v12842_v24, %v8249_v38 }
0x10cd   : > { %v8194_v4 = vsel %vm3018_vm4, %v8164_v28, %v8166_v40  ;;  %v8168_v16 = vpop.permute.xlu0 %8167  ;;  %v12955_v13 = vadd.f32 %v12844_v27, %v8250_v20 }
0x10ce   : > { %v8251_v26 = vadd.f32 %v8194_v4, %v12797_v9  ;;  %v8193_v21 = vsel %vm3018_vm4, %v8166_v40, %v8168_v16  ;;  %9428 = vrot.lane.b32.xlu1 %v9393_v25, %s11450_s30  ;;  %s726_s30 = scalar_lea.vmem [#allocation18], %s9840_s28 }
0x10cf   : > { %v8252_v19 = vadd.f32 %v8193_v21, %v12801_v56  ;;  %v7748_v56 = vsel %vm2869_vm5, %v12885_v46, %v12887_v61  ;;  %s9671_s3 = sshll.u32 %s726_s30, 4  ;;  %s13194_s3 = int_to_ptr.vmem [resolvable:$true] %s9671_s3 }
0x10d0   : > { %v8170_v30 = vpop.permute.xlu1 %8169  ;;  %v12963_v24 = vadd.f32 %v12846_v63, %v8251_v26  ;;  %s11345_s21 = scalar_lea.vmem %s13194_s3, 256  ;;  %p11352_p10 = scmp.lt.s32.totalorder %s13194_s3, %s11350_s24 }
0x10d1   : > { %v8192_v54 = vsel %vm3018_vm4, %v8168_v16, %v8170_v30  ;;  %v8174_v15 = vpop.permute.xlu0 %8173  ;;  %v12968_v27 = vadd.f32 %v12848_v17, %v8252_v19  ;;  %v7749_v17 = vsel %vm2869_vm5, %v12807_v6, %v12885_v46  ;;  %p11346_p6 = scmp.ne.s32.totalorder %s13194_s3, %s11345_s21  ;;  %p11353_p2 = scmp.lt.s32.totalorder %s11351_s6, %s11345_s21 }
0x10d2   : > { %v8253_v9 = vadd.f32 %v8192_v54, %v12805_v47 }
0x10d3   : > { %p11347_p5 = pnand %p11346_p6, %p13326_p9  ;;  %p11354_p3 = por %p11353_p2, %p11352_p10 }
0x10d4   : > { %v8176_v58 = vpop.permute.xlu1 %8175  ;;  %v12972_v10 = vadd.f32 %v12850_v8, %v8253_v9  ;;  %v11451_v9 = vmov 1966171168  }
0x10d5   : > { %v8189_v63 = vsel %vm3018_vm4, %v8174_v15, %v8176_v58  ;;  %v8172_v57 = vpop.permute.xlu0 %8171  ;;  %p11348_p0 = pneg %p11347_p5 }
0x10d6   : > { %v8256_v53 = vadd.f32 %v8189_v63, %v7748_v56  ;;  %v8190_v47 = vsel %vm3018_vm4, %v8172_v57, %v8174_v15  ;;  %v8191_v8 = vsel %vm3018_vm4, %v8170_v30, %v8172_v57 }
0x10d7   : > { %v8254_v0 = vadd.f32 %v8191_v8, %v12812_v7  ;;  %v8255_v25 = vadd.f32 %v8190_v47, %v7749_v17  ;;  %v7747_v7 = vsel %vm2869_vm5, %v12887_v61, %v12891_v43  ;;  %p11355_p4 = pnand %p11354_p3, %p11348_p0 }
0x10d8   : > { %v12990_v37 = vadd.f32 %v12856_v41, %v8256_v53 }
0x10d9   : > { %v8178_v2 = vpop.permute.xlu0 %8177  ;;  %v12997_v6 = vadd.f32 %v12852_v33, %v8254_v0  ;;  %v13000_v46 = vadd.f32 %v12854_v35, %v8255_v25  ;;  %v7804_v33 = vsel %vm2179_vm15, %v7759_v44, 0.0 }
0x10da   : > { %v8184_v31 = vpop.permute.xlu1 %8183  ;;  %v8188_v41 = vsel %vm3018_vm4, %v8176_v58, %v8178_v2  ;;  %v9559_v58 = vunpack.c.l.s4 %v11451_v9 }
0x10db   : > { %v8200_v3 = vsel %vm3018_vm4, %v8184_v31, %v12913_v42  ;;  %v8257_v50 = vadd.f32 %v8188_v41, %v7747_v7  ;;  %v13070_v41 = vrot.slane %v12772_v5, %v11903_v18 }
0x10dc   : > { %v8229_v35 = vsel %vm2242_vm14, %v8200_v3, 0.0  ;;  %v9560_v53 = vunpack.c.0.s8 %v9559_v58 }
0x10dd   : > { %v8245_v55 = vadd.f32 %v8229_v35, %v7804_v33  ;;  %v8182_v39 = vpop.permute.xlu0 %8181  ;;  %v13016_v59 = vadd.f32 %v12858_v51, %v8257_v50 }
0x10de   : > { %v8185_v61 = vsel %vm3018_vm4, %v8182_v39, %v8184_v31  ;;  %v8180_v43 = vpop.permute.xlu1 %8179  ;;  %v13073_v50 = vsub.s32 %v9560_v53, %v11891_v14 }
0x10df   : > { %v8260_v28 = vadd.f32 %v8185_v61, %v12909_v22  ;;  %v8186_v42 = vsel %vm3018_vm4, %v8180_v43, %v8182_v39  ;;  %v8187_v60 = vsel %vm3018_vm4, %v8178_v2, %v8180_v43  ;;  %v8594_v38 = vadd.f32 %v12834_v23, %v8245_v55 }
0x10e0   : > { %v8258_v1 = vadd.f32 %v8187_v60, %v12896_v11  ;;  %v8259_v52 = vadd.f32 %v8186_v42, %v12902_v34 }
0x10e1   : > { %v13029_v51 = vadd.f32 %v12864_v45, %v8260_v28 }
0x10e2   : > { %v13032_v20 = vadd.f32 %v12860_v49, %v8258_v1  ;;  %v13035_v22 = vadd.f32 %v12862_v36, %v8259_v52 }
0x1100   : > { %v13037_v40 = vpop.permute.xlu0 %8943 }
0x1101   : > { %v8948_v4 = vpop.permute.xlu1 %8947 }
0x1104   : > { %v8946_v16 = vpop.permute.xlu0 %8945 }
0x1105   : > { %v8988_v57 = vsel %vm2361_vm0, %v8946_v16, %v8948_v4  ;;  %v8989_v17 = vsel %vm2361_vm0, %v13037_v40, %v8946_v16 }
0x1106   : > { %v9051_v47 = vadd.f32 %v8989_v17, %v8594_v38  ;;  %v9052_v8 = vadd.f32 %v8988_v57, %v12927_v62 }
0x1108   : > { %v8950_v26 = vpop.permute.xlu0 %8949  ;;  %v8952_v21 = vpop.permute.xlu1 %8951 }
0x1109   : > { %v8987_v0 = vsel %vm2361_vm0, %v8948_v4, %v8950_v26  ;;  %v8986_v25 = vsel %vm2361_vm0, %v8950_v26, %v8952_v21 }
0x110a   : > { %v9053_v33 = vadd.f32 %v8987_v0, %v12936_v29  ;;  %v9054_v35 = vadd.f32 %v8986_v25, %v12941_v48 }
0x110c   : > { %v8956_v23 = vpop.permute.xlu1 %8955  ;;  %v8954_v19 = vpop.permute.xlu0 %8953 }
0x110d   : > { %v8984_v55 = vsel %vm2361_vm0, %v8954_v19, %v8956_v23  ;;  %v8985_v39 = vsel %vm2361_vm0, %v8952_v21, %v8954_v19 }
0x110e   : > { %v9055_v60 = vadd.f32 %v8985_v39, %v12950_v32  ;;  %v9056_v38 = vadd.f32 %v8984_v55, %v12955_v13 }
0x1110   : > { %v8958_v11 = vpop.permute.xlu0 %8957  ;;  %v8960_v30 = vpop.permute.xlu1 %8959 }
0x1111   : > { %v8983_v1 = vsel %vm2361_vm0, %v8956_v23, %v8958_v11  ;;  %v8982_v52 = vsel %vm2361_vm0, %v8958_v11, %v8960_v30 }
0x1112   : > { %v9057_v57 = vadd.f32 %v8983_v1, %v12963_v24  ;;  %v9058_v11 = vadd.f32 %v8982_v52, %v12968_v27 }
0x1114   : > { %v13039_v34 = vpop.permute.xlu1 %8963  ;;  %v8962_v45 = vpop.permute.xlu0 %8961 }
0x1115   : > { %v8980_v17 = vsel %vm2361_vm0, %v8962_v45, %v13039_v34  ;;  %v8981_v53 = vsel %vm2361_vm0, %v8960_v30, %v8962_v45 }
0x1116   : > { %v9059_v45 = vadd.f32 %v8981_v53, %v12972_v10 }
0x1118   : > { %v13041_v54 = vpop.permute.xlu0 %8965  ;;  %v13043_v49 = vpop.permute.xlu1 %8967 }
0x111c   : > { %v13045_v15 = vpop.permute.xlu1 %8971  ;;  %v13047_v36 = vpop.permute.xlu0 %8969 }
0x1120   : > { %v13049_v56 = vpop.permute.xlu1 %8973  ;;  %v13051_v63 = vpop.permute.xlu0 %9400 }
0x1124   : > { %v9405_v44 = vpop.permute.xlu1 %9404  ;;  %v9403_v2 = vpop.permute.xlu0 %9402 }
0x1125   : > { %v9445_v7 = vsel %vm2425_vm1, %v9403_v2, %v9405_v44  ;;  %v9446_v31 = vsel %vm2425_vm1, %v13051_v63, %v9403_v2  ;;  %v7331_v2 = vadd.s32 1920, %v12072_v12 }
0x1126   : > { %v9496_v62 = vadd.f32 %v9446_v31, %v9051_v47  ;;  %v9497_v3 = vadd.f32 %v9445_v7, %v9052_v8 }
0x1127   : > { %vm9018_vm7 = vcmp.lt.s32.totalorder %v7331_v2, 2047  ;;  %vm9463_vm8 = vcmp.lt.s32.totalorder %v7331_v2, 2046 }
0x1128   : > { %v9522_v61 = vadd.f32 %v13070_v41, %v9496_v62  ;;  %v9523_v18 = vadd.f32 %v13070_v41, %v9497_v3  ;;  %v9407_v5 = vpop.permute.xlu0 %9406  ;;  %v9409_v43 = vpop.permute.xlu1 %9408  ;;  %v9060_v3 = vadd.f32 %v8980_v17, %v12997_v6 }
0x1129   : > { %v9444_v14 = vsel %vm2425_vm1, %v9405_v44, %v9407_v5  ;;  %v9443_v29 = vsel %vm2425_vm1, %v9407_v5, %v9409_v43 }
0x112a   : > { %v9554_v28 = vcombine.low %v9522_v61, %v9523_v18  ;;  %v9498_v48 = vadd.f32 %v9444_v14, %v9053_v33  ;;  %v9499_v42 = vadd.f32 %v9443_v29, %v9054_v35  ;;  %v8979_v33 = vsel %vm2361_vm0, %v13039_v34, %v13041_v54 }
0x112b   : > { %v8978_v35 = vsel %vm2361_vm0, %v13041_v54, %v13043_v49  ;;  %v9061_v54 = vadd.f32 %v8979_v33, %v13000_v46 }
0x112c   : > { %v9564_v4 = vrot.slane %v9554_v28, %v13073_v50  ;;  %v9524_v16 = vadd.f32 %v13070_v41, %v9498_v48  ;;  %v9525_v26 = vadd.f32 %v13070_v41, %v9499_v42  ;;  %v9413_v21 = vpop.permute.xlu1 %9412  ;;  %v9411_v19 = vpop.permute.xlu0 %9410  ;;  %v9062_v28 = vadd.f32 %v8978_v35, %v12990_v37 }
0x112d   : > { %v9441_v9 = vsel %vm2425_vm1, %v9411_v19, %v9413_v21  ;;  %v9442_v32 = vsel %vm2425_vm1, %v9409_v43, %v9411_v19  ;;  %v8990_v48 = vsel %vm2361_vm0, %v13049_v56, %v13037_v40  ;;  %v8977_v37 = vsel %vm2361_vm0, %v13043_v49, %v13047_v36 }
0x112e   : > { %v9555_v13 = vcombine.low %v9524_v16, %v9525_v26  ;;  %v9500_v58 = vadd.f32 %v9442_v32, %v9055_v60  ;;  %v9501_v23 = vadd.f32 %v9441_v9, %v9056_v38  ;;  %v8976_v19 = vsel %vm2361_vm0, %v13047_v36, %v13045_v15 }
0x112f   : > { %v9050_v9 = vsel %vm9018_vm7, %v8990_v48, 0.0  ;;  %v8975_v36 = vsel %vm2361_vm0, %v13045_v15, %v13049_v56 }
0x1130   : > { %v9571_v47 = vrot.slane %v9555_v13, %v13073_v50  ;;  %v9526_v8 = vadd.f32 %v13070_v41, %v9500_v58  ;;  %v9527_v0 = vadd.f32 %v13070_v41, %v9501_v23  ;;  %v9415_v25 = vpop.permute.xlu0 %9414  ;;  %v9417_v44 = vpop.permute.xlu1 %9416  ;;  %v9065_v2 = vadd.f32 %v8975_v36, %v13035_v22 }
0x1131   : > { %v9440_v24 = vsel %vm2425_vm1, %v9413_v21, %v9415_v25  ;;  %v9439_v27 = vsel %vm2425_vm1, %v9415_v25, %v9417_v44 }
0x1132   : > { %v9586_v7 = vcombine.low %v9564_v4, %v9571_v47  ;;  %v9556_v31 = vcombine.low %v9526_v8, %v9527_v0  ;;  %v9502_v62 = vadd.f32 %v9440_v24, %v9057_v57  ;;  %v9503_v30 = vadd.f32 %v9439_v27, %v9058_v11 }
0x1133   : > { %v9063_v11 = vadd.f32 %v8977_v37, %v13016_v59  ;;  %v9066_v47 = vadd.f32 %v9050_v9, %v13029_v51  ;;  %v9064_v59 = vadd.f32 %v8976_v19, %v13032_v20 }
0x1134   : > { %v9594_v55 = vrot.slane %v9586_v7, %v13073_v50  ;;  %v9578_v39 = vrot.slane %v9556_v31, %v13073_v50  ;;  %v9528_v61 = vadd.f32 %v13070_v41, %v9502_v62  ;;  %v9529_v10 = vadd.f32 %v13070_v41, %v9503_v30  ;;  %v9421_v6 = vpop.permute.xlu1 %9420  ;;  %v9419_v18 = vpop.permute.xlu0 %9418 }
0x1135   : > { %v9437_v5 = vsel %vm2425_vm1, %v9419_v18, %v9421_v6  ;;  %v9438_v34 = vsel %vm2425_vm1, %v9417_v44, %v9419_v18 }
0x1136   : > { %v9557_v43 = vcombine.low %v9528_v61, %v9529_v10  ;;  %v9504_v14 = vadd.f32 %v9438_v34, %v9059_v45  ;;  %v9505_v29 = vadd.f32 %v9437_v5, %v9060_v3 }
0x1138   : > { %v9585_v42 = vrot.slane %v9557_v43, %v13073_v50  ;;  %v9530_v60 = vadd.f32 %v13070_v41, %v9504_v14  ;;  %v9531_v38 = vadd.f32 %v13070_v41, %v9505_v29  ;;  %v9423_v1 = vpop.permute.xlu0 %9422  ;;  %v9425_v52 = vpop.permute.xlu1 %9424 }
0x1139   : > { %v9436_v46 = vsel %vm2425_vm1, %v9421_v6, %v9423_v1  ;;  %v9435_v4 = vsel %vm2425_vm1, %v9423_v1, %v9425_v52 }
0x113a   : > { %v9587_v40 = vcombine.low %v9578_v39, %v9585_v42  ;;  %v9603_v16 = vcombine.low %v9530_v60, %v9531_v38  ;;  %v9506_v26 = vadd.f32 %v9436_v46, %v9061_v54  ;;  %v9507_v21 = vadd.f32 %v9435_v4, %v9062_v28 }
0x113c   : > { %v9601_v49 = vrot.slane %v9587_v40, %v13073_v50  ;;  %v9613_v32 = vrot.slane %v9603_v16, %v13073_v50  ;;  %v9532_v13 = vadd.f32 %v13070_v41, %v9506_v26  ;;  %v9533_v58 = vadd.f32 %v13070_v41, %v9507_v21  ;;  %v9431_v23 = vpop.permute.xlu1 %9430  ;;  %v9427_v57 = vpop.permute.xlu0 %9426 }
0x113d   : > { %v9447_v17 = vsel %vm2425_vm1, %v9431_v23, %v13051_v63  ;;  %v9434_v53 = vsel %vm2425_vm1, %v9425_v52, %v9427_v57 }
0x113e   : > { %v9604_v8 = vcombine.low %v9532_v13, %v9533_v58  ;;  %v9495_v0 = vsel %vm9463_vm8, %v9447_v17, 0.0  ;;  %v9602_v25 = vcombine.low %v9594_v55, %v9601_v49  ;;  %v9508_v44 = vadd.f32 %v9434_v53, %v9063_v11 }
0x113f   : > { %v9511_v15 = vadd.f32 %v9495_v0, %v9066_v47 }
0x1140   : > { %v9620_v24 = vrot.slane %v9604_v8, %v13073_v50  ;;  %v9429_v56 = vpop.permute.xlu1 %9428  ;;  %9654 = vst [vmem:[%s726_s30] sm:$0xff] %v9602_v25  ;;  %v9534_v20 = vadd.f32 %v13070_v41, %v9508_v44 }
0x1141   : > { %v9432_v63 = vsel %vm2425_vm1, %v9429_v56, %v9431_v23  ;;  %v9433_v51 = vsel %vm2425_vm1, %v9427_v57, %v9429_v56  ;;  %v9537_v62 = vadd.f32 %v13070_v41, %v9511_v15 }
0x1142   : > { %v9635_v27 = vcombine.low %v9613_v32, %v9620_v24  ;;  %v9509_v7 = vadd.f32 %v9433_v51, %v9064_v59  ;;  %v9510_v31 = vadd.f32 %v9432_v63, %v9065_v2 }
0x1144   : > { %v9643_v22 = vrot.slane %v9635_v27, %v13073_v50  ;;  %v9535_v30 = vadd.f32 %v13070_v41, %v9509_v7  ;;  %v9536_v45 = vadd.f32 %v13070_v41, %v9510_v31 }
0x1146   : > { %v9605_v3 = vcombine.low %v9534_v20, %v9535_v30  ;;  %v9606_v33 = vcombine.low %v9536_v45, %v9537_v62 }
0x1148   : > { %v9627_v12 = vrot.slane %v9605_v3, %v13073_v50  ;;  %v9634_v35 = vrot.slane %v9606_v33, %v13073_v50 }
0x114a   : > { %v9636_v55 = vcombine.low %v9627_v12, %v9634_v35 }
0x114c   : > { %v9650_v39 = vrot.slane %v9636_v55, %v13073_v50 }
0x114e   : > { %v9651_v61 = vcombine.low %v9643_v22, %v9650_v39 }
0x1150   : > { %9655 = vst [vmem:[%s726_s30 + $0x8] sm:$0xff] %v9651_v61 }
0x1151   : > { %11358 = shalt.err (!%p11355_p4)
}
0x1152   : > { %s11359_s20 = scalar_lea.hbm %s13192_s1, 256  ;;  %s11363_s30 = scalar_lea.hbm %s13325_s2, 512 }
0x1153   : > { %p11360_p12 = scmp.ne.s32.totalorder %s13192_s1, %s11359_s20  ;;  %p11364_p11 = scmp.lt.u32.totalorder %s13192_s1, %s13325_s2 }
0x1154   : > { %p11365_p13 = scmp.lt.u32.totalorder %s11363_s30, %s11359_s20  ;;  %p11367_p6 = scmp.lt.u32.totalorder %s11359_s20, %s13192_s1 }
0x1155   : > { %p11361_p7 = pnand %p11360_p12, %p13326_p9 }
0x1156   : > { %p11366_p1 = por %p11365_p13, %p11364_p11 }
0x1157   : > { %p11362_p8 = pneg %p11361_p7 }
0x1158   : > { %p11368_p5 = por %p11367_p6, %p11366_p1 }
0x115a   : > { %p11369_p0 = pnand %p11368_p5, %p11362_p8 }
0x115c   : > { %11372 = shalt.err (!%p11369_p0)
}
0x115d   : > { %10878 = dma.vmem_to_hbm [thread:$0]  (%p13326_p9), %s13194_s3, 256, %s13192_s1, %s9657_s23  }
0x115e PF: > { %s13327_s11 = sld [smem:[#allocation28_spill]]  ;;  %s13328_s21 = sld [smem:[#allocation25_spill]] }
0x115f   : > { %s13329_s12 = sld [smem:[#allocation32_spill]] }
0x1164   : > { %p10930_p10 = scmp.ge.s32.totalorder %s13327_s11, 2  ;;  %s9683_s24 = sand.u32 1, %s13328_s21  }
0x1165   : > { %p13330_p2 = scmp.ne.s32.totalorder %s13329_s12, 0  ;;  %s9684_s6 = scalar_lea.sflag [#allocation5], %s9683_s24 }
0x1167   : > { %p10909_p3 = pnand %p10930_p10, %p13330_p2 }
0x1169   : > { %11410 = dma.done.wait (!%p10909_p3), %s9684_s6, 256  }
0x116a   : > { %11412 = vsyncadd (!%p10909_p3), %s9684_s6, 4294967040  ;;  %s13331_s22 = sld [smem:[#allocation29_spill]]  ;;  %s13332_s20 = sld [smem:[#allocation26_spill]] }
0x116b   : > { %s13333_s21 = sld [smem:[#allocation27_spill]]  ;;  %s13334_s1 = sld [smem:[#allocation30_spill]] }
0x1170   : > { %p36_p4 = scmp.ge.s32.totalorder %s13331_s22, 4  }
0x1172   :  { %38 = sbr.rel (!%p36_p4) target bundleno = 18 (0x12), region = 202 }
0x1179   :  { %9689 = vsyncpa [#allocation4], 1 }
0x117a   :  { %9691 = vsyncpa [#allocation4 + $0x1], 1 }
0x117b   :  { %9692 = vsyncpa [#allocation7], 1 }
0x117c   :  { %9693 = vsyncpa [#allocation10], 1 }
0x117d   :  { %9694 = vsyncpa [#allocation13], 1 }
0x117e   :  { %9695 = vsyncpa [#allocation16], 1 }
0x117f   :  { %9696 = vsyncpa [#allocation5], 1 }
0x1180   :  { %9698 = vsyncpa [#allocation5 + $0x1], 1 }

</bundles_post_ra>
